<compile_context>
chip_gen: v6e
topology: v6e:2x2x1
jax: 0.10.0
libtpu: 0.0.40
codegen_flags: <defaults>
</compile_context>

<pallas_src>
import functools

import numpy as np
import jax
import jax.numpy as jnp
from jax import lax
from jax.experimental import pallas as pl
from jax.experimental.pallas import tpu as pltpu

# ---------------- configuration (small, consistent with the module) ----------------
D_MODEL = 16
EXPAND = 2.0
D_INNER = int(EXPAND * D_MODEL)      # 32  (= d_spn)
D_STATE = 16
N_DIR = 4
C_GROUP = 12
CHUNK = 8                            # items_each_chunk
LN_EPS = 1e-5
GRN_EPS = 1e-6
GATE_EPS = 1e-8
VMEM_LIMIT = 32 * 1024 * 1024


# ---------------- fused Pallas kernel ----------------
def _shift_rows(a, s):
    """out[n] = a[n + s], zero-filled outside [0, N). Static s, sublane shift."""
    if s == 0:
        return a
    n, c = a.shape
    z = jnp.zeros((abs(s), c), a.dtype)
    if s > 0:
        return jnp.concatenate([a[s:], z], axis=0)
    return jnp.concatenate([z, a[:n + s]], axis=0)


def _gspn_kernel(x_ref, xT_ref, win_ref, wdw_ref, bdw_ref, weff_ref, s_ref,
                 lnw_ref, lnb_ref, gg_ref, gb_ref, wout_ref,
                 o_ref,
                 xc0_scr, xc1_scr, z_scr, out_scr,
                 *, H, W, chunk):
    # Per-batch fused GSPN forward.  Row layout everywhere: n = w*H + h.
    #   x_ref / xT_ref : (N, d_model)   input rows, original / spatially transposed
    #   weff_ref       : (Dn, 6*C4)     x_conv_down folded into [Gl|Gm|Gr|L|U|D]
    #   s_ref          : (C4, Dn)       block-diagonal m_conv matrix (direction sum)
    #   o_ref          : (N, d_model)   output rows
    N = H * W
    Dn = win_ref.shape[1]
    C4 = s_ref.shape[0]                      # 4 * Dn = 128

    # ---- depthwise-conv border masks (hoisted, shared by both orientations) ----
    h_col = lax.broadcasted_iota(jnp.int32, (N, 1), 0) % H
    not_top = (h_col > 0).astype(jnp.float32)
    not_bot = (h_col < (H - 1)).astype(jnp.float32)

    def dwconv(xp, transpose_taps):
        # tap (kh, kw) reads row n + (kw-1)*H + (kh-1); minor-border rows masked,
        # rows outside [0, N) zero-filled by the shift (corner cases covered by masks).
        # For the transposed image the same routine with kh/kw-swapped weights gives
        # exactly the transposed conv output (H == W).
        acc = jnp.zeros((N, Dn), jnp.float32)
        for kh in range(3):
            for kw in range(3):
                widx = (kw * 3 + kh) if transpose_taps else (kh * 3 + kw)
                tap = _shift_rows(xp, (kw - 1) * H + (kh - 1))
                if kh == 0:
                    tap = tap * not_top
                elif kh == 2:
                    tap = tap * not_bot
                # 9 distinct per-channel weights -> one (1,Dn) broadcast per tap is inherent
                acc = acc + tap * wdw_ref[widx:widx + 1, :]
        return acc + bdw_ref[...]

    # ---- stem: in_proj (1x1) + depthwise 3x3, both image orientations ----
    win = win_ref[...]
    xc0 = dwconv(jnp.dot(x_ref[...], win, preferred_element_type=jnp.float32), False)
    xc1 = dwconv(jnp.dot(xT_ref[...], win, preferred_element_type=jnp.float32), True)
    xc0_scr[...] = xc0
    xc1_scr[...] = xc1

    # ---- fused projections (one MXU matmul) + gate normalisation, kept in VMEM ----
    z = jnp.dot(xc0, weff_ref[...], preferred_element_type=jnp.float32)   # (N, 6*C4)
    gl = jax.nn.sigmoid(z[:, 0:C4])
    gm = jax.nn.sigmoid(z[:, C4:2 * C4])
    gr = jax.nn.sigmoid(z[:, 2 * C4:3 * C4])
    inv = 1.0 / (gl + gm + gr + GATE_EPS)          # normalize_w, hoisted out of the scan
    z_scr[:, 0:C4] = gl * inv
    z_scr[:, C4:2 * C4] = gm * inv
    z_scr[:, 2 * C4:3 * C4] = gr * inv
    z_scr[:, 3 * C4:6 * C4] = z[:, 3 * C4:6 * C4]  # L | U | D

    # ---- left->right column scan, hidden state reset every `chunk` columns ----
    # h_t = L_t*x_t + gl_t*h_{t-1}[i-1] + gm_t*h_{t-1}[i] + gr_t*h_{t-1}[i+1]
    # out_t = h_t*U_t + x_t*D_t
    # 4-direction input assembled per column from the two conv orientations:
    #   [ xc0[t] | xc1[t] | xc0[W-1-t] | xc1[W-1-t] ]  ==  [x, x^T, flip_W(x), flip_W(x^T)]
    zrow = jnp.zeros((1, C4), jnp.float32)
    prev = jnp.zeros((H, C4), jnp.float32)
    for t in range(W):                              # static unroll (W = 16)
        if t % chunk == 0:
            prev = jnp.zeros((H, C4), jnp.float32)
        r0 = t * H
        rf = (W - 1 - t) * H
        xs_t = jnp.concatenate([xc0_scr[r0:r0 + H, :], xc1_scr[r0:r0 + H, :],
                                xc0_scr[rf:rf + H, :], xc1_scr[rf:rf + H, :]], axis=-1)
        gl_t = z_scr[r0:r0 + H, 0:C4]
        gm_t = z_scr[r0:r0 + H, C4:2 * C4]
        gr_t = z_scr[r0:r0 + H, 2 * C4:3 * C4]
        l_t = z_scr[r0:r0 + H, 3 * C4:4 * C4]
        u_t = z_scr[r0:r0 + H, 4 * C4:5 * C4]
        d_t = z_scr[r0:r0 + H, 5 * C4:6 * C4]
        # proven-correct sublane shifts of the hidden state (pltpu.roll variant skipped:
        # the scan is VMEM-resident and VPU-light, the concat cost is negligible here)
        up = jnp.concatenate([zrow, prev[:-1, :]], axis=0)      # h_{t-1}[i-1]
        dn = jnp.concatenate([prev[1:, :], zrow], axis=0)       # h_{t-1}[i+1]
        h = l_t * xs_t + gl_t * up + gm_t * prev + gr_t * dn
        out_scr[r0:r0 + H, :] = h * u_t + xs_t * d_t
        prev = h

    # ---- epilogue: m_conv direction sum, LayerNorm2d, GRN, out_proj ----
    y = jnp.dot(out_scr[...], s_ref[...], preferred_element_type=jnp.float32)   # (N, Dn)
    # LayerNorm2d: normalise over channels per spatial position
    mu = jnp.mean(y, axis=-1, keepdims=True)
    yc = y - mu
    var = jnp.mean(yc * yc, axis=-1, keepdims=True)
    yn = yc * lax.rsqrt(var + LN_EPS)
    yn = yn * lnw_ref[...] + lnb_ref[...]
    # GRN (channels-first): L2 over spatial per channel, mean over channels
    gx = jnp.sqrt(jnp.sum(yn * yn, axis=0, keepdims=True))                       # (1, Dn)
    nx = gx / (jnp.mean(gx, axis=-1, keepdims=True) + GRN_EPS)
    yg = gg_ref[...] * (yn * nx) + gb_ref[...] + yn
    # out_proj (Linear2d, no bias)
    o_ref[...] = jnp.dot(yg, wout_ref[...], preferred_element_type=jnp.float32)  # (N, dm)


# ---------------- forward (Pallas-backed) ----------------
def gspn_forward(x_nchw, p):
    B, dm, H, W = x_nchw.shape
    Dn = D_INNER
    C4 = N_DIR * Dn
    N = W * H
    assert H == W, "torch code stacks x and x.transpose(2,3) -> requires H == W"
    assert W % CHUNK == 0

    # NCHW -> scan-layout rows (n = w*H + h), original and spatially transposed
    x_rows = jnp.transpose(x_nchw, (0, 3, 2, 1)).reshape(B, N, dm)   # row n -> x[:, h, w]
    xT_rows = jnp.transpose(x_nchw, (0, 2, 3, 1)).reshape(B, N, dm)  # row n -> x[:, w, h]

    # fold x_conv_down into all up-projections: one (Dn, 6*C4) effective weight
    w_cat = jnp.concatenate([p["w_w"], p["w_l"], p["w_u"], p["w_d"]], axis=1)   # (d_state, 6*C4)
    w_eff = jnp.dot(p["w_down"], w_cat)                                         # (Dn, 6*C4)
    # m_conv as a block-diagonal (C4, Dn) matrix: S[d*Dn + c, c] = m[d]
    eye = jnp.eye(Dn, dtype=jnp.float32)
    s_mat = jnp.concatenate([p["w_m"][d] * eye for d in range(N_DIR)], axis=0)  # (C4, Dn)

    kernel = functools.partial(_gspn_kernel, H=H, W=W, chunk=CHUNK)
    out_rows = pl.pallas_call(
        kernel,
        out_shape=jax.ShapeDtypeStruct((B, N, dm), jnp.float32),
        grid=(B,),
        in_specs=[pl.BlockSpec((None, N, dm), lambda b: (b, 0, 0)),      # x rows
                  pl.BlockSpec((None, N, dm), lambda b: (b, 0, 0)),      # x^T rows
                  pl.BlockSpec((dm, Dn), lambda b: (0, 0)),              # in_proj
                  pl.BlockSpec((9, Dn), lambda b: (0, 0)),               # dw 3x3 weights
                  pl.BlockSpec((1, Dn), lambda b: (0, 0)),               # dw bias
                  pl.BlockSpec((Dn, 6 * C4), lambda b: (0, 0)),          # fused projections
                  pl.BlockSpec((C4, Dn), lambda b: (0, 0)),              # m_conv (S)
                  pl.BlockSpec((1, Dn), lambda b: (0, 0)),               # ln w
                  pl.BlockSpec((1, Dn), lambda b: (0, 0)),               # ln b
                  pl.BlockSpec((1, Dn), lambda b: (0, 0)),               # grn gamma
                  pl.BlockSpec((1, Dn), lambda b: (0, 0)),               # grn beta
                  pl.BlockSpec((Dn, dm), lambda b: (0, 0))],             # out_proj
        out_specs=pl.BlockSpec((None, N, dm), lambda b: (b, 0, 0)),
        scratch_shapes=[pltpu.VMEM((N, Dn), jnp.float32),                # xc (orientation 0)
                        pltpu.VMEM((N, Dn), jnp.float32),                # xc (orientation 1)
                        pltpu.VMEM((N, 6 * C4), jnp.float32),            # gates / L / U / D
                        pltpu.VMEM((N, C4), jnp.float32)],               # scan output
        compiler_params=pltpu.CompilerParams(
            dimension_semantics=("parallel",),                           # v7x: 1 batch / core
            vmem_limit_bytes=VMEM_LIMIT),
    )(x_rows, xT_rows, p["w_in"], p["w_dw"], p["b_dw"], w_eff, s_mat,
      p["ln_w"], p["ln_b"], p["grn_g"], p["grn_b"], p["w_out"])

    # rows (B, W*H, dm) with n = w*H + h  ->  NCHW (B, dm, H, W)
    return jnp.transpose(out_rows.reshape(B, W, H, dm), (0, 3, 2, 1))


# ---------------- pure-JAX reference (unfused math, independent of the kernel) ----
def reference_forward(x_nchw, p):
    B, dm, H, W = x_nchw.shape
    Dn = D_INNER
    C4 = N_DIR * Dn
    x = jnp.einsum("bchw,cd->bdhw", x_nchw, p["w_in"])
    xp = jnp.pad(x, ((0, 0), (0, 0), (1, 1), (1, 1)))
    acc = jnp.zeros_like(x)
    for kh in range(3):
        for kw in range(3):
            acc = acc + xp[:, :, kh:kh + H, kw:kw + W] * p["w_dw"][kh * 3 + kw][None, :, None, None]
    x = acc + p["b_dw"][0][None, :, None, None]
    x_proxy = jnp.einsum("bchw,cs->bshw", x, p["w_down"])
    ws = jnp.einsum("bshw,sc->bchw", x_proxy, p["w_w"])
    Ls = jnp.einsum("bshw,sc->bchw", x_proxy, p["w_l"])
    Us = jnp.einsum("bshw,sc->bchw", x_proxy, p["w_u"])
    Ds = jnp.einsum("bshw,sc->bchw", x_proxy, p["w_d"])
    x_wh = jnp.swapaxes(x, 2, 3)
    xs2 = jnp.stack([x, x_wh], 1)
    xs = jnp.concatenate([xs2, jnp.flip(xs2, -1)], 1).reshape(B, C4, H, W)
    Gl, Gm, Gr = ws[:, :C4], ws[:, C4:2 * C4], ws[:, 2 * C4:]
    gl, gm, gr = jax.nn.sigmoid(Gl), jax.nn.sigmoid(Gm), jax.nn.sigmoid(Gr)
    s = gl + gm + gr + GATE_EPS
    gl, gm, gr = gl / s, gm / s, gr / s
    prev = jnp.zeros((B, C4, H), jnp.float32)
    hs = []
    for t in range(W):
        if t % CHUNK == 0:
            prev = jnp.zeros_like(prev)
        up = jnp.concatenate([jnp.zeros((B, C4, 1), jnp.float32), prev[:, :, :-1]], axis=-1)
        dn = jnp.concatenate([prev[:, :, 1:], jnp.zeros((B, C4, 1), jnp.float32)], axis=-1)
        h = Ls[..., t] * xs[..., t] + gl[..., t] * up + gm[..., t] * prev + gr[..., t] * dn
        hs.append(h)
        prev = h
    hall = jnp.stack(hs, axis=-1)
    out = hall * Us + xs * Ds
    out = out.reshape(B, N_DIR, Dn, H, W)
    y = jnp.einsum("bkdhw,k->bdhw", out, p["w_m"])
    mu = jnp.mean(y, axis=1, keepdims=True)
    var = jnp.mean(jnp.square(y - mu), axis=1, keepdims=True)
    yn = (y - mu) / jnp.sqrt(var + LN_EPS)
    yn = yn * p["ln_w"][0][None, :, None, None] + p["ln_b"][0][None, :, None, None]
    gx = jnp.sqrt(jnp.sum(jnp.square(yn), axis=(2, 3), keepdims=True))
    nx = gx / (jnp.mean(gx, axis=1, keepdims=True) + GRN_EPS)
    yg = p["grn_g"][0][None, :, None, None] * (yn * nx) + p["grn_b"][0][None, :, None, None] + yn
    return jnp.einsum("bchw,cd->bdhw", yg, p["w_out"])


# ---------------- deterministic parameter init ----------------
def init_params(key):
    ks = jax.random.split(key, 12)

    def w(k, shape, fan_in):
        return (jax.random.normal(k, shape, jnp.float32) / np.sqrt(fan_in)).astype(jnp.float32)

    p = {}
    p["w_in"] = w(ks[0], (D_MODEL, D_INNER), D_MODEL)              # in_proj (no bias)
    p["w_dw"] = w(ks[1], (9, D_INNER), 9)                          # depthwise 3x3 (c,1,3,3) flattened
    p["b_dw"] = 0.1 * jax.random.normal(ks[2], (1, D_INNER), jnp.float32)
    p["w_down"] = w(ks[3], (D_INNER, D_STATE), D_INNER)            # x_conv_down
    p["w_w"] = w(ks[4], (D_STATE, C_GROUP * D_INNER), D_STATE)     # w_conv_up
    p["w_l"] = w(ks[5], (D_STATE, N_DIR * D_INNER), D_STATE)       # l_conv_up
    p["w_u"] = w(ks[6], (D_STATE, N_DIR * D_INNER), D_STATE)       # u_conv_up
    p["w_d"] = w(ks[7], (D_STATE, N_DIR * D_INNER), D_STATE)       # d_conv
    p["w_m"] = w(ks[8], (N_DIR,), N_DIR)                           # m_conv (4 -> 1)
    p["ln_w"] = jnp.ones((1, D_INNER), jnp.float32)                # out_norm
    p["ln_b"] = jnp.zeros((1, D_INNER), jnp.float32)
    p["grn_g"] = 0.1 * jax.random.normal(ks[9], (1, D_INNER), jnp.float32)
    p["grn_b"] = 0.1 * jax.random.normal(ks[10], (1, D_INNER), jnp.float32)
    p["w_out"] = w(ks[11], (D_INNER, D_MODEL), D_INNER)            # out_proj (no bias)
    return p


if __name__ == "__main__":
    key = jax.random.PRNGKey(0)
    kx, kp = jax.random.split(key)
    B, H, W = 2, 16, 16                     # H must equal W (torch code stacks x and x^T)
    x = jax.random.normal(kx, (B, D_MODEL, H, W), jnp.float32)
    params = init_params(kp)

    out = jax.jit(gspn_forward)(x, params)
    out = jax.block_until_ready(out)
    assert out.shape == (B, D_MODEL, H, W)
    assert bool(jnp.all(jnp.isfinite(out)))

    ref = reference_forward(x, params)
    np.testing.assert_allclose(np.asarray(out), np.asarray(ref), rtol=2e-3, atol=2e-3)
    print("KERNEL_OK")
</pallas_src>

<mosaic_0001>
module attributes {stable_mosaic.version = 11 : i64} {
  func.func @_gspn_kernel(%arg0: i32, %arg1: memref<1x256x16xf32, #tpu.memory_space<vmem>>, %arg2: memref<1x256x16xf32, #tpu.memory_space<vmem>>, %arg3: memref<16x32xf32, #tpu.memory_space<vmem>>, %arg4: memref<9x32xf32, #tpu.memory_space<vmem>>, %arg5: memref<1x32xf32, #tpu.memory_space<vmem>>, %arg6: memref<32x768xf32, #tpu.memory_space<vmem>>, %arg7: memref<128x32xf32, #tpu.memory_space<vmem>>, %arg8: memref<1x32xf32, #tpu.memory_space<vmem>>, %arg9: memref<1x32xf32, #tpu.memory_space<vmem>>, %arg10: memref<1x32xf32, #tpu.memory_space<vmem>>, %arg11: memref<1x32xf32, #tpu.memory_space<vmem>>, %arg12: memref<32x16xf32, #tpu.memory_space<vmem>>, %arg13: memref<1x256x16xf32, #tpu.memory_space<vmem>>, %arg14: memref<256x32xf32, #tpu.memory_space<vmem>>, %arg15: memref<256x32xf32, #tpu.memory_space<vmem>>, %arg16: memref<256x768xf32, #tpu.memory_space<vmem>>, %arg17: memref<256x128xf32, #tpu.memory_space<vmem>>) attributes {dimension_semantics = [#tpu.dimension_semantics<parallel>], iteration_bounds = array<i64: 2>, scalar_prefetch = 0 : i64, scratch_operands = 4 : i64, tpu.core_type = #tpu.core_type<tc>, window_params = [{transform_indices = @transform_0, window_bounds = array<i64: 1, 256, 16>}, {transform_indices = @transform_1, window_bounds = array<i64: 1, 256, 16>}, {pipeline_mode = #tpu.pipeline_mode<synchronous>, transform_indices = @transform_2, window_bounds = array<i64: 16, 32>}, {pipeline_mode = #tpu.pipeline_mode<synchronous>, transform_indices = @transform_3, window_bounds = array<i64: 9, 32>}, {pipeline_mode = #tpu.pipeline_mode<synchronous>, transform_indices = @transform_4, window_bounds = array<i64: 1, 32>}, {pipeline_mode = #tpu.pipeline_mode<synchronous>, transform_indices = @transform_5, window_bounds = array<i64: 32, 768>}, {pipeline_mode = #tpu.pipeline_mode<synchronous>, transform_indices = @transform_6, window_bounds = array<i64: 128, 32>}, {pipeline_mode = #tpu.pipeline_mode<synchronous>, transform_indices = @transform_7, window_bounds = array<i64: 1, 32>}, {pipeline_mode = #tpu.pipeline_mode<synchronous>, transform_indices = @transform_8, window_bounds = array<i64: 1, 32>}, {pipeline_mode = #tpu.pipeline_mode<synchronous>, transform_indices = @transform_9, window_bounds = array<i64: 1, 32>}, {pipeline_mode = #tpu.pipeline_mode<synchronous>, transform_indices = @transform_10, window_bounds = array<i64: 1, 32>}, {pipeline_mode = #tpu.pipeline_mode<synchronous>, transform_indices = @transform_11, window_bounds = array<i64: 32, 16>}, {transform_indices = @transform_12, window_bounds = array<i64: 1, 256, 16>}]} {
    %0 = tpu.iota {dimensions = array<i32: 0>} : vector<256x1xi32>
    %c16_i32 = arith.constant 16 : i32
    %c0_i32 = arith.constant 0 : i32
    %1 = arith.cmpi eq, %c16_i32, %c0_i32 : i32
    %c1_i32 = arith.constant 1 : i32
    %2 = arith.select %1, %c1_i32, %c16_i32 : i32
    %3 = vector.broadcast %2 : i32 to vector<256x1xi32>
    %4 = arith.remsi %0, %3 : vector<256x1xi32>
    %c0_i32_0 = arith.constant 0 : i32
    %5 = vector.broadcast %c0_i32_0 : i32 to vector<256x1xi32>
    %6 = arith.cmpi ne, %4, %5 : vector<256x1xi32>
    %c0_i32_1 = arith.constant 0 : i32
    %7 = vector.broadcast %c0_i32_1 : i32 to vector<256x1xi32>
    %8 = arith.cmpi slt, %4, %7 : vector<256x1xi32>
    %c0_i32_2 = arith.constant 0 : i32
    %9 = arith.cmpi slt, %2, %c0_i32_2 : i32
    %10 = vector.broadcast %9 : i1 to vector<256x1xi1>
    %11 = vector.broadcast %10 : vector<256x1xi1> to vector<256x1xi1>
    %12 = arith.xori %8, %11 : vector<256x1xi1>
    %13 = arith.andi %12, %6 : vector<256x1xi1>
    %14 = vector.broadcast %2 : i32 to vector<256x1xi32>
    %15 = arith.addi %4, %14 : vector<256x1xi32>
    %16 = arith.select %13, %15, %4 : vector<256x1xi1>, vector<256x1xi32>
    %c0_i32_3 = arith.constant 0 : i32
    %17 = vector.broadcast %c0_i32_3 : i32 to vector<256x1xi32>
    %18 = arith.cmpi sgt, %16, %17 : vector<256x1xi32>
    %19 = arith.extui %18 : vector<256x1xi1> to vector<256x1xi32>
    %20 = arith.sitofp %19 : vector<256x1xi32> to vector<256x1xf32>
    %c15_i32 = arith.constant 15 : i32
    %21 = vector.broadcast %c15_i32 : i32 to vector<256x1xi32>
    %22 = arith.cmpi slt, %16, %21 : vector<256x1xi32>
    %23 = arith.extui %22 : vector<256x1xi1> to vector<256x1xi32>
    %24 = arith.sitofp %23 : vector<256x1xi32> to vector<256x1xf32>
    %c0 = arith.constant 0 : index
    %c0_4 = arith.constant 0 : index
    %25 = vector.load %arg3[%c0, %c0_4] : memref<16x32xf32, #tpu.memory_space<vmem>>, vector<16x32xf32>
    %c0_5 = arith.constant 0 : index
    %c0_6 = arith.constant 0 : index
    %c0_7 = arith.constant 0 : index
    %26 = vector.load %arg1[%c0_5, %c0_6, %c0_7] : memref<1x256x16xf32, #tpu.memory_space<vmem>>, vector<1x256x16xf32>
    %27 = vector.shape_cast %26 : vector<1x256x16xf32> to vector<256x16xf32>
    %cst = arith.constant dense<0.000000e+00> : vector<256x32xf32>
    %28 = tpu.matmul %27, %25, %cst {dimension_numbers = #tpu.dot_dimension_numbers<[1], [0], [0], [1], [0, 0, 1, 1], [], []>} : vector<256x16xf32>, vector<16x32xf32>, vector<256x32xf32> -> vector<256x32xf32>
    %cst_8 = arith.constant 0.000000e+00 : f32
    %29 = vector.broadcast %cst_8 : f32 to vector<256x32xf32>
    %cst_9 = arith.constant 0.000000e+00 : f32
    %30 = vector.broadcast %cst_9 : f32 to vector<17x32xf32>
    %31 = vector.extract_strided_slice %28 {offsets = [0, 0], sizes = [239, 32], strides = [1, 1]} : vector<256x32xf32> to vector<239x32xf32>
    %32 = tpu.concatenate %30, %31 in 0 : vector<17x32xf32>, vector<239x32xf32> -> vector<256x32xf32>
    %33 = vector.broadcast %20 : vector<256x1xf32> to vector<256x32xf32>
    %34 = arith.mulf %32, %33 : vector<256x32xf32>
    %c0_10 = arith.constant 0 : index
    %c0_11 = arith.constant 0 : index
    %35 = vector.load %arg4[%c0_10, %c0_11] : memref<9x32xf32, #tpu.memory_space<vmem>>, vector<1x32xf32>
    %36 = vector.broadcast %35 : vector<1x32xf32> to vector<256x32xf32>
    %37 = arith.mulf %34, %36 : vector<256x32xf32>
    %38 = arith.addf %29, %37 : vector<256x32xf32>
    %cst_12 = arith.constant 0.000000e+00 : f32
    %39 = vector.broadcast %cst_12 : f32 to vector<1x32xf32>
    %40 = vector.extract_strided_slice %28 {offsets = [0, 0], sizes = [255, 32], strides = [1, 1]} : vector<256x32xf32> to vector<255x32xf32>
    %41 = tpu.concatenate %39, %40 in 0 : vector<1x32xf32>, vector<255x32xf32> -> vector<256x32xf32>
    %42 = vector.broadcast %20 : vector<256x1xf32> to vector<256x32xf32>
    %43 = arith.mulf %41, %42 : vector<256x32xf32>
    %c1 = arith.constant 1 : index
    %c0_13 = arith.constant 0 : index
    %44 = vector.load %arg4[%c1, %c0_13] : memref<9x32xf32, #tpu.memory_space<vmem>>, vector<1x32xf32>
    %45 = vector.broadcast %44 : vector<1x32xf32> to vector<256x32xf32>
    %46 = arith.mulf %43, %45 : vector<256x32xf32>
    %47 = arith.addf %38, %46 : vector<256x32xf32>
    %cst_14 = arith.constant 0.000000e+00 : f32
    %48 = vector.broadcast %cst_14 : f32 to vector<15x32xf32>
    %49 = vector.extract_strided_slice %28 {offsets = [15, 0], sizes = [241, 32], strides = [1, 1]} : vector<256x32xf32> to vector<241x32xf32>
    %50 = tpu.concatenate %49, %48 in 0 : vector<241x32xf32>, vector<15x32xf32> -> vector<256x32xf32>
    %51 = vector.broadcast %20 : vector<256x1xf32> to vector<256x32xf32>
    %52 = arith.mulf %50, %51 : vector<256x32xf32>
    %c2 = arith.constant 2 : index
    %c0_15 = arith.constant 0 : index
    %53 = vector.load %arg4[%c2, %c0_15] : memref<9x32xf32, #tpu.memory_space<vmem>>, vector<1x32xf32>
    %54 = vector.broadcast %53 : vector<1x32xf32> to vector<256x32xf32>
    %55 = arith.mulf %52, %54 : vector<256x32xf32>
    %56 = arith.addf %47, %55 : vector<256x32xf32>
    %cst_16 = arith.constant 0.000000e+00 : f32
    %57 = vector.broadcast %cst_16 : f32 to vector<16x32xf32>
    %58 = vector.extract_strided_slice %28 {offsets = [0, 0], sizes = [240, 32], strides = [1, 1]} : vector<256x32xf32> to vector<240x32xf32>
    %59 = tpu.concatenate %57, %58 in 0 : vector<16x32xf32>, vector<240x32xf32> -> vector<256x32xf32>
    %c3 = arith.constant 3 : index
    %c0_17 = arith.constant 0 : index
    %60 = vector.load %arg4[%c3, %c0_17] : memref<9x32xf32, #tpu.memory_space<vmem>>, vector<1x32xf32>
    %61 = vector.broadcast %60 : vector<1x32xf32> to vector<256x32xf32>
    %62 = arith.mulf %59, %61 : vector<256x32xf32>
    %63 = arith.addf %56, %62 : vector<256x32xf32>
    %c4 = arith.constant 4 : index
    %c0_18 = arith.constant 0 : index
    %64 = vector.load %arg4[%c4, %c0_18] : memref<9x32xf32, #tpu.memory_space<vmem>>, vector<1x32xf32>
    %65 = vector.broadcast %64 : vector<1x32xf32> to vector<256x32xf32>
    %66 = arith.mulf %28, %65 : vector<256x32xf32>
    %67 = arith.addf %63, %66 : vector<256x32xf32>
    %cst_19 = arith.constant 0.000000e+00 : f32
    %68 = vector.broadcast %cst_19 : f32 to vector<16x32xf32>
    %69 = vector.extract_strided_slice %28 {offsets = [16, 0], sizes = [240, 32], strides = [1, 1]} : vector<256x32xf32> to vector<240x32xf32>
    %70 = tpu.concatenate %69, %68 in 0 : vector<240x32xf32>, vector<16x32xf32> -> vector<256x32xf32>
    %c5 = arith.constant 5 : index
    %c0_20 = arith.constant 0 : index
    %71 = vector.load %arg4[%c5, %c0_20] : memref<9x32xf32, #tpu.memory_space<vmem>>, vector<1x32xf32>
    %72 = vector.broadcast %71 : vector<1x32xf32> to vector<256x32xf32>
    %73 = arith.mulf %70, %72 : vector<256x32xf32>
    %74 = arith.addf %67, %73 : vector<256x32xf32>
    %cst_21 = arith.constant 0.000000e+00 : f32
    %75 = vector.broadcast %cst_21 : f32 to vector<15x32xf32>
    %76 = vector.extract_strided_slice %28 {offsets = [0, 0], sizes = [241, 32], strides = [1, 1]} : vector<256x32xf32> to vector<241x32xf32>
    %77 = tpu.concatenate %75, %76 in 0 : vector<15x32xf32>, vector<241x32xf32> -> vector<256x32xf32>
    %78 = vector.broadcast %24 : vector<256x1xf32> to vector<256x32xf32>
    %79 = arith.mulf %77, %78 : vector<256x32xf32>
    %c6 = arith.constant 6 : index
    %c0_22 = arith.constant 0 : index
    %80 = vector.load %arg4[%c6, %c0_22] : memref<9x32xf32, #tpu.memory_space<vmem>>, vector<1x32xf32>
    %81 = vector.broadcast %80 : vector<1x32xf32> to vector<256x32xf32>
    %82 = arith.mulf %79, %81 : vector<256x32xf32>
    %83 = arith.addf %74, %82 : vector<256x32xf32>
    %cst_23 = arith.constant 0.000000e+00 : f32
    %84 = vector.broadcast %cst_23 : f32 to vector<1x32xf32>
    %85 = vector.extract_strided_slice %28 {offsets = [1, 0], sizes = [255, 32], strides = [1, 1]} : vector<256x32xf32> to vector<255x32xf32>
    %86 = tpu.concatenate %85, %84 in 0 : vector<255x32xf32>, vector<1x32xf32> -> vector<256x32xf32>
    %87 = vector.broadcast %24 : vector<256x1xf32> to vector<256x32xf32>
    %88 = arith.mulf %86, %87 : vector<256x32xf32>
    %c7 = arith.constant 7 : index
    %c0_24 = arith.constant 0 : index
    %89 = vector.load %arg4[%c7, %c0_24] : memref<9x32xf32, #tpu.memory_space<vmem>>, vector<1x32xf32>
    %90 = vector.broadcast %89 : vector<1x32xf32> to vector<256x32xf32>
    %91 = arith.mulf %88, %90 : vector<256x32xf32>
    %92 = arith.addf %83, %91 : vector<256x32xf32>
    %cst_25 = arith.constant 0.000000e+00 : f32
    %93 = vector.broadcast %cst_25 : f32 to vector<17x32xf32>
    %94 = vector.extract_strided_slice %28 {offsets = [17, 0], sizes = [239, 32], strides = [1, 1]} : vector<256x32xf32> to vector<239x32xf32>
    %95 = tpu.concatenate %94, %93 in 0 : vector<239x32xf32>, vector<17x32xf32> -> vector<256x32xf32>
    %96 = vector.broadcast %24 : vector<256x1xf32> to vector<256x32xf32>
    %97 = arith.mulf %95, %96 : vector<256x32xf32>
    %c8 = arith.constant 8 : index
    %c0_26 = arith.constant 0 : index
    %98 = vector.load %arg4[%c8, %c0_26] : memref<9x32xf32, #tpu.memory_space<vmem>>, vector<1x32xf32>
    %99 = vector.broadcast %98 : vector<1x32xf32> to vector<256x32xf32>
    %100 = arith.mulf %97, %99 : vector<256x32xf32>
    %101 = arith.addf %92, %100 : vector<256x32xf32>
    %c0_27 = arith.constant 0 : index
    %c0_28 = arith.constant 0 : index
    %102 = vector.load %arg5[%c0_27, %c0_28] : memref<1x32xf32, #tpu.memory_space<vmem>>, vector<1x32xf32>
    %103 = vector.broadcast %102 : vector<1x32xf32> to vector<256x32xf32>
    %104 = arith.addf %101, %103 : vector<256x32xf32>
    %c0_29 = arith.constant 0 : index
    %c0_30 = arith.constant 0 : index
    %c0_31 = arith.constant 0 : index
    %105 = vector.load %arg2[%c0_29, %c0_30, %c0_31] : memref<1x256x16xf32, #tpu.memory_space<vmem>>, vector<1x256x16xf32>
    %106 = vector.shape_cast %105 : vector<1x256x16xf32> to vector<256x16xf32>
    %cst_32 = arith.constant dense<0.000000e+00> : vector<256x32xf32>
    %107 = tpu.matmul %106, %25, %cst_32 {dimension_numbers = #tpu.dot_dimension_numbers<[1], [0], [0], [1], [0, 0, 1, 1], [], []>} : vector<256x16xf32>, vector<16x32xf32>, vector<256x32xf32> -> vector<256x32xf32>
    %cst_33 = arith.constant 0.000000e+00 : f32
    %108 = vector.broadcast %cst_33 : f32 to vector<256x32xf32>
    %cst_34 = arith.constant 0.000000e+00 : f32
    %109 = vector.broadcast %cst_34 : f32 to vector<17x32xf32>
    %110 = vector.extract_strided_slice %107 {offsets = [0, 0], sizes = [239, 32], strides = [1, 1]} : vector<256x32xf32> to vector<239x32xf32>
    %111 = tpu.concatenate %109, %110 in 0 : vector<17x32xf32>, vector<239x32xf32> -> vector<256x32xf32>
    %112 = vector.broadcast %20 : vector<256x1xf32> to vector<256x32xf32>
    %113 = arith.mulf %111, %112 : vector<256x32xf32>
    %c0_35 = arith.constant 0 : index
    %c0_36 = arith.constant 0 : index
    %114 = vector.load %arg4[%c0_35, %c0_36] : memref<9x32xf32, #tpu.memory_space<vmem>>, vector<1x32xf32>
    %115 = vector.broadcast %114 : vector<1x32xf32> to vector<256x32xf32>
    %116 = arith.mulf %113, %115 : vector<256x32xf32>
    %117 = arith.addf %108, %116 : vector<256x32xf32>
    %cst_37 = arith.constant 0.000000e+00 : f32
    %118 = vector.broadcast %cst_37 : f32 to vector<1x32xf32>
    %119 = vector.extract_strided_slice %107 {offsets = [0, 0], sizes = [255, 32], strides = [1, 1]} : vector<256x32xf32> to vector<255x32xf32>
    %120 = tpu.concatenate %118, %119 in 0 : vector<1x32xf32>, vector<255x32xf32> -> vector<256x32xf32>
    %121 = vector.broadcast %20 : vector<256x1xf32> to vector<256x32xf32>
    %122 = arith.mulf %120, %121 : vector<256x32xf32>
    %c3_38 = arith.constant 3 : index
    %c0_39 = arith.constant 0 : index
    %123 = vector.load %arg4[%c3_38, %c0_39] : memref<9x32xf32, #tpu.memory_space<vmem>>, vector<1x32xf32>
    %124 = vector.broadcast %123 : vector<1x32xf32> to vector<256x32xf32>
    %125 = arith.mulf %122, %124 : vector<256x32xf32>
    %126 = arith.addf %117, %125 : vector<256x32xf32>
    %cst_40 = arith.constant 0.000000e+00 : f32
    %127 = vector.broadcast %cst_40 : f32 to vector<15x32xf32>
    %128 = vector.extract_strided_slice %107 {offsets = [15, 0], sizes = [241, 32], strides = [1, 1]} : vector<256x32xf32> to vector<241x32xf32>
    %129 = tpu.concatenate %128, %127 in 0 : vector<241x32xf32>, vector<15x32xf32> -> vector<256x32xf32>
    %130 = vector.broadcast %20 : vector<256x1xf32> to vector<256x32xf32>
    %131 = arith.mulf %129, %130 : vector<256x32xf32>
    %c6_41 = arith.constant 6 : index
    %c0_42 = arith.constant 0 : index
    %132 = vector.load %arg4[%c6_41, %c0_42] : memref<9x32xf32, #tpu.memory_space<vmem>>, vector<1x32xf32>
    %133 = vector.broadcast %132 : vector<1x32xf32> to vector<256x32xf32>
    %134 = arith.mulf %131, %133 : vector<256x32xf32>
    %135 = arith.addf %126, %134 : vector<256x32xf32>
    %cst_43 = arith.constant 0.000000e+00 : f32
    %136 = vector.broadcast %cst_43 : f32 to vector<16x32xf32>
    %137 = vector.extract_strided_slice %107 {offsets = [0, 0], sizes = [240, 32], strides = [1, 1]} : vector<256x32xf32> to vector<240x32xf32>
    %138 = tpu.concatenate %136, %137 in 0 : vector<16x32xf32>, vector<240x32xf32> -> vector<256x32xf32>
    %c1_44 = arith.constant 1 : index
    %c0_45 = arith.constant 0 : index
    %139 = vector.load %arg4[%c1_44, %c0_45] : memref<9x32xf32, #tpu.memory_space<vmem>>, vector<1x32xf32>
    %140 = vector.broadcast %139 : vector<1x32xf32> to vector<256x32xf32>
    %141 = arith.mulf %138, %140 : vector<256x32xf32>
    %142 = arith.addf %135, %141 : vector<256x32xf32>
    %c4_46 = arith.constant 4 : index
    %c0_47 = arith.constant 0 : index
    %143 = vector.load %arg4[%c4_46, %c0_47] : memref<9x32xf32, #tpu.memory_space<vmem>>, vector<1x32xf32>
    %144 = vector.broadcast %143 : vector<1x32xf32> to vector<256x32xf32>
    %145 = arith.mulf %107, %144 : vector<256x32xf32>
    %146 = arith.addf %142, %145 : vector<256x32xf32>
    %cst_48 = arith.constant 0.000000e+00 : f32
    %147 = vector.broadcast %cst_48 : f32 to vector<16x32xf32>
    %148 = vector.extract_strided_slice %107 {offsets = [16, 0], sizes = [240, 32], strides = [1, 1]} : vector<256x32xf32> to vector<240x32xf32>
    %149 = tpu.concatenate %148, %147 in 0 : vector<240x32xf32>, vector<16x32xf32> -> vector<256x32xf32>
    %c7_49 = arith.constant 7 : index
    %c0_50 = arith.constant 0 : index
    %150 = vector.load %arg4[%c7_49, %c0_50] : memref<9x32xf32, #tpu.memory_space<vmem>>, vector<1x32xf32>
    %151 = vector.broadcast %150 : vector<1x32xf32> to vector<256x32xf32>
    %152 = arith.mulf %149, %151 : vector<256x32xf32>
    %153 = arith.addf %146, %152 : vector<256x32xf32>
    %cst_51 = arith.constant 0.000000e+00 : f32
    %154 = vector.broadcast %cst_51 : f32 to vector<15x32xf32>
    %155 = vector.extract_strided_slice %107 {offsets = [0, 0], sizes = [241, 32], strides = [1, 1]} : vector<256x32xf32> to vector<241x32xf32>
    %156 = tpu.concatenate %154, %155 in 0 : vector<15x32xf32>, vector<241x32xf32> -> vector<256x32xf32>
    %157 = vector.broadcast %24 : vector<256x1xf32> to vector<256x32xf32>
    %158 = arith.mulf %156, %157 : vector<256x32xf32>
    %c2_52 = arith.constant 2 : index
    %c0_53 = arith.constant 0 : index
    %159 = vector.load %arg4[%c2_52, %c0_53] : memref<9x32xf32, #tpu.memory_space<vmem>>, vector<1x32xf32>
    %160 = vector.broadcast %159 : vector<1x32xf32> to vector<256x32xf32>
    %161 = arith.mulf %158, %160 : vector<256x32xf32>
    %162 = arith.addf %153, %161 : vector<256x32xf32>
    %cst_54 = arith.constant 0.000000e+00 : f32
    %163 = vector.broadcast %cst_54 : f32 to vector<1x32xf32>
    %164 = vector.extract_strided_slice %107 {offsets = [1, 0], sizes = [255, 32], strides = [1, 1]} : vector<256x32xf32> to vector<255x32xf32>
    %165 = tpu.concatenate %164, %163 in 0 : vector<255x32xf32>, vector<1x32xf32> -> vector<256x32xf32>
    %166 = vector.broadcast %24 : vector<256x1xf32> to vector<256x32xf32>
    %167 = arith.mulf %165, %166 : vector<256x32xf32>
    %c5_55 = arith.constant 5 : index
    %c0_56 = arith.constant 0 : index
    %168 = vector.load %arg4[%c5_55, %c0_56] : memref<9x32xf32, #tpu.memory_space<vmem>>, vector<1x32xf32>
    %169 = vector.broadcast %168 : vector<1x32xf32> to vector<256x32xf32>
    %170 = arith.mulf %167, %169 : vector<256x32xf32>
    %171 = arith.addf %162, %170 : vector<256x32xf32>
    %cst_57 = arith.constant 0.000000e+00 : f32
    %172 = vector.broadcast %cst_57 : f32 to vector<17x32xf32>
    %173 = vector.extract_strided_slice %107 {offsets = [17, 0], sizes = [239, 32], strides = [1, 1]} : vector<256x32xf32> to vector<239x32xf32>
    %174 = tpu.concatenate %173, %172 in 0 : vector<239x32xf32>, vector<17x32xf32> -> vector<256x32xf32>
    %175 = vector.broadcast %24 : vector<256x1xf32> to vector<256x32xf32>
    %176 = arith.mulf %174, %175 : vector<256x32xf32>
    %c8_58 = arith.constant 8 : index
    %c0_59 = arith.constant 0 : index
    %177 = vector.load %arg4[%c8_58, %c0_59] : memref<9x32xf32, #tpu.memory_space<vmem>>, vector<1x32xf32>
    %178 = vector.broadcast %177 : vector<1x32xf32> to vector<256x32xf32>
    %179 = arith.mulf %176, %178 : vector<256x32xf32>
    %180 = arith.addf %171, %179 : vector<256x32xf32>
    %c0_60 = arith.constant 0 : index
    %c0_61 = arith.constant 0 : index
    %181 = vector.load %arg5[%c0_60, %c0_61] : memref<1x32xf32, #tpu.memory_space<vmem>>, vector<1x32xf32>
    %182 = vector.broadcast %181 : vector<1x32xf32> to vector<256x32xf32>
    %183 = arith.addf %180, %182 : vector<256x32xf32>
    %c0_62 = arith.constant 0 : index
    %c0_63 = arith.constant 0 : index
    %184 = vector.load %arg14[%c0_62, %c0_63] : memref<256x32xf32, #tpu.memory_space<vmem>>, vector<256x32xf32>
    tpu.vector_store %arg14[%c0_62, %c0_63], %104 {strides = array<i32>} : memref<256x32xf32, #tpu.memory_space<vmem>>, vector<256x32xf32>,
    %c0_64 = arith.constant 0 : index
    %c0_65 = arith.constant 0 : index
    %185 = vector.load %arg15[%c0_64, %c0_65] : memref<256x32xf32, #tpu.memory_space<vmem>>, vector<256x32xf32>
    tpu.vector_store %arg15[%c0_64, %c0_65], %183 {strides = array<i32>} : memref<256x32xf32, #tpu.memory_space<vmem>>, vector<256x32xf32>,
    %c0_66 = arith.constant 0 : index
    %c0_67 = arith.constant 0 : index
    %186 = vector.load %arg6[%c0_66, %c0_67] : memref<32x768xf32, #tpu.memory_space<vmem>>, vector<32x768xf32>
    %cst_68 = arith.constant dense<0.000000e+00> : vector<256x768xf32>
    %187 = tpu.matmul %104, %186, %cst_68 {dimension_numbers = #tpu.dot_dimension_numbers<[1], [0], [0], [1], [0, 0, 1, 1], [], []>} : vector<256x32xf32>, vector<32x768xf32>, vector<256x768xf32> -> vector<256x768xf32>
    %188 = vector.extract_strided_slice %187 {offsets = [0, 0], sizes = [256, 128], strides = [1, 1]} : vector<256x768xf32> to vector<256x128xf32>
    %189 = arith.negf %188 : vector<256x128xf32>
    %190 = math.exp %189 : vector<256x128xf32>
    %cst_69 = arith.constant 1.000000e+00 : f32
    %191 = vector.broadcast %cst_69 : f32 to vector<256x128xf32>
    %192 = arith.addf %191, %190 : vector<256x128xf32>
    %193 = arith.divf %191, %192 : vector<256x128xf32>
    %194 = vector.extract_strided_slice %187 {offsets = [0, 128], sizes = [256, 128], strides = [1, 1]} : vector<256x768xf32> to vector<256x128xf32>
    %195 = arith.negf %194 : vector<256x128xf32>
    %196 = math.exp %195 : vector<256x128xf32>
    %cst_70 = arith.constant 1.000000e+00 : f32
    %197 = vector.broadcast %cst_70 : f32 to vector<256x128xf32>
    %198 = arith.addf %197, %196 : vector<256x128xf32>
    %199 = arith.divf %197, %198 : vector<256x128xf32>
    %200 = vector.extract_strided_slice %187 {offsets = [0, 256], sizes = [256, 128], strides = [1, 1]} : vector<256x768xf32> to vector<256x128xf32>
    %201 = arith.negf %200 : vector<256x128xf32>
    %202 = math.exp %201 : vector<256x128xf32>
    %cst_71 = arith.constant 1.000000e+00 : f32
    %203 = vector.broadcast %cst_71 : f32 to vector<256x128xf32>
    %204 = arith.addf %203, %202 : vector<256x128xf32>
    %205 = arith.divf %203, %204 : vector<256x128xf32>
    %206 = arith.addf %193, %199 : vector<256x128xf32>
    %207 = arith.addf %206, %205 : vector<256x128xf32>
    %cst_72 = arith.constant 9.99999993E-9 : f32
    %208 = vector.broadcast %cst_72 : f32 to vector<256x128xf32>
    %209 = arith.addf %207, %208 : vector<256x128xf32>
    %cst_73 = arith.constant 1.000000e+00 : f32
    %210 = vector.broadcast %cst_73 : f32 to vector<256x128xf32>
    %211 = arith.divf %210, %209 : vector<256x128xf32>
    %212 = arith.mulf %193, %211 : vector<256x128xf32>
    %c0_74 = arith.constant 0 : index
    %c0_75 = arith.constant 0 : index
    %213 = vector.load %arg16[%c0_74, %c0_75] : memref<256x768xf32, #tpu.memory_space<vmem>>, vector<256x128xf32>
    tpu.vector_store %arg16[%c0_74, %c0_75], %212 {strides = array<i32>} : memref<256x768xf32, #tpu.memory_space<vmem>>, vector<256x128xf32>,
    %214 = arith.mulf %199, %211 : vector<256x128xf32>
    %c0_76 = arith.constant 0 : index
    %c128 = arith.constant 128 : index
    %215 = vector.load %arg16[%c0_76, %c128] : memref<256x768xf32, #tpu.memory_space<vmem>>, vector<256x128xf32>
    tpu.vector_store %arg16[%c0_76, %c128], %214 {strides = array<i32>} : memref<256x768xf32, #tpu.memory_space<vmem>>, vector<256x128xf32>,
    %216 = arith.mulf %205, %211 : vector<256x128xf32>
    %c0_77 = arith.constant 0 : index
    %c256 = arith.constant 256 : index
    %217 = vector.load %arg16[%c0_77, %c256] : memref<256x768xf32, #tpu.memory_space<vmem>>, vector<256x128xf32>
    tpu.vector_store %arg16[%c0_77, %c256], %216 {strides = array<i32>} : memref<256x768xf32, #tpu.memory_space<vmem>>, vector<256x128xf32>,
    %218 = vector.extract_strided_slice %187 {offsets = [0, 384], sizes = [256, 384], strides = [1, 1]} : vector<256x768xf32> to vector<256x384xf32>
    %c0_78 = arith.constant 0 : index
    %c384 = arith.constant 384 : index
    %219 = vector.load %arg16[%c0_78, %c384] : memref<256x768xf32, #tpu.memory_space<vmem>>, vector<256x384xf32>
    tpu.vector_store %arg16[%c0_78, %c384], %218 {strides = array<i32>} : memref<256x768xf32, #tpu.memory_space<vmem>>, vector<256x384xf32>,
    %cst_79 = arith.constant 0.000000e+00 : f32
    %220 = vector.broadcast %cst_79 : f32 to vector<1x128xf32>
    %cst_80 = arith.constant 0.000000e+00 : f32
    %221 = vector.broadcast %cst_80 : f32 to vector<16x128xf32>
    %c0_81 = arith.constant 0 : index
    %c0_82 = arith.constant 0 : index
    %222 = vector.load %arg14[%c0_81, %c0_82] : memref<256x32xf32, #tpu.memory_space<vmem>>, vector<16x32xf32>
    %c0_83 = arith.constant 0 : index
    %c0_84 = arith.constant 0 : index
    %223 = vector.load %arg15[%c0_83, %c0_84] : memref<256x32xf32, #tpu.memory_space<vmem>>, vector<16x32xf32>
    %c240 = arith.constant 240 : index
    %c0_85 = arith.constant 0 : index
    %224 = vector.load %arg14[%c240, %c0_85] : memref<256x32xf32, #tpu.memory_space<vmem>>, vector<16x32xf32>
    %c240_86 = arith.constant 240 : index
    %c0_87 = arith.constant 0 : index
    %225 = vector.load %arg15[%c240_86, %c0_87] : memref<256x32xf32, #tpu.memory_space<vmem>>, vector<16x32xf32>
    %226 = tpu.concatenate %222, %223, %224, %225 in 1 : vector<16x32xf32>, vector<16x32xf32>, vector<16x32xf32>, vector<16x32xf32> -> vector<16x128xf32>
    %c0_88 = arith.constant 0 : index
    %c0_89 = arith.constant 0 : index
    %227 = vector.load %arg16[%c0_88, %c0_89] : memref<256x768xf32, #tpu.memory_space<vmem>>, vector<16x128xf32>
    %c0_90 = arith.constant 0 : index
    %c128_91 = arith.constant 128 : index
    %228 = vector.load %arg16[%c0_90, %c128_91] : memref<256x768xf32, #tpu.memory_space<vmem>>, vector<16x128xf32>
    %c0_92 = arith.constant 0 : index
    %c256_93 = arith.constant 256 : index
    %229 = vector.load %arg16[%c0_92, %c256_93] : memref<256x768xf32, #tpu.memory_space<vmem>>, vector<16x128xf32>
    %c0_94 = arith.constant 0 : index
    %c384_95 = arith.constant 384 : index
    %230 = vector.load %arg16[%c0_94, %c384_95] : memref<256x768xf32, #tpu.memory_space<vmem>>, vector<16x128xf32>
    %c0_96 = arith.constant 0 : index
    %c512 = arith.constant 512 : index
    %231 = vector.load %arg16[%c0_96, %c512] : memref<256x768xf32, #tpu.memory_space<vmem>>, vector<16x128xf32>
    %c0_97 = arith.constant 0 : index
    %c640 = arith.constant 640 : index
    %232 = vector.load %arg16[%c0_97, %c640] : memref<256x768xf32, #tpu.memory_space<vmem>>, vector<16x128xf32>
    %233 = vector.extract_strided_slice %221 {offsets = [0, 0], sizes = [15, 128], strides = [1, 1]} : vector<16x128xf32> to vector<15x128xf32>
    %234 = tpu.concatenate %220, %233 in 0 : vector<1x128xf32>, vector<15x128xf32> -> vector<16x128xf32>
    %235 = vector.extract_strided_slice %221 {offsets = [1, 0], sizes = [15, 128], strides = [1, 1]} : vector<16x128xf32> to vector<15x128xf32>
    %236 = tpu.concatenate %235, %220 in 0 : vector<15x128xf32>, vector<1x128xf32> -> vector<16x128xf32>
    %237 = arith.mulf %230, %226 : vector<16x128xf32>
    %238 = arith.mulf %227, %234 : vector<16x128xf32>
    %239 = arith.addf %237, %238 : vector<16x128xf32>
    %240 = arith.mulf %228, %221 : vector<16x128xf32>
    %241 = arith.addf %239, %240 : vector<16x128xf32>
    %242 = arith.mulf %229, %236 : vector<16x128xf32>
    %243 = arith.addf %241, %242 : vector<16x128xf32>
    %244 = arith.mulf %243, %231 : vector<16x128xf32>
    %245 = arith.mulf %226, %232 : vector<16x128xf32>
    %246 = arith.addf %244, %245 : vector<16x128xf32>
    %c0_98 = arith.constant 0 : index
    %c0_99 = arith.constant 0 : index
    %247 = vector.load %arg17[%c0_98, %c0_99] : memref<256x128xf32, #tpu.memory_space<vmem>>, vector<16x128xf32>
    tpu.vector_store %arg17[%c0_98, %c0_99], %246 {strides = array<i32>} : memref<256x128xf32, #tpu.memory_space<vmem>>, vector<16x128xf32>,
    %c16 = arith.constant 16 : index
    %c0_100 = arith.constant 0 : index
    %248 = vector.load %arg14[%c16, %c0_100] : memref<256x32xf32, #tpu.memory_space<vmem>>, vector<16x32xf32>
    %c16_101 = arith.constant 16 : index
    %c0_102 = arith.constant 0 : index
    %249 = vector.load %arg15[%c16_101, %c0_102] : memref<256x32xf32, #tpu.memory_space<vmem>>, vector<16x32xf32>
    %c224 = arith.constant 224 : index
    %c0_103 = arith.constant 0 : index
    %250 = vector.load %arg14[%c224, %c0_103] : memref<256x32xf32, #tpu.memory_space<vmem>>, vector<16x32xf32>
    %c224_104 = arith.constant 224 : index
    %c0_105 = arith.constant 0 : index
    %251 = vector.load %arg15[%c224_104, %c0_105] : memref<256x32xf32, #tpu.memory_space<vmem>>, vector<16x32xf32>
    %252 = tpu.concatenate %248, %249, %250, %251 in 1 : vector<16x32xf32>, vector<16x32xf32>, vector<16x32xf32>, vector<16x32xf32> -> vector<16x128xf32>
    %c16_106 = arith.constant 16 : index
    %c0_107 = arith.constant 0 : index
    %253 = vector.load %arg16[%c16_106, %c0_107] : memref<256x768xf32, #tpu.memory_space<vmem>>, vector<16x128xf32>
    %c16_108 = arith.constant 16 : index
    %c128_109 = arith.constant 128 : index
    %254 = vector.load %arg16[%c16_108, %c128_109] : memref<256x768xf32, #tpu.memory_space<vmem>>, vector<16x128xf32>
    %c16_110 = arith.constant 16 : index
    %c256_111 = arith.constant 256 : index
    %255 = vector.load %arg16[%c16_110, %c256_111] : memref<256x768xf32, #tpu.memory_space<vmem>>, vector<16x128xf32>
    %c16_112 = arith.constant 16 : index
    %c384_113 = arith.constant 384 : index
    %256 = vector.load %arg16[%c16_112, %c384_113] : memref<256x768xf32, #tpu.memory_space<vmem>>, vector<16x128xf32>
    %c16_114 = arith.constant 16 : index
    %c512_115 = arith.constant 512 : index
    %257 = vector.load %arg16[%c16_114, %c512_115] : memref<256x768xf32, #tpu.memory_space<vmem>>, vector<16x128xf32>
    %c16_116 = arith.constant 16 : index
    %c640_117 = arith.constant 640 : index
    %258 = vector.load %arg16[%c16_116, %c640_117] : memref<256x768xf32, #tpu.memory_space<vmem>>, vector<16x128xf32>
    %259 = vector.extract_strided_slice %243 {offsets = [0, 0], sizes = [15, 128], strides = [1, 1]} : vector<16x128xf32> to vector<15x128xf32>
    %260 = tpu.concatenate %220, %259 in 0 : vector<1x128xf32>, vector<15x128xf32> -> vector<16x128xf32>
    %261 = vector.extract_strided_slice %243 {offsets = [1, 0], sizes = [15, 128], strides = [1, 1]} : vector<16x128xf32> to vector<15x128xf32>
    %262 = tpu.concatenate %261, %220 in 0 : vector<15x128xf32>, vector<1x128xf32> -> vector<16x128xf32>
    %263 = arith.mulf %256, %252 : vector<16x128xf32>
    %264 = arith.mulf %253, %260 : vector<16x128xf32>
    %265 = arith.addf %263, %264 : vector<16x128xf32>
    %266 = arith.mulf %254, %243 : vector<16x128xf32>
    %267 = arith.addf %265, %266 : vector<16x128xf32>
    %268 = arith.mulf %255, %262 : vector<16x128xf32>
    %269 = arith.addf %267, %268 : vector<16x128xf32>
    %270 = arith.mulf %269, %257 : vector<16x128xf32>
    %271 = arith.mulf %252, %258 : vector<16x128xf32>
    %272 = arith.addf %270, %271 : vector<16x128xf32>
    %c16_118 = arith.constant 16 : index
    %c0_119 = arith.constant 0 : index
    %273 = vector.load %arg17[%c16_118, %c0_119] : memref<256x128xf32, #tpu.memory_space<vmem>>, vector<16x128xf32>
    tpu.vector_store %arg17[%c16_118, %c0_119], %272 {strides = array<i32>} : memref<256x128xf32, #tpu.memory_space<vmem>>, vector<16x128xf32>,
    %c32 = arith.constant 32 : index
    %c0_120 = arith.constant 0 : index
    %274 = vector.load %arg14[%c32, %c0_120] : memref<256x32xf32, #tpu.memory_space<vmem>>, vector<16x32xf32>
    %c32_121 = arith.constant 32 : index
    %c0_122 = arith.constant 0 : index
    %275 = vector.load %arg15[%c32_121, %c0_122] : memref<256x32xf32, #tpu.memory_space<vmem>>, vector<16x32xf32>
    %c208 = arith.constant 208 : index
    %c0_123 = arith.constant 0 : index
    %276 = vector.load %arg14[%c208, %c0_123] : memref<256x32xf32, #tpu.memory_space<vmem>>, vector<16x32xf32>
    %c208_124 = arith.constant 208 : index
    %c0_125 = arith.constant 0 : index
    %277 = vector.load %arg15[%c208_124, %c0_125] : memref<256x32xf32, #tpu.memory_space<vmem>>, vector<16x32xf32>
    %278 = tpu.concatenate %274, %275, %276, %277 in 1 : vector<16x32xf32>, vector<16x32xf32>, vector<16x32xf32>, vector<16x32xf32> -> vector<16x128xf32>
    %c32_126 = arith.constant 32 : index
    %c0_127 = arith.constant 0 : index
    %279 = vector.load %arg16[%c32_126, %c0_127] : memref<256x768xf32, #tpu.memory_space<vmem>>, vector<16x128xf32>
    %c32_128 = arith.constant 32 : index
    %c128_129 = arith.constant 128 : index
    %280 = vector.load %arg16[%c32_128, %c128_129] : memref<256x768xf32, #tpu.memory_space<vmem>>, vector<16x128xf32>
    %c32_130 = arith.constant 32 : index
    %c256_131 = arith.constant 256 : index
    %281 = vector.load %arg16[%c32_130, %c256_131] : memref<256x768xf32, #tpu.memory_space<vmem>>, vector<16x128xf32>
    %c32_132 = arith.constant 32 : index
    %c384_133 = arith.constant 384 : index
    %282 = vector.load %arg16[%c32_132, %c384_133] : memref<256x768xf32, #tpu.memory_space<vmem>>, vector<16x128xf32>
    %c32_134 = arith.constant 32 : index
    %c512_135 = arith.constant 512 : index
    %283 = vector.load %arg16[%c32_134, %c512_135] : memref<256x768xf32, #tpu.memory_space<vmem>>, vector<16x128xf32>
    %c32_136 = arith.constant 32 : index
    %c640_137 = arith.constant 640 : index
    %284 = vector.load %arg16[%c32_136, %c640_137] : memref<256x768xf32, #tpu.memory_space<vmem>>, vector<16x128xf32>
    %285 = vector.extract_strided_slice %269 {offsets = [0, 0], sizes = [15, 128], strides = [1, 1]} : vector<16x128xf32> to vector<15x128xf32>
    %286 = tpu.concatenate %220, %285 in 0 : vector<1x128xf32>, vector<15x128xf32> -> vector<16x128xf32>
    %287 = vector.extract_strided_slice %269 {offsets = [1, 0], sizes = [15, 128], strides = [1, 1]} : vector<16x128xf32> to vector<15x128xf32>
    %288 = tpu.concatenate %287, %220 in 0 : vector<15x128xf32>, vector<1x128xf32> -> vector<16x128xf32>
    %289 = arith.mulf %282, %278 : vector<16x128xf32>
    %290 = arith.mulf %279, %286 : vector<16x128xf32>
    %291 = arith.addf %289, %290 : vector<16x128xf32>
    %292 = arith.mulf %280, %269 : vector<16x128xf32>
    %293 = arith.addf %291, %292 : vector<16x128xf32>
    %294 = arith.mulf %281, %288 : vector<16x128xf32>
    %295 = arith.addf %293, %294 : vector<16x128xf32>
    %296 = arith.mulf %295, %283 : vector<16x128xf32>
    %297 = arith.mulf %278, %284 : vector<16x128xf32>
    %298 = arith.addf %296, %297 : vector<16x128xf32>
    %c32_138 = arith.constant 32 : index
    %c0_139 = arith.constant 0 : index
    %299 = vector.load %arg17[%c32_138, %c0_139] : memref<256x128xf32, #tpu.memory_space<vmem>>, vector<16x128xf32>
    tpu.vector_store %arg17[%c32_138, %c0_139], %298 {strides = array<i32>} : memref<256x128xf32, #tpu.memory_space<vmem>>, vector<16x128xf32>,
    %c48 = arith.constant 48 : index
    %c0_140 = arith.constant 0 : index
    %300 = vector.load %arg14[%c48, %c0_140] : memref<256x32xf32, #tpu.memory_space<vmem>>, vector<16x32xf32>
    %c48_141 = arith.constant 48 : index
    %c0_142 = arith.constant 0 : index
    %301 = vector.load %arg15[%c48_141, %c0_142] : memref<256x32xf32, #tpu.memory_space<vmem>>, vector<16x32xf32>
    %c192 = arith.constant 192 : index
    %c0_143 = arith.constant 0 : index
    %302 = vector.load %arg14[%c192, %c0_143] : memref<256x32xf32, #tpu.memory_space<vmem>>, vector<16x32xf32>
    %c192_144 = arith.constant 192 : index
    %c0_145 = arith.constant 0 : index
    %303 = vector.load %arg15[%c192_144, %c0_145] : memref<256x32xf32, #tpu.memory_space<vmem>>, vector<16x32xf32>
    %304 = tpu.concatenate %300, %301, %302, %303 in 1 : vector<16x32xf32>, vector<16x32xf32>, vector<16x32xf32>, vector<16x32xf32> -> vector<16x128xf32>
    %c48_146 = arith.constant 48 : index
    %c0_147 = arith.constant 0 : index
    %305 = vector.load %arg16[%c48_146, %c0_147] : memref<256x768xf32, #tpu.memory_space<vmem>>, vector<16x128xf32>
    %c48_148 = arith.constant 48 : index
    %c128_149 = arith.constant 128 : index
    %306 = vector.load %arg16[%c48_148, %c128_149] : memref<256x768xf32, #tpu.memory_space<vmem>>, vector<16x128xf32>
    %c48_150 = arith.constant 48 : index
    %c256_151 = arith.constant 256 : index
    %307 = vector.load %arg16[%c48_150, %c256_151] : memref<256x768xf32, #tpu.memory_space<vmem>>, vector<16x128xf32>
    %c48_152 = arith.constant 48 : index
    %c384_153 = arith.constant 384 : index
    %308 = vector.load %arg16[%c48_152, %c384_153] : memref<256x768xf32, #tpu.memory_space<vmem>>, vector<16x128xf32>
    %c48_154 = arith.constant 48 : index
    %c512_155 = arith.constant 512 : index
    %309 = vector.load %arg16[%c48_154, %c512_155] : memref<256x768xf32, #tpu.memory_space<vmem>>, vector<16x128xf32>
    %c48_156 = arith.constant 48 : index
    %c640_157 = arith.constant 640 : index
    %310 = vector.load %arg16[%c48_156, %c640_157] : memref<256x768xf32, #tpu.memory_space<vmem>>, vector<16x128xf32>
    %311 = vector.extract_strided_slice %295 {offsets = [0, 0], sizes = [15, 128], strides = [1, 1]} : vector<16x128xf32> to vector<15x128xf32>
    %312 = tpu.concatenate %220, %311 in 0 : vector<1x128xf32>, vector<15x128xf32> -> vector<16x128xf32>
    %313 = vector.extract_strided_slice %295 {offsets = [1, 0], sizes = [15, 128], strides = [1, 1]} : vector<16x128xf32> to vector<15x128xf32>
    %314 = tpu.concatenate %313, %220 in 0 : vector<15x128xf32>, vector<1x128xf32> -> vector<16x128xf32>
    %315 = arith.mulf %308, %304 : vector<16x128xf32>
    %316 = arith.mulf %305, %312 : vector<16x128xf32>
    %317 = arith.addf %315, %316 : vector<16x128xf32>
    %318 = arith.mulf %306, %295 : vector<16x128xf32>
    %319 = arith.addf %317, %318 : vector<16x128xf32>
    %320 = arith.mulf %307, %314 : vector<16x128xf32>
    %321 = arith.addf %319, %320 : vector<16x128xf32>
    %322 = arith.mulf %321, %309 : vector<16x128xf32>
    %323 = arith.mulf %304, %310 : vector<16x128xf32>
    %324 = arith.addf %322, %323 : vector<16x128xf32>
    %c48_158 = arith.constant 48 : index
    %c0_159 = arith.constant 0 : index
    %325 = vector.load %arg17[%c48_158, %c0_159] : memref<256x128xf32, #tpu.memory_space<vmem>>, vector<16x128xf32>
    tpu.vector_store %arg17[%c48_158, %c0_159], %324 {strides = array<i32>} : memref<256x128xf32, #tpu.memory_space<vmem>>, vector<16x128xf32>,
    %c64 = arith.constant 64 : index
    %c0_160 = arith.constant 0 : index
    %326 = vector.load %arg14[%c64, %c0_160] : memref<256x32xf32, #tpu.memory_space<vmem>>, vector<16x32xf32>
    %c64_161 = arith.constant 64 : index
    %c0_162 = arith.constant 0 : index
    %327 = vector.load %arg15[%c64_161, %c0_162] : memref<256x32xf32, #tpu.memory_space<vmem>>, vector<16x32xf32>
    %c176 = arith.constant 176 : index
    %c0_163 = arith.constant 0 : index
    %328 = vector.load %arg14[%c176, %c0_163] : memref<256x32xf32, #tpu.memory_space<vmem>>, vector<16x32xf32>
    %c176_164 = arith.constant 176 : index
    %c0_165 = arith.constant 0 : index
    %329 = vector.load %arg15[%c176_164, %c0_165] : memref<256x32xf32, #tpu.memory_space<vmem>>, vector<16x32xf32>
    %330 = tpu.concatenate %326, %327, %328, %329 in 1 : vector<16x32xf32>, vector<16x32xf32>, vector<16x32xf32>, vector<16x32xf32> -> vector<16x128xf32>
    %c64_166 = arith.constant 64 : index
    %c0_167 = arith.constant 0 : index
    %331 = vector.load %arg16[%c64_166, %c0_167] : memref<256x768xf32, #tpu.memory_space<vmem>>, vector<16x128xf32>
    %c64_168 = arith.constant 64 : index
    %c128_169 = arith.constant 128 : index
    %332 = vector.load %arg16[%c64_168, %c128_169] : memref<256x768xf32, #tpu.memory_space<vmem>>, vector<16x128xf32>
    %c64_170 = arith.constant 64 : index
    %c256_171 = arith.constant 256 : index
    %333 = vector.load %arg16[%c64_170, %c256_171] : memref<256x768xf32, #tpu.memory_space<vmem>>, vector<16x128xf32>
    %c64_172 = arith.constant 64 : index
    %c384_173 = arith.constant 384 : index
    %334 = vector.load %arg16[%c64_172, %c384_173] : memref<256x768xf32, #tpu.memory_space<vmem>>, vector<16x128xf32>
    %c64_174 = arith.constant 64 : index
    %c512_175 = arith.constant 512 : index
    %335 = vector.load %arg16[%c64_174, %c512_175] : memref<256x768xf32, #tpu.memory_space<vmem>>, vector<16x128xf32>
    %c64_176 = arith.constant 64 : index
    %c640_177 = arith.constant 640 : index
    %336 = vector.load %arg16[%c64_176, %c640_177] : memref<256x768xf32, #tpu.memory_space<vmem>>, vector<16x128xf32>
    %337 = vector.extract_strided_slice %321 {offsets = [0, 0], sizes = [15, 128], strides = [1, 1]} : vector<16x128xf32> to vector<15x128xf32>
    %338 = tpu.concatenate %220, %337 in 0 : vector<1x128xf32>, vector<15x128xf32> -> vector<16x128xf32>
    %339 = vector.extract_strided_slice %321 {offsets = [1, 0], sizes = [15, 128], strides = [1, 1]} : vector<16x128xf32> to vector<15x128xf32>
    %340 = tpu.concatenate %339, %220 in 0 : vector<15x128xf32>, vector<1x128xf32> -> vector<16x128xf32>
    %341 = arith.mulf %334, %330 : vector<16x128xf32>
    %342 = arith.mulf %331, %338 : vector<16x128xf32>
    %343 = arith.addf %341, %342 : vector<16x128xf32>
    %344 = arith.mulf %332, %321 : vector<16x128xf32>
    %345 = arith.addf %343, %344 : vector<16x128xf32>
    %346 = arith.mulf %333, %340 : vector<16x128xf32>
    %347 = arith.addf %345, %346 : vector<16x128xf32>
    %348 = arith.mulf %347, %335 : vector<16x128xf32>
    %349 = arith.mulf %330, %336 : vector<16x128xf32>
    %350 = arith.addf %348, %349 : vector<16x128xf32>
    %c64_178 = arith.constant 64 : index
    %c0_179 = arith.constant 0 : index
    %351 = vector.load %arg17[%c64_178, %c0_179] : memref<256x128xf32, #tpu.memory_space<vmem>>, vector<16x128xf32>
    tpu.vector_store %arg17[%c64_178, %c0_179], %350 {strides = array<i32>} : memref<256x128xf32, #tpu.memory_space<vmem>>, vector<16x128xf32>,
    %c80 = arith.constant 80 : index
    %c0_180 = arith.constant 0 : index
    %352 = vector.load %arg14[%c80, %c0_180] : memref<256x32xf32, #tpu.memory_space<vmem>>, vector<16x32xf32>
    %c80_181 = arith.constant 80 : index
    %c0_182 = arith.constant 0 : index
    %353 = vector.load %arg15[%c80_181, %c0_182] : memref<256x32xf32, #tpu.memory_space<vmem>>, vector<16x32xf32>
    %c160 = arith.constant 160 : index
    %c0_183 = arith.constant 0 : index
    %354 = vector.load %arg14[%c160, %c0_183] : memref<256x32xf32, #tpu.memory_space<vmem>>, vector<16x32xf32>
    %c160_184 = arith.constant 160 : index
    %c0_185 = arith.constant 0 : index
    %355 = vector.load %arg15[%c160_184, %c0_185] : memref<256x32xf32, #tpu.memory_space<vmem>>, vector<16x32xf32>
    %356 = tpu.concatenate %352, %353, %354, %355 in 1 : vector<16x32xf32>, vector<16x32xf32>, vector<16x32xf32>, vector<16x32xf32> -> vector<16x128xf32>
    %c80_186 = arith.constant 80 : index
    %c0_187 = arith.constant 0 : index
    %357 = vector.load %arg16[%c80_186, %c0_187] : memref<256x768xf32, #tpu.memory_space<vmem>>, vector<16x128xf32>
    %c80_188 = arith.constant 80 : index
    %c128_189 = arith.constant 128 : index
    %358 = vector.load %arg16[%c80_188, %c128_189] : memref<256x768xf32, #tpu.memory_space<vmem>>, vector<16x128xf32>
    %c80_190 = arith.constant 80 : index
    %c256_191 = arith.constant 256 : index
    %359 = vector.load %arg16[%c80_190, %c256_191] : memref<256x768xf32, #tpu.memory_space<vmem>>, vector<16x128xf32>
    %c80_192 = arith.constant 80 : index
    %c384_193 = arith.constant 384 : index
    %360 = vector.load %arg16[%c80_192, %c384_193] : memref<256x768xf32, #tpu.memory_space<vmem>>, vector<16x128xf32>
    %c80_194 = arith.constant 80 : index
    %c512_195 = arith.constant 512 : index
    %361 = vector.load %arg16[%c80_194, %c512_195] : memref<256x768xf32, #tpu.memory_space<vmem>>, vector<16x128xf32>
    %c80_196 = arith.constant 80 : index
    %c640_197 = arith.constant 640 : index
    %362 = vector.load %arg16[%c80_196, %c640_197] : memref<256x768xf32, #tpu.memory_space<vmem>>, vector<16x128xf32>
    %363 = vector.extract_strided_slice %347 {offsets = [0, 0], sizes = [15, 128], strides = [1, 1]} : vector<16x128xf32> to vector<15x128xf32>
    %364 = tpu.concatenate %220, %363 in 0 : vector<1x128xf32>, vector<15x128xf32> -> vector<16x128xf32>
    %365 = vector.extract_strided_slice %347 {offsets = [1, 0], sizes = [15, 128], strides = [1, 1]} : vector<16x128xf32> to vector<15x128xf32>
    %366 = tpu.concatenate %365, %220 in 0 : vector<15x128xf32>, vector<1x128xf32> -> vector<16x128xf32>
    %367 = arith.mulf %360, %356 : vector<16x128xf32>
    %368 = arith.mulf %357, %364 : vector<16x128xf32>
    %369 = arith.addf %367, %368 : vector<16x128xf32>
    %370 = arith.mulf %358, %347 : vector<16x128xf32>
    %371 = arith.addf %369, %370 : vector<16x128xf32>
    %372 = arith.mulf %359, %366 : vector<16x128xf32>
    %373 = arith.addf %371, %372 : vector<16x128xf32>
    %374 = arith.mulf %373, %361 : vector<16x128xf32>
    %375 = arith.mulf %356, %362 : vector<16x128xf32>
    %376 = arith.addf %374, %375 : vector<16x128xf32>
    %c80_198 = arith.constant 80 : index
    %c0_199 = arith.constant 0 : index
    %377 = vector.load %arg17[%c80_198, %c0_199] : memref<256x128xf32, #tpu.memory_space<vmem>>, vector<16x128xf32>
    tpu.vector_store %arg17[%c80_198, %c0_199], %376 {strides = array<i32>} : memref<256x128xf32, #tpu.memory_space<vmem>>, vector<16x128xf32>,
    %c96 = arith.constant 96 : index
    %c0_200 = arith.constant 0 : index
    %378 = vector.load %arg14[%c96, %c0_200] : memref<256x32xf32, #tpu.memory_space<vmem>>, vector<16x32xf32>
    %c96_201 = arith.constant 96 : index
    %c0_202 = arith.constant 0 : index
    %379 = vector.load %arg15[%c96_201, %c0_202] : memref<256x32xf32, #tpu.memory_space<vmem>>, vector<16x32xf32>
    %c144 = arith.constant 144 : index
    %c0_203 = arith.constant 0 : index
    %380 = vector.load %arg14[%c144, %c0_203] : memref<256x32xf32, #tpu.memory_space<vmem>>, vector<16x32xf32>
    %c144_204 = arith.constant 144 : index
    %c0_205 = arith.constant 0 : index
    %381 = vector.load %arg15[%c144_204, %c0_205] : memref<256x32xf32, #tpu.memory_space<vmem>>, vector<16x32xf32>
    %382 = tpu.concatenate %378, %379, %380, %381 in 1 : vector<16x32xf32>, vector<16x32xf32>, vector<16x32xf32>, vector<16x32xf32> -> vector<16x128xf32>
    %c96_206 = arith.constant 96 : index
    %c0_207 = arith.constant 0 : index
    %383 = vector.load %arg16[%c96_206, %c0_207] : memref<256x768xf32, #tpu.memory_space<vmem>>, vector<16x128xf32>
    %c96_208 = arith.constant 96 : index
    %c128_209 = arith.constant 128 : index
    %384 = vector.load %arg16[%c96_208, %c128_209] : memref<256x768xf32, #tpu.memory_space<vmem>>, vector<16x128xf32>
    %c96_210 = arith.constant 96 : index
    %c256_211 = arith.constant 256 : index
    %385 = vector.load %arg16[%c96_210, %c256_211] : memref<256x768xf32, #tpu.memory_space<vmem>>, vector<16x128xf32>
    %c96_212 = arith.constant 96 : index
    %c384_213 = arith.constant 384 : index
    %386 = vector.load %arg16[%c96_212, %c384_213] : memref<256x768xf32, #tpu.memory_space<vmem>>, vector<16x128xf32>
    %c96_214 = arith.constant 96 : index
    %c512_215 = arith.constant 512 : index
    %387 = vector.load %arg16[%c96_214, %c512_215] : memref<256x768xf32, #tpu.memory_space<vmem>>, vector<16x128xf32>
    %c96_216 = arith.constant 96 : index
    %c640_217 = arith.constant 640 : index
    %388 = vector.load %arg16[%c96_216, %c640_217] : memref<256x768xf32, #tpu.memory_space<vmem>>, vector<16x128xf32>
    %389 = vector.extract_strided_slice %373 {offsets = [0, 0], sizes = [15, 128], strides = [1, 1]} : vector<16x128xf32> to vector<15x128xf32>
    %390 = tpu.concatenate %220, %389 in 0 : vector<1x128xf32>, vector<15x128xf32> -> vector<16x128xf32>
    %391 = vector.extract_strided_slice %373 {offsets = [1, 0], sizes = [15, 128], strides = [1, 1]} : vector<16x128xf32> to vector<15x128xf32>
    %392 = tpu.concatenate %391, %220 in 0 : vector<15x128xf32>, vector<1x128xf32> -> vector<16x128xf32>
    %393 = arith.mulf %386, %382 : vector<16x128xf32>
    %394 = arith.mulf %383, %390 : vector<16x128xf32>
    %395 = arith.addf %393, %394 : vector<16x128xf32>
    %396 = arith.mulf %384, %373 : vector<16x128xf32>
    %397 = arith.addf %395, %396 : vector<16x128xf32>
    %398 = arith.mulf %385, %392 : vector<16x128xf32>
    %399 = arith.addf %397, %398 : vector<16x128xf32>
    %400 = arith.mulf %399, %387 : vector<16x128xf32>
    %401 = arith.mulf %382, %388 : vector<16x128xf32>
    %402 = arith.addf %400, %401 : vector<16x128xf32>
    %c96_218 = arith.constant 96 : index
    %c0_219 = arith.constant 0 : index
    %403 = vector.load %arg17[%c96_218, %c0_219] : memref<256x128xf32, #tpu.memory_space<vmem>>, vector<16x128xf32>
    tpu.vector_store %arg17[%c96_218, %c0_219], %402 {strides = array<i32>} : memref<256x128xf32, #tpu.memory_space<vmem>>, vector<16x128xf32>,
    %c112 = arith.constant 112 : index
    %c0_220 = arith.constant 0 : index
    %404 = vector.load %arg14[%c112, %c0_220] : memref<256x32xf32, #tpu.memory_space<vmem>>, vector<16x32xf32>
    %c112_221 = arith.constant 112 : index
    %c0_222 = arith.constant 0 : index
    %405 = vector.load %arg15[%c112_221, %c0_222] : memref<256x32xf32, #tpu.memory_space<vmem>>, vector<16x32xf32>
    %c128_223 = arith.constant 128 : index
    %c0_224 = arith.constant 0 : index
    %406 = vector.load %arg14[%c128_223, %c0_224] : memref<256x32xf32, #tpu.memory_space<vmem>>, vector<16x32xf32>
    %c128_225 = arith.constant 128 : index
    %c0_226 = arith.constant 0 : index
    %407 = vector.load %arg15[%c128_225, %c0_226] : memref<256x32xf32, #tpu.memory_space<vmem>>, vector<16x32xf32>
    %408 = tpu.concatenate %404, %405, %406, %407 in 1 : vector<16x32xf32>, vector<16x32xf32>, vector<16x32xf32>, vector<16x32xf32> -> vector<16x128xf32>
    %c112_227 = arith.constant 112 : index
    %c0_228 = arith.constant 0 : index
    %409 = vector.load %arg16[%c112_227, %c0_228] : memref<256x768xf32, #tpu.memory_space<vmem>>, vector<16x128xf32>
    %c112_229 = arith.constant 112 : index
    %c128_230 = arith.constant 128 : index
    %410 = vector.load %arg16[%c112_229, %c128_230] : memref<256x768xf32, #tpu.memory_space<vmem>>, vector<16x128xf32>
    %c112_231 = arith.constant 112 : index
    %c256_232 = arith.constant 256 : index
    %411 = vector.load %arg16[%c112_231, %c256_232] : memref<256x768xf32, #tpu.memory_space<vmem>>, vector<16x128xf32>
    %c112_233 = arith.constant 112 : index
    %c384_234 = arith.constant 384 : index
    %412 = vector.load %arg16[%c112_233, %c384_234] : memref<256x768xf32, #tpu.memory_space<vmem>>, vector<16x128xf32>
    %c112_235 = arith.constant 112 : index
    %c512_236 = arith.constant 512 : index
    %413 = vector.load %arg16[%c112_235, %c512_236] : memref<256x768xf32, #tpu.memory_space<vmem>>, vector<16x128xf32>
    %c112_237 = arith.constant 112 : index
    %c640_238 = arith.constant 640 : index
    %414 = vector.load %arg16[%c112_237, %c640_238] : memref<256x768xf32, #tpu.memory_space<vmem>>, vector<16x128xf32>
    %415 = vector.extract_strided_slice %399 {offsets = [0, 0], sizes = [15, 128], strides = [1, 1]} : vector<16x128xf32> to vector<15x128xf32>
    %416 = tpu.concatenate %220, %415 in 0 : vector<1x128xf32>, vector<15x128xf32> -> vector<16x128xf32>
    %417 = vector.extract_strided_slice %399 {offsets = [1, 0], sizes = [15, 128], strides = [1, 1]} : vector<16x128xf32> to vector<15x128xf32>
    %418 = tpu.concatenate %417, %220 in 0 : vector<15x128xf32>, vector<1x128xf32> -> vector<16x128xf32>
    %419 = arith.mulf %412, %408 : vector<16x128xf32>
    %420 = arith.mulf %409, %416 : vector<16x128xf32>
    %421 = arith.addf %419, %420 : vector<16x128xf32>
    %422 = arith.mulf %410, %399 : vector<16x128xf32>
    %423 = arith.addf %421, %422 : vector<16x128xf32>
    %424 = arith.mulf %411, %418 : vector<16x128xf32>
    %425 = arith.addf %423, %424 : vector<16x128xf32>
    %426 = arith.mulf %425, %413 : vector<16x128xf32>
    %427 = arith.mulf %408, %414 : vector<16x128xf32>
    %428 = arith.addf %426, %427 : vector<16x128xf32>
    %c112_239 = arith.constant 112 : index
    %c0_240 = arith.constant 0 : index
    %429 = vector.load %arg17[%c112_239, %c0_240] : memref<256x128xf32, #tpu.memory_space<vmem>>, vector<16x128xf32>
    tpu.vector_store %arg17[%c112_239, %c0_240], %428 {strides = array<i32>} : memref<256x128xf32, #tpu.memory_space<vmem>>, vector<16x128xf32>,
    %cst_241 = arith.constant 0.000000e+00 : f32
    %430 = vector.broadcast %cst_241 : f32 to vector<16x128xf32>
    %c128_242 = arith.constant 128 : index
    %c0_243 = arith.constant 0 : index
    %431 = vector.load %arg14[%c128_242, %c0_243] : memref<256x32xf32, #tpu.memory_space<vmem>>, vector<16x32xf32>
    %c128_244 = arith.constant 128 : index
    %c0_245 = arith.constant 0 : index
    %432 = vector.load %arg15[%c128_244, %c0_245] : memref<256x32xf32, #tpu.memory_space<vmem>>, vector<16x32xf32>
    %c112_246 = arith.constant 112 : index
    %c0_247 = arith.constant 0 : index
    %433 = vector.load %arg14[%c112_246, %c0_247] : memref<256x32xf32, #tpu.memory_space<vmem>>, vector<16x32xf32>
    %c112_248 = arith.constant 112 : index
    %c0_249 = arith.constant 0 : index
    %434 = vector.load %arg15[%c112_248, %c0_249] : memref<256x32xf32, #tpu.memory_space<vmem>>, vector<16x32xf32>
    %435 = tpu.concatenate %431, %432, %433, %434 in 1 : vector<16x32xf32>, vector<16x32xf32>, vector<16x32xf32>, vector<16x32xf32> -> vector<16x128xf32>
    %c128_250 = arith.constant 128 : index
    %c0_251 = arith.constant 0 : index
    %436 = vector.load %arg16[%c128_250, %c0_251] : memref<256x768xf32, #tpu.memory_space<vmem>>, vector<16x128xf32>
    %c128_252 = arith.constant 128 : index
    %c128_253 = arith.constant 128 : index
    %437 = vector.load %arg16[%c128_252, %c128_253] : memref<256x768xf32, #tpu.memory_space<vmem>>, vector<16x128xf32>
    %c128_254 = arith.constant 128 : index
    %c256_255 = arith.constant 256 : index
    %438 = vector.load %arg16[%c128_254, %c256_255] : memref<256x768xf32, #tpu.memory_space<vmem>>, vector<16x128xf32>
    %c128_256 = arith.constant 128 : index
    %c384_257 = arith.constant 384 : index
    %439 = vector.load %arg16[%c128_256, %c384_257] : memref<256x768xf32, #tpu.memory_space<vmem>>, vector<16x128xf32>
    %c128_258 = arith.constant 128 : index
    %c512_259 = arith.constant 512 : index
    %440 = vector.load %arg16[%c128_258, %c512_259] : memref<256x768xf32, #tpu.memory_space<vmem>>, vector<16x128xf32>
    %c128_260 = arith.constant 128 : index
    %c640_261 = arith.constant 640 : index
    %441 = vector.load %arg16[%c128_260, %c640_261] : memref<256x768xf32, #tpu.memory_space<vmem>>, vector<16x128xf32>
    %442 = vector.extract_strided_slice %430 {offsets = [0, 0], sizes = [15, 128], strides = [1, 1]} : vector<16x128xf32> to vector<15x128xf32>
    %443 = tpu.concatenate %220, %442 in 0 : vector<1x128xf32>, vector<15x128xf32> -> vector<16x128xf32>
    %444 = vector.extract_strided_slice %430 {offsets = [1, 0], sizes = [15, 128], strides = [1, 1]} : vector<16x128xf32> to vector<15x128xf32>
    %445 = tpu.concatenate %444, %220 in 0 : vector<15x128xf32>, vector<1x128xf32> -> vector<16x128xf32>
    %446 = arith.mulf %439, %435 : vector<16x128xf32>
    %447 = arith.mulf %436, %443 : vector<16x128xf32>
    %448 = arith.addf %446, %447 : vector<16x128xf32>
    %449 = arith.mulf %437, %430 : vector<16x128xf32>
    %450 = arith.addf %448, %449 : vector<16x128xf32>
    %451 = arith.mulf %438, %445 : vector<16x128xf32>
    %452 = arith.addf %450, %451 : vector<16x128xf32>
    %453 = arith.mulf %452, %440 : vector<16x128xf32>
    %454 = arith.mulf %435, %441 : vector<16x128xf32>
    %455 = arith.addf %453, %454 : vector<16x128xf32>
    %c128_262 = arith.constant 128 : index
    %c0_263 = arith.constant 0 : index
    %456 = vector.load %arg17[%c128_262, %c0_263] : memref<256x128xf32, #tpu.memory_space<vmem>>, vector<16x128xf32>
    tpu.vector_store %arg17[%c128_262, %c0_263], %455 {strides = array<i32>} : memref<256x128xf32, #tpu.memory_space<vmem>>, vector<16x128xf32>,
    %c144_264 = arith.constant 144 : index
    %c0_265 = arith.constant 0 : index
    %457 = vector.load %arg14[%c144_264, %c0_265] : memref<256x32xf32, #tpu.memory_space<vmem>>, vector<16x32xf32>
    %c144_266 = arith.constant 144 : index
    %c0_267 = arith.constant 0 : index
    %458 = vector.load %arg15[%c144_266, %c0_267] : memref<256x32xf32, #tpu.memory_space<vmem>>, vector<16x32xf32>
    %c96_268 = arith.constant 96 : index
    %c0_269 = arith.constant 0 : index
    %459 = vector.load %arg14[%c96_268, %c0_269] : memref<256x32xf32, #tpu.memory_space<vmem>>, vector<16x32xf32>
    %c96_270 = arith.constant 96 : index
    %c0_271 = arith.constant 0 : index
    %460 = vector.load %arg15[%c96_270, %c0_271] : memref<256x32xf32, #tpu.memory_space<vmem>>, vector<16x32xf32>
    %461 = tpu.concatenate %457, %458, %459, %460 in 1 : vector<16x32xf32>, vector<16x32xf32>, vector<16x32xf32>, vector<16x32xf32> -> vector<16x128xf32>
    %c144_272 = arith.constant 144 : index
    %c0_273 = arith.constant 0 : index
    %462 = vector.load %arg16[%c144_272, %c0_273] : memref<256x768xf32, #tpu.memory_space<vmem>>, vector<16x128xf32>
    %c144_274 = arith.constant 144 : index
    %c128_275 = arith.constant 128 : index
    %463 = vector.load %arg16[%c144_274, %c128_275] : memref<256x768xf32, #tpu.memory_space<vmem>>, vector<16x128xf32>
    %c144_276 = arith.constant 144 : index
    %c256_277 = arith.constant 256 : index
    %464 = vector.load %arg16[%c144_276, %c256_277] : memref<256x768xf32, #tpu.memory_space<vmem>>, vector<16x128xf32>
    %c144_278 = arith.constant 144 : index
    %c384_279 = arith.constant 384 : index
    %465 = vector.load %arg16[%c144_278, %c384_279] : memref<256x768xf32, #tpu.memory_space<vmem>>, vector<16x128xf32>
    %c144_280 = arith.constant 144 : index
    %c512_281 = arith.constant 512 : index
    %466 = vector.load %arg16[%c144_280, %c512_281] : memref<256x768xf32, #tpu.memory_space<vmem>>, vector<16x128xf32>
    %c144_282 = arith.constant 144 : index
    %c640_283 = arith.constant 640 : index
    %467 = vector.load %arg16[%c144_282, %c640_283] : memref<256x768xf32, #tpu.memory_space<vmem>>, vector<16x128xf32>
    %468 = vector.extract_strided_slice %452 {offsets = [0, 0], sizes = [15, 128], strides = [1, 1]} : vector<16x128xf32> to vector<15x128xf32>
    %469 = tpu.concatenate %220, %468 in 0 : vector<1x128xf32>, vector<15x128xf32> -> vector<16x128xf32>
    %470 = vector.extract_strided_slice %452 {offsets = [1, 0], sizes = [15, 128], strides = [1, 1]} : vector<16x128xf32> to vector<15x128xf32>
    %471 = tpu.concatenate %470, %220 in 0 : vector<15x128xf32>, vector<1x128xf32> -> vector<16x128xf32>
    %472 = arith.mulf %465, %461 : vector<16x128xf32>
    %473 = arith.mulf %462, %469 : vector<16x128xf32>
    %474 = arith.addf %472, %473 : vector<16x128xf32>
    %475 = arith.mulf %463, %452 : vector<16x128xf32>
    %476 = arith.addf %474, %475 : vector<16x128xf32>
    %477 = arith.mulf %464, %471 : vector<16x128xf32>
    %478 = arith.addf %476, %477 : vector<16x128xf32>
    %479 = arith.mulf %478, %466 : vector<16x128xf32>
    %480 = arith.mulf %461, %467 : vector<16x128xf32>
    %481 = arith.addf %479, %480 : vector<16x128xf32>
    %c144_284 = arith.constant 144 : index
    %c0_285 = arith.constant 0 : index
    %482 = vector.load %arg17[%c144_284, %c0_285] : memref<256x128xf32, #tpu.memory_space<vmem>>, vector<16x128xf32>
    tpu.vector_store %arg17[%c144_284, %c0_285], %481 {strides = array<i32>} : memref<256x128xf32, #tpu.memory_space<vmem>>, vector<16x128xf32>,
    %c160_286 = arith.constant 160 : index
    %c0_287 = arith.constant 0 : index
    %483 = vector.load %arg14[%c160_286, %c0_287] : memref<256x32xf32, #tpu.memory_space<vmem>>, vector<16x32xf32>
    %c160_288 = arith.constant 160 : index
    %c0_289 = arith.constant 0 : index
    %484 = vector.load %arg15[%c160_288, %c0_289] : memref<256x32xf32, #tpu.memory_space<vmem>>, vector<16x32xf32>
    %c80_290 = arith.constant 80 : index
    %c0_291 = arith.constant 0 : index
    %485 = vector.load %arg14[%c80_290, %c0_291] : memref<256x32xf32, #tpu.memory_space<vmem>>, vector<16x32xf32>
    %c80_292 = arith.constant 80 : index
    %c0_293 = arith.constant 0 : index
    %486 = vector.load %arg15[%c80_292, %c0_293] : memref<256x32xf32, #tpu.memory_space<vmem>>, vector<16x32xf32>
    %487 = tpu.concatenate %483, %484, %485, %486 in 1 : vector<16x32xf32>, vector<16x32xf32>, vector<16x32xf32>, vector<16x32xf32> -> vector<16x128xf32>
    %c160_294 = arith.constant 160 : index
    %c0_295 = arith.constant 0 : index
    %488 = vector.load %arg16[%c160_294, %c0_295] : memref<256x768xf32, #tpu.memory_space<vmem>>, vector<16x128xf32>
    %c160_296 = arith.constant 160 : index
    %c128_297 = arith.constant 128 : index
    %489 = vector.load %arg16[%c160_296, %c128_297] : memref<256x768xf32, #tpu.memory_space<vmem>>, vector<16x128xf32>
    %c160_298 = arith.constant 160 : index
    %c256_299 = arith.constant 256 : index
    %490 = vector.load %arg16[%c160_298, %c256_299] : memref<256x768xf32, #tpu.memory_space<vmem>>, vector<16x128xf32>
    %c160_300 = arith.constant 160 : index
    %c384_301 = arith.constant 384 : index
    %491 = vector.load %arg16[%c160_300, %c384_301] : memref<256x768xf32, #tpu.memory_space<vmem>>, vector<16x128xf32>
    %c160_302 = arith.constant 160 : index
    %c512_303 = arith.constant 512 : index
    %492 = vector.load %arg16[%c160_302, %c512_303] : memref<256x768xf32, #tpu.memory_space<vmem>>, vector<16x128xf32>
    %c160_304 = arith.constant 160 : index
    %c640_305 = arith.constant 640 : index
    %493 = vector.load %arg16[%c160_304, %c640_305] : memref<256x768xf32, #tpu.memory_space<vmem>>, vector<16x128xf32>
    %494 = vector.extract_strided_slice %478 {offsets = [0, 0], sizes = [15, 128], strides = [1, 1]} : vector<16x128xf32> to vector<15x128xf32>
    %495 = tpu.concatenate %220, %494 in 0 : vector<1x128xf32>, vector<15x128xf32> -> vector<16x128xf32>
    %496 = vector.extract_strided_slice %478 {offsets = [1, 0], sizes = [15, 128], strides = [1, 1]} : vector<16x128xf32> to vector<15x128xf32>
    %497 = tpu.concatenate %496, %220 in 0 : vector<15x128xf32>, vector<1x128xf32> -> vector<16x128xf32>
    %498 = arith.mulf %491, %487 : vector<16x128xf32>
    %499 = arith.mulf %488, %495 : vector<16x128xf32>
    %500 = arith.addf %498, %499 : vector<16x128xf32>
    %501 = arith.mulf %489, %478 : vector<16x128xf32>
    %502 = arith.addf %500, %501 : vector<16x128xf32>
    %503 = arith.mulf %490, %497 : vector<16x128xf32>
    %504 = arith.addf %502, %503 : vector<16x128xf32>
    %505 = arith.mulf %504, %492 : vector<16x128xf32>
    %506 = arith.mulf %487, %493 : vector<16x128xf32>
    %507 = arith.addf %505, %506 : vector<16x128xf32>
    %c160_306 = arith.constant 160 : index
    %c0_307 = arith.constant 0 : index
    %508 = vector.load %arg17[%c160_306, %c0_307] : memref<256x128xf32, #tpu.memory_space<vmem>>, vector<16x128xf32>
    tpu.vector_store %arg17[%c160_306, %c0_307], %507 {strides = array<i32>} : memref<256x128xf32, #tpu.memory_space<vmem>>, vector<16x128xf32>,
    %c176_308 = arith.constant 176 : index
    %c0_309 = arith.constant 0 : index
    %509 = vector.load %arg14[%c176_308, %c0_309] : memref<256x32xf32, #tpu.memory_space<vmem>>, vector<16x32xf32>
    %c176_310 = arith.constant 176 : index
    %c0_311 = arith.constant 0 : index
    %510 = vector.load %arg15[%c176_310, %c0_311] : memref<256x32xf32, #tpu.memory_space<vmem>>, vector<16x32xf32>
    %c64_312 = arith.constant 64 : index
    %c0_313 = arith.constant 0 : index
    %511 = vector.load %arg14[%c64_312, %c0_313] : memref<256x32xf32, #tpu.memory_space<vmem>>, vector<16x32xf32>
    %c64_314 = arith.constant 64 : index
    %c0_315 = arith.constant 0 : index
    %512 = vector.load %arg15[%c64_314, %c0_315] : memref<256x32xf32, #tpu.memory_space<vmem>>, vector<16x32xf32>
    %513 = tpu.concatenate %509, %510, %511, %512 in 1 : vector<16x32xf32>, vector<16x32xf32>, vector<16x32xf32>, vector<16x32xf32> -> vector<16x128xf32>
    %c176_316 = arith.constant 176 : index
    %c0_317 = arith.constant 0 : index
    %514 = vector.load %arg16[%c176_316, %c0_317] : memref<256x768xf32, #tpu.memory_space<vmem>>, vector<16x128xf32>
    %c176_318 = arith.constant 176 : index
    %c128_319 = arith.constant 128 : index
    %515 = vector.load %arg16[%c176_318, %c128_319] : memref<256x768xf32, #tpu.memory_space<vmem>>, vector<16x128xf32>
    %c176_320 = arith.constant 176 : index
    %c256_321 = arith.constant 256 : index
    %516 = vector.load %arg16[%c176_320, %c256_321] : memref<256x768xf32, #tpu.memory_space<vmem>>, vector<16x128xf32>
    %c176_322 = arith.constant 176 : index
    %c384_323 = arith.constant 384 : index
    %517 = vector.load %arg16[%c176_322, %c384_323] : memref<256x768xf32, #tpu.memory_space<vmem>>, vector<16x128xf32>
    %c176_324 = arith.constant 176 : index
    %c512_325 = arith.constant 512 : index
    %518 = vector.load %arg16[%c176_324, %c512_325] : memref<256x768xf32, #tpu.memory_space<vmem>>, vector<16x128xf32>
    %c176_326 = arith.constant 176 : index
    %c640_327 = arith.constant 640 : index
    %519 = vector.load %arg16[%c176_326, %c640_327] : memref<256x768xf32, #tpu.memory_space<vmem>>, vector<16x128xf32>
    %520 = vector.extract_strided_slice %504 {offsets = [0, 0], sizes = [15, 128], strides = [1, 1]} : vector<16x128xf32> to vector<15x128xf32>
    %521 = tpu.concatenate %220, %520 in 0 : vector<1x128xf32>, vector<15x128xf32> -> vector<16x128xf32>
    %522 = vector.extract_strided_slice %504 {offsets = [1, 0], sizes = [15, 128], strides = [1, 1]} : vector<16x128xf32> to vector<15x128xf32>
    %523 = tpu.concatenate %522, %220 in 0 : vector<15x128xf32>, vector<1x128xf32> -> vector<16x128xf32>
    %524 = arith.mulf %517, %513 : vector<16x128xf32>
    %525 = arith.mulf %514, %521 : vector<16x128xf32>
    %526 = arith.addf %524, %525 : vector<16x128xf32>
    %527 = arith.mulf %515, %504 : vector<16x128xf32>
    %528 = arith.addf %526, %527 : vector<16x128xf32>
    %529 = arith.mulf %516, %523 : vector<16x128xf32>
    %530 = arith.addf %528, %529 : vector<16x128xf32>
    %531 = arith.mulf %530, %518 : vector<16x128xf32>
    %532 = arith.mulf %513, %519 : vector<16x128xf32>
    %533 = arith.addf %531, %532 : vector<16x128xf32>
    %c176_328 = arith.constant 176 : index
    %c0_329 = arith.constant 0 : index
    %534 = vector.load %arg17[%c176_328, %c0_329] : memref<256x128xf32, #tpu.memory_space<vmem>>, vector<16x128xf32>
    tpu.vector_store %arg17[%c176_328, %c0_329], %533 {strides = array<i32>} : memref<256x128xf32, #tpu.memory_space<vmem>>, vector<16x128xf32>,
    %c192_330 = arith.constant 192 : index
    %c0_331 = arith.constant 0 : index
    %535 = vector.load %arg14[%c192_330, %c0_331] : memref<256x32xf32, #tpu.memory_space<vmem>>, vector<16x32xf32>
    %c192_332 = arith.constant 192 : index
    %c0_333 = arith.constant 0 : index
    %536 = vector.load %arg15[%c192_332, %c0_333] : memref<256x32xf32, #tpu.memory_space<vmem>>, vector<16x32xf32>
    %c48_334 = arith.constant 48 : index
    %c0_335 = arith.constant 0 : index
    %537 = vector.load %arg14[%c48_334, %c0_335] : memref<256x32xf32, #tpu.memory_space<vmem>>, vector<16x32xf32>
    %c48_336 = arith.constant 48 : index
    %c0_337 = arith.constant 0 : index
    %538 = vector.load %arg15[%c48_336, %c0_337] : memref<256x32xf32, #tpu.memory_space<vmem>>, vector<16x32xf32>
    %539 = tpu.concatenate %535, %536, %537, %538 in 1 : vector<16x32xf32>, vector<16x32xf32>, vector<16x32xf32>, vector<16x32xf32> -> vector<16x128xf32>
    %c192_338 = arith.constant 192 : index
    %c0_339 = arith.constant 0 : index
    %540 = vector.load %arg16[%c192_338, %c0_339] : memref<256x768xf32, #tpu.memory_space<vmem>>, vector<16x128xf32>
    %c192_340 = arith.constant 192 : index
    %c128_341 = arith.constant 128 : index
    %541 = vector.load %arg16[%c192_340, %c128_341] : memref<256x768xf32, #tpu.memory_space<vmem>>, vector<16x128xf32>
    %c192_342 = arith.constant 192 : index
    %c256_343 = arith.constant 256 : index
    %542 = vector.load %arg16[%c192_342, %c256_343] : memref<256x768xf32, #tpu.memory_space<vmem>>, vector<16x128xf32>
    %c192_344 = arith.constant 192 : index
    %c384_345 = arith.constant 384 : index
    %543 = vector.load %arg16[%c192_344, %c384_345] : memref<256x768xf32, #tpu.memory_space<vmem>>, vector<16x128xf32>
    %c192_346 = arith.constant 192 : index
    %c512_347 = arith.constant 512 : index
    %544 = vector.load %arg16[%c192_346, %c512_347] : memref<256x768xf32, #tpu.memory_space<vmem>>, vector<16x128xf32>
    %c192_348 = arith.constant 192 : index
    %c640_349 = arith.constant 640 : index
    %545 = vector.load %arg16[%c192_348, %c640_349] : memref<256x768xf32, #tpu.memory_space<vmem>>, vector<16x128xf32>
    %546 = vector.extract_strided_slice %530 {offsets = [0, 0], sizes = [15, 128], strides = [1, 1]} : vector<16x128xf32> to vector<15x128xf32>
    %547 = tpu.concatenate %220, %546 in 0 : vector<1x128xf32>, vector<15x128xf32> -> vector<16x128xf32>
    %548 = vector.extract_strided_slice %530 {offsets = [1, 0], sizes = [15, 128], strides = [1, 1]} : vector<16x128xf32> to vector<15x128xf32>
    %549 = tpu.concatenate %548, %220 in 0 : vector<15x128xf32>, vector<1x128xf32> -> vector<16x128xf32>
    %550 = arith.mulf %543, %539 : vector<16x128xf32>
    %551 = arith.mulf %540, %547 : vector<16x128xf32>
    %552 = arith.addf %550, %551 : vector<16x128xf32>
    %553 = arith.mulf %541, %530 : vector<16x128xf32>
    %554 = arith.addf %552, %553 : vector<16x128xf32>
    %555 = arith.mulf %542, %549 : vector<16x128xf32>
    %556 = arith.addf %554, %555 : vector<16x128xf32>
    %557 = arith.mulf %556, %544 : vector<16x128xf32>
    %558 = arith.mulf %539, %545 : vector<16x128xf32>
    %559 = arith.addf %557, %558 : vector<16x128xf32>
    %c192_350 = arith.constant 192 : index
    %c0_351 = arith.constant 0 : index
    %560 = vector.load %arg17[%c192_350, %c0_351] : memref<256x128xf32, #tpu.memory_space<vmem>>, vector<16x128xf32>
    tpu.vector_store %arg17[%c192_350, %c0_351], %559 {strides = array<i32>} : memref<256x128xf32, #tpu.memory_space<vmem>>, vector<16x128xf32>,
    %c208_352 = arith.constant 208 : index
    %c0_353 = arith.constant 0 : index
    %561 = vector.load %arg14[%c208_352, %c0_353] : memref<256x32xf32, #tpu.memory_space<vmem>>, vector<16x32xf32>
    %c208_354 = arith.constant 208 : index
    %c0_355 = arith.constant 0 : index
    %562 = vector.load %arg15[%c208_354, %c0_355] : memref<256x32xf32, #tpu.memory_space<vmem>>, vector<16x32xf32>
    %c32_356 = arith.constant 32 : index
    %c0_357 = arith.constant 0 : index
    %563 = vector.load %arg14[%c32_356, %c0_357] : memref<256x32xf32, #tpu.memory_space<vmem>>, vector<16x32xf32>
    %c32_358 = arith.constant 32 : index
    %c0_359 = arith.constant 0 : index
    %564 = vector.load %arg15[%c32_358, %c0_359] : memref<256x32xf32, #tpu.memory_space<vmem>>, vector<16x32xf32>
    %565 = tpu.concatenate %561, %562, %563, %564 in 1 : vector<16x32xf32>, vector<16x32xf32>, vector<16x32xf32>, vector<16x32xf32> -> vector<16x128xf32>
    %c208_360 = arith.constant 208 : index
    %c0_361 = arith.constant 0 : index
    %566 = vector.load %arg16[%c208_360, %c0_361] : memref<256x768xf32, #tpu.memory_space<vmem>>, vector<16x128xf32>
    %c208_362 = arith.constant 208 : index
    %c128_363 = arith.constant 128 : index
    %567 = vector.load %arg16[%c208_362, %c128_363] : memref<256x768xf32, #tpu.memory_space<vmem>>, vector<16x128xf32>
    %c208_364 = arith.constant 208 : index
    %c256_365 = arith.constant 256 : index
    %568 = vector.load %arg16[%c208_364, %c256_365] : memref<256x768xf32, #tpu.memory_space<vmem>>, vector<16x128xf32>
    %c208_366 = arith.constant 208 : index
    %c384_367 = arith.constant 384 : index
    %569 = vector.load %arg16[%c208_366, %c384_367] : memref<256x768xf32, #tpu.memory_space<vmem>>, vector<16x128xf32>
    %c208_368 = arith.constant 208 : index
    %c512_369 = arith.constant 512 : index
    %570 = vector.load %arg16[%c208_368, %c512_369] : memref<256x768xf32, #tpu.memory_space<vmem>>, vector<16x128xf32>
    %c208_370 = arith.constant 208 : index
    %c640_371 = arith.constant 640 : index
    %571 = vector.load %arg16[%c208_370, %c640_371] : memref<256x768xf32, #tpu.memory_space<vmem>>, vector<16x128xf32>
    %572 = vector.extract_strided_slice %556 {offsets = [0, 0], sizes = [15, 128], strides = [1, 1]} : vector<16x128xf32> to vector<15x128xf32>
    %573 = tpu.concatenate %220, %572 in 0 : vector<1x128xf32>, vector<15x128xf32> -> vector<16x128xf32>
    %574 = vector.extract_strided_slice %556 {offsets = [1, 0], sizes = [15, 128], strides = [1, 1]} : vector<16x128xf32> to vector<15x128xf32>
    %575 = tpu.concatenate %574, %220 in 0 : vector<15x128xf32>, vector<1x128xf32> -> vector<16x128xf32>
    %576 = arith.mulf %569, %565 : vector<16x128xf32>
    %577 = arith.mulf %566, %573 : vector<16x128xf32>
    %578 = arith.addf %576, %577 : vector<16x128xf32>
    %579 = arith.mulf %567, %556 : vector<16x128xf32>
    %580 = arith.addf %578, %579 : vector<16x128xf32>
    %581 = arith.mulf %568, %575 : vector<16x128xf32>
    %582 = arith.addf %580, %581 : vector<16x128xf32>
    %583 = arith.mulf %582, %570 : vector<16x128xf32>
    %584 = arith.mulf %565, %571 : vector<16x128xf32>
    %585 = arith.addf %583, %584 : vector<16x128xf32>
    %c208_372 = arith.constant 208 : index
    %c0_373 = arith.constant 0 : index
    %586 = vector.load %arg17[%c208_372, %c0_373] : memref<256x128xf32, #tpu.memory_space<vmem>>, vector<16x128xf32>
    tpu.vector_store %arg17[%c208_372, %c0_373], %585 {strides = array<i32>} : memref<256x128xf32, #tpu.memory_space<vmem>>, vector<16x128xf32>,
    %c224_374 = arith.constant 224 : index
    %c0_375 = arith.constant 0 : index
    %587 = vector.load %arg14[%c224_374, %c0_375] : memref<256x32xf32, #tpu.memory_space<vmem>>, vector<16x32xf32>
    %c224_376 = arith.constant 224 : index
    %c0_377 = arith.constant 0 : index
    %588 = vector.load %arg15[%c224_376, %c0_377] : memref<256x32xf32, #tpu.memory_space<vmem>>, vector<16x32xf32>
    %c16_378 = arith.constant 16 : index
    %c0_379 = arith.constant 0 : index
    %589 = vector.load %arg14[%c16_378, %c0_379] : memref<256x32xf32, #tpu.memory_space<vmem>>, vector<16x32xf32>
    %c16_380 = arith.constant 16 : index
    %c0_381 = arith.constant 0 : index
    %590 = vector.load %arg15[%c16_380, %c0_381] : memref<256x32xf32, #tpu.memory_space<vmem>>, vector<16x32xf32>
    %591 = tpu.concatenate %587, %588, %589, %590 in 1 : vector<16x32xf32>, vector<16x32xf32>, vector<16x32xf32>, vector<16x32xf32> -> vector<16x128xf32>
    %c224_382 = arith.constant 224 : index
    %c0_383 = arith.constant 0 : index
    %592 = vector.load %arg16[%c224_382, %c0_383] : memref<256x768xf32, #tpu.memory_space<vmem>>, vector<16x128xf32>
    %c224_384 = arith.constant 224 : index
    %c128_385 = arith.constant 128 : index
    %593 = vector.load %arg16[%c224_384, %c128_385] : memref<256x768xf32, #tpu.memory_space<vmem>>, vector<16x128xf32>
    %c224_386 = arith.constant 224 : index
    %c256_387 = arith.constant 256 : index
    %594 = vector.load %arg16[%c224_386, %c256_387] : memref<256x768xf32, #tpu.memory_space<vmem>>, vector<16x128xf32>
    %c224_388 = arith.constant 224 : index
    %c384_389 = arith.constant 384 : index
    %595 = vector.load %arg16[%c224_388, %c384_389] : memref<256x768xf32, #tpu.memory_space<vmem>>, vector<16x128xf32>
    %c224_390 = arith.constant 224 : index
    %c512_391 = arith.constant 512 : index
    %596 = vector.load %arg16[%c224_390, %c512_391] : memref<256x768xf32, #tpu.memory_space<vmem>>, vector<16x128xf32>
    %c224_392 = arith.constant 224 : index
    %c640_393 = arith.constant 640 : index
    %597 = vector.load %arg16[%c224_392, %c640_393] : memref<256x768xf32, #tpu.memory_space<vmem>>, vector<16x128xf32>
    %598 = vector.extract_strided_slice %582 {offsets = [0, 0], sizes = [15, 128], strides = [1, 1]} : vector<16x128xf32> to vector<15x128xf32>
    %599 = tpu.concatenate %220, %598 in 0 : vector<1x128xf32>, vector<15x128xf32> -> vector<16x128xf32>
    %600 = vector.extract_strided_slice %582 {offsets = [1, 0], sizes = [15, 128], strides = [1, 1]} : vector<16x128xf32> to vector<15x128xf32>
    %601 = tpu.concatenate %600, %220 in 0 : vector<15x128xf32>, vector<1x128xf32> -> vector<16x128xf32>
    %602 = arith.mulf %595, %591 : vector<16x128xf32>
    %603 = arith.mulf %592, %599 : vector<16x128xf32>
    %604 = arith.addf %602, %603 : vector<16x128xf32>
    %605 = arith.mulf %593, %582 : vector<16x128xf32>
    %606 = arith.addf %604, %605 : vector<16x128xf32>
    %607 = arith.mulf %594, %601 : vector<16x128xf32>
    %608 = arith.addf %606, %607 : vector<16x128xf32>
    %609 = arith.mulf %608, %596 : vector<16x128xf32>
    %610 = arith.mulf %591, %597 : vector<16x128xf32>
    %611 = arith.addf %609, %610 : vector<16x128xf32>
    %c224_394 = arith.constant 224 : index
    %c0_395 = arith.constant 0 : index
    %612 = vector.load %arg17[%c224_394, %c0_395] : memref<256x128xf32, #tpu.memory_space<vmem>>, vector<16x128xf32>
    tpu.vector_store %arg17[%c224_394, %c0_395], %611 {strides = array<i32>} : memref<256x128xf32, #tpu.memory_space<vmem>>, vector<16x128xf32>,
    %c240_396 = arith.constant 240 : index
    %c0_397 = arith.constant 0 : index
    %613 = vector.load %arg14[%c240_396, %c0_397] : memref<256x32xf32, #tpu.memory_space<vmem>>, vector<16x32xf32>
    %c240_398 = arith.constant 240 : index
    %c0_399 = arith.constant 0 : index
    %614 = vector.load %arg15[%c240_398, %c0_399] : memref<256x32xf32, #tpu.memory_space<vmem>>, vector<16x32xf32>
    %c0_400 = arith.constant 0 : index
    %c0_401 = arith.constant 0 : index
    %615 = vector.load %arg14[%c0_400, %c0_401] : memref<256x32xf32, #tpu.memory_space<vmem>>, vector<16x32xf32>
    %c0_402 = arith.constant 0 : index
    %c0_403 = arith.constant 0 : index
    %616 = vector.load %arg15[%c0_402, %c0_403] : memref<256x32xf32, #tpu.memory_space<vmem>>, vector<16x32xf32>
    %617 = tpu.concatenate %613, %614, %615, %616 in 1 : vector<16x32xf32>, vector<16x32xf32>, vector<16x32xf32>, vector<16x32xf32> -> vector<16x128xf32>
    %c240_404 = arith.constant 240 : index
    %c0_405 = arith.constant 0 : index
    %618 = vector.load %arg16[%c240_404, %c0_405] : memref<256x768xf32, #tpu.memory_space<vmem>>, vector<16x128xf32>
    %c240_406 = arith.constant 240 : index
    %c128_407 = arith.constant 128 : index
    %619 = vector.load %arg16[%c240_406, %c128_407] : memref<256x768xf32, #tpu.memory_space<vmem>>, vector<16x128xf32>
    %c240_408 = arith.constant 240 : index
    %c256_409 = arith.constant 256 : index
    %620 = vector.load %arg16[%c240_408, %c256_409] : memref<256x768xf32, #tpu.memory_space<vmem>>, vector<16x128xf32>
    %c240_410 = arith.constant 240 : index
    %c384_411 = arith.constant 384 : index
    %621 = vector.load %arg16[%c240_410, %c384_411] : memref<256x768xf32, #tpu.memory_space<vmem>>, vector<16x128xf32>
    %c240_412 = arith.constant 240 : index
    %c512_413 = arith.constant 512 : index
    %622 = vector.load %arg16[%c240_412, %c512_413] : memref<256x768xf32, #tpu.memory_space<vmem>>, vector<16x128xf32>
    %c240_414 = arith.constant 240 : index
    %c640_415 = arith.constant 640 : index
    %623 = vector.load %arg16[%c240_414, %c640_415] : memref<256x768xf32, #tpu.memory_space<vmem>>, vector<16x128xf32>
    %624 = vector.extract_strided_slice %608 {offsets = [0, 0], sizes = [15, 128], strides = [1, 1]} : vector<16x128xf32> to vector<15x128xf32>
    %625 = tpu.concatenate %220, %624 in 0 : vector<1x128xf32>, vector<15x128xf32> -> vector<16x128xf32>
    %626 = vector.extract_strided_slice %608 {offsets = [1, 0], sizes = [15, 128], strides = [1, 1]} : vector<16x128xf32> to vector<15x128xf32>
    %627 = tpu.concatenate %626, %220 in 0 : vector<15x128xf32>, vector<1x128xf32> -> vector<16x128xf32>
    %628 = arith.mulf %621, %617 : vector<16x128xf32>
    %629 = arith.mulf %618, %625 : vector<16x128xf32>
    %630 = arith.addf %628, %629 : vector<16x128xf32>
    %631 = arith.mulf %619, %608 : vector<16x128xf32>
    %632 = arith.addf %630, %631 : vector<16x128xf32>
    %633 = arith.mulf %620, %627 : vector<16x128xf32>
    %634 = arith.addf %632, %633 : vector<16x128xf32>
    %635 = arith.mulf %634, %622 : vector<16x128xf32>
    %636 = arith.mulf %617, %623 : vector<16x128xf32>
    %637 = arith.addf %635, %636 : vector<16x128xf32>
    %c240_416 = arith.constant 240 : index
    %c0_417 = arith.constant 0 : index
    %638 = vector.load %arg17[%c240_416, %c0_417] : memref<256x128xf32, #tpu.memory_space<vmem>>, vector<16x128xf32>
    tpu.vector_store %arg17[%c240_416, %c0_417], %637 {strides = array<i32>} : memref<256x128xf32, #tpu.memory_space<vmem>>, vector<16x128xf32>,
    %c0_418 = arith.constant 0 : index
    %c0_419 = arith.constant 0 : index
    %639 = vector.load %arg17[%c0_418, %c0_419] : memref<256x128xf32, #tpu.memory_space<vmem>>, vector<256x128xf32>
    %c0_420 = arith.constant 0 : index
    %c0_421 = arith.constant 0 : index
    %640 = vector.load %arg7[%c0_420, %c0_421] : memref<128x32xf32, #tpu.memory_space<vmem>>, vector<128x32xf32>
    %cst_422 = arith.constant dense<0.000000e+00> : vector<256x32xf32>
    %641 = tpu.matmul %639, %640, %cst_422 {dimension_numbers = #tpu.dot_dimension_numbers<[1], [0], [0], [1], [0, 0, 1, 1], [], []>} : vector<256x128xf32>, vector<128x32xf32>, vector<256x32xf32> -> vector<256x32xf32>
    %cst_423 = arith.constant dense<0.000000e+00> : vector<256xf32>
    %642 = vector.multi_reduction <add>, %641, %cst_423 [1] : vector<256x32xf32> to vector<256xf32>
    %643 = vector.shape_cast %642 : vector<256xf32> to vector<256x1xf32>
    %cst_424 = arith.constant 3.200000e+01 : f32
    %644 = vector.broadcast %cst_424 : f32 to vector<256x1xf32>
    %645 = arith.divf %643, %644 : vector<256x1xf32>
    %646 = vector.broadcast %645 : vector<256x1xf32> to vector<256x32xf32>
    %647 = arith.subf %641, %646 : vector<256x32xf32>
    %648 = arith.mulf %647, %647 : vector<256x32xf32>
    %cst_425 = arith.constant dense<0.000000e+00> : vector<256xf32>
    %649 = vector.multi_reduction <add>, %648, %cst_425 [1] : vector<256x32xf32> to vector<256xf32>
    %650 = vector.shape_cast %649 : vector<256xf32> to vector<256x1xf32>
    %cst_426 = arith.constant 3.200000e+01 : f32
    %651 = vector.broadcast %cst_426 : f32 to vector<256x1xf32>
    %652 = arith.divf %650, %651 : vector<256x1xf32>
    %cst_427 = arith.constant 9.99999974E-6 : f32
    %653 = vector.broadcast %cst_427 : f32 to vector<256x1xf32>
    %654 = arith.addf %652, %653 : vector<256x1xf32>
    %655 = math.rsqrt %654 : vector<256x1xf32>
    %656 = vector.broadcast %655 : vector<256x1xf32> to vector<256x32xf32>
    %657 = arith.mulf %647, %656 : vector<256x32xf32>
    %c0_428 = arith.constant 0 : index
    %c0_429 = arith.constant 0 : index
    %658 = vector.load %arg8[%c0_428, %c0_429] : memref<1x32xf32, #tpu.memory_space<vmem>>, vector<1x32xf32>
    %659 = vector.broadcast %658 : vector<1x32xf32> to vector<256x32xf32>
    %660 = arith.mulf %657, %659 : vector<256x32xf32>
    %c0_430 = arith.constant 0 : index
    %c0_431 = arith.constant 0 : index
    %661 = vector.load %arg9[%c0_430, %c0_431] : memref<1x32xf32, #tpu.memory_space<vmem>>, vector<1x32xf32>
    %662 = vector.broadcast %661 : vector<1x32xf32> to vector<256x32xf32>
    %663 = arith.addf %660, %662 : vector<256x32xf32>
    %664 = arith.mulf %663, %663 : vector<256x32xf32>
    %cst_432 = arith.constant dense<0.000000e+00> : vector<32xf32>
    %665 = vector.multi_reduction <add>, %664, %cst_432 [0] : vector<256x32xf32> to vector<32xf32>
    %666 = vector.shape_cast %665 : vector<32xf32> to vector<1x32xf32>
    %667 = math.sqrt %666 : vector<1x32xf32>
    %cst_433 = arith.constant dense<0.000000e+00> : vector<1xf32>
    %668 = vector.multi_reduction <add>, %667, %cst_433 [1] : vector<1x32xf32> to vector<1xf32>
    %669 = vector.shape_cast %668 : vector<1xf32> to vector<1x1xf32>
    %cst_434 = arith.constant 3.200000e+01 : f32
    %670 = vector.broadcast %cst_434 : f32 to vector<1x1xf32>
    %671 = arith.divf %669, %670 : vector<1x1xf32>
    %cst_435 = arith.constant 9.99999997E-7 : f32
    %672 = vector.broadcast %cst_435 : f32 to vector<1x1xf32>
    %673 = arith.addf %671, %672 : vector<1x1xf32>
    %674 = vector.broadcast %673 : vector<1x1xf32> to vector<1x32xf32>
    %675 = arith.divf %667, %674 : vector<1x32xf32>
    %c0_436 = arith.constant 0 : index
    %c0_437 = arith.constant 0 : index
    %676 = vector.load %arg10[%c0_436, %c0_437] : memref<1x32xf32, #tpu.memory_space<vmem>>, vector<1x32xf32>
    %677 = vector.broadcast %675 : vector<1x32xf32> to vector<256x32xf32>
    %678 = arith.mulf %663, %677 : vector<256x32xf32>
    %679 = vector.broadcast %676 : vector<1x32xf32> to vector<256x32xf32>
    %680 = arith.mulf %679, %678 : vector<256x32xf32>
    %c0_438 = arith.constant 0 : index
    %c0_439 = arith.constant 0 : index
    %681 = vector.load %arg11[%c0_438, %c0_439] : memref<1x32xf32, #tpu.memory_space<vmem>>, vector<1x32xf32>
    %682 = vector.broadcast %681 : vector<1x32xf32> to vector<256x32xf32>
    %683 = arith.addf %680, %682 : vector<256x32xf32>
    %684 = arith.addf %683, %663 : vector<256x32xf32>
    %c0_440 = arith.constant 0 : index
    %c0_441 = arith.constant 0 : index
    %685 = vector.load %arg12[%c0_440, %c0_441] : memref<32x16xf32, #tpu.memory_space<vmem>>, vector<32x16xf32>
    %cst_442 = arith.constant dense<0.000000e+00> : vector<256x16xf32>
    %686 = tpu.matmul %684, %685, %cst_442 {dimension_numbers = #tpu.dot_dimension_numbers<[1], [0], [0], [1], [0, 0, 1, 1], [], []>} : vector<256x32xf32>, vector<32x16xf32>, vector<256x16xf32> -> vector<256x16xf32>
    %c0_443 = arith.constant 0 : index
    %c0_444 = arith.constant 0 : index
    %c0_445 = arith.constant 0 : index
    %687 = vector.load %arg13[%c0_443, %c0_444, %c0_445] : memref<1x256x16xf32, #tpu.memory_space<vmem>>, vector<1x256x16xf32>
    %688 = vector.shape_cast %687 : vector<1x256x16xf32> to vector<256x16xf32>
    %689 = vector.shape_cast %686 : vector<256x16xf32> to vector<1x256x16xf32>
    tpu.vector_store %arg13[%c0_443, %c0_444, %c0_445], %689 {strides = array<i32>} : memref<1x256x16xf32, #tpu.memory_space<vmem>>, vector<1x256x16xf32>,
    return
  }
  func.func @transform_0(%arg0: i32) -> (i32, i32, i32) {
    %c0_i32 = arith.constant 0 : i32
    %c0_i32_0 = arith.constant 0 : i32
    %c0_i32_1 = arith.constant 0 : i32
    return %arg0, %c0_i32, %c0_i32_0 : i32, i32, i32
  }
  func.func @transform_1(%arg0: i32) -> (i32, i32, i32) {
    %c0_i32 = arith.constant 0 : i32
    %c0_i32_0 = arith.constant 0 : i32
    %c0_i32_1 = arith.constant 0 : i32
    return %arg0, %c0_i32, %c0_i32_0 : i32, i32, i32
  }
  func.func @transform_2(%arg0: i32) -> (i32, i32) {
    %c0_i32 = arith.constant 0 : i32
    %c0_i32_0 = arith.constant 0 : i32
    %c0_i32_1 = arith.constant 0 : i32
    return %c0_i32, %c0_i32_0 : i32, i32
  }
  func.func @transform_3(%arg0: i32) -> (i32, i32) {
    %c0_i32 = arith.constant 0 : i32
    %c0_i32_0 = arith.constant 0 : i32
    %c0_i32_1 = arith.constant 0 : i32
    return %c0_i32, %c0_i32_0 : i32, i32
  }
  func.func @transform_4(%arg0: i32) -> (i32, i32) {
    %c0_i32 = arith.constant 0 : i32
    %c0_i32_0 = arith.constant 0 : i32
    %c0_i32_1 = arith.constant 0 : i32
    return %c0_i32, %c0_i32_0 : i32, i32
  }
  func.func @transform_5(%arg0: i32) -> (i32, i32) {
    %c0_i32 = arith.constant 0 : i32
    %c0_i32_0 = arith.constant 0 : i32
    %c0_i32_1 = arith.constant 0 : i32
    return %c0_i32, %c0_i32_0 : i32, i32
  }
  func.func @transform_6(%arg0: i32) -> (i32, i32) {
    %c0_i32 = arith.constant 0 : i32
    %c0_i32_0 = arith.constant 0 : i32
    %c0_i32_1 = arith.constant 0 : i32
    return %c0_i32, %c0_i32_0 : i32, i32
  }
  func.func @transform_7(%arg0: i32) -> (i32, i32) {
    %c0_i32 = arith.constant 0 : i32
    %c0_i32_0 = arith.constant 0 : i32
    %c0_i32_1 = arith.constant 0 : i32
    return %c0_i32, %c0_i32_0 : i32, i32
  }
  func.func @transform_8(%arg0: i32) -> (i32, i32) {
    %c0_i32 = arith.constant 0 : i32
    %c0_i32_0 = arith.constant 0 : i32
    %c0_i32_1 = arith.constant 0 : i32
    return %c0_i32, %c0_i32_0 : i32, i32
  }
  func.func @transform_9(%arg0: i32) -> (i32, i32) {
    %c0_i32 = arith.constant 0 : i32
    %c0_i32_0 = arith.constant 0 : i32
    %c0_i32_1 = arith.constant 0 : i32
    return %c0_i32, %c0_i32_0 : i32, i32
  }
  func.func @transform_10(%arg0: i32) -> (i32, i32) {
    %c0_i32 = arith.constant 0 : i32
    %c0_i32_0 = arith.constant 0 : i32
    %c0_i32_1 = arith.constant 0 : i32
    return %c0_i32, %c0_i32_0 : i32, i32
  }
  func.func @transform_11(%arg0: i32) -> (i32, i32) {
    %c0_i32 = arith.constant 0 : i32
    %c0_i32_0 = arith.constant 0 : i32
    %c0_i32_1 = arith.constant 0 : i32
    return %c0_i32, %c0_i32_0 : i32, i32
  }
  func.func @transform_12(%arg0: i32) -> (i32, i32, i32) {
    %c0_i32 = arith.constant 0 : i32
    %c0_i32_0 = arith.constant 0 : i32
    %c0_i32_1 = arith.constant 0 : i32
    return %arg0, %c0_i32, %c0_i32_0 : i32, i32, i32
  }
}

</mosaic_0001>

<bundles_post_ra>
// kernel: gspn_forward.1
= control target key start
LH: loop header
LB: loop body
LE: loop exit
PB: predicated region body
PF: predicated region fallthrough
CT: control target
= control target key end

     0   :  { %s10010_s21 = smov 0   ;;  %s16568_s0 = inlined_call_operand.vmem [shape: f32[2,256,16], index: 0, kind: input, shape index: {}]   ;;  %s16569_s1 = inlined_call_operand.vmem [shape: f32[2,256,16], index: 1, kind: input, shape index: {}]   ;;  %s16570_s2 = inlined_call_operand.vmem [shape: f32[16,32], index: 2, kind: input, shape index: {}]   ;;  %s16571_s3 = inlined_call_operand.vmem [shape: f32[9,32], index: 3, kind: input, shape index: {}]   ;;  %s16572_s4 = inlined_call_operand.vmem [shape: f32[1,32], index: 4, kind: input, shape index: {}]   ;;  %s16573_s5 = inlined_call_operand.vmem [shape: f32[32,768], index: 5, kind: input, shape index: {}]   ;;  %s16574_s6 = inlined_call_operand.vmem [shape: f32[128,32], index: 6, kind: input, shape index: {}]   ;;  %s16575_s7 = inlined_call_operand.vmem [shape: f32[1,32], index: 7, kind: input, shape index: {}]   ;;  %s16576_s8 = inlined_call_operand.vmem [shape: f32[1,32], index: 8, kind: input, shape index: {}]   ;;  %s16577_s9 = inlined_call_operand.vmem [shape: f32[1,32], index: 9, kind: input, shape index: {}]   ;;  %s16578_s10 = inlined_call_operand.vmem [shape: f32[1,32], index: 10, kind: input, shape index: {}]   ;;  %s16579_s11 = inlined_call_operand.vmem [shape: f32[32,16], index: 11, kind: input, shape index: {}]   ;;  %s16580_s12 = inlined_call_operand.vmem [shape: f32[2,256,16], index: 12, kind: output, shape index: {}]  }
   0x1 LB: > { %s8625_s22 = sadd.s32 4294967295, %s9939_s21   ;;  %p8629_p0 = scmp.ge.s32.totalorder %s9939_s21, 1  ;;  %s9939_s21 = sphi %s10010_s21, %s22_s21  }
   0x2   : > { %p372_p1 = scmp.lt.s32.totalorder %s9939_s21, 3 }
   0x4   : > { %p373_p2 = pnand %p8629_p0, %p372_p1 }
   0x6   : > { %376 = sbr.rel (%p373_p2) target bundleno = 2018 (0x7e2), region = 68 }
   0xb   : > { %v1044_v0 = vld [vmem:[%s16570_s2 + $0x8] sm:$0xff]  ;;  %v1043_v1 = vld [vmem:[%s16570_s2] sm:$0xff]  ;;  %p419_p3 = scmp.lt.s32.totalorder %s8625_s22, 1  ;;  %v3930_v2 = vld [vmem:[%s16573_s5 + $0x98] sm:$0xff]  ;;  %vm1077_vm0 = vcmask 130048   ;;  %vm1429_vm6 = vcmask 1040384  }
   0xc   : > { %9127 = vmatprep.subr.mxu0 %v1044_v0  ;;  %9179 = vmatprep.subr.mxu1 %v1044_v0  ;;  %v3929_v3 = vld [vmem:[%s16573_s5 + $0x90] sm:$0xff]  ;;  %v3924_v10 = vld [vmem:[%s16573_s5 + $0x68] sm:$0xff]  ;;  %v3923_v15 = vld [vmem:[%s16573_s5 + $0x60] sm:$0xff]  ;;  %vm2038_vm7 = vcmask 1046528   ;;  %s9942_s23 = smov 32   ;;  %s9943_s15 = smov 64  }
   0xd   : > { %9128 = vmatpush3.msra.mxu0 %v1044_v0  ;;  %9180 = vmatpush3.msra.mxu1 %v1044_v0  ;;  %s17514_s22 = smov (!%p419_p3, %s8625_s22), 1  ;;  %v3918_v16 = vld [vmem:[%s16573_s5 + $0x38] sm:$0xff]  ;;  %v3917_v21 = vld [vmem:[%s16573_s5 + $0x30] sm:$0xff]  ;;  %s9944_s30 = smov 96  }
   0xe   : > { %9129 = vmatprep.subr.mxu0 %v1043_v1  ;;  %9181 = vmatprep.subr.mxu1 %v1043_v1  ;;  %s10027_s29 = sshll.u32 %s17514_s22, 8 }
   0xf   : > { %9130 = vmatpush3.msra.mxu0 %v1043_v1  ;;  %9182 = vmatpush3.msra.mxu1 %v1043_v1  ;;  %s10033_s14 = scalar_lea.vmem %s16568_s0, %s10027_s29  ;;  %s10039_s17 = scalar_lea.vmem %s16569_s1, %s10027_s29 }
  0x10   : > { %4055 = vmatprep.subr.mxu0 %v3930_v2  ;;  %v1045_v4 = vld [vmem:[%s10033_s14] sm:$0xff]  ;;  %v1046_v6 = vld [vmem:[%s10033_s14 + $0x8] sm:$0xff]  ;;  %v1047_v8 = vld [vmem:[%s10033_s14 + $0x10] sm:$0xff] }
  0x11   : > { %v2479_v5 = vld [vmem:[%s10039_s17] sm:$0xff]  ;;  %9131 = vmatprep.mubr.msk.f32.mxu0 %vm1077_vm0, %v1045_v4  ;;  %v2480_v7 = vld [vmem:[%s10039_s17 + $0x8] sm:$0xff]  ;;  %v2481_v9 = vld [vmem:[%s10039_s17 + $0x10] sm:$0xff] }
  0x12   : > { %9183 = vmatprep.mubr.msk.f32.mxu1 %vm1077_vm0, %v2479_v5  ;;  %9132 = vmatmul.mubr.msk.f32.vlgmr.msra.gmra.mxu0 %vm1077_vm0, %v1046_v6  ;;  %v1048_v11 = vld [vmem:[%s10033_s14 + $0x18] sm:$0xff]  ;;  %v1049_v13 = vld [vmem:[%s10033_s14 + $0x20] sm:$0xff]  ;;  %v1050_v17 = vld [vmem:[%s10033_s14 + $0x28] sm:$0xff] }
  0x13   : > { %9184 = vmatmul.mubr.msk.f32.vlgmr.msra.gmra.mxu1 %vm1077_vm0, %v2480_v7  ;;  %9134 = vmatprep.mubr.msk.f32.mxu0 %vm1077_vm0, %v1047_v8  ;;  %v2482_v12 = vld [vmem:[%s10039_s17 + $0x18] sm:$0xff]  ;;  %v2483_v14 = vld [vmem:[%s10039_s17 + $0x20] sm:$0xff]  ;;  %v2484_v18 = vld [vmem:[%s10039_s17 + $0x28] sm:$0xff]  ;;  %v16581_v8 = vmov 0.0  }
  0x14   : > { %9186 = vmatprep.mubr.msk.f32.mxu1 %vm1077_vm0, %v2481_v9  ;;  %4056 = vmatpush1.msra.mxu0 %v3929_v3  ;;  %v1051_v19 = vld [vmem:[%s10033_s14 + $0x30] sm:$0xff]  ;;  %v1052_v22 = vld [vmem:[%s10033_s14 + $0x38] sm:$0xff]  ;;  %v1053_v24 = vld [vmem:[%s10033_s14 + $0x40] sm:$0xff] }
  0x15   : > { %4057 = vmatprep.subr.mxu0 %v3924_v10  ;;  %v2485_v20 = vld [vmem:[%s10039_s17 + $0x30] sm:$0xff]  ;;  %v2486_v23 = vld [vmem:[%s10039_s17 + $0x38] sm:$0xff]  ;;  %v2487_v25 = vld [vmem:[%s10039_s17 + $0x40] sm:$0xff] }
  0x16   : > { %9135 = vmatmul.mubr.msk.f32.gmra.mxu0 %vm1077_vm0, %v1048_v11  ;;  %v1054_v26 = vld [vmem:[%s10033_s14 + $0x48] sm:$0xff]  ;;  %v1055_v28 = vld [vmem:[%s10033_s14 + $0x50] sm:$0xff]  ;;  %v1056_v30 = vld [vmem:[%s10033_s14 + $0x58] sm:$0xff] }
  0x17   : > { %9187 = vmatmul.mubr.msk.f32.gmra.mxu1 %vm1077_vm0, %v2482_v12  ;;  %9137 = vmatprep.mubr.msk.f32.mxu0 %vm1077_vm0, %v1049_v13  ;;  %v2488_v27 = vld [vmem:[%s10039_s17 + $0x48] sm:$0xff]  ;;  %v2489_v29 = vld [vmem:[%s10039_s17 + $0x50] sm:$0xff]  ;;  %v2490_v31 = vld [vmem:[%s10039_s17 + $0x58] sm:$0xff]  ;;  %v434_v13 = vlaneseq }
  0x18   : > { %9189 = vmatprep.mubr.msk.f32.mxu1 %vm1077_vm0, %v2483_v14  ;;  %4058 = vmatpush1.msra.mxu0 %v3923_v15  ;;  %v1057_v32 = vld [vmem:[%s10033_s14 + $0x60] sm:$0xff]  ;;  %v1058_v34 = vld [vmem:[%s10033_s14 + $0x68] sm:$0xff]  ;;  %v1059_v36 = vld [vmem:[%s10033_s14 + $0x70] sm:$0xff] }
  0x19   : > { %4059 = vmatprep.subr.mxu0 %v3918_v16  ;;  %v2491_v33 = vld [vmem:[%s10039_s17 + $0x60] sm:$0xff]  ;;  %v2492_v35 = vld [vmem:[%s10039_s17 + $0x68] sm:$0xff]  ;;  %v2493_v37 = vld [vmem:[%s10039_s17 + $0x70] sm:$0xff]  ;;  %v10204_v16 = vshrl.u32 %v434_v13, 7 }
  0x1a   : > { %9138 = vmatmul.mubr.msk.f32.gmra.mxu0 %vm1077_vm0, %v1050_v17  ;;  %v1060_v38 = vld [vmem:[%s10033_s14 + $0x78] sm:$0xff]  ;;  %v1061_v40 = vld [vmem:[%s10033_s14 + $0x80] sm:$0xff]  ;;  %v1062_v42 = vld [vmem:[%s10033_s14 + $0x88] sm:$0xff] }
  0x1b   : > { %9190 = vmatmul.mubr.msk.f32.gmra.mxu1 %vm1077_vm0, %v2484_v18  ;;  %9140 = vmatprep.mubr.msk.f32.mxu0 %vm1077_vm0, %v1051_v19  ;;  %v2494_v39 = vld [vmem:[%s10039_s17 + $0x78] sm:$0xff]  ;;  %v2495_v41 = vld [vmem:[%s10039_s17 + $0x80] sm:$0xff]  ;;  %v2496_v43 = vld [vmem:[%s10039_s17 + $0x88] sm:$0xff]  ;;  %16771 = vst [vmem:[#allocation6_spill] sm:$0xff] %v10204_v16  ;;  %v471_v17 = vand.u32 15, %v10204_v16  ;;  %v436_v18 = vadd.s32 8, %v10204_v16 }
  0x1c   : > { %9192 = vmatprep.mubr.msk.f32.mxu1 %vm1077_vm0, %v2485_v20  ;;  %4060 = vmatpush1.msra.mxu0 %v3917_v21  ;;  %v1063_v44 = vld [vmem:[%s10033_s14 + $0x90] sm:$0xff]  ;;  %v1064_v46 = vld [vmem:[%s10033_s14 + $0x98] sm:$0xff]  ;;  %v1065_v48 = vld [vmem:[%s10033_s14 + $0xa0] sm:$0xff]  ;;  %v437_v19 = vadd.s32 16, %v10204_v16  ;;  %v438_v20 = vadd.s32 24, %v10204_v16  ;;  %v439_v21 = vadd.s32 32, %v10204_v16 }
  0x1d   : > { %v2497_v45 = vld [vmem:[%s10039_s17 + $0x90] sm:$0xff]  ;;  %v2498_v47 = vld [vmem:[%s10039_s17 + $0x98] sm:$0xff]  ;;  %v2499_v49 = vld [vmem:[%s10039_s17 + $0xa0] sm:$0xff]  ;;  %vm851_vm1 = vcmp.gt.s32.totalorder %v471_v17, 0 }
  0x1e   : > { %9141 = vmatmul.mubr.msk.f32.gmra.mxu0 %vm1077_vm0, %v1052_v22  ;;  %v1066_v50 = vld [vmem:[%s10033_s14 + $0xa8] sm:$0xff]  ;;  %v1067_v52 = vld [vmem:[%s10033_s14 + $0xb0] sm:$0xff]  ;;  %v1068_v54 = vld [vmem:[%s10033_s14 + $0xb8] sm:$0xff]  ;;  %v478_v22 = vand.u32 15, %v436_v18 }
  0x1f   : > { %9193 = vmatmul.mubr.msk.f32.gmra.mxu1 %vm1077_vm0, %v2486_v23  ;;  %9143 = vmatprep.mubr.msk.f32.mxu0 %vm1077_vm0, %v1053_v24  ;;  %v2500_v51 = vld [vmem:[%s10039_s17 + $0xa8] sm:$0xff]  ;;  %v2501_v53 = vld [vmem:[%s10039_s17 + $0xb0] sm:$0xff]  ;;  %v2502_v55 = vld [vmem:[%s10039_s17 + $0xb8] sm:$0xff]  ;;  %v485_v23 = vand.u32 15, %v437_v19 }
  0x20   : > { %9195 = vmatprep.mubr.msk.f32.mxu1 %vm1077_vm0, %v2487_v25  ;;  %v1069_v56 = vld [vmem:[%s10033_s14 + $0xc0] sm:$0xff]  ;;  %v1070_v58 = vld [vmem:[%s10033_s14 + $0xc8] sm:$0xff]  ;;  %v1071_v60 = vld [vmem:[%s10033_s14 + $0xd0] sm:$0xff]  ;;  %v492_v25 = vand.u32 15, %v438_v20  ;;  %vm948_vm3 = vcmp.lt.s32.totalorder %v478_v22, 15 }
  0x21   : > { %v2503_v57 = vld [vmem:[%s10039_s17 + $0xc0] sm:$0xff]  ;;  %v2504_v59 = vld [vmem:[%s10039_s17 + $0xc8] sm:$0xff]  ;;  %v2505_v61 = vld [vmem:[%s10039_s17 + $0xd0] sm:$0xff]  ;;  %vm853_vm2 = vcmp.gt.s32.totalorder %v485_v23, 0 }
  0x22   : > { %9144 = vmatmul.mubr.msk.f32.gmra.mxu0 %vm1077_vm0, %v1054_v26  ;;  %v1072_v62 = vld [vmem:[%s10033_s14 + $0xd8] sm:$0xff]  ;;  %v1073_v0 = vld [vmem:[%s10033_s14 + $0xe0] sm:$0xff]  ;;  %v1074_v2 = vld [vmem:[%s10033_s14 + $0xe8] sm:$0xff]  ;;  %v499_v26 = vand.u32 15, %v439_v21  ;;  %vm10236_vm5 = vcmp.lt.s32.totalorder %v492_v25, 15 }
  0x23   : > { %9196 = vmatmul.mubr.msk.f32.gmra.mxu1 %vm1077_vm0, %v2488_v27  ;;  %9146 = vmatprep.mubr.msk.f32.mxu0 %vm1077_vm0, %v1055_v28  ;;  %v2506_v63 = vld [vmem:[%s10039_s17 + $0xd8] sm:$0xff]  ;;  %v2507_v1 = vld [vmem:[%s10039_s17 + $0xe0] sm:$0xff]  ;;  %v2508_v3 = vld [vmem:[%s10039_s17 + $0xe8] sm:$0xff]  ;;  %v10218_v28 = vsel %vm851_vm1, 1.0, %v16581_v8 }
  0x24   : > { %9198 = vmatprep.mubr.msk.f32.mxu1 %vm1077_vm0, %v2489_v29  ;;  %v1075_v4 = vld [vmem:[%s10033_s14 + $0xf0] sm:$0xff]  ;;  %v1076_v6 = vld [vmem:[%s10033_s14 + $0xf8] sm:$0xff]  ;;  %v3912_v9 = vld [vmem:[%s16573_s5 + $0x8] sm:$0xff]  ;;  %vm10232_vm4 = vcmp.gt.s32.totalorder %v499_v26, 0 }
  0x25   : > { %v2509_v5 = vld [vmem:[%s10039_s17 + $0xf0] sm:$0xff]  ;;  %v2510_v7 = vld [vmem:[%s10039_s17 + $0xf8] sm:$0xff]  ;;  %4061 = vmatprep.subr.mxu0 %v3912_v9  ;;  %v3932_v10 = vld [vmem:[%s16573_s5 + $0xa8] sm:$0xff] }
  0x26   : > { %9147 = vmatmul.mubr.msk.f32.gmra.mxu0 %vm1077_vm0, %v1056_v30  ;;  %4312 = vmatprep.subr.mxu1 %v3932_v10  ;;  %v3931_v11 = vld [vmem:[%s16573_s5 + $0xa0] sm:$0xff]  ;;  %v3926_v14 = vld [vmem:[%s16573_s5 + $0x78] sm:$0xff]  ;;  %v3925_v15 = vld [vmem:[%s16573_s5 + $0x70] sm:$0xff] }
  0x27   : > { %9199 = vmatmul.mubr.msk.f32.gmra.mxu1 %vm1077_vm0, %v2490_v31  ;;  %9149 = vmatprep.mubr.msk.f32.mxu0 %vm1077_vm0, %v1057_v32  ;;  %v3911_v12 = vld [vmem:[%s16573_s5] sm:$0xff]  ;;  %v3920_v24 = vld [vmem:[%s16573_s5 + $0x48] sm:$0xff]  ;;  %v3914_v29 = vld [vmem:[%s16573_s5 + $0x18] sm:$0xff]  ;;  %v1520_v31 = vmul.f32 0.0, %v10218_v28 }
  0x28   : > { %9201 = vmatprep.mubr.msk.f32.mxu1 %vm1077_vm0, %v2491_v33  ;;  %4313 = vmatpush1.msra.mxu1 %v3931_v11  ;;  %v3919_v27 = vld [vmem:[%s16573_s5 + $0x40] sm:$0xff]  ;;  %v3913_v30 = vld [vmem:[%s16573_s5 + $0x10] sm:$0xff]  ;;  %v3934_v10 = vld [vmem:[%s16573_s5 + $0xb8] sm:$0xff] }
  0x29   : > { %4062 = vmatpush1.msra.mxu0 %v3911_v12  ;;  %4314 = vmatprep.subr.mxu1 %v3926_v14  ;;  %v10230_v32 = vld [vmem:[%s16571_s3] ss:$0 sm:$0xff]  ;;  %v10331_v17 = vld [vmem:[%s16571_s3 + $0x4] ss:$0 sm:$0xff] }
  0x2a   : > { %9150 = vmatmul.mubr.msk.f32.gmra.mxu0 %vm1077_vm0, %v1058_v34  ;;  %4315 = vmatpush1.msra.mxu1 %v3925_v15 }
  0x2b   : > { %9202 = vmatmul.mubr.msk.f32.gmra.mxu1 %vm1077_vm0, %v2492_v35  ;;  %9152 = vmatprep.mubr.msk.f32.mxu0 %vm1077_vm0, %v1059_v36  ;;  %v441_v35 = vadd.s32 48, %v10204_v16  ;;  %v440_v36 = vadd.s32 40, %v10204_v16 }
  0x2c   : > { %9204 = vmatprep.mubr.msk.f32.mxu1 %vm1077_vm0, %v2493_v37  ;;  %4316 = vmatprep.subr.mxu1 %v3920_v24  ;;  %v443_v37 = vadd.s32 64, %v10204_v16 }
  0x2d   : > { %4317 = vmatpush1.msra.mxu1 %v3919_v27  ;;  %4569 = vmatprep.subr.mxu0 %v3934_v10 }
  0x2e   : > { %9153 = vmatmul.mubr.msk.f32.gmra.mxu0 %vm1077_vm0, %v1060_v38  ;;  %4318 = vmatprep.subr.mxu1 %v3914_v29  ;;  %v442_v38 = vadd.s32 56, %v10204_v16 }
  0x2f   : > { %9205 = vmatmul.mubr.msk.f32.gmra.mxu1 %vm1077_vm0, %v2494_v39  ;;  %9155 = vmatprep.mubr.msk.f32.mxu0 %vm1077_vm0, %v1061_v40  ;;  %v445_v39 = vadd.s32 80, %v10204_v16  ;;  %v10246_v40 = vsel %vm853_vm2, 1.0, %v16581_v8 }
  0x30   : > { %9207 = vmatprep.mubr.msk.f32.mxu1 %vm1077_vm0, %v2495_v41  ;;  %4319 = vmatpush1.msra.mxu1 %v3913_v30  ;;  %v10249_v41 = vsel %vm948_vm3, 1.0, %v16581_v8 }
  0x31   : > { %16776 = vst [vmem:[#allocation7_spill] sm:$0xff] %v10249_v41 }
  0x32   : > { %9156 = vmatmul.mubr.msk.f32.gmra.mxu0 %vm1077_vm0, %v1062_v42  ;;  %v444_v42 = vadd.s32 72, %v10204_v16 }
  0x33   : > { %9208 = vmatmul.mubr.msk.f32.gmra.mxu1 %vm1077_vm0, %v2496_v43  ;;  %9158 = vmatprep.mubr.msk.f32.mxu0 %vm1077_vm0, %v1063_v44  ;;  %v447_v43 = vadd.s32 96, %v10204_v16  ;;  %v10254_v44 = vmul.f32 0.0, %v10230_v32 }
  0x34   : > { %9210 = vmatprep.mubr.msk.f32.mxu1 %vm1077_vm0, %v2497_v45  ;;  %v446_v45 = vadd.s32 88, %v10204_v16 }
  0x36   : > { %9159 = vmatmul.mubr.msk.f32.gmra.mxu0 %vm1077_vm0, %v1064_v46  ;;  %v448_v46 = vadd.s32 104, %v10204_v16 }
  0x37   : > { %9211 = vmatmul.mubr.msk.f32.gmra.mxu1 %vm1077_vm0, %v2498_v47  ;;  %9161 = vmatprep.mubr.msk.f32.mxu0 %vm1077_vm0, %v1065_v48  ;;  %v449_v47 = vadd.s32 112, %v10204_v16  ;;  %v10262_v48 = vld [vmem:[%s16571_s3 + $0x3] ss:$0 sm:$0xff] }
  0x38   : > { %9213 = vmatprep.mubr.msk.f32.mxu1 %vm1077_vm0, %v2499_v49  ;;  %v10265_v49 = vmul.f32 %v10230_v32, %v1520_v31 }
  0x3a   : > { %9162 = vmatmul.mubr.msk.f32.gmra.mxu0 %vm1077_vm0, %v1066_v50  ;;  %v10270_v50 = vsel %vm10232_vm4, 1.0, %v16581_v8 }
  0x3b   : > { %9214 = vmatmul.mubr.msk.f32.gmra.mxu1 %vm1077_vm0, %v2500_v51  ;;  %9164 = vmatprep.mubr.msk.f32.mxu0 %vm1077_vm0, %v1067_v52  ;;  %v10275_v51 = vsel %vm10236_vm5, 1.0, %v16581_v8  ;;  %v513_v52 = vand.u32 15, %v441_v35  ;;  %vm3846_vm5 = vcmask 261120  }
  0x3c   : > { %9216 = vmatprep.mubr.msk.f32.mxu1 %vm1077_vm0, %v2501_v53  ;;  %16777 = vst [vmem:[#allocation8_spill] sm:$0xff] %v10275_v51  ;;  %v10280_v53 = vld [vmem:[%s16571_s3 + $0x1] ss:$0 sm:$0xff] }
  0x3d   : > { %vm857_vm8 = vcmp.gt.s32.totalorder %v513_v52, 0 }
  0x3e   : > { %9165 = vmatmul.mubr.msk.f32.gmra.mxu0 %vm1077_vm0, %v1068_v54  ;;  %v506_v54 = vand.u32 15, %v440_v36  ;;  %v10326_v15 = vsel %vm857_vm8, 1.0, %v16581_v8 }
  0x3f   : > { %9217 = vmatmul.mubr.msk.f32.gmra.mxu1 %vm1077_vm0, %v2502_v55  ;;  %9167 = vmatprep.mubr.msk.f32.mxu0 %vm1077_vm0, %v1069_v56  ;;  %v527_v55 = vand.u32 15, %v443_v37  ;;  %v520_v56 = vand.u32 15, %v442_v38 }
  0x40   : > { %9219 = vmatprep.mubr.msk.f32.mxu1 %vm1077_vm0, %v2503_v57  ;;  %v541_v57 = vand.u32 15, %v445_v39  ;;  %vm952_vm9 = vcmp.lt.s32.totalorder %v506_v54, 15 }
  0x41   : > { %vm859_vm10 = vcmp.gt.s32.totalorder %v527_v55, 0  ;;  %vm10306_vm11 = vcmp.lt.s32.totalorder %v520_v56, 15  ;;  %v10334_v18 = vsel %vm952_vm9, 1.0, %v16581_v8 }
  0x42   : > { %9168 = vmatmul.mubr.msk.f32.gmra.mxu0 %vm1077_vm0, %v1070_v58  ;;  %v10285_v58 = vld [vmem:[%s16571_s3 + $0x6] ss:$0 sm:$0xff]  ;;  %vm10310_vm12 = vcmp.gt.s32.totalorder %v541_v57, 0  ;;  %16789 = vst [vmem:[#allocation12_spill] sm:$0xff] %v10334_v18  ;;  %v10337_v19 = vsel %vm859_vm10, 1.0, %v16581_v8  ;;  %v10342_v20 = vsel %vm10306_vm11, 1.0, %v16581_v8 }
  0x43   : > { %9220 = vmatmul.mubr.msk.f32.gmra.mxu1 %vm1077_vm0, %v2504_v59  ;;  %9170 = vmatprep.mubr.msk.f32.mxu0 %vm1077_vm0, %v1071_v60  ;;  %v10288_v59 = vmul.f32 0.0, %v10262_v48  ;;  %v10291_v60 = vmul.f32 0.0, %v10280_v53  ;;  %16790 = vst [vmem:[#allocation13_spill] sm:$0xff] %v10337_v19  ;;  %16791 = vst [vmem:[#allocation14_spill] sm:$0xff] %v10342_v20  ;;  %v10347_v21 = vsel %vm10310_vm12, 1.0, %v16581_v8 }
  0x44   : > { %9222 = vmatprep.mubr.msk.f32.mxu1 %vm1077_vm0, %v2505_v61  ;;  %v534_v61 = vand.u32 15, %v444_v42  ;;  %16792 = vst [vmem:[#allocation15_spill] sm:$0xff] %v10347_v21 }
  0x45   : > { %16778 = vst [vmem:[#allocation9_spill] sm:$0xff] %v10288_v59 }
  0x46   : > { %9171 = vmatmul.mubr.msk.f32.gmra.mxu0 %vm1077_vm0, %v1072_v62  ;;  %v555_v62 = vand.u32 15, %v447_v43  ;;  %vm10317_vm13 = vcmp.lt.s32.totalorder %v534_v61, 15 }
  0x47   : > { %9223 = vmatmul.mubr.msk.f32.gmra.mxu1 %vm1077_vm0, %v2506_v63  ;;  %9173 = vmatprep.mubr.msk.f32.mxu0 %vm1077_vm0, %v1073_v0  ;;  %v10296_v63 = vld [vmem:[%s16571_s3 + $0x2] ss:$0 sm:$0xff]  ;;  %v10299_v0 = vmul.f32 0.0, %v10285_v58  ;;  %v10352_v22 = vsel %vm10317_vm13, 1.0, %v16581_v8 }
  0x48   : > { %9225 = vmatprep.mubr.msk.f32.mxu1 %vm1077_vm0, %v2507_v1  ;;  %v548_v1 = vand.u32 15, %v446_v45  ;;  %vm10321_vm14 = vcmp.gt.s32.totalorder %v555_v62, 0  ;;  %16793 = vst [vmem:[#allocation16_spill] sm:$0xff] %v10352_v22 }
  0x49   : > { %16779 = vst [vmem:[#allocation10_spill] sm:$0xff] %v10299_v0  ;;  %v10357_v23 = vsel %vm10321_vm14, 1.0, %v16581_v8 }
  0x4a   : > { %9174 = vmatmul.mubr.msk.f32.gmra.mxu0 %vm1077_vm0, %v1074_v2  ;;  %v562_v2 = vand.u32 15, %v448_v46  ;;  %vm958_vm15 = vcmp.lt.s32.totalorder %v548_v1, 15  ;;  %16794 = vst [vmem:[#allocation17_spill] sm:$0xff] %v10357_v23 }
  0x4b   : > { %9226 = vmatmul.mubr.msk.f32.gmra.mxu1 %vm1077_vm0, %v2508_v3  ;;  %9176 = vmatprep.mubr.msk.f32.mxu0 %vm1077_vm0, %v1075_v4  ;;  %v569_v3 = vand.u32 15, %v449_v47  ;;  %v10302_v4 = vmul.f32 0.0, %v10296_v63  ;;  %v10364_v26 = vsel %vm958_vm15, 1.0, %v16581_v8 }
  0x4c   : > { %9228 = vmatprep.mubr.msk.f32.mxu1 %vm1077_vm0, %v2509_v5  ;;  %v450_v5 = vadd.s32 120, %v10204_v16  ;;  %vm960_vm2 = vcmp.lt.s32.totalorder %v562_v2, 15  ;;  %16795 = vst [vmem:[#allocation18_spill] sm:$0xff] %v10364_v26 }
  0x4d   : > { %16780 = vst [vmem:[#allocation11_spill] sm:$0xff] %v10302_v4  ;;  %vm865_vm1 = vcmp.gt.s32.totalorder %v569_v3, 0  ;;  %v10370_v29 = vsel %vm960_vm2, 1.0, %v16581_v8  ;;  %v10421_v3 = vld [vmem:[%s16571_s3 + $0x7] ss:$0 sm:$0xff] }
  0x4e   : > { %9177 = vmatmul.mubr.msk.f32.gmra.mxu0 %vm1077_vm0, %v1076_v6  ;;  %v451_v6 = vadd.s32 128, %v10204_v16  ;;  %v576_v13 = vand.u32 15, %v450_v5  ;;  %v10367_v27 = vsel %vm865_vm1, 1.0, %v16581_v8  ;;  %16797 = vst [vmem:[#allocation20_spill] sm:$0xff] %v10370_v29 }
  0x4f   : > { %9229 = vmatmul.mubr.msk.f32.gmra.mxu1 %vm1077_vm0, %v2510_v7  ;;  %4095 = vmatprep.mubr.f32.mxu0 %v16581_v8  ;;  %16796 = vst [vmem:[#allocation19_spill] sm:$0xff] %v10367_v27 }
  0x50   : > { %4352 = vmatprep.mubr.f32.mxu1 %v16581_v8  ;;  %v583_v14 = vand.u32 15, %v451_v6  ;;  %vm962_vm4 = vcmp.lt.s32.totalorder %v576_v13, 15 }
  0x51   : > { %v10385_v35 = vsel %vm962_vm4, 1.0, %v16581_v8 }
  0x52   : > { %vm867_vm3 = vcmp.gt.s32.totalorder %v583_v14, 0  ;;  %16801 = vst [vmem:[#allocation24_spill] sm:$0xff] %v10385_v35 }
  0x53   : > { %v10373_v30 = vsel %vm867_vm3, 1.0, %v16581_v8 }
  0x54   : > { %16798 = vst [vmem:[#allocation21_spill] sm:$0xff] %v10373_v30 }
  0xd2   : > { %v10359_v24 = vpop.f32.mrf.mxu0 }
  0xd3   : > { %v10361_v25 = vpop.f32.mrf.mxu1  ;;  %v16586_v31 = vrot.slane %v10359_v24, 7  ;;  %v10378_v33 = vmul.f32 %v10359_v24, %v10262_v48  ;;  %v10382_v34 = vmul.f32 %v10359_v24, %v10331_v17  ;;  %v16584_v36 = vrot.slane %v10359_v24, 1 }
  0xd4   : > { %v16583_v37 = vrot.slane %v10361_v25, 7  ;;  %v10391_v38 = vmul.f32 %v10361_v25, %v10280_v53  ;;  %v10395_v39 = vmul.f32 %v10361_v25, %v10331_v17  ;;  %v1240_v42 = vpop.f32.mrf.mxu0  ;;  %v16585_v43 = vrot.slane %v10361_v25, 1 }
  0xd5   : > { %16799 = vst [vmem:[#allocation22_spill] sm:$0xff] %v10378_v33  ;;  %16800 = vst [vmem:[#allocation23_spill] sm:$0xff] %v10382_v34  ;;  %v1430_v45 = vrot.slane %v1240_v42, 7  ;;  %v10399_v46 = vmul.f32 %v10262_v48, %v1240_v42  ;;  %v2039_v47 = vrot.slane %v1240_v42, 1  ;;  %v2673_v52 = vpop.f32.mrf.mxu1  ;;  %v10402_v54 = vmul.f32 %v10331_v17, %v1240_v42 }
  0xd6   : > { %v2862_v55 = vrot.slane %v2673_v52, 7  ;;  %v10405_v56 = vmul.f32 %v10280_v53, %v2673_v52  ;;  %v10408_v57 = vmul.f32 %v10331_v17, %v2673_v52  ;;  %v3433_v9 = vrot.slane %v2673_v52, 1  ;;  %v10442_v52 = vpop.f32.mrf.mxu0 }
  0xd7   : > { %v1432_v61 = vsel %vm1429_vm6, %v1430_v45, %v16586_v31  ;;  %v1519_v62 = vsel %vm1429_vm6, 0.0, %v1430_v45  ;;  %v2041_v1 = vsel %vm2038_vm7, %v2039_v47, %v16584_v36  ;;  %v2131_v2 = vsel %vm2038_vm7, 0.0, %v2039_v47  ;;  %16803 = vst [vmem:[#allocation26_spill] sm:$0xff] %v10442_v52 }
  0xd8   : > { %v1522_v5 = vmul.f32 %v10246_v40, %v1519_v62  ;;  %v1629_v6 = vmul.f32 %v10218_v28, %v1519_v62  ;;  %v1667_v7 = vmul.f32 %v10280_v53, %v1432_v61  ;;  %v1560_v10 = vmul.f32 %v10230_v32, %v1432_v61  ;;  %v1250_v33 = vpop.f32.mrf.mxu0 }
  0xd9   : > { %v2133_v11 = vmul.f32 %v10249_v41, %v2131_v2  ;;  %v10429_v12 = vmul.f32 %v10285_v58, %v2041_v1  ;;  %v2864_v13 = vsel %vm1429_vm6, %v2862_v55, %v16583_v37  ;;  %v10439_v45 = vmul.f32 %v10421_v3, %v2041_v1  ;;  %v10458_v37 = vpop.f32.mrf.mxu1 }
  0xda   : > { %v10435_v14 = vmul.f32 %v10230_v32, %v1522_v5  ;;  %v1666_v42 = vmul.f32 %v10280_v53, %v1629_v6  ;;  %v2951_v47 = vsel %vm1429_vm6, 0.0, %v2862_v55  ;;  %v1699_v61 = vadd.f32 %v1667_v7, %v10254_v44 }
  0xdb   : > { %16802 = vst [vmem:[#allocation25_spill] sm:$0xff] %v10429_v12  ;;  %v10446_v62 = vmul.f32 %v10285_v58, %v2133_v11  ;;  %v2952_v2 = vmul.f32 %v10246_v40, %v2951_v47  ;;  %v3050_v8 = vmul.f32 %v10218_v28, %v2951_v47  ;;  %v10451_v5 = vmul.f32 %v10230_v32, %v2864_v13  ;;  %v10464_v11 = vld [vmem:[%s16571_s3 + $0x5] ss:$0 sm:$0xff] }
  0xdc   : > { %v3083_v6 = vmul.f32 %v10262_v48, %v2864_v13  ;;  %v3435_v55 = vsel %vm2038_vm7, %v3433_v9, %v16585_v43  ;;  %v3525_v1 = vsel %vm2038_vm7, 0.0, %v3433_v9  ;;  %v1698_v7 = vadd.f32 %v1666_v42, %v10265_v49 }
  0xdd   : > { %16804 = vst [vmem:[#allocation27_spill] sm:$0xff] %v10446_v62  ;;  %v10467_v47 = vmul.f32 %v10230_v32, %v2952_v2  ;;  %v3082_v13 = vmul.f32 %v10262_v48, %v3050_v8  ;;  %v3526_v36 = vmul.f32 %v10249_v41, %v3525_v1  ;;  %v10473_v9 = vmul.f32 %v10296_v63, %v3435_v55 }
  0xde   : > { %v3115_v43 = vadd.f32 %v3083_v6, %v10254_v44  ;;  %v10476_v31 = vmul.f32 %v10464_v11, %v3435_v55  ;;  %v10485_v8 = vmul.f32 %v10442_v52, %v10262_v48  ;;  %v10489_v44 = vmul.f32 %v10442_v52, %v10331_v17 }
  0xdf   : > { %v3114_v12 = vadd.f32 %v3082_v13, %v10265_v49  ;;  %v10481_v2 = vmul.f32 %v10296_v63, %v3526_v36  ;;  %v10493_v6 = vmul.f32 %v10442_v52, %v10464_v11  ;;  %v10499_v49 = vmul.f32 %v10458_v37, %v10280_v53  ;;  %v2683_v36 = vpop.f32.mrf.mxu1 }
  0xe0   : > { %16805 = vst [vmem:[#allocation28_spill] sm:$0xff] %v10485_v8  ;;  %16806 = vst [vmem:[#allocation29_spill] sm:$0xff] %v10489_v44  ;;  %v10503_v13 = vmul.f32 %v10458_v37, %v10331_v17  ;;  %v10507_v42 = vmul.f32 %v10458_v37, %v10421_v3  ;;  %v1433_v44 = vrot.slane %v1250_v33, 7  ;;  %v10511_v55 = vmul.f32 %v10262_v48, %v1250_v33 }
  0xe1   : > { %16807 = vst [vmem:[#allocation30_spill] sm:$0xff] %v10493_v6  ;;  %16808 = vst [vmem:[#allocation31_spill] sm:$0xff] %v10499_v49  ;;  %v10514_v1 = vmul.f32 %v10331_v17, %v1250_v33  ;;  %v1975_v62 = vmul.f32 %v10464_v11, %v1250_v33  ;;  %v2042_v6 = vrot.slane %v1250_v33, 1  ;;  %v16810_v34 = vrot.slane %v10359_v24, 7 }
  0xe2   : > { %16809 = vst [vmem:[#allocation32_spill] sm:$0xff] %v10511_v55  ;;  %v16811_v35 = vrot.slane %v10442_v52, 7  ;;  %v2865_v29 = vrot.slane %v2683_v36, 7  ;;  %v10524_v8 = vmul.f32 %v10280_v53, %v2683_v36  ;;  %v10530_v33 = vmul.f32 %v10331_v17, %v2683_v36 }
  0xe3   : > { %v1434_v16 = vsel %vm1429_vm6, %v16810_v34, %v1433_v44  ;;  %v16815_v55 = vrot.slane %v10442_v52, 1 }
  0xe4   : > { %v1436_v30 = vsel %vm1429_vm6, %v1433_v44, %v16811_v35  ;;  %16812 = vst [vmem:[#allocation33_spill] sm:$0xff] %v10524_v8  ;;  %v1524_v27 = vmul.f32 %v10270_v50, %v1434_v16  ;;  %v1631_v26 = vmul.f32 %v10246_v40, %v1434_v16  ;;  %v1732_v34 = vmul.f32 %v10218_v28, %v1434_v16  ;;  %v10556_v16 = vld [vmem:[%s16571_s3 + $0x8] ss:$0 sm:$0xff] }
  0xe5   : > { %v1669_v23 = vmul.f32 %v10280_v53, %v1436_v30  ;;  %v10533_v22 = vmul.f32 %v10230_v32, %v1436_v30  ;;  %v1770_v35 = vmul.f32 %v10296_v63, %v1436_v30  ;;  %v16813_v44 = vrot.slane %v10359_v24, 1 }
  0xe6   : > { %v10543_v8 = vmul.f32 %v10230_v32, %v1524_v27  ;;  %v1668_v20 = vmul.f32 %v10280_v53, %v1631_v26  ;;  %v10551_v19 = vsel %vm2038_vm7, %v2042_v6, %v16815_v55  ;;  %v1769_v24 = vmul.f32 %v10296_v63, %v1732_v34 }
  0xe7   : > { %v10540_v21 = vsel %vm2038_vm7, %v16813_v44, %v2042_v6  ;;  %v10546_v49 = vadd.f32 %v1669_v23, %v1560_v10  ;;  %16816 = vst [vmem:[#allocation35_spill] sm:$0xff] %v10551_v19  ;;  %v10559_v30 = vadd.f32 %v1770_v35, %v1699_v61  ;;  %v16819_v23 = vrot.slane %v10361_v25, 7 }
  0xe8   : > { %16814 = vst [vmem:[#allocation34_spill] sm:$0xff] %v10540_v21  ;;  %v10563_v27 = vmul.f32 %v10275_v51, %v10540_v21  ;;  %v16820_v10 = vrot.slane %v10458_v37, 7  ;;  %v1801_v61 = vadd.f32 %v1769_v24, %v1698_v7  ;;  %v10576_v35 = vmul.f32 %v10556_v16, %v10551_v19 }
  0xe9   : > { %16817 = vst [vmem:[#allocation36_spill] sm:$0xff] %v10559_v30  ;;  %v2866_v26 = vsel %vm1429_vm6, %v16819_v23, %v2865_v29  ;;  %v3436_v19 = vrot.slane %v2683_v36, 1  ;;  %v10592_v30 = vpop.f32.mrf.mxu0 }
  0xea   : > { %16818 = vst [vmem:[#allocation37_spill] sm:$0xff] %v10563_v27  ;;  %v2868_v6 = vsel %vm1429_vm6, %v2865_v29, %v16820_v10  ;;  %v2954_v55 = vmul.f32 %v10270_v50, %v2866_v26  ;;  %v3052_v44 = vmul.f32 %v10246_v40, %v2866_v26  ;;  %v3148_v34 = vmul.f32 %v10218_v28, %v2866_v26 }
  0xeb   : > { %16821 = vst [vmem:[#allocation38_spill] sm:$0xff] %v10576_v35  ;;  %v3085_v27 = vmul.f32 %v10262_v48, %v2868_v6  ;;  %v3180_v21 = vmul.f32 %v10285_v58, %v2868_v6  ;;  %v10584_v29 = vmul.f32 %v10230_v32, %v2868_v6  ;;  %v1869_v7 = vadd.f32 %v10288_v59, %v1801_v61 }
  0xec   : > { %v10581_v23 = vmul.f32 %v10230_v32, %v2954_v55  ;;  %v10587_v10 = vmul.f32 %v10262_v48, %v3052_v44  ;;  %v3179_v28 = vmul.f32 %v10285_v58, %v3148_v34  ;;  %v3370_v26 = vmul.f32 %v10421_v3, %v2683_v36  ;;  %16822 = vst [vmem:[#allocation39_spill] sm:$0xff] %v10592_v30 }
  0xed   : > { %v3212_v24 = vadd.f32 %v3180_v21, %v3115_v43  ;;  %v10595_v35 = vadd.f32 %v3085_v27, %v10451_v5  ;;  %v10600_v44 = vmul.f32 %v10592_v30, %v10262_v48  ;;  %v1938_v34 = vadd.f32 %v10402_v54, %v1869_v7 }
  0xee   : > { %v3211_v55 = vadd.f32 %v3179_v28, %v3114_v12  ;;  %v16824_v21 = vrot.slane %v10361_v25, 1  ;;  %v16825_v36 = vrot.slane %v10458_v37, 1  ;;  %v10617_v54 = vmul.f32 %v10592_v30, %v10331_v17 }
  0xef   : > { %16823 = vst [vmem:[#allocation40_spill] sm:$0xff] %v10600_v44  ;;  %v3275_v61 = vadd.f32 %v10291_v60, %v3212_v24  ;;  %v2006_v7 = vadd.f32 %v1975_v62, %v1938_v34  ;;  %v10635_v62 = vpop.f32.mrf.mxu1 }
  0xf0   : > { %v3437_v43 = vsel %vm2038_vm7, %v16824_v21, %v3436_v19  ;;  %v10610_v5 = vsel %vm2038_vm7, %v3436_v19, %v16825_v36  ;;  %v3274_v12 = vadd.f32 %v10291_v60, %v3211_v55  ;;  %16826 = vst [vmem:[#allocation41_spill] sm:$0xff] %v10617_v54  ;;  %v10653_v6 = vmul.f32 %v10635_v62, %v10421_v3 }
  0xf1   : > { %v3528_v27 = vmul.f32 %v10275_v51, %v3437_v43  ;;  %v3627_v28 = vmul.f32 %v10249_v41, %v3437_v43  ;;  %v3339_v25 = vadd.f32 %v10395_v39, %v3275_v61  ;;  %v10622_v24 = vmul.f32 %v10464_v11, %v10610_v5  ;;  %v10637_v39 = vpop.f32.mrf.mxu0 }
  0xf2   : > { %v3752_v19 = vmul.f32 %v10556_v16, %v10610_v5  ;;  %v3338_v60 = vadd.f32 %v10408_v57, %v3274_v12  ;;  %v10633_v43 = vmul.f32 %v10592_v30, %v10464_v11  ;;  %16828 = vst [vmem:[#allocation43_spill] sm:$0xff] %v10637_v39  ;;  %v2201_v34 = vadd.f32 %v10299_v0, %v2006_v7 }
  0xf3   : > { %v10628_v55 = vmul.f32 %v10296_v63, %v3528_v27  ;;  %v3659_v21 = vmul.f32 %v10464_v11, %v3627_v28  ;;  %v3402_v61 = vadd.f32 %v10507_v42, %v3339_v25  ;;  %v10645_v27 = vmul.f32 %v10635_v62, %v10280_v53 }
  0xf4   : > { %16827 = vst [vmem:[#allocation42_spill] sm:$0xff] %v10633_v43  ;;  %v3401_v12 = vadd.f32 %v3370_v26, %v3338_v60  ;;  %v10649_v28 = vmul.f32 %v10635_v62, %v10331_v17  ;;  %v10656_v7 = vadd.f32 %v10439_v45, %v2201_v34  ;;  %v1437_v25 = vrot.slane %v10637_v39, 7  ;;  %v2693_v45 = vpop.f32.mrf.mxu1 }
  0xf5   : > { %v3590_v42 = vadd.f32 %v10481_v2, %v3402_v61  ;;  %v1700_v36 = vadd.f32 %v1668_v20, %v10435_v14  ;;  %v10665_v57 = vmul.f32 %v10262_v48, %v10637_v39  ;;  %v10669_v0 = vmul.f32 %v10331_v17, %v10637_v39 }
  0xf6   : > { %16829 = vst [vmem:[#allocation44_spill] sm:$0xff] %v10656_v7  ;;  %v3589_v60 = vadd.f32 %v3401_v12, %v10302_v4  ;;  %v16830_v2 = vrot.slane %v10442_v52, 7  ;;  %v16831_v26 = vrot.slane %v10592_v30, 7  ;;  %v1977_v20 = vmul.f32 %v10464_v11, %v10637_v39 }
  0xf7   : > { %v10671_v34 = vadd.f32 %v3659_v21, %v3590_v42  ;;  %v2869_v43 = vrot.slane %v2693_v45, 7 }
  0xf8   : > { %v1438_v61 = vsel %vm1429_vm6, %v16830_v2, %v1437_v25  ;;  %v1440_v12 = vsel %vm1429_vm6, %v1437_v25, %v16831_v26  ;;  %v3690_v14 = vadd.f32 %v10476_v31, %v3589_v60  ;;  %v10698_v60 = vld [vmem:[%s16572_s4] ss:$0 sm:$0xff] }
  0xf9   : > { %v1526_v4 = vmul.f32 %v10326_v15, %v1438_v61  ;;  %v1633_v44 = vmul.f32 %v10270_v50, %v1438_v61  ;;  %v1671_v42 = vmul.f32 %v10280_v53, %v1440_v12  ;;  %v1734_v54 = vmul.f32 %v10246_v40, %v1438_v61 }
  0xfa   : > { %v1772_v2 = vmul.f32 %v10296_v63, %v1440_v12  ;;  %v3782_v52 = vadd.f32 %v3752_v19, %v3690_v14  ;;  %v10692_v25 = vmul.f32 %v10230_v32, %v1440_v12  ;;  %v16832_v19 = vrot.slane %v10458_v37, 7 }
  0xfb   : > { %v10689_v26 = vmul.f32 %v10230_v32, %v1526_v4  ;;  %v1670_v31 = vmul.f32 %v10280_v53, %v1633_v44  ;;  %v10701_v21 = vadd.f32 %v1671_v42, %v10533_v22  ;;  %v1771_v61 = vmul.f32 %v10296_v63, %v1734_v54 }
  0xfc   : > { %v2870_v4 = vsel %vm1429_vm6, %v16832_v19, %v2869_v43  ;;  %v3116_v12 = vadd.f32 %v10587_v10, %v10467_v47  ;;  %v3814_v14 = vadd.f32 %v10698_v60, %v3782_v52  ;;  %v16833_v44 = vrot.slane %v10635_v62, 7 }
  0xfd   : > { %v2956_v59 = vmul.f32 %v10326_v15, %v2870_v4  ;;  %v3054_v22 = vmul.f32 %v10270_v50, %v2870_v4  ;;  %v1803_v42 = vadd.f32 %v1771_v61, %v1700_v36  ;;  %v10716_v54 = vadd.f32 %v1772_v2, %v10546_v49 }
  0xfe   : > { %v2872_v39 = vsel %vm1429_vm6, %v2869_v43, %v16833_v44  ;;  %v3150_v19 = vmul.f32 %v10246_v40, %v2870_v4  ;;  %3879 = vst.msk [vmem:[#allocation3] sm:$0xff] %vm3846_vm5, %v3814_v14  ;;  %v10737_v2 = vmul.f32 %v10280_v53, %v2693_v45  ;;  %v10741_v61 = vmul.f32 %v10331_v17, %v2693_v45  ;;  %v10744_v44 = vpop.f32.mrf.mxu0 }
  0xff   : > { %16834 = vst [vmem:[#allocation45_spill] sm:$0xff] %v10716_v54  ;;  %v3087_v7 = vmul.f32 %v10262_v48, %v2872_v39  ;;  %v10722_v52 = vmul.f32 %v10230_v32, %v2956_v59  ;;  %v10725_v47 = vmul.f32 %v10230_v32, %v2872_v39  ;;  %v10728_v10 = vmul.f32 %v10262_v48, %v3054_v22 }
 0x100   : > { %v3182_v43 = vmul.f32 %v10285_v58, %v2872_v39  ;;  %v1871_v49 = vadd.f32 %v10399_v46, %v1803_v42  ;;  %v3181_v40 = vmul.f32 %v10285_v58, %v3150_v19  ;;  %v3372_v4 = vmul.f32 %v10421_v3, %v2693_v45  ;;  %16835 = vst [vmem:[#allocation46_spill] sm:$0xff] %v10744_v44 }
 0x101   : > { %v10733_v36 = vadd.f32 %v3087_v7, %v10584_v29  ;;  %v3440_v14 = vrot.slane %v2693_v45, 1  ;;  %v10750_v7 = vmul.f32 %v10744_v44, %v10262_v48  ;;  %v16838_v19 = vrot.slane %v10635_v62, 1 }
 0x102   : > { %v3214_v59 = vadd.f32 %v3182_v43, %v10595_v35  ;;  %v1940_v46 = vadd.f32 %v10514_v1, %v1871_v49  ;;  %v3213_v39 = vadd.f32 %v3181_v40, %v3116_v12  ;;  %v16837_v35 = vrot.slane %v10458_v37, 1 }
 0x103   : > { %16836 = vst [vmem:[#allocation47_spill] sm:$0xff] %v10750_v7  ;;  %v10759_v45 = vsel %vm2038_vm7, %v3440_v14, %v16838_v19  ;;  %v10763_v1 = vmul.f32 %v10744_v44, %v10331_v17  ;;  %v10770_v37 = vmul.f32 %v10744_v44, %v10464_v11 }
 0x104   : > { %v3277_v22 = vadd.f32 %v10391_v38, %v3214_v59  ;;  %v3441_v42 = vsel %vm2038_vm7, %v16837_v35, %v3440_v14  ;;  %v3276_v12 = vadd.f32 %v10405_v56, %v3213_v39  ;;  %v10772_v38 = vadd.f32 %v1977_v20, %v1940_v46  ;;  %v10787_v20 = vpop.f32.mrf.mxu1  ;;  %v10789_v46 = vpop.f32.mrf.mxu0 }
 0x105   : > { %16839 = vst [vmem:[#allocation48_spill] sm:$0xff] %v10763_v1  ;;  %v3530_v43 = vmul.f32 %v10334_v18, %v3441_v42  ;;  %v3629_v49 = vmul.f32 %v10275_v51, %v3441_v42  ;;  %16840 = vst [vmem:[#allocation49_spill] sm:$0xff] %v10770_v37  ;;  %v10777_v59 = vmul.f32 %v10464_v11, %v10759_v45  ;;  %v16845_v1 = vld [vmem:[#allocation13_spill] sm:$0xff] }
 0x106   : > { %16841 = vst [vmem:[#allocation50_spill] sm:$0xff] %v10772_v38  ;;  %v3341_v40 = vadd.f32 %v10503_v13, %v3277_v22  ;;  %v3723_v14 = vmul.f32 %v10249_v41, %v3441_v42  ;;  %v3340_v56 = vadd.f32 %v10530_v33, %v3276_v12  ;;  %v3754_v19 = vmul.f32 %v10556_v16, %v10759_v45 }
 0x107   : > { %v10782_v39 = vmul.f32 %v10296_v63, %v3530_v43  ;;  %v3661_v35 = vmul.f32 %v10464_v11, %v3629_v49  ;;  %16842 = vst [vmem:[#allocation51_spill] sm:$0xff] %v10789_v46  ;;  %v10797_v43 = vmul.f32 %v10787_v20, %v10280_v53  ;;  %v10801_v49 = vmul.f32 %v10787_v20, %v10331_v17 }
 0x108   : > { %v3404_v13 = vadd.f32 %v10653_v6, %v3341_v40  ;;  %v3753_v22 = vmul.f32 %v10556_v16, %v3723_v14  ;;  %v3403_v12 = vadd.f32 %v3372_v4, %v3340_v56  ;;  %v10805_v29 = vmul.f32 %v10787_v20, %v10421_v3 }
 0x109   : > { %v1441_v14 = vrot.slane %v10789_v46, 7  ;;  %v1702_v4 = vadd.f32 %v1670_v31, %v10543_v8  ;;  %v10815_v33 = vmul.f32 %v10262_v48, %v10789_v46  ;;  %v10819_v7 = vmul.f32 %v10331_v17, %v10789_v46 }
 0x10a   : > { %v3592_v6 = vadd.f32 %v10628_v55, %v3404_v13  ;;  %v3783_v40 = vadd.f32 %v3753_v22, %v10671_v34  ;;  %v3591_v56 = vadd.f32 %v10473_v9, %v3403_v12  ;;  %v16843_v34 = vrot.slane %v10592_v30, 7  ;;  %v2703_v22 = vpop.f32.mrf.mxu1 }
 0x10b   : > { %v16844_v8 = vrot.slane %v10744_v44, 7  ;;  %v1979_v31 = vmul.f32 %v10464_v11, %v10789_v46 }
 0x10c   : > { %v3815_v55 = vadd.f32 %v10698_v60, %v3783_v40  ;;  %v1442_v13 = vsel %vm1429_vm6, %v16843_v34, %v1441_v14  ;;  %v3692_v12 = vadd.f32 %v10622_v24, %v3591_v56  ;;  %v10831_v42 = vadd.f32 %v3661_v35, %v3592_v6 }
 0x10d   : > { %v1444_v9 = vsel %vm1429_vm6, %v1441_v14, %v16844_v8  ;;  %v1528_v37 = vmul.f32 %v16845_v1, %v1442_v13  ;;  %v1635_v40 = vmul.f32 %v10326_v15, %v1442_v13  ;;  %v1736_v14 = vmul.f32 %v10270_v50, %v1442_v13 }
 0x10e   : > { %3880 = vst.msk [vmem:[#allocation3 + $0x8] sm:$0xff] %vm3846_vm5, %v3815_v55  ;;  %v10837_v34 = vmul.f32 %v10230_v32, %v1444_v9  ;;  %v1673_v54 = vmul.f32 %v10280_v53, %v1444_v9  ;;  %v1774_v8 = vmul.f32 %v10296_v63, %v1444_v9  ;;  %v3784_v38 = vadd.f32 %v3754_v19, %v3692_v12 }
 0x10f   : > { %v10843_v24 = vmul.f32 %v10230_v32, %v1528_v37  ;;  %v2873_v6 = vrot.slane %v2703_v22, 7  ;;  %v10847_v56 = vmul.f32 %v10280_v53, %v1635_v40  ;;  %v1773_v30 = vmul.f32 %v10296_v63, %v1736_v14 }
 0x110   : > { %v10850_v55 = vadd.f32 %v1673_v54, %v10692_v25  ;;  %v10854_v41 = vadd.f32 %v1774_v8, %v10701_v21  ;;  %v3816_v13 = vadd.f32 %v10698_v60, %v3784_v38  ;;  %v16847_v19 = vrot.slane %v10635_v62, 7 }
 0x111   : > { %v16848_v9 = vrot.slane %v10787_v20, 7  ;;  %v3118_v40 = vadd.f32 %v10728_v10, %v10581_v23  ;;  %v1805_v25 = vadd.f32 %v1773_v30, %v1702_v4  ;;  %v10868_v21 = vmul.f32 %v10280_v53, %v2703_v22  ;;  %v16849_v23 = vld [vmem:[#allocation32_spill] sm:$0xff] }
 0x112   : > { %16846 = vst [vmem:[#allocation13_spill] sm:$0xff] %v10854_v41  ;;  %v2874_v37 = vsel %vm1429_vm6, %v16847_v19, %v2873_v6  ;;  %3881 = vst.msk [vmem:[#allocation3 + $0x10] sm:$0xff] %vm3846_vm5, %v3816_v13  ;;  %v3374_v41 = vmul.f32 %v10421_v3, %v2703_v22 }
 0x113   : > { %v2876_v12 = vsel %vm1429_vm6, %v2873_v6, %v16848_v9  ;;  %v2958_v54 = vmul.f32 %v16845_v1, %v2874_v37  ;;  %v3056_v14 = vmul.f32 %v10326_v15, %v2874_v37  ;;  %v3152_v6 = vmul.f32 %v10270_v50, %v2874_v37  ;;  %v10890_v37 = vpop.f32.mrf.mxu0 }
 0x114   : > { %v10872_v38 = vmul.f32 %v10230_v32, %v2876_v12  ;;  %v3089_v8 = vmul.f32 %v10262_v48, %v2876_v12  ;;  %v3184_v19 = vmul.f32 %v10285_v58, %v2876_v12  ;;  %v1873_v30 = vadd.f32 %v16849_v23, %v1805_v25  ;;  %16850 = vst [vmem:[#allocation32_spill] sm:$0xff] %v10890_v37 }
 0x115   : > { %v10879_v10 = vmul.f32 %v10230_v32, %v2958_v54  ;;  %v10882_v4 = vmul.f32 %v10262_v48, %v3056_v14  ;;  %v10885_v9 = vmul.f32 %v10331_v17, %v2703_v22  ;;  %v3183_v13 = vmul.f32 %v10285_v58, %v3152_v6  ;;  %v5829_v12 = vld [vmem:[#allocation3 + $0x8] sm:$0xff] }
 0x116   : > { %v3216_v35 = vadd.f32 %v3184_v19, %v10733_v36  ;;  %v3444_v50 = vrot.slane %v2703_v22, 1  ;;  %v1942_v25 = vadd.f32 %v10669_v0, %v1873_v30  ;;  %v10894_v54 = vadd.f32 %v3089_v8, %v10725_v47  ;;  %5838 = vrot.lane.b32.xlu0 %v5829_v12, %s9942_s23  ;;  %v16851_v6 = vld [vmem:[#allocation31_spill] sm:$0xff] }
 0x117   : > { %v3561_v14 = vmul.f32 %v10296_v63, %v10610_v5  ;;  %v3215_v36 = vadd.f32 %v3183_v13, %v3118_v40  ;;  %v16852_v22 = vrot.slane %v10635_v62, 1  ;;  %v16853_v0 = vrot.slane %v10787_v20, 1  ;;  %v16855_v5 = vld [vmem:[#allocation14_spill] sm:$0xff] }
 0x118   : > { %v3279_v19 = vadd.f32 %v16851_v6, %v3216_v35  ;;  %v10909_v8 = vadd.f32 %v1979_v31, %v1942_v25  ;;  %v10915_v40 = vmul.f32 %v10890_v37, %v10262_v48  ;;  %v16857_v35 = vld [vmem:[#allocation33_spill] sm:$0xff]  ;;  %v10924_v31 = vpop.f32.mrf.mxu1 }
 0x119   : > { %v3445_v46 = vsel %vm2038_vm7, %v16852_v22, %v3444_v50  ;;  %v10907_v47 = vsel %vm2038_vm7, %v3444_v50, %v16853_v0  ;;  %v3278_v13 = vadd.f32 %v16857_v35, %v3215_v36  ;;  %v10934_v36 = vmul.f32 %v10890_v37, %v10331_v17 }
 0x11a   : > { %16854 = vst [vmem:[#allocation31_spill] sm:$0xff] %v10909_v8  ;;  %v3532_v30 = vmul.f32 %v16855_v5, %v3445_v46  ;;  %v3631_v23 = vmul.f32 %v10334_v18, %v3445_v46  ;;  %16856 = vst [vmem:[#allocation52_spill] sm:$0xff] %v10915_v40  ;;  %v3343_v62 = vadd.f32 %v10649_v28, %v3279_v19  ;;  %v16865_v8 = vrot.slane %v10890_v37, 7 }
 0x11b   : > { %v10921_v12 = vmul.f32 %v10464_v11, %v10907_v47  ;;  %v3725_v50 = vmul.f32 %v10275_v51, %v3445_v46  ;;  %v3756_v22 = vmul.f32 %v10556_v16, %v10907_v47  ;;  %16858 = vst [vmem:[#allocation33_spill] sm:$0xff] %v10934_v36  ;;  %v3342_v28 = vadd.f32 %v10741_v61, %v3278_v13 }
 0x11c   : > { %v10927_v25 = vmul.f32 %v10296_v63, %v3532_v30  ;;  %v3663_v6 = vmul.f32 %v10464_v11, %v3631_v23  ;;  %v3406_v19 = vadd.f32 %v10805_v29, %v3343_v62  ;;  %v10941_v0 = vmul.f32 %v10890_v37, %v10464_v11  ;;  %v10943_v30 = vpop.f32.mrf.mxu0  ;;  %v10961_v23 = vpop.f32.mrf.mxu1 }
 0x11d   : > { %v3755_v46 = vmul.f32 %v10556_v16, %v3725_v50  ;;  %16860 = vst [vmem:[#allocation54_spill] sm:$0xff] %v10943_v30  ;;  %v10949_v40 = vmul.f32 %v10924_v31, %v10280_v53  ;;  %v10953_v61 = vmul.f32 %v10924_v31, %v10331_v17  ;;  %v3405_v29 = vadd.f32 %v3374_v41, %v3342_v28 }
 0x11e   : > { %16859 = vst [vmem:[#allocation53_spill] sm:$0xff] %v10941_v0  ;;  %v3594_v13 = vadd.f32 %v10782_v39, %v3406_v19  ;;  %v10959_v50 = vmul.f32 %v10924_v31, %v10421_v3  ;;  %v1445_v36 = vrot.slane %v10943_v30, 7  ;;  %v1704_v0 = vadd.f32 %v10847_v56, %v10689_v26 }
 0x11f   : > { %16861 = vst [vmem:[#allocation55_spill] sm:$0xff] %v10949_v40  ;;  %16862 = vst [vmem:[#allocation56_spill] sm:$0xff] %v10953_v61  ;;  %v3785_v62 = vadd.f32 %v3755_v46, %v10831_v42  ;;  %v10969_v41 = vmul.f32 %v10262_v48, %v10943_v30  ;;  %v3593_v39 = vadd.f32 %v3561_v14, %v3405_v29  ;;  %v16864_v46 = vrot.slane %v10744_v44, 7  ;;  %v16866_v29 = vld [vmem:[#allocation15_spill] sm:$0xff] }
 0x120   : > { %v10971_v28 = vadd.f32 %v3663_v6, %v3594_v13  ;;  %v10976_v19 = vmul.f32 %v10331_v17, %v10943_v30  ;;  %v1448_v26 = vsel %vm1429_vm6, %v1445_v36, %v16865_v8  ;;  %v1981_v56 = vmul.f32 %v10464_v11, %v10943_v30 }
 0x121   : > { %16863 = vst [vmem:[#allocation57_spill] sm:$0xff] %v10969_v41  ;;  %v3817_v42 = vadd.f32 %v10698_v60, %v3785_v62  ;;  %v1446_v35 = vsel %vm1429_vm6, %v16864_v46, %v1445_v36  ;;  %v2877_v14 = vrot.slane %v10961_v23, 7  ;;  %v3694_v6 = vadd.f32 %v10777_v59, %v3593_v39  ;;  %v5828_v46 = vld [vmem:[#allocation3] sm:$0xff] }
 0x122   : > { %v1530_v13 = vmul.f32 %v16866_v29, %v1446_v35  ;;  %v1637_v62 = vmul.f32 %v16845_v1, %v1446_v35  ;;  %v10993_v51 = vmul.f32 %v10230_v32, %v1448_v26  ;;  %v1675_v8 = vmul.f32 %v10280_v53, %v1448_v26  ;;  %5836 = vrot.lane.b32.xlu0 %v5828_v46, %s9942_s23 }
 0x123   : > { %3882 = vst.msk [vmem:[#allocation3 + $0x18] sm:$0xff] %vm3846_vm5, %v3817_v42  ;;  %v1738_v36 = vmul.f32 %v10326_v15, %v1446_v35  ;;  %v1776_v40 = vmul.f32 %v10296_v63, %v1448_v26  ;;  %v3786_v59 = vadd.f32 %v3756_v22, %v3694_v6  ;;  %v16868_v42 = vrot.slane %v10787_v20, 7 }
 0x124   : > { %v11000_v39 = vmul.f32 %v10230_v32, %v1530_v13  ;;  %v16869_v30 = vrot.slane %v10924_v31, 7  ;;  %v11009_v61 = vadd.f32 %v1675_v8, %v10837_v34  ;;  %v1674_v13 = vmul.f32 %v10280_v53, %v1637_v62 }
 0x125   : > { %v2878_v44 = vsel %vm1429_vm6, %v16868_v42, %v2877_v14  ;;  %v1775_v35 = vmul.f32 %v10296_v63, %v1738_v36  ;;  %v11013_v26 = vadd.f32 %v1776_v40, %v10850_v55  ;;  %v3818_v6 = vadd.f32 %v10698_v60, %v3786_v59  ;;  %v11053_v59 = vpop.f32.mrf.mxu0 }
 0x126   : > { %16867 = vst [vmem:[#allocation15_spill] sm:$0xff] %v11000_v39  ;;  %v2880_v41 = vsel %vm1429_vm6, %v2877_v14, %v16869_v30  ;;  %v2960_v22 = vmul.f32 %v16866_v29, %v2878_v44  ;;  %v3058_v46 = vmul.f32 %v16845_v1, %v2878_v44  ;;  %v3120_v34 = vadd.f32 %v10882_v4, %v10722_v52 }
 0x127   : > { %16870 = vst [vmem:[#allocation58_spill] sm:$0xff] %v11013_v26  ;;  %v3091_v42 = vmul.f32 %v10262_v48, %v2880_v41  ;;  %v1807_v39 = vadd.f32 %v1775_v35, %v1704_v0  ;;  %v11021_v30 = vmul.f32 %v10230_v32, %v2880_v41  ;;  %v3154_v55 = vmul.f32 %v10326_v15, %v2878_v44 }
 0x128   : > { %3883 = vst.msk [vmem:[#allocation3 + $0x20] sm:$0xff] %vm3846_vm5, %v3818_v6  ;;  %v11028_v40 = vmul.f32 %v10230_v32, %v2960_v22  ;;  %v11031_v14 = vmul.f32 %v10262_v48, %v3058_v46  ;;  %v3186_v0 = vmul.f32 %v10285_v58, %v2880_v41  ;;  %v11041_v15 = vmul.f32 %v10280_v53, %v10961_v23 }
 0x129   : > { %v11034_v62 = vadd.f32 %v3091_v42, %v10872_v38  ;;  %v1875_v8 = vadd.f32 %v10665_v57, %v1807_v39  ;;  %v3185_v36 = vmul.f32 %v10285_v58, %v3154_v55  ;;  %v11045_v52 = vmul.f32 %v10331_v17, %v10961_v23  ;;  %16871 = vst [vmem:[#allocation59_spill] sm:$0xff] %v11053_v59  ;;  %v16875_v55 = vld [vmem:[#allocation16_spill] sm:$0xff] }
 0x12a   : > { %v5903_v44 = vld [vmem:[#allocation3 + $0x18] sm:$0xff]  ;;  %v3218_v4 = vadd.f32 %v3186_v0, %v10894_v54  ;;  %v3376_v38 = vmul.f32 %v10421_v3, %v10961_v23  ;;  %v3448_v41 = vrot.slane %v10961_v23, 1  ;;  %v3563_v57 = vmul.f32 %v10296_v63, %v10759_v45 }
 0x12b   : > { %5912 = vrot.lane.b32.xlu1 %v5903_v44, %s9942_s23  ;;  %v1944_v39 = vadd.f32 %v10819_v7, %v1875_v8  ;;  %v3217_v35 = vadd.f32 %v3185_v36, %v3120_v34  ;;  %v11060_v54 = vmul.f32 %v11053_v59, %v10262_v48  ;;  %v16872_v23 = vrot.slane %v10787_v20, 1 }
 0x12c   : > { %v3281_v6 = vadd.f32 %v10645_v27, %v3218_v4  ;;  %v16873_v45 = vrot.slane %v10924_v31, 1  ;;  %v11073_v7 = vmul.f32 %v11053_v59, %v10331_v17  ;;  %v11080_v27 = vmul.f32 %v11053_v59, %v10464_v11 }
 0x12d   : > { %v3449_v46 = vsel %vm2038_vm7, %v16872_v23, %v3448_v41  ;;  %v3280_v34 = vadd.f32 %v10737_v2, %v3217_v35  ;;  %v11082_v20 = vadd.f32 %v1981_v56, %v1944_v39  ;;  %v11097_v56 = vpop.f32.mrf.mxu1  ;;  %v11099_v39 = vpop.f32.mrf.mxu0 }
 0x12e   : > { %v11069_v42 = vsel %vm2038_vm7, %v3448_v41, %v16873_v45  ;;  %16874 = vst [vmem:[#allocation60_spill] sm:$0xff] %v11073_v7  ;;  %v3534_v0 = vmul.f32 %v16875_v55, %v3449_v46  ;;  %v3633_v8 = vmul.f32 %v16855_v5, %v3449_v46  ;;  %16876 = vst [vmem:[#allocation61_spill] sm:$0xff] %v11080_v27 }
 0x12f   : > { %16877 = vst [vmem:[#allocation62_spill] sm:$0xff] %v11082_v20  ;;  %v3345_v36 = vadd.f32 %v10801_v49, %v3281_v6  ;;  %v11087_v44 = vmul.f32 %v10464_v11, %v11069_v42  ;;  %v3727_v4 = vmul.f32 %v10334_v18, %v3449_v46  ;;  %v3344_v2 = vadd.f32 %v10885_v9, %v3280_v34  ;;  %v16882_v46 = vld [vmem:[#allocation17_spill] sm:$0xff] }
 0x130   : > { %v11092_v41 = vmul.f32 %v10296_v63, %v3534_v0  ;;  %v3665_v35 = vmul.f32 %v10464_v11, %v3633_v8  ;;  %v3758_v23 = vmul.f32 %v10556_v16, %v11069_v42  ;;  %16878 = vst [vmem:[#allocation63_spill] sm:$0xff] %v11099_v39  ;;  %v11107_v34 = vmul.f32 %v11097_v56, %v10280_v53 }
 0x131   : > { %v3408_v49 = vadd.f32 %v10959_v50, %v3345_v36  ;;  %v3757_v6 = vmul.f32 %v10556_v16, %v3727_v4  ;;  %v3407_v45 = vadd.f32 %v3376_v38, %v3344_v2  ;;  %v11111_v0 = vmul.f32 %v11097_v56, %v10331_v17 }
 0x132   : > { %16879 = vst [vmem:[#allocation64_spill] sm:$0xff] %v11107_v34  ;;  %v11115_v8 = vmul.f32 %v11097_v56, %v10421_v3  ;;  %v1449_v4 = vrot.slane %v11099_v39, 7  ;;  %v1706_v38 = vadd.f32 %v1674_v13, %v10843_v24  ;;  %v11124_v9 = vmul.f32 %v10262_v48, %v11099_v39 }
 0x133   : > { %v3596_v50 = vadd.f32 %v10927_v25, %v3408_v49  ;;  %v3787_v36 = vadd.f32 %v3757_v6, %v10971_v28  ;;  %v3595_v2 = vadd.f32 %v3563_v57, %v3407_v45  ;;  %v11128_v22 = vmul.f32 %v10331_v17, %v11099_v39  ;;  %v2723_v57 = vpop.f32.mrf.mxu1 }
 0x134   : > { %v16880_v25 = vrot.slane %v10890_v37, 7  ;;  %v16881_v49 = vrot.slane %v11053_v59, 7  ;;  %v1983_v13 = vmul.f32 %v10464_v11, %v11099_v39 }
 0x135   : > { %v3819_v7 = vadd.f32 %v10698_v60, %v3787_v36  ;;  %v3696_v6 = vadd.f32 %v10921_v12, %v3595_v2  ;;  %v11140_v45 = vadd.f32 %v3665_v35, %v3596_v50  ;;  %v2881_v50 = vrot.slane %v2723_v57, 7 }
 0x136   : > { %v1450_v28 = vsel %vm1429_vm6, %v16880_v25, %v1449_v4  ;;  %v1452_v24 = vsel %vm1429_vm6, %v1449_v4, %v16881_v49 }
 0x137   : > { %v1532_v27 = vmul.f32 %v16882_v46, %v1450_v28  ;;  %v1639_v36 = vmul.f32 %v16866_v29, %v1450_v28  ;;  %3884 = vst.msk [vmem:[#allocation3 + $0x28] sm:$0xff] %vm3846_vm5, %v3819_v7  ;;  %v11146_v25 = vmul.f32 %v10230_v32, %v1452_v24  ;;  %v1677_v26 = vmul.f32 %v10280_v53, %v1452_v24 }
 0x138   : > { %v1740_v4 = vmul.f32 %v16845_v1, %v1450_v28  ;;  %v1778_v49 = vmul.f32 %v10296_v63, %v1452_v24  ;;  %v3788_v20 = vadd.f32 %v3758_v23, %v3696_v6  ;;  %v16884_v23 = vrot.slane %v10924_v31, 7 }
 0x139   : > { %v11152_v12 = vmul.f32 %v10230_v32, %v1532_v27  ;;  %v1676_v2 = vmul.f32 %v10280_v53, %v1639_v36  ;;  %v11157_v7 = vadd.f32 %v1677_v26, %v10993_v51  ;;  %v16885_v24 = vrot.slane %v11097_v56, 7 }
 0x13a   : > { %v1777_v37 = vmul.f32 %v10296_v63, %v1740_v4  ;;  %v11161_v18 = vadd.f32 %v1778_v49, %v11009_v61  ;;  %v3820_v28 = vadd.f32 %v10698_v60, %v3788_v20  ;;  %v2882_v27 = vsel %vm1429_vm6, %v16884_v23, %v2881_v50  ;;  %v5902_v20 = vld [vmem:[#allocation3 + $0x10] sm:$0xff] }
 0x13b   : > { %v2884_v6 = vsel %vm1429_vm6, %v2881_v50, %v16885_v24  ;;  %v3122_v36 = vadd.f32 %v11031_v14, %v10879_v10  ;;  %v2962_v26 = vmul.f32 %v16882_v46, %v2882_v27  ;;  %v3060_v4 = vmul.f32 %v16866_v29, %v2882_v27  ;;  %5910 = vrot.lane.b32.xlu0 %v5902_v20, %s9942_s23  ;;  %v11203_v24 = vpop.f32.mrf.mxu0 }
 0x13c   : > { %16883 = vst [vmem:[#allocation17_spill] sm:$0xff] %v11161_v18  ;;  %v1809_v51 = vadd.f32 %v1777_v37, %v1706_v38  ;;  %v11175_v61 = vmul.f32 %v10280_v53, %v2723_v57  ;;  %3885 = vst.msk [vmem:[#allocation3 + $0x30] sm:$0xff] %vm3846_vm5, %v3820_v28  ;;  %v11179_v49 = vmul.f32 %v10230_v32, %v2884_v6  ;;  %v11189_v53 = vld [vmem:[%s16571_s3] ss:$0 sm:$0xff] }
 0x13d   : > { %v3093_v23 = vmul.f32 %v10262_v48, %v2884_v6  ;;  %v3156_v50 = vmul.f32 %v16845_v1, %v2882_v27  ;;  %v3188_v10 = vmul.f32 %v10285_v58, %v2884_v6  ;;  %v11192_v14 = vmul.f32 %v11189_v53, %v2962_v26 }
 0x13e   : > { %16886 = vst [vmem:[#allocation65_spill] sm:$0xff] %v11175_v61  ;;  %v1877_v37 = vadd.f32 %v10815_v33, %v1809_v51  ;;  %v11195_v32 = vmul.f32 %v10262_v48, %v3060_v4  ;;  %v11198_v38 = vmul.f32 %v10331_v17, %v2723_v57  ;;  %v3378_v33 = vmul.f32 %v10421_v3, %v2723_v57  ;;  %v5989_v6 = vld [vmem:[#allocation3 + $0x28] sm:$0xff] }
 0x13f   : > { %v3187_v1 = vmul.f32 %v10285_v58, %v3156_v50  ;;  %v3220_v28 = vadd.f32 %v3188_v10, %v11034_v62  ;;  %v3452_v27 = vrot.slane %v2723_v57, 1  ;;  %v11207_v26 = vadd.f32 %v3093_v23, %v11021_v30  ;;  %5998 = vrot.lane.b32.xlu1 %v5989_v6, %s9942_s23  ;;  %v16891_v23 = vld [vmem:[#allocation18_spill] sm:$0xff] }
 0x140   : > { %v1946_v51 = vadd.f32 %v10976_v19, %v1877_v37  ;;  %v3565_v48 = vmul.f32 %v10296_v63, %v10907_v47  ;;  %v16887_v57 = vrot.slane %v10924_v31, 1  ;;  %v16888_v50 = vrot.slane %v11097_v56, 1  ;;  %v16892_v37 = vld [vmem:[#allocation56_spill] sm:$0xff] }
 0x141   : > { %v3219_v58 = vadd.f32 %v3187_v1, %v3122_v36  ;;  %v3283_v62 = vadd.f32 %v10797_v43, %v3220_v28  ;;  %v11229_v36 = vld [vmem:[%s16571_s3 + $0x3] ss:$0 sm:$0xff]  ;;  %v3124_v34 = vadd.f32 %v11195_v32, %v11028_v40  ;;  %v16921_v32 = vld [vmem:[#allocation24_spill] sm:$0xff] }
 0x142   : > { %v3453_v20 = vsel %vm2038_vm7, %v16887_v57, %v3452_v27  ;;  %v11220_v19 = vsel %vm2038_vm7, %v3452_v27, %v16888_v50  ;;  %v11222_v30 = vadd.f32 %v1983_v13, %v1946_v51  ;;  %v11233_v43 = vmul.f32 %v11229_v36, %v11203_v24  ;;  %v1300_v27 = vpop.f32.mrf.mxu0 }
 0x143   : > { %16889 = vst [vmem:[#allocation66_spill] sm:$0xff] %v11220_v19  ;;  %v3536_v47 = vmul.f32 %v16891_v23, %v3453_v20  ;;  %v3635_v10 = vmul.f32 %v16875_v55, %v3453_v20  ;;  %v3282_v31 = vadd.f32 %v10868_v21, %v3219_v58  ;;  %v3347_v1 = vadd.f32 %v16892_v37, %v3283_v62 }
 0x144   : > { %16890 = vst [vmem:[#allocation67_spill] sm:$0xff] %v11222_v30  ;;  %v11239_v13 = vmul.f32 %v10464_v11, %v11220_v19  ;;  %v3729_v28 = vmul.f32 %v16855_v5, %v3453_v20  ;;  %v3760_v57 = vmul.f32 %v10556_v16, %v11220_v19  ;;  %v11250_v21 = vmul.f32 %v11203_v24, %v10331_v17 }
 0x145   : > { %v11243_v6 = vmul.f32 %v10296_v63, %v3536_v47  ;;  %v3667_v51 = vmul.f32 %v10464_v11, %v3635_v10  ;;  %v3346_v58 = vadd.f32 %v11045_v52, %v3282_v31  ;;  %v3410_v62 = vadd.f32 %v11115_v8, %v3347_v1  ;;  %v16894_v10 = vld [vmem:[#allocation15_spill] sm:$0xff] }
 0x146   : > { %v3759_v50 = vmul.f32 %v10556_v16, %v3729_v28  ;;  %v11257_v20 = vmul.f32 %v11203_v24, %v10464_v11  ;;  %v1453_v47 = vrot.slane %v1300_v27, 7  ;;  %v1708_v37 = vadd.f32 %v1676_v2, %v16894_v10 }
 0x147   : > { %v11262_v35 = vmul.f32 %v11229_v36, %v1300_v27  ;;  %v3409_v4 = vadd.f32 %v3378_v33, %v3346_v58  ;;  %v3598_v18 = vadd.f32 %v11092_v41, %v3410_v62  ;;  %v11267_v8 = vmul.f32 %v10331_v17, %v1300_v27 }
 0x148   : > { %16893 = vst [vmem:[#allocation56_spill] sm:$0xff] %v11257_v20  ;;  %v3789_v52 = vadd.f32 %v3759_v50, %v11140_v45  ;;  %v16895_v31 = vrot.slane %v11053_v59, 7  ;;  %v16896_v28 = vrot.slane %v11203_v24, 7  ;;  %v1985_v2 = vmul.f32 %v10464_v11, %v1300_v27  ;;  %v11276_v20 = vpop.f32.mrf.mxu0  ;;  %v16897_v45 = vld [vmem:[#allocation19_spill] sm:$0xff] }
 0x149   : > { %v2062_v10 = vrot.slane %v1300_v27, 1  ;;  %v3597_v33 = vadd.f32 %v3565_v48, %v3409_v4  ;;  %v11281_v62 = vadd.f32 %v3667_v51, %v3598_v18  ;;  %v11300_v51 = vld [vmem:[%s16571_s3 + $0x2] ss:$0 sm:$0xff]  ;;  %v16901_v30 = vrot.slane %v11203_v24, 1 }
 0x14a   : > { %v1454_v1 = vsel %vm1429_vm6, %v16895_v31, %v1453_v47  ;;  %v1456_v63 = vsel %vm1429_vm6, %v1453_v47, %v16896_v28  ;;  %v3821_v41 = vadd.f32 %v10698_v60, %v3789_v52  ;;  %v11287_v47 = vld [vmem:[%s16571_s3 + $0x1] ss:$0 sm:$0xff]  ;;  %v16913_v19 = vrot.slane %v11276_v20, 7 }
 0x14b   : > { %v1534_v58 = vmul.f32 %v16897_v45, %v1454_v1  ;;  %v1641_v50 = vmul.f32 %v16882_v46, %v1454_v1  ;;  %v1679_v27 = vmul.f32 %v11287_v47, %v1456_v63  ;;  %v1742_v31 = vmul.f32 %v16866_v29, %v1454_v1 }
 0x14c   : > { %v3698_v48 = vadd.f32 %v11087_v44, %v3597_v33  ;;  %3886 = vst.msk [vmem:[#allocation3 + $0x38] sm:$0xff] %vm3846_vm5, %v3821_v41  ;;  %v1572_v18 = vmul.f32 %v11189_v53, %v1456_v63  ;;  %v1780_v52 = vmul.f32 %v11300_v51, %v1456_v63  ;;  %v16898_v33 = vrot.slane %v11053_v59, 1  ;;  %v16903_v63 = vld [vmem:[#allocation20_spill] sm:$0xff] }
 0x14d   : > { %v11294_v4 = vmul.f32 %v11189_v53, %v1534_v58  ;;  %v1678_v28 = vmul.f32 %v11287_v47, %v1641_v50  ;;  %v1711_v1 = vadd.f32 %v1679_v27, %v11146_v25  ;;  %v1779_v44 = vmul.f32 %v11300_v51, %v1742_v31 }
 0x14e   : > { %v11309_v41 = vsel %vm2038_vm7, %v16898_v33, %v2062_v10  ;;  %v3790_v58 = vadd.f32 %v3760_v57, %v3698_v48  ;;  %v11312_v17 = vadd.f32 %v1780_v52, %v11157_v7  ;;  %v11317_v5 = vsel %vm2038_vm7, %v2062_v10, %v16901_v30  ;;  %v11332_v7 = vld [vmem:[%s16571_s3 + $0x4] ss:$0 sm:$0xff]  ;;  %v11338_v57 = vpop.f32.mrf.mxu1  ;;  %v11344_v48 = vld [vmem:[%s16571_s3 + $0x6] ss:$0 sm:$0xff] }
 0x14f   : > { %16899 = vst [vmem:[#allocation15_spill] sm:$0xff] %v11309_v41  ;;  %16902 = vst [vmem:[#allocation68_spill] sm:$0xff] %v11317_v5  ;;  %v2145_v50 = vmul.f32 %v16903_v63, %v11309_v41  ;;  %v1811_v25 = vadd.f32 %v1779_v44, %v1708_v37  ;;  %v11323_v27 = vmul.f32 %v10421_v3, %v11317_v5  ;;  %v1310_v37 = vpop.f32.mrf.mxu0 }
 0x150   : > { %16900 = vst [vmem:[#allocation19_spill] sm:$0xff] %v11312_v17  ;;  %v11327_v31 = vmul.f32 %v11229_v36, %v11276_v20  ;;  %v11336_v30 = vmul.f32 %v11332_v7, %v11276_v20  ;;  %v3822_v10 = vadd.f32 %v10698_v60, %v3790_v58  ;;  %v1988_v44 = vmul.f32 %v11276_v20, %v10464_v11 }
 0x151   : > { %16904 = vst [vmem:[#allocation20_spill] sm:$0xff] %v11323_v27  ;;  %v11347_v52 = vmul.f32 %v11344_v48, %v2145_v50  ;;  %v11356_v58 = vmul.f32 %v11287_v47, %v11338_v57  ;;  %v11360_v27 = vmul.f32 %v11332_v7, %v11338_v57  ;;  %v11365_v50 = vmul.f32 %v11338_v57, %v10421_v3 }
 0x152   : > { %16905 = vst [vmem:[#allocation69_spill] sm:$0xff] %v11327_v31  ;;  %16906 = vst [vmem:[#allocation70_spill] sm:$0xff] %v11336_v30  ;;  %v16907_v31 = vld [vmem:[#allocation57_spill] sm:$0xff]  ;;  %v1457_v59 = vrot.slane %v1310_v37, 7  ;;  %v11371_v41 = vmul.f32 %v11229_v36, %v1310_v37  ;;  %v11374_v39 = vmul.f32 %v11332_v7, %v1310_v37 }
 0x153   : > { %v1879_v17 = vadd.f32 %v16907_v31, %v1811_v25  ;;  %16908 = vst [vmem:[#allocation57_spill] sm:$0xff] %v11356_v58  ;;  %16909 = vst [vmem:[#allocation71_spill] sm:$0xff] %v11360_v27  ;;  %v1710_v25 = vadd.f32 %v1678_v28, %v11152_v12  ;;  %v2066_v58 = vrot.slane %v1310_v37, 1  ;;  %v2733_v27 = vpop.f32.mrf.mxu1  ;;  %v1987_v12 = vmul.f32 %v10464_v11, %v1310_v37 }
 0x154   : > { %3887 = vst.msk [vmem:[#allocation3 + $0x40] sm:$0xff] %vm3846_vm5, %v3822_v10  ;;  %16910 = vst [vmem:[#allocation72_spill] sm:$0xff] %v11371_v41  ;;  %v16912_v10 = vrot.slane %v11203_v24, 7  ;;  %v1460_v33 = vsel %vm1429_vm6, %v1457_v59, %v16913_v19  ;;  %v2885_v28 = vrot.slane %v2733_v27, 7  ;;  %v16919_v37 = vrot.slane %v11276_v20, 1 }
 0x155   : > { %v1948_v31 = vadd.f32 %v11128_v22, %v1879_v17  ;;  %16911 = vst [vmem:[#allocation73_spill] sm:$0xff] %v11374_v39  ;;  %v16915_v17 = vld [vmem:[#allocation21_spill] sm:$0xff]  ;;  %v1681_v39 = vmul.f32 %v11287_v47, %v1460_v33  ;;  %v1782_v30 = vmul.f32 %v11300_v51, %v1460_v33 }
 0x156   : > { %v1458_v3 = vsel %vm1429_vm6, %v16912_v10, %v1457_v59  ;;  %v16916_v59 = vrot.slane %v11203_v24, 1  ;;  %v11406_v40 = vsel %vm2038_vm7, %v2066_v58, %v16919_v37  ;;  %v11425_v37 = vld [vmem:[%s16571_s3 + $0x7] ss:$0 sm:$0xff] }
 0x157   : > { %v11383_v22 = vadd.f32 %v1985_v2, %v1948_v31  ;;  %v1536_v41 = vmul.f32 %v16915_v17, %v1458_v3  ;;  %v1643_v61 = vmul.f32 %v16897_v45, %v1458_v3  ;;  %v1744_v10 = vmul.f32 %v16882_v46, %v1458_v3  ;;  %16920 = vst [vmem:[#allocation76_spill] sm:$0xff] %v11406_v40  ;;  %v5988_v3 = vld [vmem:[#allocation3 + $0x20] sm:$0xff] }
 0x158   : > { %v11395_v11 = vsel %vm2038_vm7, %v16916_v59, %v2066_v58  ;;  %v11401_v2 = vmul.f32 %v11189_v53, %v1460_v33  ;;  %5996 = vrot.lane.b32.xlu0 %v5988_v3, %s9942_s23 }
 0x159   : > { %16914 = vst [vmem:[#allocation74_spill] sm:$0xff] %v11383_v22  ;;  %16917 = vst [vmem:[#allocation21_spill] sm:$0xff] %v11395_v11  ;;  %v11398_v19 = vmul.f32 %v11189_v53, %v1536_v41  ;;  %v2147_v31 = vmul.f32 %v16921_v32, %v11395_v11  ;;  %v6074_v22 = vld [vmem:[#allocation3 + $0x30] sm:$0xff]  ;;  %v11411_v24 = vmul.f32 %v11287_v47, %v1643_v61 }
 0x15a   : > { %v1781_v59 = vmul.f32 %v11300_v51, %v1744_v10  ;;  %v1814_v41 = vadd.f32 %v1782_v30, %v1711_v1  ;;  %v2251_v33 = vmul.f32 %v16903_v63, %v11395_v11  ;;  %v11429_v61 = vmul.f32 %v11425_v37, %v11406_v40  ;;  %6082 = vrot.lane.b32.xlu1 %v6074_v22, %s9942_s23 }
 0x15b   : > { %16918 = vst [vmem:[#allocation75_spill] sm:$0xff] %v11398_v19  ;;  %v11417_v19 = vadd.f32 %v1681_v39, %v1572_v18  ;;  %v11420_v58 = vmul.f32 %v11344_v48, %v2147_v31  ;;  %v16924_v1 = vrot.slane %v11097_v56, 7  ;;  %v11438_v10 = vmul.f32 %v10556_v16, %v11406_v40 }
 0x15c   : > { %16923 = vst [vmem:[#allocation77_spill] sm:$0xff] %v11429_v61  ;;  %v1813_v39 = vadd.f32 %v1781_v59, %v1710_v25  ;;  %v1882_v18 = vadd.f32 %v11060_v54, %v1814_v41  ;;  %v16926_v31 = vrot.slane %v11338_v57, 7  ;;  %v2288_v11 = vmul.f32 %v11425_v37, %v2251_v33 }
 0x15d   : > { %16922 = vst [vmem:[#allocation24_spill] sm:$0xff] %v11420_v58  ;;  %v2886_v30 = vsel %vm1429_vm6, %v16924_v1, %v2885_v28  ;;  %16925 = vst [vmem:[#allocation78_spill] sm:$0xff] %v11438_v10  ;;  %v16942_v10 = vrot.slane %v11276_v20, 1 }
 0x15e   : > { %v2888_v3 = vsel %vm1429_vm6, %v2885_v28, %v16926_v31  ;;  %v2964_v61 = vmul.f32 %v16897_v45, %v2886_v30  ;;  %v3062_v58 = vmul.f32 %v16882_v46, %v2886_v30  ;;  %v1881_v25 = vadd.f32 %v11124_v9, %v1813_v39 }
 0x15f   : > { %v3095_v1 = vmul.f32 %v11229_v36, %v2888_v3  ;;  %v1951_v54 = vadd.f32 %v11250_v21, %v1882_v18  ;;  %v3158_v22 = vmul.f32 %v16866_v29, %v2886_v30  ;;  %v3190_v16 = vmul.f32 %v11344_v48, %v2888_v3 }
 0x160   : > { %v11452_v59 = vmul.f32 %v11189_v53, %v2964_v61  ;;  %v11455_v28 = vmul.f32 %v11189_v53, %v2888_v3  ;;  %v11458_v41 = vmul.f32 %v11229_v36, %v3062_v58  ;;  %v1950_v9 = vadd.f32 %v11267_v8, %v1881_v25  ;;  %v16927_v3 = vld [vmem:[#allocation55_spill] sm:$0xff] }
 0x161   : > { %v11461_v33 = vadd.f32 %v3095_v1, %v11179_v49  ;;  %v2019_v39 = vadd.f32 %v1988_v44, %v1951_v54  ;;  %v3189_v21 = vmul.f32 %v11344_v48, %v3158_v22  ;;  %v3222_v29 = vadd.f32 %v3190_v16, %v11207_v26  ;;  %v16932_v16 = vld [vmem:[#allocation38_spill] sm:$0xff] }
 0x162   : > { %v11467_v30 = vmul.f32 %v11287_v47, %v2733_v27  ;;  %v11470_v61 = vmul.f32 %v11332_v7, %v2733_v27  ;;  %v3380_v18 = vmul.f32 %v11425_v37, %v2733_v27  ;;  %v3456_v58 = vrot.slane %v2733_v27, 1  ;;  %v16931_v27 = vld [vmem:[#allocation44_spill] sm:$0xff] }
 0x163   : > { %v2214_v31 = vadd.f32 %v11347_v52, %v2019_v39  ;;  %v3221_v49 = vadd.f32 %v3189_v21, %v3124_v34  ;;  %v3285_v1 = vadd.f32 %v16927_v3, %v3222_v29  ;;  %v3567_v8 = vmul.f32 %v11300_v51, %v11069_v42  ;;  %v11500_v21 = vld [vmem:[%s16571_s3 + $0x5] ss:$0 sm:$0xff] }
 0x164   : > { %v11477_v44 = vadd.f32 %v1987_v12, %v1950_v9  ;;  %v16929_v26 = vrot.slane %v11097_v56, 1  ;;  %v16930_v54 = vrot.slane %v11338_v57, 1  ;;  %v2408_v52 = vadd.f32 %v16932_v16, %v16931_v27  ;;  %v11494_v9 = vpop.f32.mrf.mxu0 }
 0x165   : > { %v11489_v34 = vadd.f32 %v2288_v11, %v2214_v31  ;;  %v3284_v39 = vadd.f32 %v11041_v15, %v3221_v49  ;;  %v3349_v42 = vadd.f32 %v11111_v0, %v3285_v1  ;;  %v11510_v15 = vld [vmem:[%s16571_s3 + $0x8] ss:$0 sm:$0xff]  ;;  %v3933_v1 = vld [vmem:[%s16573_s5 + $0xb0] sm:$0xff] }
 0x166   : > { %16928 = vst [vmem:[#allocation55_spill] sm:$0xff] %v11477_v44  ;;  %v3457_v25 = vsel %vm2038_vm7, %v16929_v26, %v3456_v58  ;;  %v11485_v22 = vsel %vm2038_vm7, %v3456_v58, %v16930_v54  ;;  %v11520_v3 = vadd.f32 %v10698_v60, %v2408_v52  ;;  %v11529_v54 = vmul.f32 %v11229_v36, %v11494_v9 }
 0x167   : > { %v3538_v12 = vmul.f32 %v16903_v63, %v3457_v25  ;;  %v3637_v56 = vmul.f32 %v16891_v23, %v3457_v25  ;;  %v11504_v29 = vmul.f32 %v11500_v21, %v11485_v22  ;;  %v3731_v11 = vmul.f32 %v16875_v55, %v3457_v25 }
 0x168   : > { %v3762_v0 = vmul.f32 %v11510_v15, %v11485_v22  ;;  %v3348_v58 = vadd.f32 %v11198_v38, %v3284_v39  ;;  %v3412_v31 = vadd.f32 %v11365_v50, %v3349_v42  ;;  %16933 = vst [vmem:[#allocation44_spill] sm:$0xff] %v11520_v3  ;;  %16934 = vst [vmem:[#allocation38_spill] sm:$0xff] %v11529_v54  ;;  %8742 = vmatmul.mubr.msk.f32.vlgmr.msra.gmra.mxu0 %vm3846_vm5, %v11520_v3  ;;  %v11547_v39 = vpop.f32.mrf.mxu1 }
 0x169   : > { %v11517_v49 = vmul.f32 %v11300_v51, %v3538_v12  ;;  %v3669_v26 = vmul.f32 %v11500_v21, %v3637_v56  ;;  %v3761_v25 = vmul.f32 %v11510_v15, %v3731_v11  ;;  %v11533_v38 = vmul.f32 %v11332_v7, %v11494_v9  ;;  %3847 = vst.msk [vmem:[#allocation2] sm:$0xff] %vm3846_vm5, %v11520_v3  ;;  %v16938_v12 = vld [vmem:[#allocation6_spill] sm:$0xff] }
 0x16a   : > { %v3411_v50 = vadd.f32 %v3380_v18, %v3348_v58  ;;  %v3600_v27 = vadd.f32 %v11243_v6, %v3412_v31  ;;  %8774 = vmatmul.mubr.msk.f32.vlgmr.msra.gmra.mxu1 %vm3846_vm5, %v11520_v3  ;;  %v11545_v52 = vmul.f32 %v11500_v21, %v11494_v9  ;;  %v1320_v18 = vpop.f32.mrf.mxu0  ;;  %4570 = vmatpush1.msra.mxu0 %v3933_v1  ;;  %v16937_v11 = vmov 0.0  }
 0x16b   : > { %16935 = vst [vmem:[#allocation79_spill] sm:$0xff] %v11533_v38  ;;  %v3791_v6 = vadd.f32 %v3761_v25, %v11281_v62  ;;  %v11554_v56 = vmul.f32 %v11287_v47, %v11547_v39  ;;  %4101 = vmatprep.mubr.f32.mxu0 %v16937_v11  ;;  %v11561_v16 = vmul.f32 %v11332_v7, %v11547_v39  ;;  %v453_v42 = vadd.s32 144, %v16938_v12 }
 0x16c   : > { %v3599_v58 = vadd.f32 %v3567_v8, %v3411_v50  ;;  %v11557_v31 = vadd.f32 %v3669_v26, %v3600_v27  ;;  %v11565_v62 = vmul.f32 %v11425_v37, %v11547_v39  ;;  %4358 = vmatprep.mubr.f32.mxu1 %v16937_v11  ;;  %v1461_v3 = vrot.slane %v1320_v18, 7 }
 0x16d   : > { %16936 = vst [vmem:[#allocation80_spill] sm:$0xff] %v11554_v56  ;;  %v3823_v1 = vadd.f32 %v10698_v60, %v3791_v6  ;;  %v1712_v26 = vadd.f32 %v11411_v24, %v11294_v4  ;;  %v11575_v50 = vmul.f32 %v11229_v36, %v1320_v18  ;;  %v11578_v27 = vmul.f32 %v11332_v7, %v1320_v18 }
 0x16e   : > { %v3700_v8 = vadd.f32 %v11239_v13, %v3599_v58  ;;  %v597_v54 = vand.u32 15, %v453_v42  ;;  %v16940_v6 = vrot.slane %v11276_v20, 7  ;;  %v16941_v38 = vrot.slane %v11494_v9, 7 }
 0x16f   : > { %16939 = vst [vmem:[#allocation6_spill] sm:$0xff] %v11575_v50  ;;  %3888 = vst.msk [vmem:[#allocation3 + $0x48] sm:$0xff] %vm3846_vm5, %v3823_v1  ;;  %v2070_v58 = vrot.slane %v1320_v18, 1  ;;  %v1989_v55 = vmul.f32 %v11500_v21, %v1320_v18  ;;  %v16966_v50 = vld [vmem:[#allocation26_spill] sm:$0xff] }
 0x170   : > { %v1462_v25 = vsel %vm1429_vm6, %v16940_v6, %v1461_v3  ;;  %v1464_v13 = vsel %vm1429_vm6, %v1461_v3, %v16941_v38  ;;  %v3792_v40 = vadd.f32 %v3762_v0, %v3700_v8  ;;  %vm869_vm8 = vcmp.gt.s32.totalorder %v597_v54, 0  ;;  %v2743_v54 = vpop.f32.mrf.mxu1 }
 0x171   : > { %v1645_v4 = vmul.f32 %v16915_v17, %v1462_v25  ;;  %v1683_v24 = vmul.f32 %v11287_v47, %v1464_v13  ;;  %v1746_v1 = vmul.f32 %v16897_v45, %v1462_v25  ;;  %v1784_v42 = vmul.f32 %v11300_v51, %v1464_v13 }
 0x172   : > { %v11595_v6 = vsel %vm2038_vm7, %v16942_v10, %v2070_v58  ;;  %v3824_v3 = vadd.f32 %v10698_v60, %v3792_v40  ;;  %v11599_v0 = vsel %vm869_vm8, 1.0, %v16937_v11  ;;  %v11602_v38 = vmul.f32 %v11189_v53, %v1464_v13 }
 0x173   : > { %16943 = vst [vmem:[#allocation81_spill] sm:$0xff] %v11595_v6  ;;  %v11605_v18 = vadd.f32 %v1683_v24, %v11401_v2  ;;  %v1538_v8 = vmul.f32 %v11599_v0, %v1462_v25  ;;  %v1783_v44 = vmul.f32 %v11300_v51, %v1746_v1  ;;  %v1816_v20 = vadd.f32 %v1784_v42, %v11417_v19 }
 0x174   : > { %v16944_v10 = vrot.slane %v11494_v9, 1  ;;  %3889 = vst.msk [vmem:[#allocation3 + $0x50] sm:$0xff] %vm3846_vm5, %v3824_v3  ;;  %v11617_v40 = vmul.f32 %v11287_v47, %v1645_v4  ;;  %v2183_v2 = vmul.f32 %v11344_v48, %v11317_v5  ;;  %v2253_v25 = vmul.f32 %v16921_v32, %v11595_v6 }
 0x175   : > { %v2352_v13 = vmul.f32 %v16903_v63, %v11595_v6  ;;  %v1815_v19 = vadd.f32 %v1783_v44, %v1712_v26  ;;  %v1884_v24 = vadd.f32 %v11233_v43, %v1816_v20  ;;  %v2889_v1 = vrot.slane %v2743_v54, 7  ;;  %v16946_v6 = vld [vmem:[#allocation70_spill] sm:$0xff] }
 0x176   : > { %v11613_v60 = vsel %vm2038_vm7, %v2070_v58, %v16944_v10  ;;  %v11629_v42 = vmul.f32 %v11189_v53, %v1538_v8  ;;  %v2290_v4 = vmul.f32 %v11425_v37, %v2253_v25  ;;  %v3126_v10 = vadd.f32 %v11458_v41, %v11192_v14  ;;  %v16950_v41 = vld [vmem:[#allocation73_spill] sm:$0xff] }
 0x177   : > { %16945 = vst [vmem:[#allocation82_spill] sm:$0xff] %v11613_v60  ;;  %v2390_v58 = vmul.f32 %v11510_v15, %v11613_v60  ;;  %v2389_v3 = vmul.f32 %v11510_v15, %v2352_v13  ;;  %v1883_v5 = vadd.f32 %v11262_v35, %v1815_v19  ;;  %v1953_v44 = vadd.f32 %v16946_v6, %v1884_v24  ;;  %v6075_v60 = vld [vmem:[#allocation3 + $0x38] sm:$0xff]  ;;  %v6160_v35 = vld [vmem:[#allocation3 + $0x40] sm:$0xff] }
 0x178   : > { %v16947_v43 = vrot.slane %v11338_v57, 7  ;;  %v16948_v20 = vrot.slane %v11547_v39, 7  ;;  %v11647_v14 = vmul.f32 %v11287_v47, %v2743_v54  ;;  %6084 = vrot.lane.b32.xlu0 %v6075_v60, %s9942_s23  ;;  %6168 = vrot.lane.b32.xlu1 %v6160_v35, %s9942_s23  ;;  %v11682_v35 = vmul.f32 %v11332_v7, %v2743_v54 }
 0x179   : > { %v2421_v25 = vadd.f32 %v2389_v3, %v11489_v34  ;;  %v1952_v6 = vadd.f32 %v16950_v41, %v1883_v5  ;;  %v2021_v19 = vadd.f32 %v11545_v52, %v1953_v44  ;;  %v11658_v34 = vld [vmem:[%s16572_s4] ss:$0 sm:$0xff] }
 0x17a   : > { %v2890_v26 = vsel %vm1429_vm6, %v16947_v43, %v2889_v1  ;;  %v2892_v8 = vsel %vm1429_vm6, %v2889_v1, %v16948_v20  ;;  %16949 = vst [vmem:[#allocation70_spill] sm:$0xff] %v11647_v14 }
 0x17b   : > { %v2966_v13 = vmul.f32 %v16915_v17, %v2890_v26  ;;  %v3064_v56 = vmul.f32 %v16897_v45, %v2890_v26  ;;  %v3097_v24 = vmul.f32 %v11229_v36, %v2892_v8  ;;  %v3160_v1 = vmul.f32 %v16882_v46, %v2890_v26  ;;  %v16953_v46 = vld [vmem:[#allocation24_spill] sm:$0xff] }
 0x17c   : > { %v11661_v3 = vadd.f32 %v11658_v34, %v2421_v25  ;;  %v11667_v5 = vmul.f32 %v11189_v53, %v2892_v8  ;;  %v3192_v52 = vmul.f32 %v11344_v48, %v2892_v8  ;;  %v2020_v44 = vadd.f32 %v1989_v55, %v1952_v6 }
 0x17d   : > { %v11664_v60 = vmul.f32 %v11189_v53, %v2966_v13  ;;  %v2216_v43 = vadd.f32 %v16953_v46, %v2021_v19  ;;  %v11672_v26 = vmul.f32 %v11229_v36, %v3064_v56  ;;  %v3191_v20 = vmul.f32 %v11344_v48, %v3160_v1  ;;  %v16954_v19 = vld [vmem:[#allocation64_spill] sm:$0xff] }
 0x17e   : > { %16951 = vst [vmem:[#allocation73_spill] sm:$0xff] %v11661_v3  ;;  %3860 = vst.msk [vmem:[#allocation2 + $0x68] sm:$0xff] %vm3846_vm5, %v11661_v3  ;;  %v11678_v25 = vadd.f32 %v3097_v24, %v11455_v28  ;;  %v3224_v13 = vadd.f32 %v3192_v52, %v11461_v33  ;;  %v3460_v8 = vrot.slane %v2743_v54, 1  ;;  %v2215_v55 = vadd.f32 %v2183_v2, %v2020_v44  ;;  %v16957_v24 = vld [vmem:[#allocation36_spill] sm:$0xff]  ;;  %v16958_v52 = vld [vmem:[#allocation9_spill] sm:$0xff] }
 0x17f   : > { %16952 = vst [vmem:[#allocation83_spill] sm:$0xff] %v11664_v60  ;;  %v11684_v41 = vadd.f32 %v2290_v4, %v2216_v43  ;;  %v3223_v6 = vadd.f32 %v3191_v20, %v3126_v10  ;;  %v3382_v56 = vmul.f32 %v11425_v37, %v2743_v54  ;;  %v16955_v46 = vrot.slane %v11338_v57, 1  ;;  %v16959_v2 = vld [vmem:[#allocation77_spill] sm:$0xff]  ;;  %v16961_v43 = vld [vmem:[#allocation66_spill] sm:$0xff]  ;;  %v16962_v57 = vld [vmem:[#allocation71_spill] sm:$0xff] }
 0x180   : > { %v3287_v1 = vadd.f32 %v16954_v19, %v3224_v13  ;;  %v16956_v28 = vrot.slane %v11547_v39, 1  ;;  %v1870_v14 = vadd.f32 %v16958_v52, %v16957_v24  ;;  %v2321_v4 = vadd.f32 %v16959_v2, %v2215_v55  ;;  %v16960_v44 = vld [vmem:[#allocation65_spill] sm:$0xff]  ;;  %v16963_v2 = vld [vmem:[#allocation23_spill] sm:$0xff] }
 0x181   : > { %v3461_v3 = vsel %vm2038_vm7, %v16955_v46, %v3460_v8  ;;  %v3286_v10 = vadd.f32 %v16960_v44, %v3223_v6  ;;  %v3569_v54 = vmul.f32 %v11300_v51, %v16961_v43  ;;  %v16964_v43 = vld [vmem:[#allocation43_spill] sm:$0xff]  ;;  %v16967_v60 = vrot.slane %v16966_v50, 1 }
 0x182   : > { %v11694_v33 = vsel %vm2038_vm7, %v3460_v8, %v16956_v28  ;;  %v3639_v20 = vmul.f32 %v16903_v63, %v3461_v3  ;;  %v3351_v13 = vadd.f32 %v16962_v57, %v3287_v1  ;;  %v3540_v19 = vmul.f32 %v16921_v32, %v3461_v3 }
 0x183   : > { %v11707_v8 = vmul.f32 %v11500_v21, %v11694_v33  ;;  %v3733_v46 = vmul.f32 %v16891_v23, %v3461_v3  ;;  %v2422_v28 = vadd.f32 %v2390_v58, %v2321_v4  ;;  %v3350_v55 = vadd.f32 %v11470_v61, %v3286_v10  ;;  %v16970_v4 = vld [vmem:[#allocation34_spill] sm:$0xff]  ;;  %v16971_v10 = vld [vmem:[#allocation7_spill] sm:$0xff] }
 0x184   : > { %v3671_v6 = vmul.f32 %v11500_v21, %v3639_v20  ;;  %v3764_v24 = vmul.f32 %v11510_v15, %v11694_v33  ;;  %v3414_v52 = vadd.f32 %v11565_v62, %v3351_v13  ;;  %v1939_v44 = vadd.f32 %v16963_v2, %v1870_v14  ;;  %v11737_v2 = vpop.f32.mrf.mxu0 }
 0x185   : > { %v3763_v1 = vmul.f32 %v11510_v15, %v3733_v46  ;;  %v16965_v57 = vrot.slane %v16964_v43, 1  ;;  %v11725_v61 = vadd.f32 %v11658_v34, %v2422_v28  ;;  %v3413_v58 = vadd.f32 %v3382_v56, %v3350_v55  ;;  %v16972_v46 = vld [vmem:[#allocation30_spill] sm:$0xff]  ;;  %16973 = vst [vmem:[#allocation36_spill] sm:$0xff] %v11737_v2 }
 0x186   : > { %v2239_v20 = vmul.f32 %v16971_v10, %v16970_v4  ;;  %v11732_v13 = vmul.f32 %v11300_v51, %v3540_v19  ;;  %v3602_v14 = vadd.f32 %v11517_v49, %v3414_v52  ;;  %v16974_v52 = vld [vmem:[#allocation27_spill] sm:$0xff]  ;;  %v3128_v23 = vadd.f32 %v11672_v26, %v11452_v59 }
 0x187   : > { %v11722_v3 = vsel %vm2038_vm7, %v16967_v60, %v16965_v57  ;;  %16969 = vst [vmem:[#allocation64_spill] sm:$0xff] %v11725_v61  ;;  %v3793_v50 = vadd.f32 %v3763_v1, %v11557_v31  ;;  %v2007_v60 = vadd.f32 %v16972_v46, %v1939_v44  ;;  %3861 = vst.msk [vmem:[#allocation2 + $0x70] sm:$0xff] %vm3846_vm5, %v11725_v61  ;;  %v11752_v44 = vpop.f32.mrf.mxu1  ;;  %v452_v61 = vadd.s32 136, %v16938_v12 }
 0x188   : > { %16968 = vst [vmem:[#allocation24_spill] sm:$0xff] %v11722_v3  ;;  %v2340_v62 = vmul.f32 %v16971_v10, %v11722_v3  ;;  %v3601_v56 = vadd.f32 %v3569_v54, %v3413_v58  ;;  %v2276_v28 = vmul.f32 %v11425_v37, %v2239_v20  ;;  %v11744_v19 = vadd.f32 %v3671_v6, %v3602_v14  ;;  %v11777_v14 = vpop.f32.mrf.mxu0 }
 0x189   : > { %v3825_v49 = vadd.f32 %v11658_v34, %v3793_v50  ;;  %v2202_v31 = vadd.f32 %v16974_v52, %v2007_v60  ;;  %v11750_v1 = vmul.f32 %v11229_v36, %v11737_v2  ;;  %v11757_v58 = vmul.f32 %v11332_v7, %v11737_v2  ;;  %16979 = vst [vmem:[#allocation71_spill] sm:$0xff] %v11777_v14  ;;  %v6161_v50 = vld [vmem:[#allocation3 + $0x48] sm:$0xff] }
 0x18a   : > { %v2377_v55 = vmul.f32 %v11510_v15, %v2340_v62  ;;  %v3702_v54 = vadd.f32 %v11504_v29, %v3601_v56  ;;  %v11761_v6 = vmul.f32 %v11500_v21, %v11737_v2  ;;  %v11767_v20 = vmul.f32 %v11287_v47, %v11752_v44  ;;  %6170 = vrot.lane.b32.xlu0 %v6161_v50, %s9942_s23  ;;  %v16980_v52 = vld [vmem:[#allocation75_spill] sm:$0xff] }
 0x18b   : > { %16975 = vst [vmem:[#allocation9_spill] sm:$0xff] %v11750_v1  ;;  %16976 = vst [vmem:[#allocation77_spill] sm:$0xff] %v11757_v58  ;;  %v2308_v10 = vadd.f32 %v2276_v28, %v2202_v31  ;;  %v11771_v29 = vmul.f32 %v11332_v7, %v11752_v44  ;;  %v11775_v62 = vmul.f32 %v11425_v37, %v11752_v44  ;;  %v455_v56 = vadd.s32 160, %v16938_v12 }
 0x18c   : > { %16977 = vst [vmem:[#allocation65_spill] sm:$0xff] %v11761_v6  ;;  %3890 = vst.msk [vmem:[#allocation3 + $0x58] sm:$0xff] %vm3846_vm5, %v3825_v49  ;;  %v3794_v46 = vadd.f32 %v3764_v24, %v3702_v54  ;;  %v1465_v28 = vrot.slane %v11777_v14, 7  ;;  %v1714_v31 = vadd.f32 %v11617_v40, %v16980_v52  ;;  %v11787_v4 = vmul.f32 %v11229_v36, %v11777_v14 }
 0x18d   : > { %16978 = vst [vmem:[#allocation66_spill] sm:$0xff] %v11767_v20  ;;  %v2409_v49 = vadd.f32 %v2377_v55, %v2308_v10  ;;  %v11791_v57 = vmul.f32 %v11332_v7, %v11777_v14  ;;  %v611_v54 = vand.u32 15, %v455_v56  ;;  %v16982_v60 = vrot.slane %v11494_v9, 7 }
 0x18e   : > { %16981 = vst [vmem:[#allocation23_spill] sm:$0xff] %v11787_v4  ;;  %v3826_v24 = vadd.f32 %v11658_v34, %v3794_v46  ;;  %v16983_v55 = vrot.slane %v11737_v2, 7  ;;  %v1991_v56 = vmul.f32 %v11500_v21, %v11777_v14 }
 0x18f   : > { %v1466_v1 = vsel %vm1429_vm6, %v16982_v60, %v1465_v28  ;;  %v11801_v40 = vadd.f32 %v11658_v34, %v2409_v49  ;;  %vm871_vm9 = vcmp.gt.s32.totalorder %v611_v54, 0 }
 0x190   : > { %v1468_v10 = vsel %vm1429_vm6, %v1465_v28, %v16983_v55  ;;  %v1647_v52 = vmul.f32 %v11599_v0, %v1466_v1  ;;  %3891 = vst.msk [vmem:[#allocation3 + $0x60] sm:$0xff] %vm3846_vm5, %v3826_v24  ;;  %v1748_v46 = vmul.f32 %v16915_v17, %v1466_v1  ;;  %v2753_v28 = vpop.f32.mrf.mxu1  ;;  %v11820_v49 = vsel %vm871_vm9, 1.0, %v16937_v11 }
 0x191   : > { %16984 = vst [vmem:[#allocation43_spill] sm:$0xff] %v11801_v40  ;;  %v11804_v50 = vmul.f32 %v11189_v53, %v1468_v10  ;;  %v1685_v58 = vmul.f32 %v11287_v47, %v1468_v10  ;;  %v1786_v60 = vmul.f32 %v11300_v51, %v1468_v10  ;;  %3848 = vst.msk [vmem:[#allocation2 + $0x8] sm:$0xff] %vm3846_vm5, %v11801_v40  ;;  %8743 = vmatmul.mubr.msk.f32.gmra.mxu0 %vm3846_vm5, %v11801_v40 }
 0x192   : > { %8775 = vmatmul.mubr.msk.f32.gmra.mxu1 %vm3846_vm5, %v11801_v40  ;;  %v11823_v24 = vmul.f32 %v11287_v47, %v1647_v52  ;;  %v16645_v55 = vrot.slane %v11777_v14, 1  ;;  %4107 = vmatprep.mubr.f32.mxu0 %v16937_v11  ;;  %v1540_v10 = vmul.f32 %v11820_v49, %v1466_v1  ;;  %v1785_v6 = vmul.f32 %v11300_v51, %v1748_v46 }
 0x193   : > { %v11826_v54 = vadd.f32 %v1685_v58, %v11602_v38  ;;  %4364 = vmatprep.mubr.f32.mxu1 %v16937_v11  ;;  %v11834_v40 = vadd.f32 %v1786_v60, %v11605_v18  ;;  %v16986_v38 = vrot.slane %v11494_v9, 1  ;;  %v2893_v52 = vrot.slane %v2753_v28, 7 }
 0x194   : > { %v11847_v1 = vmul.f32 %v11287_v47, %v2753_v28  ;;  %v11850_v46 = vmul.f32 %v11189_v53, %v1540_v10  ;;  %v1817_v18 = vadd.f32 %v1785_v6, %v1714_v31  ;;  %v16990_v9 = vrot.slane %v11547_v39, 7  ;;  %v16993_v10 = vld [vmem:[#allocation72_spill] sm:$0xff] }
 0x195   : > { %16985 = vst [vmem:[#allocation26_spill] sm:$0xff] %v11834_v40  ;;  %v11842_v58 = vsel %vm2038_vm7, %v16986_v38, %v16645_v55  ;;  %v590_v40 = vand.u32 15, %v452_v61  ;;  %v16991_v55 = vrot.slane %v11752_v44, 7  ;;  %v11861_v59 = vmul.f32 %v11332_v7, %v2753_v28 }
 0x196   : > { %16987 = vst [vmem:[#allocation34_spill] sm:$0xff] %v11842_v58  ;;  %16988 = vst [vmem:[#allocation7_spill] sm:$0xff] %v11847_v1  ;;  %v2354_v60 = vmul.f32 %v16921_v32, %v11842_v58  ;;  %v2894_v38 = vsel %vm1429_vm6, %v16990_v9, %v2893_v52  ;;  %v3384_v26 = vmul.f32 %v11425_v37, %v2753_v28 }
 0x197   : > { %16989 = vst [vmem:[#allocation30_spill] sm:$0xff] %v11850_v46  ;;  %v2896_v14 = vsel %vm1429_vm6, %v2893_v52, %v16991_v55  ;;  %16992 = vst [vmem:[#allocation27_spill] sm:$0xff] %v11861_v59  ;;  %v1885_v1 = vadd.f32 %v16993_v10, %v1817_v18  ;;  %vm964_vm10 = vcmp.lt.s32.totalorder %v590_v40, 15  ;;  %v2968_v61 = vmul.f32 %v11599_v0, %v2894_v38 }
 0x198   : > { %v2391_v6 = vmul.f32 %v11510_v15, %v2354_v60  ;;  %v11868_v31 = vsel %vm964_vm10, 1.0, %v16937_v11  ;;  %v11871_v9 = vmul.f32 %v11189_v53, %v2896_v14  ;;  %v3066_v55 = vmul.f32 %v16915_v17, %v2894_v38 }
 0x199   : > { %16994 = vst [vmem:[#allocation75_spill] sm:$0xff] %v11868_v31  ;;  %v3099_v52 = vmul.f32 %v11229_v36, %v2896_v14  ;;  %v1954_v58 = vadd.f32 %v11578_v27, %v1885_v1  ;;  %v11878_v18 = vmul.f32 %v11189_v53, %v2968_v61  ;;  %v3162_v40 = vmul.f32 %v16897_v45, %v2894_v38 }
 0x19a   : > { %v2423_v20 = vadd.f32 %v2391_v6, %v11684_v41  ;;  %v11882_v60 = vmul.f32 %v11229_v36, %v3066_v55  ;;  %v3194_v4 = vmul.f32 %v11344_v48, %v2896_v14  ;;  %v3464_v46 = vrot.slane %v2753_v28, 1 }
 0x19b   : > { %v11885_v10 = vadd.f32 %v3099_v52, %v11667_v5  ;;  %v11888_v59 = vadd.f32 %v1991_v56, %v1954_v58  ;;  %v3193_v41 = vmul.f32 %v11344_v48, %v3162_v40  ;;  %v3571_v1 = vmul.f32 %v11300_v51, %v11485_v22  ;;  %v16999_v56 = vld [vmem:[#allocation39_spill] sm:$0xff]  ;;  %v17003_v52 = vld [vmem:[#allocation50_spill] sm:$0xff]  ;;  %v17004_v40 = vld [vmem:[#allocation25_spill] sm:$0xff] }
 0x19c   : > { %v11891_v27 = vadd.f32 %v11658_v34, %v2423_v20  ;;  %v3226_v45 = vadd.f32 %v3194_v4, %v11678_v25  ;;  %v16997_v38 = vrot.slane %v11547_v39, 1  ;;  %v16998_v6 = vrot.slane %v11752_v44, 1 }
 0x19d   : > { %16995 = vst [vmem:[#allocation72_spill] sm:$0xff] %v11888_v59  ;;  %v17000_v28 = vrot.slane %v16999_v56, 1  ;;  %v17001_v20 = vrot.slane %v16964_v43, 1  ;;  %v3225_v22 = vadd.f32 %v3193_v41, %v3128_v23 }
 0x19e   : > { %16996 = vst [vmem:[#allocation84_spill] sm:$0xff] %v11891_v27  ;;  %v3465_v5 = vsel %vm2038_vm7, %v16997_v38, %v3464_v46  ;;  %v11903_v14 = vsel %vm2038_vm7, %v3464_v46, %v16998_v6  ;;  %3862 = vst.msk [vmem:[#allocation2 + $0x78] sm:$0xff] %vm3846_vm5, %v11891_v27  ;;  %v17002_v46 = vld [vmem:[#allocation57_spill] sm:$0xff]  ;;  %v2203_v38 = vadd.f32 %v17004_v40, %v17003_v52  ;;  %v11933_v27 = vpop.f32.mrf.mxu0  ;;  %v6579_v52 = vld [vmem:[#allocation2 + $0x68] sm:$0xff]  ;;  %v11956_v40 = vpop.f32.mrf.mxu1 }
 0x19f   : > { %v11910_v58 = vsel %vm2038_vm7, %v17001_v20, %v17000_v28  ;;  %v3542_v39 = vmul.f32 %v11868_v31, %v3465_v5  ;;  %v3641_v25 = vmul.f32 %v16921_v32, %v3465_v5  ;;  %v11918_v4 = vmul.f32 %v11500_v21, %v11903_v14  ;;  %v17005_v28 = vld [vmem:[#allocation35_spill] sm:$0xff]  ;;  %6594 = vrot.lane.b32.xlu0 %v6579_v52, %s9943_s15 }
 0x1a0   : > { %v3289_v61 = vadd.f32 %v17002_v46, %v3226_v45  ;;  %v3735_v55 = vmul.f32 %v16903_v63, %v3465_v5  ;;  %v3766_v43 = vmul.f32 %v11510_v15, %v11903_v14  ;;  %v3288_v23 = vadd.f32 %v11467_v30, %v3225_v22  ;;  %v11979_v52 = vpop.f32.mrf.mxu0 }
 0x1a1   : > { %v11928_v41 = vmul.f32 %v11300_v51, %v3542_v39  ;;  %v3673_v6 = vmul.f32 %v11500_v21, %v3641_v25  ;;  %v2277_v20 = vmul.f32 %v11425_v37, %v17005_v28  ;;  %v2378_v5 = vmul.f32 %v11510_v15, %v11910_v58  ;;  %17011 = vst [vmem:[#allocation85_spill] sm:$0xff] %v11979_v52 }
 0x1a2   : > { %v3353_v63 = vadd.f32 %v11561_v16, %v3289_v61  ;;  %v3765_v45 = vmul.f32 %v11510_v15, %v3735_v55  ;;  %v16652_v46 = vrot.slane %v11933_v27, 7  ;;  %v3352_v30 = vadd.f32 %v11682_v35, %v3288_v23 }
 0x1a3   : > { %v2309_v22 = vadd.f32 %v2277_v20, %v2203_v38  ;;  %v11943_v39 = vmul.f32 %v11229_v36, %v11933_v27  ;;  %v11947_v25 = vmul.f32 %v11332_v7, %v11933_v27  ;;  %v11953_v55 = vmul.f32 %v11500_v21, %v11933_v27 }
 0x1a4   : > { %v3416_v16 = vadd.f32 %v11775_v62, %v3353_v63  ;;  %v3795_v61 = vadd.f32 %v3765_v45, %v11744_v19  ;;  %v3415_v38 = vadd.f32 %v3384_v26, %v3352_v30  ;;  %v11962_v62 = vmul.f32 %v11287_v47, %v11956_v40 }
 0x1a5   : > { %17006 = vst [vmem:[#allocation39_spill] sm:$0xff] %v11943_v39  ;;  %17007 = vst [vmem:[#allocation57_spill] sm:$0xff] %v11947_v25  ;;  %v2410_v23 = vadd.f32 %v2378_v5, %v2309_v22  ;;  %v11968_v45 = vmul.f32 %v11332_v7, %v11956_v40  ;;  %v11972_v35 = vmul.f32 %v11425_v37, %v11956_v40  ;;  %v457_v22 = vadd.s32 176, %v16938_v12 }
 0x1a6   : > { %17008 = vst [vmem:[#allocation50_spill] sm:$0xff] %v11953_v55  ;;  %17009 = vst [vmem:[#allocation25_spill] sm:$0xff] %v11962_v62  ;;  %v3604_v19 = vadd.f32 %v11732_v13, %v3416_v16  ;;  %v3827_v63 = vadd.f32 %v11658_v34, %v3795_v61  ;;  %v3603_v26 = vadd.f32 %v3571_v1, %v3415_v38  ;;  %v1469_v16 = vrot.slane %v11979_v52, 7 }
 0x1a7   : > { %v11975_v5 = vadd.f32 %v11658_v34, %v2410_v23  ;;  %v1716_v61 = vadd.f32 %v11823_v24, %v11629_v42  ;;  %v11989_v1 = vmul.f32 %v11229_v36, %v11979_v52  ;;  %v12000_v23 = vmul.f32 %v11332_v7, %v11979_v52 }
 0x1a8   : > { %v11981_v13 = vadd.f32 %v3673_v6, %v3604_v19  ;;  %3892 = vst.msk [vmem:[#allocation3 + $0x68] sm:$0xff] %vm3846_vm5, %v3827_v63  ;;  %v3704_v38 = vadd.f32 %v11707_v8, %v3603_v26  ;;  %v625_v6 = vand.u32 15, %v457_v22  ;;  %v1993_v42 = vmul.f32 %v11500_v21, %v11979_v52  ;;  %v3928_v22 = vld [vmem:[%s16573_s5 + $0x88] sm:$0xff] }
 0x1a9   : > { %17010 = vst [vmem:[#allocation35_spill] sm:$0xff] %v11975_v5  ;;  %17012 = vst [vmem:[#allocation86_spill] sm:$0xff] %v11989_v1  ;;  %8744 = vmatmul.mubr.msk.f32.gmra.mxu0 %vm3846_vm5, %v11975_v5  ;;  %8776 = vmatmul.mubr.msk.f32.gmra.mxu1 %vm3846_vm5, %v11975_v5  ;;  %v17013_v8 = vrot.slane %v11737_v2, 7  ;;  %v1472_v19 = vsel %vm1429_vm6, %v1469_v16, %v16652_v46  ;;  %v454_v26 = vadd.s32 152, %v16938_v12  ;;  %v17014_v55 = vrot.slane %v11933_v27, 1  ;;  %v17019_v1 = vld [vmem:[#allocation83_spill] sm:$0xff] }
 0x1aa   : > { %3849 = vst.msk [vmem:[#allocation2 + $0x10] sm:$0xff] %vm3846_vm5, %v11975_v5  ;;  %4113 = vmatprep.mubr.f32.mxu0 %v16937_v11  ;;  %4370 = vmatprep.mubr.f32.mxu1 %v16937_v11  ;;  %v3796_v30 = vadd.f32 %v3766_v43, %v3704_v38  ;;  %vm873_vm11 = vcmp.gt.s32.totalorder %v625_v6, 0  ;;  %v12018_v20 = vmul.f32 %v11189_v53, %v1472_v19  ;;  %v2763_v38 = vpop.f32.mrf.mxu1  ;;  %v17015_v59 = vrot.slane %v11979_v52, 1 }
 0x1ab   : > { %v1470_v24 = vsel %vm1429_vm6, %v17013_v8, %v1469_v16  ;;  %4571 = vmatprep.subr.mxu0 %v3928_v22  ;;  %v3927_v16 = vld [vmem:[%s16573_s5 + $0x80] sm:$0xff]  ;;  %v12025_v8 = vsel %vm873_vm11, 1.0, %v16937_v11  ;;  %v1687_v46 = vmul.f32 %v11287_v47, %v1472_v19  ;;  %v1788_v43 = vmul.f32 %v11300_v51, %v1472_v19 }
 0x1ac   : > { %v1649_v5 = vmul.f32 %v11820_v49, %v1470_v24  ;;  %v1750_v63 = vmul.f32 %v11599_v0, %v1470_v24  ;;  %4572 = vmatpush1.msra.mxu0 %v3927_v16  ;;  %v3828_v6 = vadd.f32 %v11658_v34, %v3796_v30  ;;  %v1542_v25 = vmul.f32 %v12025_v8, %v1470_v24 }
 0x1ad   : > { %v12040_v2 = vsel %vm2038_vm7, %v17015_v59, %v17014_v55  ;;  %v12043_v62 = vadd.f32 %v1687_v46, %v11804_v50  ;;  %v12047_v16 = vadd.f32 %v1788_v43, %v11826_v54  ;;  %v604_v30 = vand.u32 15, %v454_v26  ;;  %v17024_v43 = vld [vmem:[#allocation6_spill] sm:$0xff] }
 0x1ae   : > { %v12033_v22 = vmul.f32 %v11287_v47, %v1649_v5  ;;  %17016 = vst [vmem:[#allocation87_spill] sm:$0xff] %v12040_v2  ;;  %v1787_v19 = vmul.f32 %v11300_v51, %v1750_v63  ;;  %3893 = vst.msk [vmem:[#allocation3 + $0x70] sm:$0xff] %vm3846_vm5, %v3828_v6  ;;  %v12051_v5 = vmul.f32 %v11189_v53, %v1542_v25  ;;  %v2897_v24 = vrot.slane %v2763_v38, 7 }
 0x1af   : > { %17017 = vst [vmem:[#allocation88_spill] sm:$0xff] %v12047_v16  ;;  %v3130_v52 = vadd.f32 %v11882_v60, %v17019_v1  ;;  %v12056_v59 = vmul.f32 %v11287_v47, %v2763_v38  ;;  %vm966_vm12 = vcmp.lt.s32.totalorder %v604_v30, 15  ;;  %v12059_v46 = vmul.f32 %v11332_v7, %v2763_v38 }
 0x1b0   : > { %17018 = vst [vmem:[#allocation89_spill] sm:$0xff] %v12051_v5  ;;  %v1819_v50 = vadd.f32 %v1787_v19, %v1716_v61  ;;  %v3386_v54 = vmul.f32 %v11425_v37, %v2763_v38  ;;  %v12063_v55 = vsel %vm966_vm12, 1.0, %v16937_v11  ;;  %v17022_v25 = vrot.slane %v11752_v44, 7 }
 0x1b1   : > { %17020 = vst [vmem:[#allocation83_spill] sm:$0xff] %v12056_v59  ;;  %17021 = vst [vmem:[#allocation90_spill] sm:$0xff] %v12063_v55  ;;  %v17023_v26 = vrot.slane %v11956_v40, 7  ;;  %v3468_v1 = vrot.slane %v2763_v38, 1  ;;  %v17025_v39 = vrot.slane %v11752_v44, 1  ;;  %v6507_v38 = vld [vmem:[#allocation2 + $0x78] sm:$0xff] }
 0x1b2   : > { %v2898_v63 = vsel %vm1429_vm6, %v17022_v25, %v2897_v24  ;;  %v1887_v61 = vadd.f32 %v17024_v43, %v1819_v50  ;;  %v17026_v2 = vrot.slane %v11956_v40, 1  ;;  %6522 = vrot.lane.b32.xlu0 %v6507_v38, %s9943_s15  ;;  %vm5860_vm11 = vcmask 523264  }
 0x1b3   : > { %v2900_v60 = vsel %vm1429_vm6, %v2897_v24, %v17023_v26  ;;  %v2970_v6 = vmul.f32 %v11820_v49, %v2898_v63  ;;  %v3068_v30 = vmul.f32 %v11599_v0, %v2898_v63  ;;  %v3164_v59 = vmul.f32 %v16915_v17, %v2898_v63 }
 0x1b4   : > { %v12074_v19 = vmul.f32 %v11189_v53, %v2900_v60  ;;  %v3101_v16 = vmul.f32 %v11229_v36, %v2900_v60  ;;  %v3196_v25 = vmul.f32 %v11344_v48, %v2900_v60  ;;  %v3469_v24 = vsel %vm2038_vm7, %v17025_v39, %v3468_v1 }
 0x1b5   : > { %v1956_v50 = vadd.f32 %v11791_v57, %v1887_v61  ;;  %v12085_v26 = vmul.f32 %v11189_v53, %v2970_v6  ;;  %v12088_v43 = vmul.f32 %v11229_v36, %v3068_v30  ;;  %v12093_v5 = vsel %vm2038_vm7, %v3468_v1, %v17026_v2  ;;  %v17030_v6 = vld [vmem:[#allocation22_spill] sm:$0xff] }
 0x1b6   : > { %v12097_v17 = vadd.f32 %v3101_v16, %v11871_v9  ;;  %v3195_v44 = vmul.f32 %v11344_v48, %v3164_v59  ;;  %v3228_v57 = vadd.f32 %v3196_v25, %v11885_v10  ;;  %v3544_v53 = vmul.f32 %v12063_v55, %v3469_v24  ;;  %v17028_v9 = vld [vmem:[#allocation80_spill] sm:$0xff]  ;;  %v17031_v25 = vld [vmem:[#allocation51_spill] sm:$0xff] }
 0x1b7   : > { %v12102_v39 = vadd.f32 %v1993_v42, %v1956_v50  ;;  %v3573_v63 = vmul.f32 %v11300_v51, %v11694_v33  ;;  %v3643_v60 = vmul.f32 %v11868_v31, %v3469_v24  ;;  %v12109_v2 = vmul.f32 %v11500_v21, %v12093_v5  ;;  %v17029_v33 = vld [vmem:[#allocation45_spill] sm:$0xff] }
 0x1b8   : > { %v3227_v1 = vadd.f32 %v3195_v44, %v3130_v52  ;;  %v3291_v16 = vadd.f32 %v17028_v9, %v3228_v57  ;;  %v12113_v59 = vmul.f32 %v11300_v51, %v3544_v53  ;;  %v3737_v10 = vmul.f32 %v16921_v32, %v3469_v24  ;;  %v17035_v44 = vld [vmem:[#allocation70_spill] sm:$0xff]  ;;  %v17036_v24 = vld [vmem:[#allocation37_spill] sm:$0xff] }
 0x1b9   : > { %17027 = vst [vmem:[#allocation6_spill] sm:$0xff] %v12102_v39  ;;  %v3675_v42 = vmul.f32 %v11500_v21, %v3643_v60  ;;  %v3768_v61 = vmul.f32 %v11510_v15, %v12093_v5  ;;  %v1872_v30 = vadd.f32 %v17030_v6, %v17029_v33  ;;  %v17032_v38 = vrot.slane %v17031_v25, 1  ;;  %v12133_v60 = vpop.f32.mrf.mxu0  ;;  %v17037_v9 = vld [vmem:[#allocation29_spill] sm:$0xff]  ;;  %v17038_v6 = vld [vmem:[#allocation8_spill] sm:$0xff] }
 0x1ba   : > { %v17033_v50 = vrot.slane %v16999_v56, 1  ;;  %v3290_v51 = vadd.f32 %v17035_v44, %v3227_v1  ;;  %v3355_v57 = vadd.f32 %v11771_v29, %v3291_v16  ;;  %v3767_v32 = vmul.f32 %v11510_v15, %v3737_v10  ;;  %v17039_v1 = vld [vmem:[#allocation27_spill] sm:$0xff]  ;;  %v17041_v10 = vld [vmem:[#allocation42_spill] sm:$0xff] }
 0x1bb   : > { %v2172_v53 = vmul.f32 %v11344_v48, %v17036_v24  ;;  %v1941_v33 = vadd.f32 %v17037_v9, %v1872_v30  ;;  %v2241_v39 = vmul.f32 %v17038_v6, %v11722_v3  ;;  %v12146_v48 = vmul.f32 %v11229_v36, %v12133_v60  ;;  %v12161_v36 = vpop.f32.mrf.mxu1 }
 0x1bc   : > { %v12126_v52 = vsel %vm2038_vm7, %v17033_v50, %v17032_v38  ;;  %v16657_v38 = vrot.slane %v12133_v60, 7  ;;  %v3354_v50 = vadd.f32 %v17039_v1, %v3290_v51  ;;  %v3418_v29 = vadd.f32 %v11972_v35, %v3355_v57 }
 0x1bd   : > { %17034 = vst [vmem:[#allocation80_spill] sm:$0xff] %v12126_v52  ;;  %v2342_v56 = vmul.f32 %v17038_v6, %v12126_v52  ;;  %v3797_v16 = vadd.f32 %v3767_v32, %v11981_v13  ;;  %17040 = vst [vmem:[#allocation45_spill] sm:$0xff] %v12146_v48  ;;  %v2009_v30 = vadd.f32 %v17041_v10, %v1941_v33  ;;  %v17044_v10 = vld [vmem:[#allocation30_spill] sm:$0xff]  ;;  %vm5863_vm12 = vcmask 785408  }
 0x1be   : > { %v2278_v44 = vmul.f32 %v11425_v37, %v2241_v39  ;;  %v12153_v9 = vmul.f32 %v11332_v7, %v12133_v60  ;;  %v3417_v6 = vadd.f32 %v3386_v54, %v3354_v50  ;;  %v3606_v51 = vadd.f32 %v11928_v41, %v3418_v29 }
 0x1bf   : > { %v2379_v24 = vmul.f32 %v11510_v15, %v2342_v56  ;;  %v3829_v35 = vadd.f32 %v11658_v34, %v3797_v16  ;;  %v12159_v13 = vmul.f32 %v11500_v21, %v12133_v60  ;;  %v2204_v57 = vadd.f32 %v2172_v53, %v2009_v30 }
 0x1c0   : > { %v12167_v33 = vmul.f32 %v11287_v47, %v12161_v36  ;;  %v3605_v54 = vadd.f32 %v3573_v63, %v3417_v6  ;;  %v12169_v56 = vadd.f32 %v3675_v42, %v3606_v51  ;;  %v12174_v41 = vmul.f32 %v11332_v7, %v12161_v36  ;;  %v1350_v63 = vpop.f32.mrf.mxu0  ;;  %v12189_v6 = vld [vmem:[%s16571_s3 + $0x3] ss:$0 sm:$0xff] }
 0x1c1   : > { %17042 = vst [vmem:[#allocation22_spill] sm:$0xff] %v12159_v13  ;;  %3894 = vst.msk [vmem:[#allocation3 + $0x78] sm:$0xff] %vm3846_vm5, %v3829_v35  ;;  %v12178_v53 = vmul.f32 %v11425_v37, %v12161_v36  ;;  %v2310_v1 = vadd.f32 %v2278_v44, %v2204_v57  ;;  %v458_v29 = vadd.s32 184, %v16938_v12  ;;  %v459_v47 = vadd.s32 192, %v16938_v12 }
 0x1c2   : > { %17043 = vst [vmem:[#allocation51_spill] sm:$0xff] %v12167_v33  ;;  %v3706_v42 = vadd.f32 %v11918_v4, %v3605_v54  ;;  %v1473_v16 = vrot.slane %v1350_v63, 7  ;;  %v1718_v30 = vadd.f32 %v12033_v22, %v17044_v10  ;;  %v12192_v44 = vmul.f32 %v12189_v6, %v1350_v63 }
 0x1c3   : > { %v2411_v51 = vadd.f32 %v2379_v24, %v2310_v1  ;;  %v632_v35 = vand.u32 15, %v458_v29  ;;  %v639_v57 = vand.u32 15, %v459_v47  ;;  %v12195_v50 = vmul.f32 %v11332_v7, %v1350_v63  ;;  %v12212_v7 = vld [vmem:[%s16571_s3] ss:$0 sm:$0xff] }
 0x1c4   : > { %17045 = vst [vmem:[#allocation70_spill] sm:$0xff] %v12192_v44  ;;  %v3798_v32 = vadd.f32 %v3768_v61, %v3706_v42  ;;  %v17046_v4 = vrot.slane %v11933_v27, 7  ;;  %v1476_v22 = vsel %vm1429_vm6, %v1473_v16, %v16657_v38  ;;  %v12204_v10 = vmul.f32 %v11500_v21, %v1350_v63  ;;  %v12248_v38 = vld [vmem:[%s16571_s3 + $0x2] ss:$0 sm:$0xff] }
 0x1c5   : > { %v12207_v39 = vadd.f32 %v11658_v34, %v2411_v51  ;;  %vm875_vm13 = vcmp.gt.s32.totalorder %v639_v57, 0  ;;  %vm970_vm14 = vcmp.lt.s32.totalorder %v632_v35, 15  ;;  %v12215_v61 = vmul.f32 %v12212_v7, %v1476_v22  ;;  %v2773_v57 = vpop.f32.mrf.mxu1 }
 0x1c6   : > { %v1474_v54 = vsel %vm1429_vm6, %v17046_v4, %v1473_v16  ;;  %v3830_v24 = vadd.f32 %v11658_v34, %v3798_v32  ;;  %v12219_v1 = vsel %vm875_vm13, 1.0, %v16937_v11  ;;  %v12222_v29 = vsel %vm970_vm14, 1.0, %v16937_v11  ;;  %v12235_v32 = vld [vmem:[%s16571_s3 + $0x1] ss:$0 sm:$0xff] }
 0x1c7   : > { %17047 = vst [vmem:[#allocation37_spill] sm:$0xff] %v12207_v39  ;;  %v1651_v47 = vmul.f32 %v12025_v8, %v1474_v54  ;;  %3850 = vst.msk [vmem:[#allocation2 + $0x18] sm:$0xff] %vm3846_vm5, %v12207_v39  ;;  %8745 = vmatmul.mubr.msk.f32.gmra.mxu0 %vm3846_vm5, %v12207_v39  ;;  %8777 = vmatmul.mubr.msk.f32.gmra.mxu1 %vm3846_vm5, %v12207_v39  ;;  %v1544_v42 = vmul.f32 %v12219_v1, %v1474_v54  ;;  %v2082_v35 = vrot.slane %v1350_v63, 1 }
 0x1c8   : > { %v1689_v16 = vmul.f32 %v12235_v32, %v1476_v22  ;;  %v1752_v51 = vmul.f32 %v11820_v49, %v1474_v54  ;;  %3895 = vst.msk [vmem:[#allocation3 + $0x80] sm:$0xff] %vm3846_vm5, %v3830_v24  ;;  %4119 = vmatprep.mubr.f32.mxu0 %v16937_v11  ;;  %4376 = vmatprep.mubr.f32.mxu1 %v16937_v11  ;;  %v456_v54 = vadd.s32 168, %v16938_v12  ;;  %v2901_v63 = vrot.slane %v2773_v57, 7  ;;  %v6509_v33 = vld [vmem:[#allocation3 + $0x78] sm:$0xff] }
 0x1c9   : > { %v12243_v4 = vmul.f32 %v12235_v32, %v1651_v47  ;;  %v1790_v39 = vmul.f32 %v12248_v38, %v1476_v22  ;;  %v12253_v13 = vmul.f32 %v12212_v7, %v1544_v42  ;;  %v17049_v47 = vrot.slane %v11933_v27, 1  ;;  %6530 = vrot.lane.b32.xlu0 %v6509_v33, %s9944_s30 }
 0x1ca   : > { %v12256_v24 = vadd.f32 %v1689_v16, %v12018_v20  ;;  %v1789_v48 = vmul.f32 %v12248_v38, %v1752_v51  ;;  %v17052_v22 = vrot.slane %v12133_v60, 1  ;;  %v618_v42 = vand.u32 15, %v456_v54  ;;  %v12288_v54 = vld [vmem:[%s16571_s3 + $0x6] ss:$0 sm:$0xff] }
 0x1cb   : > { %17048 = vst [vmem:[#allocation29_spill] sm:$0xff] %v12253_v13  ;;  %v12262_v44 = vsel %vm2038_vm7, %v17049_v47, %v2082_v35  ;;  %v12265_v52 = vadd.f32 %v1790_v39, %v12043_v62  ;;  %v17054_v62 = vrot.slane %v11956_v40, 7  ;;  %v17055_v51 = vrot.slane %v12161_v36, 7  ;;  %v17056_v47 = vld [vmem:[#allocation23_spill] sm:$0xff] }
 0x1cc   : > { %17050 = vst [vmem:[#allocation8_spill] sm:$0xff] %v12262_v44  ;;  %v12270_v3 = vsel %vm2038_vm7, %v2082_v35, %v17052_v22  ;;  %v2155_v20 = vmul.f32 %v12222_v29, %v12262_v44  ;;  %v1821_v27 = vadd.f32 %v1789_v48, %v1718_v30  ;;  %vm968_vm15 = vcmp.lt.s32.totalorder %v618_v42, 15 }
 0x1cd   : > { %17051 = vst [vmem:[#allocation27_spill] sm:$0xff] %v12265_v52  ;;  %17053 = vst [vmem:[#allocation42_spill] sm:$0xff] %v12270_v3  ;;  %v12277_v16 = vmul.f32 %v11425_v37, %v12270_v3  ;;  %v2902_v39 = vsel %vm1429_vm6, %v17054_v62, %v2901_v63  ;;  %v2904_v35 = vsel %vm1429_vm6, %v2901_v63, %v17055_v51  ;;  %v12299_v62 = vsel %vm968_vm15, 1.0, %v16937_v11 }
 0x1ce   : > { %v12291_v33 = vmul.f32 %v12288_v54, %v2155_v20  ;;  %v2972_v48 = vmul.f32 %v12025_v8, %v2902_v39  ;;  %v12295_v30 = vmul.f32 %v12212_v7, %v2904_v35  ;;  %v1889_v22 = vadd.f32 %v17056_v47, %v1821_v27  ;;  %17057 = vst [vmem:[#allocation30_spill] sm:$0xff] %v12299_v62 }
 0x1cf   : > { %v3070_v63 = vmul.f32 %v11820_v49, %v2902_v39  ;;  %v3103_v51 = vmul.f32 %v12189_v6, %v2904_v35  ;;  %v3132_v20 = vadd.f32 %v12088_v43, %v11878_v18  ;;  %v3166_v42 = vmul.f32 %v11599_v0, %v2902_v39  ;;  %v12325_v0 = vld [vmem:[%s16571_s3 + $0x4] ss:$0 sm:$0xff] }
 0x1d0   : > { %v12304_v52 = vmul.f32 %v12212_v7, %v2972_v48  ;;  %v3198_v44 = vmul.f32 %v12288_v54, %v2904_v35  ;;  %v1958_v3 = vadd.f32 %v12000_v23, %v1889_v22  ;;  %v12318_v13 = vmul.f32 %v12235_v32, %v2773_v57  ;;  %v17061_v35 = vld [vmem:[#allocation46_spill] sm:$0xff] }
 0x1d1   : > { %v12312_v27 = vmul.f32 %v12189_v6, %v3070_v63  ;;  %v12315_v47 = vadd.f32 %v3103_v51, %v12074_v19  ;;  %v3197_v48 = vmul.f32 %v12288_v54, %v3166_v42  ;;  %v12328_v18 = vmul.f32 %v12325_v0, %v2773_v57  ;;  %v17065_v51 = vld [vmem:[#allocation66_spill] sm:$0xff] }
 0x1d2   : > { %17058 = vst [vmem:[#allocation23_spill] sm:$0xff] %v12304_v52  ;;  %17059 = vst [vmem:[#allocation91_spill] sm:$0xff] %v12318_v13  ;;  %v3230_v52 = vadd.f32 %v3198_v44, %v12097_v17  ;;  %v3388_v23 = vmul.f32 %v11425_v37, %v2773_v57  ;;  %v12332_v19 = vadd.f32 %v12204_v10, %v1958_v3  ;;  %v3472_v43 = vrot.slane %v2773_v57, 1  ;;  %v12348_v10 = vpop.f32.mrf.mxu0 }
 0x1d3   : > { %v3575_v39 = vmul.f32 %v12248_v38, %v11903_v14  ;;  %v17062_v22 = vrot.slane %v17061_v35, 1  ;;  %v17063_v17 = vrot.slane %v17031_v25, 1  ;;  %v3229_v63 = vadd.f32 %v3197_v48, %v3132_v20  ;;  %17066 = vst [vmem:[#allocation66_spill] sm:$0xff] %v12348_v10 }
 0x1d4   : > { %17060 = vst [vmem:[#allocation92_spill] sm:$0xff] %v12332_v19  ;;  %v3293_v42 = vadd.f32 %v17065_v51, %v3230_v52  ;;  %v2173_v13 = vmul.f32 %v12288_v54, %v17005_v28  ;;  %v2279_v3 = vmul.f32 %v11425_v37, %v11910_v58  ;;  %v17067_v14 = vrot.slane %v11956_v40, 1  ;;  %v17069_v28 = vld [vmem:[#allocation7_spill] sm:$0xff] }
 0x1d5   : > { %v12341_v44 = vsel %vm2038_vm7, %v17063_v17, %v17062_v22  ;;  %v17068_v25 = vrot.slane %v12161_v36, 1  ;;  %v3292_v48 = vadd.f32 %v17069_v28, %v3229_v63 }
 0x1d6   : > { %17064 = vst [vmem:[#allocation46_spill] sm:$0xff] %v12341_v44  ;;  %v3473_v57 = vsel %vm2038_vm7, %v17067_v14, %v3472_v43  ;;  %v2380_v52 = vmul.f32 %v11510_v15, %v12341_v44  ;;  %v3357_v37 = vadd.f32 %v11968_v45, %v3293_v42 }
 0x1d7   : > { %v12356_v22 = vsel %vm2038_vm7, %v3472_v43, %v17068_v25  ;;  %v3546_v17 = vmul.f32 %v12299_v62, %v3473_v57  ;;  %v3645_v40 = vmul.f32 %v12063_v55, %v3473_v57  ;;  %v3739_v43 = vmul.f32 %v11868_v31, %v3473_v57  ;;  %v17070_v25 = vld [vmem:[#allocation31_spill] sm:$0xff] }
 0x1d8   : > { %v12367_v51 = vmul.f32 %v11500_v21, %v12356_v22  ;;  %v3770_v14 = vmul.f32 %v11510_v15, %v12356_v22  ;;  %v2205_v19 = vadd.f32 %v2173_v13, %v17070_v25  ;;  %v3356_v20 = vadd.f32 %v12059_v46, %v3292_v48 }
 0x1d9   : > { %v3420_v63 = vadd.f32 %v12178_v53, %v3357_v37  ;;  %v12376_v45 = vmul.f32 %v12248_v38, %v3546_v17  ;;  %v3677_v42 = vmul.f32 %v11500_v21, %v3645_v40  ;;  %v3769_v28 = vmul.f32 %v11510_v15, %v3739_v43  ;;  %v12394_v37 = vpop.f32.mrf.mxu1  ;;  %v12411_v40 = vld [vmem:[%s16571_s3 + $0x7] ss:$0 sm:$0xff] }
 0x1da   : > { %v2311_v44 = vadd.f32 %v2279_v3, %v2205_v19  ;;  %v12382_v57 = vmul.f32 %v12189_v6, %v12348_v10  ;;  %v12386_v31 = vmul.f32 %v12325_v0, %v12348_v10  ;;  %v3419_v13 = vadd.f32 %v3388_v23, %v3356_v20  ;;  %v1360_v23 = vpop.f32.mrf.mxu0 }
 0x1db   : > { %v3608_v46 = vadd.f32 %v12113_v59, %v3420_v63  ;;  %v12391_v53 = vmul.f32 %v11500_v21, %v12348_v10  ;;  %v3799_v15 = vadd.f32 %v3769_v28, %v12169_v56  ;;  %v12400_v17 = vmul.f32 %v12235_v32, %v12394_v37  ;;  %v17074_v28 = vld [vmem:[#allocation89_spill] sm:$0xff] }
 0x1dc   : > { %17071 = vst [vmem:[#allocation7_spill] sm:$0xff] %v12382_v57  ;;  %17072 = vst [vmem:[#allocation31_spill] sm:$0xff] %v12386_v31  ;;  %v2412_v19 = vadd.f32 %v2380_v52, %v2311_v44  ;;  %v3607_v20 = vadd.f32 %v3575_v39, %v3419_v13  ;;  %v12406_v21 = vmul.f32 %v12325_v0, %v12394_v37  ;;  %v460_v43 = vadd.s32 200, %v16938_v12  ;;  %v17082_v57 = vld [vmem:[#allocation87_spill] sm:$0xff] }
 0x1dd   : > { %v12402_v59 = vadd.f32 %v3677_v42, %v3608_v46  ;;  %v12415_v56 = vmul.f32 %v12411_v40, %v12394_v37  ;;  %v3831_v44 = vadd.f32 %v11658_v34, %v3799_v15  ;;  %v461_v63 = vadd.s32 208, %v16938_v12 }
 0x1de   : > { %v12419_v52 = vadd.f32 %v11658_v34, %v2412_v19  ;;  %v3708_v25 = vadd.f32 %v12109_v2, %v3607_v20  ;;  %v1477_v42 = vrot.slane %v1360_v23, 7  ;;  %v1720_v13 = vadd.f32 %v12243_v4, %v17074_v28  ;;  %v12443_v4 = vld [vmem:[%s16571_s3 + $0x5] ss:$0 sm:$0xff] }
 0x1df   : > { %3896 = vst.msk [vmem:[#allocation3 + $0x88] sm:$0xff] %vm3846_vm5, %v3831_v44  ;;  %v646_v46 = vand.u32 15, %v460_v43  ;;  %v12435_v2 = vmul.f32 %v12189_v6, %v1360_v23  ;;  %v12438_v15 = vmul.f32 %v12325_v0, %v1360_v23  ;;  %v1997_v19 = vmul.f32 %v12443_v4, %v1360_v23 }
 0x1e0   : > { %17073 = vst [vmem:[#allocation93_spill] sm:$0xff] %v12419_v52  ;;  %3851 = vst.msk [vmem:[#allocation2 + $0x20] sm:$0xff] %vm3846_vm5, %v12419_v52  ;;  %8746 = vmatmul.mubr.msk.f32.gmra.mxu0 %vm3846_vm5, %v12419_v52  ;;  %8778 = vmatmul.mubr.msk.f32.gmra.mxu1 %vm3846_vm5, %v12419_v52  ;;  %v3800_v20 = vadd.f32 %v3770_v14, %v3708_v25  ;;  %v653_v44 = vand.u32 15, %v461_v63  ;;  %v17077_v43 = vrot.slane %v12133_v60, 7  ;;  %v17078_v39 = vrot.slane %v12348_v10, 7 }
 0x1e1   : > { %17075 = vst [vmem:[#allocation89_spill] sm:$0xff] %v12435_v2  ;;  %17076 = vst [vmem:[#allocation94_spill] sm:$0xff] %v12438_v15  ;;  %4125 = vmatprep.mubr.f32.mxu0 %v16937_v11  ;;  %4382 = vmatprep.mubr.f32.mxu1 %v16937_v11  ;;  %vm972_vm1 = vcmp.lt.s32.totalorder %v646_v46, 15  ;;  %v2191_v31 = vmul.f32 %v12288_v54, %v17082_v57  ;;  %v2783_v15 = vpop.f32.mrf.mxu1  ;;  %v17088_v57 = vld [vmem:[#allocation39_spill] sm:$0xff] }
 0x1e2   : > { %v1478_v28 = vsel %vm1429_vm6, %v17077_v43, %v1477_v42  ;;  %v1480_v3 = vsel %vm1429_vm6, %v1477_v42, %v17078_v39  ;;  %v3832_v25 = vadd.f32 %v11658_v34, %v3800_v20  ;;  %vm877_vm2 = vcmp.gt.s32.totalorder %v653_v44, 0 }
 0x1e3   : > { %v12455_v48 = vmul.f32 %v12212_v7, %v1480_v3  ;;  %v1653_v52 = vmul.f32 %v12219_v1, %v1478_v28  ;;  %v1691_v14 = vmul.f32 %v12235_v32, %v1480_v3  ;;  %v12461_v63 = vsel %vm972_vm1, 1.0, %v16937_v11 }
 0x1e4   : > { %v1754_v43 = vmul.f32 %v12025_v8, %v1478_v28  ;;  %v12465_v2 = vsel %vm877_vm2, 1.0, %v16937_v11  ;;  %v1792_v46 = vmul.f32 %v12248_v38, %v1480_v3  ;;  %3897 = vst.msk [vmem:[#allocation3 + $0x90] sm:$0xff] %vm3846_vm5, %v3832_v25  ;;  %v2086_v44 = vrot.slane %v1360_v23, 1 }
 0x1e5   : > { %17079 = vst [vmem:[#allocation95_spill] sm:$0xff] %v12455_v48  ;;  %v12468_v39 = vmul.f32 %v12235_v32, %v1653_v52  ;;  %v12471_v42 = vadd.f32 %v1691_v14, %v12215_v61  ;;  %v1546_v34 = vmul.f32 %v12465_v2, %v1478_v28  ;;  %v2905_v52 = vrot.slane %v2783_v15, 7 }
 0x1e6   : > { %v1791_v20 = vmul.f32 %v12248_v38, %v1754_v43  ;;  %v1824_v48 = vadd.f32 %v1792_v46, %v12256_v24  ;;  %v3134_v61 = vadd.f32 %v12312_v27, %v12085_v26  ;;  %v12483_v14 = vmul.f32 %v12235_v32, %v2783_v15  ;;  %v6505_v46 = vld [vmem:[#allocation3 + $0x88] sm:$0xff] }
 0x1e7   : > { %17080 = vst [vmem:[#allocation96_spill] sm:$0xff] %v12468_v39  ;;  %17081 = vst [vmem:[#allocation97_spill] sm:$0xff] %v12471_v42  ;;  %v12486_v3 = vmul.f32 %v12212_v7, %v1546_v34  ;;  %v17084_v25 = vrot.slane %v12133_v60, 1  ;;  %v17086_v43 = vrot.slane %v12348_v10, 1  ;;  %6514 = vrot.lane.b32.xlu0 %v6505_v46, %s9942_s23  ;;  %v17096_v39 = vld [vmem:[#allocation25_spill] sm:$0xff] }
 0x1e8   : > { %v1823_v28 = vadd.f32 %v1791_v20, %v1720_v13  ;;  %v1892_v26 = vadd.f32 %v17088_v57, %v1824_v48  ;;  %v17090_v13 = vld [vmem:[#allocation86_spill] sm:$0xff]  ;;  %v17091_v48 = vrot.slane %v12161_v36, 7 }
 0x1e9   : > { %17083 = vst [vmem:[#allocation98_spill] sm:$0xff] %v12486_v3  ;;  %v12491_v23 = vsel %vm2038_vm7, %v17084_v25, %v2086_v44  ;;  %v12496_v24 = vsel %vm2038_vm7, %v2086_v44, %v17086_v43  ;;  %v12512_v44 = vld [vmem:[%s16571_s3 + $0x8] ss:$0 sm:$0xff]  ;;  %v17092_v43 = vrot.slane %v12394_v37, 7 }
 0x1ea   : > { %17085 = vst [vmem:[#allocation99_spill] sm:$0xff] %v12491_v23  ;;  %17087 = vst [vmem:[#allocation100_spill] sm:$0xff] %v12496_v24  ;;  %v2157_v27 = vmul.f32 %v12461_v63, %v12491_v23  ;;  %v2261_v34 = vmul.f32 %v12222_v29, %v12491_v23  ;;  %v12505_v60 = vmul.f32 %v12411_v40, %v12496_v24 }
 0x1eb   : > { %v1891_v20 = vadd.f32 %v17090_v13, %v1823_v28  ;;  %v2398_v57 = vmul.f32 %v12512_v44, %v12496_v24  ;;  %v2906_v25 = vsel %vm1429_vm6, %v17091_v48, %v2905_v52  ;;  %v2908_v23 = vsel %vm1429_vm6, %v2905_v52, %v17092_v43 }
 0x1ec   : > { %17089 = vst [vmem:[#allocation39_spill] sm:$0xff] %v12505_v60  ;;  %v1961_v46 = vadd.f32 %v12153_v9, %v1892_v26  ;;  %v12524_v28 = vmul.f32 %v12288_v54, %v2157_v27  ;;  %v2298_v13 = vmul.f32 %v12411_v40, %v2261_v34  ;;  %v2974_v3 = vmul.f32 %v12219_v1, %v2906_v25 }
 0x1ed   : > { %v1960_v60 = vadd.f32 %v12195_v50, %v1891_v20  ;;  %v12530_v24 = vmul.f32 %v12212_v7, %v2908_v23  ;;  %v3072_v48 = vmul.f32 %v12025_v8, %v2906_v25  ;;  %v3105_v42 = vmul.f32 %v12189_v6, %v2908_v23 }
 0x1ee   : > { %17093 = vst [vmem:[#allocation86_spill] sm:$0xff] %v12524_v28  ;;  %v2029_v52 = vadd.f32 %v12391_v53, %v1961_v46  ;;  %v12536_v9 = vmul.f32 %v12212_v7, %v2974_v3  ;;  %v3168_v26 = vmul.f32 %v11820_v49, %v2906_v25  ;;  %v3200_v27 = vmul.f32 %v12288_v54, %v2908_v23  ;;  %v17094_v23 = vld [vmem:[#allocation13_spill] sm:$0xff] }
 0x1ef   : > { %v2028_v34 = vadd.f32 %v1997_v19, %v1960_v60  ;;  %v3104_v43 = vmul.f32 %v12189_v6, %v3072_v48  ;;  %v12542_v50 = vadd.f32 %v3105_v42, %v12295_v30  ;;  %v12545_v20 = vmul.f32 %v12325_v0, %v2783_v15  ;;  %v17095_v60 = vld [vmem:[#allocation28_spill] sm:$0xff] }
 0x1f0   : > { %v2224_v28 = vadd.f32 %v12291_v33, %v2029_v52  ;;  %v3199_v53 = vmul.f32 %v12288_v54, %v3168_v26  ;;  %v3232_v3 = vadd.f32 %v3200_v27, %v12315_v47  ;;  %v3390_v46 = vmul.f32 %v12411_v40, %v2783_v15  ;;  %v17097_v33 = vld [vmem:[#allocation54_spill] sm:$0xff] }
 0x1f1   : > { %v2223_v49 = vadd.f32 %v2191_v31, %v2028_v34  ;;  %v3476_v25 = vrot.slane %v2783_v15, 1  ;;  %v3577_v19 = vmul.f32 %v12248_v38, %v12093_v5  ;;  %v1874_v30 = vadd.f32 %v17095_v60, %v17094_v23  ;;  %v12586_v23 = vpop.f32.mrf.mxu1 }
 0x1f2   : > { %v12555_v42 = vadd.f32 %v2298_v13, %v2224_v28  ;;  %v3231_v48 = vadd.f32 %v3199_v53, %v3134_v61  ;;  %v3295_v10 = vadd.f32 %v17096_v39, %v3232_v3  ;;  %v17098_v52 = vrot.slane %v17097_v33, 1  ;;  %v17102_v61 = vld [vmem:[#allocation41_spill] sm:$0xff]  ;;  %v17103_v13 = vld [vmem:[#allocation83_spill] sm:$0xff] }
 0x1f3   : > { %v17099_v26 = vrot.slane %v17061_v35, 1  ;;  %v2329_v31 = vadd.f32 %v12277_v16, %v2223_v49  ;;  %v17100_v15 = vrot.slane %v12161_v36, 1  ;;  %v17101_v27 = vrot.slane %v12394_v37, 1 }
 0x1f4   : > { %v1943_v39 = vadd.f32 %v17102_v61, %v1874_v30  ;;  %v3294_v34 = vadd.f32 %v17103_v13, %v3231_v48  ;;  %v3359_v35 = vadd.f32 %v12174_v41, %v3295_v10  ;;  %v12597_v30 = vld [vmem:[%s16572_s4] ss:$0 sm:$0xff]  ;;  %v17108_v61 = vld [vmem:[#allocation80_spill] sm:$0xff] }
 0x1f5   : > { %v12563_v47 = vsel %vm2038_vm7, %v17099_v26, %v17098_v52  ;;  %v3477_v5 = vsel %vm2038_vm7, %v17100_v15, %v3476_v25  ;;  %v12572_v28 = vsel %vm2038_vm7, %v3476_v25, %v17101_v27  ;;  %v2430_v16 = vadd.f32 %v2398_v57, %v2329_v31  ;;  %v17105_v26 = vld [vmem:[#allocation49_spill] sm:$0xff]  ;;  %v17107_v15 = vld [vmem:[#allocation12_spill] sm:$0xff] }
 0x1f6   : > { %v3548_v53 = vmul.f32 %v12222_v29, %v3477_v5  ;;  %v3647_v3 = vmul.f32 %v12299_v62, %v3477_v5  ;;  %v12581_v36 = vmul.f32 %v12443_v4, %v12572_v28  ;;  %v3741_v49 = vmul.f32 %v12063_v55, %v3477_v5 }
 0x1f7   : > { %v3772_v25 = vmul.f32 %v12512_v44, %v12572_v28  ;;  %v3358_v60 = vadd.f32 %v12328_v18, %v3294_v34  ;;  %v3422_v41 = vadd.f32 %v12415_v56, %v3359_v35  ;;  %v12600_v48 = vadd.f32 %v12597_v30, %v2430_v16  ;;  %v17106_v18 = vld [vmem:[#allocation24_spill] sm:$0xff] }
 0x1f8   : > { %v12591_v10 = vmul.f32 %v12248_v38, %v3548_v53  ;;  %v3679_v57 = vmul.f32 %v12443_v4, %v3647_v3  ;;  %v3771_v52 = vmul.f32 %v12512_v44, %v3741_v49  ;;  %v2011_v31 = vadd.f32 %v17105_v26, %v1943_v39 }
 0x1f9   : > { %17104 = vst [vmem:[#allocation13_spill] sm:$0xff] %v12600_v48  ;;  %v2137_v56 = vmul.f32 %v17107_v15, %v17106_v18  ;;  %v3421_v5 = vadd.f32 %v3390_v46, %v3358_v60  ;;  %v3610_v27 = vadd.f32 %v12376_v45, %v3422_v41  ;;  %v2243_v13 = vmul.f32 %v17107_v15, %v17108_v61  ;;  %v2793_v45 = vpop.f32.mrf.mxu1 }
 0x1fa   : > { %v2344_v34 = vmul.f32 %v17107_v15, %v12563_v47  ;;  %3869 = vst.msk [vmem:[#allocation2 + $0xb0] sm:$0xff] %vm3846_vm5, %v12600_v48  ;;  %v3801_v35 = vadd.f32 %v3771_v52, %v12402_v59  ;;  %v16675_v39 = vrot.slane %v12586_v23, 7  ;;  %v12618_v46 = vmul.f32 %v12235_v32, %v12586_v23  ;;  %v17109_v15 = vld [vmem:[#allocation23_spill] sm:$0xff] }
 0x1fb   : > { %v2174_v53 = vmul.f32 %v12288_v54, %v2137_v56  ;;  %v3609_v3 = vadd.f32 %v3577_v19, %v3421_v5  ;;  %v12620_v16 = vadd.f32 %v3679_v57, %v3610_v27  ;;  %v2280_v49 = vmul.f32 %v12411_v40, %v2243_v13 }
 0x1fc   : > { %v2381_v60 = vmul.f32 %v12512_v44, %v2344_v34  ;;  %v3833_v41 = vadd.f32 %v12597_v30, %v3801_v35  ;;  %v12627_v59 = vmul.f32 %v12325_v0, %v12586_v23  ;;  %v12631_v52 = vmul.f32 %v12411_v40, %v12586_v23  ;;  %v6504_v34 = vld [vmem:[#allocation3 + $0x80] sm:$0xff] }
 0x1fd   : > { %v2206_v26 = vadd.f32 %v2174_v53, %v2011_v31  ;;  %v3710_v18 = vadd.f32 %v12367_v51, %v3609_v3  ;;  %v16676_v19 = vrot.slane %v12586_v23, 1  ;;  %v2909_v57 = vrot.slane %v2793_v45, 7  ;;  %6512 = vrot.lane.b32.xlu0 %v6504_v34, %s9942_s23 }
 0x1fe   : > { %v3136_v56 = vadd.f32 %v3104_v43, %v17109_v15  ;;  %3898 = vst.msk [vmem:[#allocation3 + $0x98] sm:$0xff] %vm3846_vm5, %v3833_v41  ;;  %v12638_v31 = vmul.f32 %v12235_v32, %v2793_v45  ;;  %v12641_v27 = vmul.f32 %v12325_v0, %v2793_v45  ;;  %v12644_v13 = vmul.f32 %v12411_v40, %v2793_v45 }
 0x1ff   : > { %v2312_v5 = vadd.f32 %v2280_v49, %v2206_v26  ;;  %v3802_v35 = vadd.f32 %v3772_v25, %v3710_v18  ;;  %v17111_v51 = vrot.slane %v12394_v37, 7  ;;  %v2912_v43 = vsel %vm1429_vm6, %v2909_v57, %v16675_v39  ;;  %v3922_v49 = vld [vmem:[%s16573_s5 + $0x58] sm:$0xff] }
 0x200   : > { %17110 = vst [vmem:[#allocation28_spill] sm:$0xff] %v12638_v31  ;;  %v3480_v3 = vrot.slane %v2793_v45, 1  ;;  %v12658_v25 = vmul.f32 %v12212_v7, %v2912_v43  ;;  %4573 = vmatprep.subr.mxu0 %v3922_v49  ;;  %v3202_v34 = vmul.f32 %v12288_v54, %v2912_v43  ;;  %v17113_v39 = vrot.slane %v12394_v37, 1  ;;  %v17133_v31 = vld [vmem:[#allocation14_spill] sm:$0xff] }
 0x201   : > { %v2910_v53 = vsel %vm1429_vm6, %v17111_v51, %v2909_v57  ;;  %v2413_v41 = vadd.f32 %v2381_v60, %v2312_v5  ;;  %v3834_v15 = vadd.f32 %v12597_v30, %v3802_v35  ;;  %v3107_v57 = vmul.f32 %v12189_v6, %v2912_v43  ;;  %v3921_v35 = vld [vmem:[%s16573_s5 + $0x50] sm:$0xff] }
 0x202   : > { %v2976_v26 = vmul.f32 %v12465_v2, %v2910_v53  ;;  %v3074_v18 = vmul.f32 %v12219_v1, %v2910_v53  ;;  %v3170_v45 = vmul.f32 %v12025_v8, %v2910_v53  ;;  %v3481_v49 = vsel %vm2038_vm7, %v17113_v39, %v3480_v3  ;;  %4574 = vmatpush1.msra.mxu0 %v3921_v35 }
 0x203   : > { %v12666_v51 = vadd.f32 %v12597_v30, %v2413_v41  ;;  %3899 = vst.msk [vmem:[#allocation3 + $0xa0] sm:$0xff] %vm3846_vm5, %v3834_v15  ;;  %v12682_v8 = vadd.f32 %v3107_v57, %v12530_v24  ;;  %v3234_v43 = vadd.f32 %v3202_v34, %v12542_v50  ;;  %v12689_v41 = vsel %vm2038_vm7, %v3480_v3, %v16676_v19  ;;  %v17116_v15 = vld [vmem:[#allocation51_spill] sm:$0xff] }
 0x204   : > { %v12669_v60 = vmul.f32 %v12212_v7, %v2976_v26  ;;  %v12672_v5 = vmul.f32 %v12189_v6, %v3074_v18  ;;  %v3201_v53 = vmul.f32 %v12288_v54, %v3170_v45  ;;  %17114 = vst [vmem:[#allocation54_spill] sm:$0xff] %v12689_v41  ;;  %v3550_v24 = vmul.f32 %v12461_v63, %v3481_v49  ;;  %v12702_v26 = vpop.f32.mrf.mxu0 }
 0x205   : > { %17112 = vst [vmem:[#allocation25_spill] sm:$0xff] %v12666_v51  ;;  %3852 = vst.msk [vmem:[#allocation2 + $0x28] sm:$0xff] %vm3846_vm5, %v12666_v51  ;;  %8747 = vmatmul.mubr.msk.f32.gmra.mxu0 %vm3846_vm5, %v12666_v51  ;;  %8779 = vmatmul.mubr.msk.f32.gmra.mxu1 %vm3846_vm5, %v12666_v51  ;;  %v3579_v50 = vmul.f32 %v12248_v38, %v12356_v22  ;;  %v3649_v3 = vmul.f32 %v12222_v29, %v3481_v49  ;;  %v6577_v35 = vld [vmem:[#allocation3 + $0x98] sm:$0xff]  ;;  %v17120_v34 = vrot.slane %v17097_v33, 1  ;;  %v17121_v51 = vld [vmem:[#allocation46_spill] sm:$0xff] }
 0x206   : > { %4131 = vmatprep.mubr.f32.mxu0 %v16937_v11  ;;  %4388 = vmatprep.mubr.f32.mxu1 %v16937_v11  ;;  %v3233_v18 = vadd.f32 %v3201_v53, %v3136_v56  ;;  %v3297_v57 = vadd.f32 %v17116_v15, %v3234_v43  ;;  %v12709_v45 = vmul.f32 %v12443_v4, %v12689_v41  ;;  %v17117_v56 = vld [vmem:[#allocation91_spill] sm:$0xff]  ;;  %v17118_v15 = vld [vmem:[#allocation32_spill] sm:$0xff] }
 0x207   : > { %v12713_v22 = vmul.f32 %v12248_v38, %v3550_v24  ;;  %v3681_v39 = vmul.f32 %v12443_v4, %v3649_v3  ;;  %v3743_v19 = vmul.f32 %v12299_v62, %v3481_v49  ;;  %6586 = vrot.lane.b32.xlu0 %v6577_v35, %s9942_s23  ;;  %v17119_v48 = vrot.slane %v17118_v15, 1  ;;  %v6576_v3 = vld [vmem:[#allocation3 + $0x90] sm:$0xff] }
 0x208   : > { %v3296_v53 = vadd.f32 %v17117_v56, %v3233_v18  ;;  %v3361_v43 = vadd.f32 %v12406_v21, %v3297_v57  ;;  %v2175_v24 = vmul.f32 %v12288_v54, %v11910_v58  ;;  %v3774_v35 = vmul.f32 %v12512_v44, %v12689_v41  ;;  %v17122_v57 = vld [vmem:[#allocation62_spill] sm:$0xff] }
 0x209   : > { %v12726_v55 = vsel %vm2038_vm7, %v17120_v34, %v17119_v48  ;;  %v3773_v49 = vmul.f32 %v12512_v44, %v3743_v19  ;;  %v2281_v18 = vmul.f32 %v12411_v40, %v17121_v51  ;;  %v12742_v58 = vmul.f32 %v12189_v6, %v12702_v26  ;;  %v12744_v19 = vpop.f32.mrf.mxu1 }
 0x20a   : > { %v2382_v21 = vmul.f32 %v12512_v44, %v12726_v55  ;;  %v3360_v33 = vadd.f32 %v12545_v20, %v3296_v53  ;;  %v3424_v48 = vadd.f32 %v12631_v52, %v3361_v43  ;;  %v2207_v34 = vadd.f32 %v2175_v24, %v17122_v57  ;;  %v17127_v20 = vld [vmem:[#allocation40_spill] sm:$0xff] }
 0x20b   : > { %17123 = vst [vmem:[#allocation41_spill] sm:$0xff] %v12742_v58  ;;  %v3803_v56 = vadd.f32 %v3773_v49, %v12620_v16  ;;  %v12749_v62 = vmul.f32 %v12325_v0, %v12702_v26  ;;  %v12753_v37 = vmul.f32 %v12443_v4, %v12702_v26  ;;  %6584 = vrot.lane.b32.xlu0 %v6576_v3, %s9942_s23  ;;  %v17126_v3 = vld [vmem:[#allocation58_spill] sm:$0xff]  ;;  %v17132_v58 = vld [vmem:[#allocation48_spill] sm:$0xff] }
 0x20c   : > { %v3423_v52 = vadd.f32 %v12644_v13, %v3360_v33  ;;  %v3612_v53 = vadd.f32 %v12591_v10, %v3424_v48  ;;  %v2313_v43 = vadd.f32 %v2281_v18, %v2207_v34  ;;  %v12761_v16 = vmul.f32 %v12235_v32, %v12744_v19  ;;  %v17128_v48 = vld [vmem:[#allocation63_spill] sm:$0xff] }
 0x20d   : > { %v3835_v24 = vadd.f32 %v12597_v30, %v3803_v56  ;;  %v12766_v49 = vmul.f32 %v12325_v0, %v12744_v19  ;;  %v12770_v57 = vmul.f32 %v12411_v40, %v12744_v19  ;;  %v1876_v13 = vadd.f32 %v17127_v20, %v17126_v3  ;;  %v2803_v20 = vpop.f32.mrf.mxu1 }
 0x20e   : > { %17124 = vst [vmem:[#allocation83_spill] sm:$0xff] %v12761_v16  ;;  %v3611_v33 = vadd.f32 %v3579_v50, %v3423_v52  ;;  %v2414_v10 = vadd.f32 %v2382_v21, %v2313_v43  ;;  %v16685_v18 = vrot.slane %v12744_v19, 1  ;;  %v17129_v34 = vrot.slane %v17128_v48, 1 }
 0x20f   : > { %17125 = vst [vmem:[#allocation49_spill] sm:$0xff] %v12766_v49  ;;  %v17130_v16 = vrot.slane %v17118_v15, 1  ;;  %3900 = vst.msk [vmem:[#allocation3 + $0xa8] sm:$0xff] %vm3846_vm5, %v3835_v24  ;;  %v1945_v49 = vadd.f32 %v17132_v58, %v1876_v13  ;;  %v2139_v41 = vmul.f32 %v17133_v31, %v17108_v61  ;;  %v2245_v50 = vmul.f32 %v17133_v31, %v12563_v47  ;;  %v17135_v24 = vld [vmem:[#allocation53_spill] sm:$0xff] }
 0x210   : > { %v3712_v52 = vadd.f32 %v12581_v36, %v3611_v33  ;;  %v12792_v15 = vadd.f32 %v12597_v30, %v2414_v10  ;;  %v462_v43 = vadd.s32 216, %v16938_v12  ;;  %v12796_v58 = vadd.f32 %v3681_v39, %v3612_v53 }
 0x211   : > { %v12780_v56 = vsel %vm2038_vm7, %v17130_v16, %v17129_v34  ;;  %v463_v16 = vadd.s32 224, %v16938_v12  ;;  %v2013_v61 = vadd.f32 %v17135_v24, %v1945_v49  ;;  %v2176_v3 = vmul.f32 %v12288_v54, %v2139_v41 }
 0x212   : > { %17131 = vst [vmem:[#allocation24_spill] sm:$0xff] %v12780_v56  ;;  %v2346_v21 = vmul.f32 %v17133_v31, %v12780_v56  ;;  %17134 = vst [vmem:[#allocation12_spill] sm:$0xff] %v12792_v15  ;;  %v2282_v13 = vmul.f32 %v12411_v40, %v2245_v50  ;;  %v3804_v34 = vadd.f32 %v3774_v35, %v3712_v52  ;;  %8748 = vmatmul.mubr.msk.f32.gmra.mxu0 %vm3846_vm5, %v12792_v15 }
 0x213   : > { %3853 = vst.msk [vmem:[#allocation2 + $0x30] sm:$0xff] %vm3846_vm5, %v12792_v15  ;;  %8780 = vmatmul.mubr.msk.f32.gmra.mxu1 %vm3846_vm5, %v12792_v15  ;;  %v660_v36 = vand.u32 15, %v462_v43  ;;  %v667_v31 = vand.u32 15, %v463_v16  ;;  %v2913_v39 = vrot.slane %v2803_v20, 7  ;;  %4137 = vmatprep.mubr.f32.mxu0 %v16937_v11  ;;  %v2208_v41 = vadd.f32 %v2176_v3, %v2013_v61 }
 0x214   : > { %4394 = vmatprep.mubr.f32.mxu1 %v16937_v11  ;;  %v2383_v53 = vmul.f32 %v12512_v44, %v2346_v21  ;;  %v3138_v35 = vadd.f32 %v12672_v5, %v12536_v9  ;;  %v3484_v49 = vrot.slane %v2803_v20, 1  ;;  %v3836_v33 = vadd.f32 %v12597_v30, %v3804_v34 }
 0x215   : > { %vm879_vm3 = vcmp.gt.s32.totalorder %v667_v31, 0  ;;  %vm974_vm4 = vcmp.lt.s32.totalorder %v660_v36, 15  ;;  %v17136_v10 = vrot.slane %v12586_v23, 7  ;;  %v2314_v52 = vadd.f32 %v2282_v13, %v2208_v41 }
 0x216   : > { %v12817_v43 = vsel %vm879_vm3, 1.0, %v16937_v11  ;;  %v17137_v16 = vrot.slane %v12744_v19, 7  ;;  %v12823_v24 = vmul.f32 %v12235_v32, %v2803_v20  ;;  %3901 = vst.msk [vmem:[#allocation3 + $0xb0] sm:$0xff] %vm3846_vm5, %v3836_v33  ;;  %v12827_v9 = vsel %vm974_vm4, 1.0, %v16937_v11 }
 0x217   : > { %v2914_v50 = vsel %vm1429_vm6, %v17136_v10, %v2913_v39  ;;  %v2415_v13 = vadd.f32 %v2383_v53, %v2314_v52  ;;  %v12846_v33 = vmul.f32 %v12325_v0, %v2803_v20  ;;  %v17141_v10 = vrot.slane %v12586_v23, 1 }
 0x218   : > { %v2916_v21 = vsel %vm1429_vm6, %v2913_v39, %v17137_v16  ;;  %17138 = vst [vmem:[#allocation80_spill] sm:$0xff] %v12823_v24  ;;  %v12830_v5 = vmul.f32 %v12817_v43, %v2914_v50  ;;  %v3076_v61 = vmul.f32 %v12465_v2, %v2914_v50  ;;  %v3172_v36 = vmul.f32 %v12219_v1, %v2914_v50  ;;  %v17148_v24 = vld [vmem:[#allocation29_spill] sm:$0xff] }
 0x219   : > { %v3109_v3 = vmul.f32 %v12189_v6, %v2916_v21  ;;  %v12835_v34 = vmul.f32 %v12212_v7, %v2916_v21  ;;  %v3204_v31 = vmul.f32 %v12288_v54, %v2916_v21  ;;  %v3485_v53 = vsel %vm2038_vm7, %v17141_v10, %v3484_v49 }
 0x21a   : > { %17139 = vst [vmem:[#allocation23_spill] sm:$0xff] %v12830_v5  ;;  %v12840_v39 = vmul.f32 %v12189_v6, %v3076_v61  ;;  %v12852_v52 = vadd.f32 %v12597_v30, %v2415_v13  ;;  %v3203_v50 = vmul.f32 %v12288_v54, %v3172_v36  ;;  %v12859_v21 = vsel %vm2038_vm7, %v3484_v49, %v16685_v18  ;;  %v1370_v13 = vpop.f32.mrf.mxu0 }
 0x21b   : > { %17140 = vst [vmem:[#allocation51_spill] sm:$0xff] %v12835_v34  ;;  %v12843_v41 = vadd.f32 %v3109_v3, %v12658_v25  ;;  %v3236_v16 = vadd.f32 %v3204_v31, %v12682_v8  ;;  %17143 = vst [vmem:[#allocation32_spill] sm:$0xff] %v12859_v21  ;;  %v3394_v25 = vmul.f32 %v12411_v40, %v2803_v20  ;;  %v1481_v36 = vrot.slane %v1370_v13, 7 }
 0x21c   : > { %17142 = vst [vmem:[#allocation91_spill] sm:$0xff] %v12852_v52  ;;  %v3552_v61 = vmul.f32 %v12827_v9, %v3485_v53  ;;  %v3581_v23 = vmul.f32 %v12248_v38, %v12572_v28  ;;  %v3651_v3 = vmul.f32 %v12461_v63, %v3485_v53  ;;  %3854 = vst.msk [vmem:[#allocation2 + $0x38] sm:$0xff] %vm3846_vm5, %v12852_v52  ;;  %8749 = vmatmul.mubr.msk.f32.gmra.mxu0 %vm3846_vm5, %v12852_v52 }
 0x21d   : > { %8781 = vmatmul.mubr.msk.f32.gmra.mxu1 %vm3846_vm5, %v12852_v52  ;;  %v3235_v8 = vadd.f32 %v3203_v50, %v3138_v35  ;;  %v3299_v20 = vadd.f32 %v12400_v17, %v3236_v16  ;;  %v3745_v49 = vmul.f32 %v12222_v29, %v3485_v53  ;;  %v12880_v10 = vmul.f32 %v12443_v4, %v12859_v21  ;;  %v17145_v50 = vld [vmem:[#allocation66_spill] sm:$0xff] }
 0x21e   : > { %v12875_v28 = vmul.f32 %v12248_v38, %v3552_v61  ;;  %v3683_v31 = vmul.f32 %v12443_v4, %v3651_v3  ;;  %v3776_v18 = vmul.f32 %v12512_v44, %v12859_v21  ;;  %4143 = vmatprep.mubr.f32.mxu0 %v16937_v11  ;;  %v17146_v16 = vrot.slane %v17145_v50, 7  ;;  %4400 = vmatprep.mubr.f32.mxu1 %v16937_v11 }
 0x21f   : > { %v3298_v35 = vadd.f32 %v12483_v14, %v3235_v8  ;;  %v3363_v17 = vadd.f32 %v12627_v59, %v3299_v20  ;;  %v3775_v53 = vmul.f32 %v12512_v44, %v3745_v49  ;;  %v17147_v3 = vrot.slane %v12702_v26, 7 }
 0x220   : > { %17144 = vst [vmem:[#allocation46_spill] sm:$0xff] %v12875_v28  ;;  %v1482_v61 = vsel %vm1429_vm6, %v17146_v16, %v1481_v36  ;;  %v17149_v28 = vld [vmem:[#allocation96_spill] sm:$0xff] }
 0x221   : > { %v1484_v52 = vsel %vm1429_vm6, %v1481_v36, %v17147_v3  ;;  %v1655_v15 = vmul.f32 %v12465_v2, %v1482_v61  ;;  %v1722_v21 = vadd.f32 %v17149_v28, %v17148_v24  ;;  %v1756_v14 = vmul.f32 %v12219_v1, %v1482_v61  ;;  %v3916_v1 = vld [vmem:[%s16573_s5 + $0x28] sm:$0xff] }
 0x222   : > { %v3362_v59 = vadd.f32 %v12641_v27, %v3298_v35  ;;  %v3426_v8 = vadd.f32 %v12770_v57, %v3363_v17  ;;  %v3805_v20 = vadd.f32 %v3775_v53, %v12796_v58  ;;  %v12903_v49 = vmul.f32 %v12817_v43, %v1482_v61  ;;  %4575 = vmatprep.subr.mxu0 %v3916_v1  ;;  %v17151_v53 = vld [vmem:[#allocation97_spill] sm:$0xff] }
 0x223   : > { %v12906_v16 = vmul.f32 %v12212_v7, %v1484_v52  ;;  %v1693_v36 = vmul.f32 %v12235_v32, %v1484_v52  ;;  %v1793_v3 = vmul.f32 %v12248_v38, %v1756_v14  ;;  %v1794_v24 = vmul.f32 %v12248_v38, %v1484_v52  ;;  %v17150_v7 = vld [vmem:[#allocation95_spill] sm:$0xff] }
 0x224   : > { %v3425_v27 = vadd.f32 %v3394_v25, %v3362_v59  ;;  %v3614_v57 = vadd.f32 %v12713_v22, %v3426_v8  ;;  %v3837_v58 = vadd.f32 %v12597_v30, %v3805_v20  ;;  %v1692_v28 = vmul.f32 %v12235_v32, %v1655_v15  ;;  %v3915_v15 = vld [vmem:[%s16573_s5 + $0x20] sm:$0xff]  ;;  %v17154_v8 = vld [vmem:[#allocation45_spill] sm:$0xff] }
 0x225   : > { %v12918_v35 = vadd.f32 %v1693_v36, %v17150_v7  ;;  %v1825_v17 = vadd.f32 %v1793_v3, %v1722_v21  ;;  %v1826_v61 = vadd.f32 %v1794_v24, %v17151_v53  ;;  %v12922_v52 = vmul.f32 %v12189_v6, %v1370_v13  ;;  %v17153_v59 = vld [vmem:[#allocation70_spill] sm:$0xff]  ;;  %4576 = vmatpush1.msra.mxu0 %v3915_v15  ;;  %v17162_v15 = vld [vmem:[#allocation31_spill] sm:$0xff] }
 0x226   : > { %v3613_v14 = vadd.f32 %v3581_v23, %v3425_v27  ;;  %v12924_v34 = vadd.f32 %v3683_v31, %v3614_v57  ;;  %3902 = vst.msk [vmem:[#allocation3 + $0xb8] sm:$0xff] %vm3846_vm5, %v3837_v58  ;;  %v12928_v22 = vmul.f32 %v12325_v0, %v1370_v13  ;;  %v2090_v25 = vrot.slane %v1370_v13, 1  ;;  %v17155_v3 = vld [vmem:[#allocation42_spill] sm:$0xff]  ;;  %v17158_v58 = vld [vmem:[#allocation59_spill] sm:$0xff] }
 0x227   : > { %17152 = vst [vmem:[#allocation62_spill] sm:$0xff] %v12922_v52  ;;  %v1893_v21 = vadd.f32 %v17153_v59, %v1825_v17  ;;  %v1894_v20 = vadd.f32 %v17154_v8, %v1826_v61  ;;  %v1999_v36 = vmul.f32 %v12443_v4, %v1370_v13  ;;  %v2193_v23 = vmul.f32 %v12288_v54, %v17155_v3  ;;  %v17161_v53 = vld [vmem:[#allocation94_spill] sm:$0xff] }
 0x228   : > { %v3714_v31 = vadd.f32 %v12709_v45, %v3613_v14  ;;  %v17156_v24 = vrot.slane %v17145_v50, 1  ;;  %v17157_v27 = vrot.slane %v12702_v26, 1  ;;  %v17159_v7 = vrot.slane %v17158_v58, 1 }
 0x229   : > { %v17160_v17 = vrot.slane %v17128_v48, 1  ;;  %v1962_v61 = vadd.f32 %v17161_v53, %v1893_v21  ;;  %v1963_v45 = vadd.f32 %v17162_v15, %v1894_v20  ;;  %v2177_v14 = vmul.f32 %v12288_v54, %v17121_v51 }
 0x22a   : > { %v2091_v1 = vsel %vm2038_vm7, %v17156_v24, %v2090_v25  ;;  %v12945_v57 = vsel %vm2038_vm7, %v2090_v25, %v17157_v27  ;;  %v3806_v59 = vadd.f32 %v3776_v18, %v3714_v31  ;;  %v12965_v24 = vpop.f32.mrf.mxu0 }
 0x22b   : > { %v12952_v13 = vsel %vm2038_vm7, %v17160_v17, %v17159_v7  ;;  %v2263_v50 = vmul.f32 %v12461_v63, %v2091_v1  ;;  %v2159_v25 = vmul.f32 %v12827_v9, %v2091_v1  ;;  %v12962_v8 = vmul.f32 %v12411_v40, %v12945_v57  ;;  %v17163_v7 = vld [vmem:[#allocation67_spill] sm:$0xff] }
 0x22c   : > { %v2362_v48 = vmul.f32 %v12222_v29, %v2091_v1  ;;  %v2030_v27 = vadd.f32 %v1999_v36, %v1962_v61  ;;  %v2031_v21 = vadd.f32 %v12753_v37, %v1963_v45  ;;  %v2400_v58 = vmul.f32 %v12512_v44, %v12945_v57  ;;  %v17164_v1 = vld [vmem:[#allocation86_spill] sm:$0xff]  ;;  %v17165_v45 = vld [vmem:[#allocation55_spill] sm:$0xff] }
 0x22d   : > { %v2300_v20 = vmul.f32 %v12411_v40, %v2263_v50  ;;  %v3838_v51 = vadd.f32 %v12597_v30, %v3806_v59  ;;  %v2181_v31 = vmul.f32 %v12288_v54, %v12952_v13  ;;  %v2209_v17 = vadd.f32 %v2177_v14, %v17163_v7  ;;  %v17166_v59 = vld [vmem:[#allocation39_spill] sm:$0xff] }
 0x22e   : > { %v2399_v18 = vmul.f32 %v12512_v44, %v2362_v48  ;;  %v2225_v29 = vadd.f32 %v2193_v23, %v2030_v27  ;;  %v2226_v53 = vadd.f32 %v17164_v1, %v2031_v21  ;;  %v2283_v37 = vmul.f32 %v12411_v40, %v12726_v55  ;;  %v1380_v23 = vpop.f32.mrf.mxu0 }
 0x22f   : > { %v2384_v36 = vmul.f32 %v12512_v44, %v12952_v13  ;;  %3903 = vst.msk [vmem:[#allocation3 + $0xc0] sm:$0xff] %vm3846_vm5, %v3838_v51  ;;  %v12983_v61 = vmul.f32 %v12288_v54, %v2159_v25  ;;  %v2213_v50 = vadd.f32 %v2181_v31, %v17165_v45  ;;  %v16689_v14 = vrot.slane %v12965_v24, 7  ;;  %v17169_v25 = vld [vmem:[#allocation20_spill] sm:$0xff] }
 0x230   : > { %v2431_v15 = vadd.f32 %v2399_v18, %v12555_v42  ;;  %v2331_v48 = vadd.f32 %v17166_v59, %v2225_v29  ;;  %v12989_v27 = vadd.f32 %v2300_v20, %v2226_v53  ;;  %v2315_v21 = vadd.f32 %v2283_v37, %v2209_v17  ;;  %v17171_v53 = vld [vmem:[#allocation78_spill] sm:$0xff] }
 0x231   : > { %v12993_v7 = vmul.f32 %v12189_v6, %v12965_v24  ;;  %v2319_v1 = vadd.f32 %v17169_v25, %v2213_v50  ;;  %v13001_v42 = vmul.f32 %v12325_v0, %v12965_v24  ;;  %v13005_v18 = vmul.f32 %v12443_v4, %v12965_v24 }
 0x232   : > { %v12996_v51 = vadd.f32 %v12597_v30, %v2431_v15  ;;  %v2432_v20 = vadd.f32 %v2400_v58, %v2331_v48  ;;  %v2416_v31 = vadd.f32 %v2384_v36, %v2315_v21  ;;  %v1485_v29 = vrot.slane %v1380_v23, 7  ;;  %v17172_v15 = vld [vmem:[#allocation98_spill] sm:$0xff] }
 0x233   : > { %17167 = vst [vmem:[#allocation58_spill] sm:$0xff] %v12993_v7  ;;  %17170 = vst [vmem:[#allocation63_spill] sm:$0xff] %v13001_v42  ;;  %v2420_v37 = vadd.f32 %v17171_v53, %v2319_v1  ;;  %v1724_v45 = vadd.f32 %v1692_v28, %v17172_v15  ;;  %v13013_v50 = vmul.f32 %v12189_v6, %v1380_v23  ;;  %v17177_v36 = vrot.slane %v12702_v26, 7  ;;  %v17190_v7 = vld [vmem:[#allocation15_spill] sm:$0xff] }
 0x234   : > { %17168 = vst [vmem:[#allocation40_spill] sm:$0xff] %v12996_v51  ;;  %3870 = vst.msk [vmem:[#allocation2 + $0xb8] sm:$0xff] %vm3846_vm5, %v12996_v51  ;;  %v13016_v59 = vmul.f32 %v12325_v0, %v1380_v23  ;;  %v13019_v25 = vadd.f32 %v12597_v30, %v2432_v20  ;;  %v13022_v58 = vadd.f32 %v12597_v30, %v2416_v31  ;;  %v2094_v53 = vrot.slane %v1380_v23, 1 }
 0x235   : > { %17173 = vst [vmem:[#allocation48_spill] sm:$0xff] %v13013_v50  ;;  %v13027_v48 = vsel %vm1429_vm6, %v17177_v36, %v1485_v29  ;;  %v13032_v28 = vsel %vm1429_vm6, %v1485_v29, %v16689_v14  ;;  %v13035_v6 = vadd.f32 %v12597_v30, %v2420_v37  ;;  %v2001_v20 = vmul.f32 %v12443_v4, %v1380_v23  ;;  %v17179_v37 = vld [vmem:[#allocation100_spill] sm:$0xff]  ;;  %v13060_v36 = vpop.f32.mrf.mxu1 }
 0x236   : > { %17174 = vst [vmem:[#allocation14_spill] sm:$0xff] %v13016_v59  ;;  %17175 = vst [vmem:[#allocation53_spill] sm:$0xff] %v13019_v25  ;;  %v13039_v21 = vmul.f32 %v12817_v43, %v13027_v48  ;;  %v1758_v1 = vmul.f32 %v12465_v2, %v13027_v48  ;;  %8750 = vmatmul.mubr.msk.f32.gmra.mxu0 %vm3846_vm5, %v13022_v58  ;;  %8782 = vmatmul.mubr.msk.f32.gmra.mxu1 %vm3846_vm5, %v13022_v58  ;;  %v17189_v59 = vld [vmem:[#allocation89_spill] sm:$0xff] }
 0x237   : > { %17176 = vst [vmem:[#allocation66_spill] sm:$0xff] %v13022_v58  ;;  %17178 = vst [vmem:[#allocation29_spill] sm:$0xff] %v13035_v6  ;;  %v13054_v31 = vmul.f32 %v12235_v32, %v13032_v28  ;;  %v1796_v29 = vmul.f32 %v12248_v38, %v13032_v28  ;;  %v2195_v15 = vmul.f32 %v12288_v54, %v17179_v37  ;;  %4149 = vmatprep.mubr.f32.mxu0 %v16937_v11 }
 0x238   : > { %3871 = vst.msk [vmem:[#allocation2 + $0xc0] sm:$0xff] %vm3846_vm5, %v13019_v25  ;;  %3855 = vst.msk [vmem:[#allocation2 + $0x40] sm:$0xff] %vm3846_vm5, %v13022_v58  ;;  %v1795_v14 = vmul.f32 %v12248_v38, %v1758_v1  ;;  %4406 = vmatprep.mubr.f32.mxu1 %v16937_v11  ;;  %v13070_v58 = vmul.f32 %v12235_v32, %v13060_v36  ;;  %v13074_v23 = vmul.f32 %v12325_v0, %v13060_v36 }
 0x239   : > { %3859 = vst.msk [vmem:[#allocation2 + $0x60] sm:$0xff] %vm3846_vm5, %v13035_v6  ;;  %v1828_v37 = vadd.f32 %v1796_v29, %v12918_v35  ;;  %v17182_v25 = vrot.slane %v12702_v26, 1  ;;  %v17183_v1 = vrot.slane %v12965_v24, 1  ;;  %v13094_v26 = vmul.f32 %v12411_v40, %v13060_v36  ;;  %v17185_v35 = vld [vmem:[#allocation7_spill] sm:$0xff]  ;;  %v17186_v29 = vld [vmem:[#allocation17_spill] sm:$0xff] }
 0x23a   : > { %17180 = vst [vmem:[#allocation96_spill] sm:$0xff] %v13070_v58  ;;  %17181 = vst [vmem:[#allocation95_spill] sm:$0xff] %v13074_v23  ;;  %v1827_v3 = vadd.f32 %v1795_v14, %v1724_v45  ;;  %v17187_v58 = vld [vmem:[#allocation47_spill] sm:$0xff]  ;;  %v2813_v45 = vpop.f32.mrf.mxu1 }
 0x23b   : > { %v13080_v38 = vsel %vm2038_vm7, %v17182_v25, %v2094_v53  ;;  %v13085_v51 = vsel %vm2038_vm7, %v2094_v53, %v17183_v1  ;;  %17184 = vst [vmem:[#allocation97_spill] sm:$0xff] %v13094_v26  ;;  %v1896_v25 = vadd.f32 %v17185_v35, %v1828_v37  ;;  %v1878_v5 = vadd.f32 %v17187_v58, %v17186_v29  ;;  %v17188_v53 = vld [vmem:[#allocation16_spill] sm:$0xff]  ;;  %v6163_v17 = vld [vmem:[#allocation2 + $0xb8] sm:$0xff] }
 0x23c   : > { %v2265_v6 = vmul.f32 %v12827_v9, %v13080_v38  ;;  %v2364_v23 = vmul.f32 %v12461_v63, %v13080_v38  ;;  %v2141_v1 = vmul.f32 %v17188_v53, %v12563_v47  ;;  %v2247_v14 = vmul.f32 %v17188_v53, %v12780_v56  ;;  %6178 = vrot.lane.b32.xlu0 %v6163_v17, %s9943_s15  ;;  %v17191_v35 = vld [vmem:[#allocation33_spill] sm:$0xff] }
 0x23d   : > { %v1895_v50 = vadd.f32 %v17189_v59, %v1827_v3  ;;  %v2402_v26 = vmul.f32 %v12512_v44, %v13085_v51  ;;  %v2348_v37 = vmul.f32 %v17188_v53, %v17190_v7  ;;  %v13111_v58 = vadd.f32 %v12749_v62, %v1896_v25  ;;  %v17192_v7 = vld [vmem:[#allocation61_spill] sm:$0xff] }
 0x23e   : > { %v2401_v42 = vmul.f32 %v12512_v44, %v2364_v23  ;;  %v13114_v47 = vmul.f32 %v12411_v40, %v2265_v6  ;;  %v1947_v29 = vadd.f32 %v17191_v35, %v1878_v5  ;;  %v2178_v3 = vmul.f32 %v12288_v54, %v2141_v1 }
 0x23f   : > { %v1964_v59 = vadd.f32 %v12928_v22, %v1895_v50  ;;  %v2284_v56 = vmul.f32 %v12411_v40, %v2247_v14  ;;  %v2917_v52 = vrot.slane %v2813_v45, 7  ;;  %v2385_v62 = vmul.f32 %v12512_v44, %v2348_v37 }
 0x240   : > { %v2433_v23 = vadd.f32 %v2401_v42, %v12989_v27  ;;  %v6578_v53 = vld [vmem:[#allocation2 + $0x60] sm:$0xff]  ;;  %v2015_v17 = vadd.f32 %v17192_v7, %v1947_v29  ;;  %v3140_v6 = vadd.f32 %v12840_v39, %v12669_v60  ;;  %v13126_v25 = vmul.f32 %v12235_v32, %v2813_v45 }
 0x241   : > { %6592 = vrot.lane.b32.xlu1 %v6578_v53, %s9943_s15  ;;  %v2032_v5 = vadd.f32 %v2001_v20, %v1964_v59  ;;  %v17194_v27 = vrot.slane %v12744_v19, 7  ;;  %v17195_v7 = vrot.slane %v13060_v36, 7  ;;  %v6580_v39 = vld [vmem:[#allocation3 + $0x60] sm:$0xff]  ;;  %v13149_v1 = vmul.f32 %v12325_v0, %v2813_v45 }
 0x242   : > { %v13130_v22 = vadd.f32 %v12597_v30, %v2433_v23  ;;  %v2210_v60 = vadd.f32 %v2178_v3, %v2015_v17  ;;  %v2179_v3 = vmul.f32 %v12288_v54, %v12726_v55  ;;  %v17196_v53 = vrot.slane %v12744_v19, 1  ;;  %v13189_v19 = vld [vmem:[%s16571_s3 + $0x2] ss:$0 sm:$0xff] }
 0x243   : > { %v13135_v42 = vsel %vm1429_vm6, %v17194_v27, %v2917_v52  ;;  %v13140_v50 = vsel %vm1429_vm6, %v2917_v52, %v17195_v7  ;;  %v2227_v14 = vadd.f32 %v2195_v15, %v2032_v5  ;;  %v13156_v52 = vld [vmem:[%s16571_s3 + $0x3] ss:$0 sm:$0xff]  ;;  %v3396_v15 = vmul.f32 %v12411_v40, %v2813_v45 }
 0x244   : > { %17193 = vst [vmem:[#allocation70_spill] sm:$0xff] %v13130_v22  ;;  %v13144_v32 = vmul.f32 %v12817_v43, %v13135_v42  ;;  %v3174_v20 = vmul.f32 %v12465_v2, %v13135_v42  ;;  %3872 = vst.msk [vmem:[#allocation2 + $0xc8] sm:$0xff] %vm3846_vm5, %v13130_v22  ;;  %v13160_v37 = vmul.f32 %v13156_v52, %v13140_v50  ;;  %v3488_v2 = vrot.slane %v2813_v45, 1  ;;  %v17198_v7 = vld [vmem:[#allocation54_spill] sm:$0xff] }
 0x245   : > { %v3206_v35 = vmul.f32 %v12288_v54, %v13140_v50  ;;  %v2316_v29 = vadd.f32 %v2284_v56, %v2210_v60  ;;  %v2333_v59 = vadd.f32 %v12962_v8, %v2227_v14  ;;  %6600 = vrot.lane.b32.xlu1 %v6580_v39, %s9944_s30  ;;  %v17197_v56 = vrot.slane %v13060_v36, 1  ;;  %v17199_v39 = vld [vmem:[#allocation74_spill] sm:$0xff] }
 0x246   : > { %v3205_v0 = vmul.f32 %v12288_v54, %v3174_v20  ;;  %v13174_v17 = vsel %vm2038_vm7, %v17196_v53, %v3488_v2  ;;  %v3583_v60 = vmul.f32 %v13189_v19, %v17198_v7  ;;  %v17201_v20 = vld [vmem:[#allocation28_spill] sm:$0xff]  ;;  %v13222_v53 = vpop.f32.mrf.mxu0 }
 0x247   : > { %v3238_v23 = vadd.f32 %v3206_v35, %v12843_v41  ;;  %v13179_v5 = vsel %vm2038_vm7, %v3488_v2, %v17197_v56  ;;  %v2417_v45 = vadd.f32 %v2385_v62, %v2316_v29  ;;  %v3653_v55 = vmul.f32 %v12827_v9, %v13174_v17  ;;  %v6508_v56 = vld [vmem:[#allocation3 + $0x70] sm:$0xff] }
 0x248   : > { %v3237_v27 = vadd.f32 %v3205_v0, %v3140_v6  ;;  %v3747_v54 = vmul.f32 %v12461_v63, %v13174_v17  ;;  %v2434_v8 = vadd.f32 %v2402_v26, %v2333_v59  ;;  %v2211_v62 = vadd.f32 %v2179_v3, %v17199_v39  ;;  %v6506_v26 = vld [vmem:[#allocation2 + $0x70] sm:$0xff] }
 0x249   : > { %v3301_v41 = vadd.f32 %v12618_v46, %v3238_v23  ;;  %v13195_v6 = vadd.f32 %v12597_v30, %v2417_v45  ;;  %v3778_v46 = vmul.f32 %v12512_v44, %v13179_v5  ;;  %v13205_v2 = vmul.f32 %v12443_v4, %v3653_v55  ;;  %v17203_v0 = vld [vmem:[#allocation68_spill] sm:$0xff]  ;;  %6520 = vrot.lane.b32.xlu1 %v6506_v26, %s9943_s15  ;;  %v13239_v26 = vld [vmem:[%s16571_s3 + $0x4] ss:$0 sm:$0xff] }
 0x24a   : > { %v3300_v14 = vadd.f32 %v17201_v20, %v3237_v27  ;;  %v3777_v63 = vmul.f32 %v12512_v44, %v3747_v54  ;;  %v13202_v35 = vadd.f32 %v12597_v30, %v2434_v8  ;;  %v2285_v29 = vmul.f32 %v12411_v40, %v12952_v13  ;;  %v17204_v27 = vld [vmem:[#allocation49_spill] sm:$0xff] }
 0x24b   : > { %17200 = vst [vmem:[#allocation45_spill] sm:$0xff] %v13195_v6  ;;  %v2386_v3 = vmul.f32 %v12512_v44, %v17203_v0  ;;  %3856 = vst.msk [vmem:[#allocation2 + $0x48] sm:$0xff] %vm3846_vm5, %v13195_v6  ;;  %8751 = vmatmul.mubr.msk.f32.gmra.mxu0 %vm3846_vm5, %v13195_v6  ;;  %8783 = vmatmul.mubr.msk.f32.gmra.mxu1 %vm3846_vm5, %v13195_v6  ;;  %v464_v40 = vadd.s32 232, %v16938_v12  ;;  %v465_v13 = vadd.s32 240, %v16938_v12  ;;  %v6077_v45 = vld [vmem:[#allocation2 + $0xc8] sm:$0xff]  ;;  %v1625_v54 = vrot.slane %v13222_v53, 7 }
 0x24c   : > { %17202 = vst [vmem:[#allocation59_spill] sm:$0xff] %v13202_v35  ;;  %v3364_v59 = vadd.f32 %v12846_v33, %v3300_v14  ;;  %v3807_v23 = vadd.f32 %v3777_v63, %v12924_v34  ;;  %3873 = vst.msk [vmem:[#allocation2 + $0xd0] sm:$0xff] %vm3846_vm5, %v13202_v35  ;;  %v13227_v55 = vadd.f32 %v17204_v27, %v3301_v41  ;;  %4155 = vmatprep.mubr.f32.mxu0 %v16937_v11  ;;  %v6162_v27 = vld [vmem:[#allocation2 + $0xb0] sm:$0xff] }
 0x24d   : > { %4412 = vmatprep.mubr.f32.mxu1 %v16937_v11  ;;  %v2317_v33 = vadd.f32 %v2285_v29, %v2211_v62  ;;  %v466_v34 = vadd.s32 248, %v16938_v12  ;;  %v674_v39 = vand.u32 15, %v464_v40  ;;  %v681_v20 = vand.u32 15, %v465_v13  ;;  %6092 = vrot.lane.b32.xlu0 %v6077_v45, %s9943_s15 }
 0x24e   : > { %v3427_v8 = vadd.f32 %v3396_v15, %v3364_v59  ;;  %v3839_v7 = vadd.f32 %v12597_v30, %v3807_v23  ;;  %v1731_v41 = vsel %vm1429_vm6, %v1625_v54, 0.0  ;;  %v13243_v12 = vmul.f32 %v13239_v26, %v13222_v53  ;;  %6528 = vrot.lane.b32.xlu1 %v6508_v56, %s9944_s30 }
 0x24f   : > { %v2418_v14 = vadd.f32 %v2386_v3, %v2317_v33  ;;  %v688_v63 = vand.u32 15, %v466_v34  ;;  %vm881_vm8 = vcmp.gt.s32.totalorder %v681_v20, 0  ;;  %vm976_vm9 = vcmp.lt.s32.totalorder %v674_v39, 15 }
 0x250   : > { %v3615_v15 = vadd.f32 %v3583_v60, %v3427_v8  ;;  %3904 = vst.msk [vmem:[#allocation3 + $0xc8] sm:$0xff] %vm3846_vm5, %v3839_v7  ;;  %v16698_v62 = vrot.slane %v13222_v53, 1  ;;  %v13252_v0 = vsel %vm881_vm8, 1.0, %v16937_v11  ;;  %v13255_v3 = vsel %vm976_vm9, 1.0, %v16937_v11 }
 0x251   : > { %v13249_v29 = vadd.f32 %v12597_v30, %v2418_v14  ;;  %vm978_vm10 = vcmp.lt.s32.totalorder %v688_v63, 15  ;;  %v1762_v23 = vmul.f32 %v13252_v0, %v1731_v41  ;;  %v13264_v40 = vmul.f32 %v12443_v4, %v13222_v53  ;;  %v1390_v4 = vpop.f32.mrf.mxu0  ;;  %v13304_v63 = vld [vmem:[%s16571_s3 + $0x7] ss:$0 sm:$0xff] }
 0x252   : > { %v3716_v59 = vadd.f32 %v12880_v10, %v3615_v15  ;;  %v13259_v60 = vsel %vm978_vm10, 1.0, %v16937_v11  ;;  %v2161_v10 = vmul.f32 %v13255_v3, %v13080_v38  ;;  %v2237_v13 = vsel %vm2038_vm7, %v16698_v62, 0.0  ;;  %6176 = vrot.lane.b32.xlu1 %v6162_v27, %s9943_s15  ;;  %v13345_v62 = vld [vmem:[%s16571_s3 + $0x6] ss:$0 sm:$0xff] }
 0x253   : > { %17205 = vst [vmem:[#allocation94_spill] sm:$0xff] %v13249_v29  ;;  %3857 = vst.msk [vmem:[#allocation2 + $0x50] sm:$0xff] %vm3846_vm5, %v13249_v29  ;;  %8752 = vmatmul.mubr.msk.f32.gmra.mxu0 %vm3846_vm5, %v13249_v29  ;;  %8784 = vmatmul.mubr.msk.f32.gmra.mxu1 %vm3846_vm5, %v13249_v29  ;;  %v2370_v56 = vmul.f32 0.0, %v13259_v60  ;;  %v1550_v45 = vmul.f32 %v13252_v0, %v13027_v48  ;;  %v2269_v34 = vmul.f32 %v13259_v60, %v2237_v13  ;;  %v5990_v38 = vld [vmem:[#allocation2 + $0xd0] sm:$0xff]  ;;  %v13294_v48 = vld [vmem:[%s16571_s3] ss:$0 sm:$0xff] }
 0x254   : > { %v3808_v33 = vadd.f32 %v3778_v46, %v3716_v59  ;;  %v2368_v8 = vmul.f32 %v13255_v3, %v2237_v13  ;;  %v13284_v7 = vmul.f32 %v13255_v3, %v13174_v17  ;;  %4161 = vmatprep.mubr.f32.mxu0 %v16937_v11  ;;  %v1799_v39 = vmul.f32 %v13189_v19, %v1762_v23  ;;  %v9920_v23 = vld [vmem:[%s16571_s3 + $0x1] ss:$0 sm:$0xff] }
 0x255   : > { %v13289_v20 = vmul.f32 %v12512_v44, %v2370_v56  ;;  %v1585_v46 = vmul.f32 %v13294_v48, %v12903_v49  ;;  %v1587_v14 = vmul.f32 %v13294_v48, %v1550_v45  ;;  %4418 = vmatprep.mubr.f32.mxu1 %v16937_v11  ;;  %v13307_v41 = vmul.f32 %v13304_v63, %v2269_v34  ;;  %v13333_v34 = vld [vmem:[%s16571_s3 + $0x5] ss:$0 sm:$0xff] }
 0x256   : > { %v3840_v17 = vadd.f32 %v12597_v30, %v3808_v33  ;;  %v1588_v15 = vmul.f32 %v13294_v48, %v13032_v28  ;;  %v1623_v59 = vrot.slane %v1390_v4, 7  ;;  %6004 = vrot.lane.b32.xlu0 %v5990_v38, %s9943_s15  ;;  %v13314_v49 = vmul.f32 %v12512_v44, %v2368_v8  ;;  %v13323_v28 = vld [vmem:[#allocation3 + $0xb0] sm:$0xff] }
 0x257   : > { %v1694_v13 = vmul.f32 %v9920_v23, %v13039_v21  ;;  %v1727_v56 = vadd.f32 %v13054_v31, %v12906_v16  ;;  %v1936_v45 = vmul.f32 %v13239_v26, %v1390_v4  ;;  %17206 = vst [vmem:[#allocation31_spill] sm:$0xff] %v13323_v28  ;;  %v17207_v27 = vrot.slane %v12965_v24, 7  ;;  %6184 = vrot.lane.b32.xlu1 %v13323_v28, %s9944_s30 }
 0x258   : > { %3905 = vst.msk [vmem:[#allocation3 + $0xd0] sm:$0xff] %vm3846_vm5, %v3840_v17  ;;  %v1626_v33 = vsel %vm1429_vm6, %v1623_v59, %v1625_v54  ;;  %v2003_v21 = vmul.f32 %v13333_v34, %v1390_v4  ;;  %v2033_v16 = vadd.f32 %v13005_v18, %v13111_v58  ;;  %v2005_v54 = vmul.f32 0.0, %v13333_v34 }
 0x259   : > { %v1624_v44 = vsel %vm1429_vm6, %v17207_v27, %v1623_v59  ;;  %v1697_v8 = vmul.f32 %v9920_v23, %v1626_v33  ;;  %v1726_v38 = vadd.f32 %v1694_v13, %v1585_v46  ;;  %v1798_v27 = vmul.f32 %v13189_v19, %v1626_v33 }
 0x25a   : > { %v1659_v31 = vmul.f32 %v13252_v0, %v1624_v44  ;;  %v1760_v17 = vmul.f32 %v12817_v43, %v1624_v44  ;;  %v2098_v59 = vrot.slane %v1390_v4, 1  ;;  %v2197_v29 = vmul.f32 %v13345_v62, %v12945_v57  ;;  %v13353_v44 = vld [vmem:[#allocation3 + $0xc8] sm:$0xff] }
 0x25b   : > { %v1729_v58 = vadd.f32 %v1697_v8, %v1588_v15  ;;  %v2198_v13 = vmul.f32 %v13345_v62, %v2161_v10  ;;  %v1830_v4 = vadd.f32 %v1798_v27, %v1727_v56  ;;  %v17208_v33 = vrot.slane %v12965_v24, 1  ;;  %v17210_v8 = vld [vmem:[#allocation41_spill] sm:$0xff]  ;;  %6100 = vrot.lane.b32.xlu1 %v13353_v44, %s9944_s30 }
 0x25c   : > { %v1696_v18 = vmul.f32 %v9920_v23, %v1659_v31  ;;  %v1797_v46 = vmul.f32 %v13189_v19, %v1760_v17  ;;  %v2199_v35 = vmul.f32 %v13345_v62, %v13085_v51  ;;  %v2228_v57 = vadd.f32 %v12983_v61, %v2033_v16  ;;  %v17209_v23 = vld [vmem:[#allocation11_spill] sm:$0xff] }
 0x25d   : > { %v2099_v6 = vsel %vm2038_vm7, %v17208_v33, %v2098_v59  ;;  %v1832_v15 = vadd.f32 %v17209_v23, %v1729_v58  ;;  %v1898_v10 = vadd.f32 %v17210_v8, %v1830_v4  ;;  %v17211_v17 = vrot.slane %v13222_v53, 1  ;;  %v17214_v53 = vld [vmem:[#allocation63_spill] sm:$0xff] }
 0x25e   : > { %v1728_v22 = vadd.f32 %v1696_v18, %v1587_v14  ;;  %v1829_v28 = vadd.f32 %v1797_v46, %v1726_v38  ;;  %v2163_v31 = vmul.f32 %v13259_v60, %v2099_v6  ;;  %v2267_v24 = vmul.f32 %v13255_v3, %v2099_v6  ;;  %v17212_v14 = vld [vmem:[#allocation62_spill] sm:$0xff] }
 0x25f   : > { %v2234_v56 = vsel %vm2038_vm7, %v2098_v59, %v17211_v17  ;;  %v2303_v27 = vmul.f32 %v13304_v63, %v13085_v51  ;;  %v17213_v38 = vld [vmem:[#allocation58_spill] sm:$0xff]  ;;  %v13375_v4 = vld [vmem:[#allocation3 + $0xd0] sm:$0xff]  ;;  %v1967_v59 = vadd.f32 %v17214_v53, %v1898_v10  ;;  %v2334_v23 = vadd.f32 %v13114_v47, %v2228_v57  ;;  %v13393_v47 = vld [vmem:[%s16571_s3 + $0x8] ss:$0 sm:$0xff] }
 0x260   : > { %v1831_v61 = vadd.f32 %v1799_v39, %v1728_v22  ;;  %v1897_v16 = vadd.f32 %v17212_v14, %v1829_v28  ;;  %v1900_v18 = vadd.f32 %v17213_v38, %v1832_v15  ;;  %v2305_v58 = vmul.f32 %v13304_v63, %v2234_v56  ;;  %v6076_v46 = vld [vmem:[#allocation2 + $0xc0] sm:$0xff]  ;;  %6012 = vrot.lane.b32.xlu0 %v13375_v4, %s9944_s30  ;;  %v17215_v22 = vld [vmem:[#allocation48_spill] sm:$0xff]  ;;  %v13387_v14 = vpop.f32.mrf.mxu1 }
 0x261   : > { %v2200_v33 = vmul.f32 %v13345_v62, %v2163_v31  ;;  %v2366_v51 = vmul.f32 %v12827_v9, %v2099_v6  ;;  %v17216_v28 = vld [vmem:[#allocation14_spill] sm:$0xff]  ;;  %v2304_v17 = vmul.f32 %v13304_v63, %v2267_v24  ;;  %v2035_v10 = vadd.f32 %v13264_v40, %v1967_v59  ;;  %6090 = vrot.lane.b32.xlu1 %v6076_v46, %s9943_s15 }
 0x262   : > { %v1899_v39 = vadd.f32 %v17215_v22, %v1831_v61  ;;  %v1966_v15 = vadd.f32 %v17216_v28, %v1897_v16  ;;  %v1969_v8 = vadd.f32 %v13243_v12, %v1900_v18  ;;  %v2404_v57 = vmul.f32 %v13393_v47, %v2234_v56  ;;  %v13402_v40 = vld [vmem:[#allocation3 + $0xc0] sm:$0xff] }
 0x263   : > { %v2403_v6 = vmul.f32 %v13393_v47, %v2366_v51  ;;  %v3046_v31 = vrot.slane %v13387_v14, 7  ;;  %v13400_v16 = vmul.f32 0.0, %v13393_v47  ;;  %v2230_v38 = vadd.f32 %v2198_v13, %v2035_v10 }
 0x264   : > { %v1968_v12 = vadd.f32 %v1936_v45, %v1899_v39  ;;  %v2034_v61 = vadd.f32 %v2003_v21, %v1966_v15  ;;  %v2037_v24 = vadd.f32 %v2005_v54, %v1969_v8  ;;  %v13409_v56 = vmul.f32 %v13239_v26, %v13387_v14  ;;  %v17219_v39 = vld [vmem:[#allocation52_spill] sm:$0xff] }
 0x265   : > { %v2435_v18 = vadd.f32 %v2403_v6, %v2334_v23  ;;  %v3147_v53 = vsel %vm1429_vm6, %v3046_v31, 0.0  ;;  %v13413_v21 = vmul.f32 %v13304_v63, %v13387_v14  ;;  %v2336_v51 = vadd.f32 %v2304_v17, %v2230_v38  ;;  %v17218_v23 = vld [vmem:[#allocation19_spill] sm:$0xff]  ;;  %6098 = vrot.lane.b32.xlu1 %v13402_v40, %s9944_s30  ;;  %v17220_v17 = vld [vmem:[#allocation60_spill] sm:$0xff] }
 0x266   : > { %v2036_v59 = vadd.f32 %v2005_v54, %v1968_v12  ;;  %v2229_v46 = vadd.f32 %v2197_v29, %v2034_v61  ;;  %v2232_v45 = vadd.f32 %v2200_v33, %v2037_v24  ;;  %v3621_v13 = vrot.slane %v13387_v14, 1  ;;  %v17221_v6 = vld [vmem:[#allocation24_spill] sm:$0xff]  ;;  %v17222_v12 = vld [vmem:[#allocation18_spill] sm:$0xff] }
 0x267   : > { %v13416_v22 = vadd.f32 %v12597_v30, %v2435_v18  ;;  %v1880_v28 = vadd.f32 %v17219_v39, %v17218_v23  ;;  %v3178_v33 = vmul.f32 %v13252_v0, %v3147_v53  ;;  %v2437_v8 = vadd.f32 %v13314_v49, %v2336_v51  ;;  %v13439_v49 = vld [vmem:[%s16572_s4] ss:$0 sm:$0xff]  ;;  %v17224_v53 = vld [vmem:[#allocation56_spill] sm:$0xff]  ;;  %v13455_v23 = vpop.f32.mrf.mxu1 }
 0x268   : > { %v2231_v15 = vadd.f32 %v2199_v35, %v2036_v59  ;;  %v2335_v54 = vadd.f32 %v2303_v27, %v2229_v46  ;;  %v2338_v29 = vadd.f32 %v13307_v41, %v2232_v45  ;;  %v3625_v30 = vsel %vm2038_vm7, %v3621_v13, 0.0 }
 0x269   : > { %17217 = vst [vmem:[#allocation67_spill] sm:$0xff] %v13416_v22  ;;  %3874 = vst.msk [vmem:[#allocation2 + $0xd8] sm:$0xff] %vm3846_vm5, %v13416_v22  ;;  %v1949_v10 = vadd.f32 %v17220_v17, %v1880_v28  ;;  %v2143_v61 = vmul.f32 %v17222_v12, %v17221_v6  ;;  %v3657_v24 = vmul.f32 %v13259_v60, %v3625_v30 }
 0x26a   : > { %v2337_v35 = vadd.f32 %v2305_v58, %v2231_v15  ;;  %v2436_v27 = vadd.f32 %v2404_v57, %v2335_v54  ;;  %v2439_v41 = vadd.f32 %v13289_v20, %v2338_v29  ;;  %v13442_v38 = vadd.f32 %v13439_v49, %v2437_v8  ;;  %v17227_v15 = vld [vmem:[#allocation15_spill] sm:$0xff]  ;;  %v17228_v29 = vld [vmem:[#allocation21_spill] sm:$0xff] }
 0x26b   : > { %v3751_v18 = vmul.f32 %v13255_v3, %v3625_v30  ;;  %v2017_v59 = vadd.f32 %v17224_v53, %v1949_v10  ;;  %v2180_v46 = vmul.f32 %v13345_v62, %v2143_v61  ;;  %v3209_v51 = vmul.f32 %v13345_v62, %v3178_v33  ;;  %v17230_v10 = vld [vmem:[#allocation23_spill] sm:$0xff] }
 0x26c   : > { %17223 = vst [vmem:[#allocation86_spill] sm:$0xff] %v13442_v38  ;;  %v2438_v58 = vadd.f32 %v13400_v16, %v2337_v35  ;;  %v13449_v57 = vadd.f32 %v13439_v49, %v2436_v27  ;;  %v13452_v45 = vadd.f32 %v13439_v49, %v2439_v41  ;;  %3876 = vst.msk [vmem:[#allocation2 + $0xe8] sm:$0xff] %vm3846_vm5, %v13442_v38  ;;  %v3044_v35 = vrot.slane %v13455_v23, 7 }
 0x26d   : > { %v13460_v39 = vmul.f32 %v13333_v34, %v3657_v24  ;;  %v2212_v28 = vadd.f32 %v2180_v46, %v2017_v59  ;;  %v2249_v54 = vmul.f32 %v17222_v12, %v17227_v15  ;;  %v2350_v8 = vmul.f32 %v17222_v12, %v17228_v29  ;;  %v17231_v24 = vld [vmem:[#allocation51_spill] sm:$0xff] }
 0x26e   : > { %17225 = vst [vmem:[#allocation55_spill] sm:$0xff] %v13449_v57  ;;  %17226 = vst [vmem:[#allocation39_spill] sm:$0xff] %v13452_v45  ;;  %v13467_v30 = vadd.f32 %v13439_v49, %v2438_v58  ;;  %v13474_v33 = vmul.f32 %v13393_v47, %v3751_v18  ;;  %v2980_v17 = vmul.f32 %v13252_v0, %v13135_v42  ;;  %v17232_v58 = vrot.slane %v13060_v36, 7 }
 0x26f   : > { %3875 = vst.msk [vmem:[#allocation2 + $0xe0] sm:$0xff] %vm3846_vm5, %v13449_v57  ;;  %3878 = vst.msk [vmem:[#allocation2 + $0xf8] sm:$0xff] %vm3846_vm5, %v13452_v45  ;;  %v3008_v6 = vmul.f32 %v13294_v48, %v17230_v10  ;;  %v2286_v12 = vmul.f32 %v13304_v63, %v2249_v54  ;;  %v2387_v61 = vmul.f32 %v13393_v47, %v2350_v8  ;;  %v17233_v8 = vld [vmem:[#allocation97_spill] sm:$0xff] }
 0x270   : > { %17229 = vst [vmem:[#allocation20_spill] sm:$0xff] %v13467_v30  ;;  %v3110_v27 = vmul.f32 %v13156_v52, %v13144_v32  ;;  %3877 = vst.msk [vmem:[#allocation2 + $0xf0] sm:$0xff] %vm3846_vm5, %v13467_v30  ;;  %v3010_v41 = vmul.f32 %v13294_v48, %v2980_v17  ;;  %v3011_v42 = vmul.f32 %v13294_v48, %v13140_v50  ;;  %v5991_v59 = vld [vmem:[#allocation2 + $0xd8] sm:$0xff] }
 0x271   : > { %v3143_v18 = vadd.f32 %v13160_v37, %v17231_v24  ;;  %v3336_v53 = vmul.f32 %v13239_v26, %v13455_v23  ;;  %v2318_v46 = vadd.f32 %v2286_v12, %v2212_v28  ;;  %v3045_v32 = vsel %vm1429_vm6, %v17232_v58, %v3044_v35  ;;  %6006 = vrot.lane.b32.xlu1 %v5991_v59, %s9943_s15  ;;  %v17237_v58 = vld [vmem:[#allocation83_spill] sm:$0xff] }
 0x272   : > { %v3047_v15 = vsel %vm1429_vm6, %v3044_v35, %v3046_v31  ;;  %v3142_v54 = vadd.f32 %v3110_v27, %v3008_v6  ;;  %v3080_v50 = vmul.f32 %v13252_v0, %v3045_v32  ;;  %v3176_v48 = vmul.f32 %v12817_v43, %v3045_v32  ;;  %v17235_v27 = vld [vmem:[#allocation32_spill] sm:$0xff]  ;;  %v17238_v32 = vld [vmem:[#allocation46_spill] sm:$0xff] }
 0x273   : > { %v3113_v37 = vmul.f32 %v13156_v52, %v3047_v15  ;;  %v3208_v26 = vmul.f32 %v13345_v62, %v3047_v15  ;;  %v2419_v28 = vadd.f32 %v2387_v61, %v2318_v46  ;;  %v3398_v29 = vmul.f32 %v13304_v63, %v13455_v23 }
 0x274   : > { %v3428_v17 = vadd.f32 %v17233_v8, %v13227_v55  ;;  %v3492_v31 = vrot.slane %v13455_v23, 1  ;;  %v3112_v10 = vmul.f32 %v13156_v52, %v3080_v50  ;;  %v3207_v0 = vmul.f32 %v13345_v62, %v3176_v48  ;;  %v17239_v50 = vld [vmem:[#allocation80_spill] sm:$0xff] }
 0x275   : > { %v3145_v6 = vadd.f32 %v3113_v37, %v3011_v42  ;;  %v3240_v12 = vadd.f32 %v3208_v26, %v3143_v18  ;;  %v13513_v35 = vadd.f32 %v13439_v49, %v2419_v28  ;;  %v17234_v43 = vrot.slane %v13060_v36, 1  ;;  %v17236_v42 = vld [vmem:[#allocation10_spill] sm:$0xff]  ;;  %v17240_v48 = vld [vmem:[#allocation96_spill] sm:$0xff]  ;;  %v17241_v28 = vld [vmem:[#allocation95_spill] sm:$0xff] }
 0x276   : > { %v3585_v24 = vmul.f32 %v13189_v19, %v17235_v27  ;;  %v3586_v55 = vmul.f32 %v13189_v19, %v13284_v7  ;;  %v5904_v23 = vld [vmem:[#allocation2 + $0xe0] sm:$0xff]  ;;  %v3144_v59 = vadd.f32 %v3112_v10, %v3010_v41  ;;  %v3239_v52 = vadd.f32 %v3207_v0, %v3142_v54 }
 0x277   : > { %v3493_v61 = vsel %vm2038_vm7, %v17234_v43, %v3492_v31  ;;  %v3242_v46 = vadd.f32 %v3145_v6, %v17236_v42  ;;  %v3303_v18 = vadd.f32 %v17237_v58, %v3240_v12  ;;  %5918 = vrot.lane.b32.xlu0 %v5904_v23, %s9943_s15  ;;  %3858 = vst.msk [vmem:[#allocation2 + $0x58] sm:$0xff] %vm3846_vm5, %v13513_v35  ;;  %v3400_v36 = vmul.f32 0.0, %v13304_v63  ;;  %v17247_v42 = vld [vmem:[#allocation73_spill] sm:$0xff] }
 0x278   : > { %8753 = vmatmul.mubr.msk.f32.gmra.mxu0 %vm3846_vm5, %v13513_v35  ;;  %8785 = vmatmul.mubr.msk.f32.gmra.mxu1 %vm3846_vm5, %v13513_v35  ;;  %v3556_v7 = vmul.f32 %v13259_v60, %v3493_v61  ;;  %v3587_v41 = vmul.f32 %v13189_v19, %v13179_v5  ;;  %v3616_v15 = vadd.f32 %v17238_v32, %v3428_v17 }
 0x279   : > { %v3241_v54 = vadd.f32 %v3209_v51, %v3144_v59  ;;  %v3302_v37 = vadd.f32 %v17239_v50, %v3239_v52  ;;  %v3305_v26 = vadd.f32 %v17240_v48, %v3242_v46  ;;  %v3367_v8 = vadd.f32 %v17241_v28, %v3303_v18  ;;  %4167 = vmatprep.mubr.f32.mxu0 %v16937_v11  ;;  %v17248_v46 = vld [vmem:[#allocation76_spill] sm:$0xff]  ;;  %v17249_v18 = vld [vmem:[#allocation82_spill] sm:$0xff]  ;;  %v17252_v28 = vld [vmem:[#allocation69_spill] sm:$0xff] }
 0x27a   : > { %v3588_v10 = vmul.f32 %v13189_v19, %v3556_v7  ;;  %v3622_v60 = vsel %vm2038_vm7, %v3492_v31, %v3621_v13  ;;  %v3655_v6 = vmul.f32 %v13255_v3, %v3493_v61  ;;  %v3686_v17 = vmul.f32 %v13333_v34, %v13179_v5  ;;  %4424 = vmatprep.mubr.f32.mxu1 %v16937_v11  ;;  %v17242_v31 = vld [vmem:[#allocation29_spill] sm:$0xff] }
 0x27b   : > { %v3304_v51 = vadd.f32 %v13126_v25, %v3241_v54  ;;  %v3366_v0 = vadd.f32 %v13149_v1, %v3302_v37  ;;  %v3369_v12 = vadd.f32 %v13409_v56, %v3305_v26  ;;  %v3430_v43 = vadd.f32 %v13413_v21, %v3367_v8  ;;  %v17250_v37 = vld [vmem:[#allocation72_spill] sm:$0xff]  ;;  %v17251_v26 = vld [vmem:[#allocation26_spill] sm:$0xff] }
 0x27c   : > { %v3687_v19 = vmul.f32 %v13333_v34, %v3655_v6  ;;  %v3688_v14 = vmul.f32 %v13333_v34, %v3622_v60  ;;  %v3717_v13 = vadd.f32 %v13205_v2, %v3616_v15  ;;  %v3749_v3 = vmul.f32 %v12827_v9, %v3493_v61  ;;  %8754 = vmatmul.mubr.msk.f32.gmra.mxu0 %vm3846_vm5, %v17242_v31  ;;  %v17243_v2 = vld [vmem:[#allocation36_spill] sm:$0xff]  ;;  %v17245_v34 = vld [vmem:[#allocation71_spill] sm:$0xff] }
 0x27d   : > { %v3368_v5 = vadd.f32 %v3336_v53, %v3304_v51  ;;  %v3429_v27 = vadd.f32 %v3398_v29, %v3366_v0  ;;  %v3432_v25 = vadd.f32 %v3400_v36, %v3369_v12  ;;  %v3618_v23 = vadd.f32 %v3586_v55, %v3430_v43  ;;  %8786 = vmatmul.mubr.msk.f32.gmra.mxu1 %vm3846_vm5, %v17242_v31  ;;  %v17255_v0 = vld [vmem:[#allocation85_spill] sm:$0xff] }
 0x27e   : > { %v3779_v1 = vmul.f32 %v13393_v47, %v3749_v3  ;;  %v3780_v56 = vmul.f32 %v13393_v47, %v3622_v60  ;;  %4173 = vmatprep.mubr.f32.mxu0 %v16937_v11  ;;  %4430 = vmatprep.mubr.f32.mxu1 %v16937_v11  ;;  %v17244_v9 = vrot.slane %v17243_v2, 1  ;;  %v17246_v21 = vrot.slane %v17245_v34, 1  ;;  %v17253_v60 = vld [vmem:[#allocation64_spill] sm:$0xff]  ;;  %v17261_v2 = vld [vmem:[#allocation34_spill] sm:$0xff] }
 0x27f   : > { %v3431_v29 = vadd.f32 %v3400_v36, %v3368_v5  ;;  %v3617_v61 = vadd.f32 %v3585_v24, %v3429_v27  ;;  %v3620_v55 = vadd.f32 %v3588_v10, %v3432_v25  ;;  %v3719_v59 = vadd.f32 %v3687_v19, %v3618_v23  ;;  %v17260_v23 = vld [vmem:[#allocation65_spill] sm:$0xff] }
 0x280   : > { %v13569_v53 = vsel %vm2038_vm7, %v17246_v21, %v17244_v9  ;;  %v3809_v52 = vadd.f32 %v3779_v1, %v3717_v13  ;;  %8755 = vmatmul.mubr.msk.f32.gmra.mxu0 %vm3846_vm5, %v17247_v42  ;;  %v2185_v58 = vmul.f32 %v13345_v62, %v17248_v46  ;;  %v2291_v7 = vmul.f32 %v13304_v63, %v17249_v18  ;;  %v17259_v13 = vld [vmem:[#allocation75_spill] sm:$0xff] }
 0x281   : > { %v2392_v32 = vmul.f32 %v13393_v47, %v13569_v53  ;;  %v3619_v15 = vadd.f32 %v3587_v41, %v3431_v29  ;;  %v3718_v54 = vadd.f32 %v3686_v17, %v3617_v61  ;;  %v3721_v36 = vadd.f32 %v13460_v39, %v3620_v55  ;;  %8787 = vmatmul.mubr.msk.f32.gmra.mxu1 %vm3846_vm5, %v17247_v42  ;;  %v17254_v17 = vld [vmem:[#allocation79_spill] sm:$0xff]  ;;  %v17262_v61 = vld [vmem:[#allocation84_spill] sm:$0xff] }
 0x282   : > { %v3811_v24 = vadd.f32 %v13474_v33, %v3719_v59  ;;  %v3841_v50 = vadd.f32 %v13439_v49, %v3809_v52  ;;  %4179 = vmatprep.mubr.f32.mxu0 %v16937_v11  ;;  %4436 = vmatprep.mubr.f32.mxu1 %v16937_v11  ;;  %v2217_v48 = vadd.f32 %v2185_v58, %v17250_v37  ;;  %v17256_v12 = vrot.slane %v17255_v0, 1  ;;  %v17263_v46 = vld [vmem:[#allocation87_spill] sm:$0xff] }
 0x283   : > { %v1886_v8 = vadd.f32 %v17252_v28, %v17251_v26  ;;  %v3720_v41 = vadd.f32 %v3688_v14, %v3619_v15  ;;  %v3810_v10 = vadd.f32 %v3780_v56, %v3718_v54  ;;  %v3813_v39 = vadd.f32 %v3721_v36, %v13289_v20  ;;  %v17258_v14 = vld [vmem:[#allocation81_spill] sm:$0xff]  ;;  %v17265_v15 = vld [vmem:[#allocation88_spill] sm:$0xff]  ;;  %v17266_v54 = vld [vmem:[#allocation38_spill] sm:$0xff] }
 0x284   : > { %v3843_v33 = vadd.f32 %v13439_v49, %v3811_v24  ;;  %3906 = vst.msk [vmem:[#allocation3 + $0xd8] sm:$0xff] %vm3846_vm5, %v3841_v50  ;;  %8756 = vmatmul.mubr.msk.f32.gmra.mxu0 %vm3846_vm5, %v17253_v60  ;;  %v2323_v6 = vadd.f32 %v2291_v7, %v2217_v48  ;;  %v17257_v43 = vmov %v17244_v9  ;;  %v2149_v3 = vmul.f32 %v17259_v13, %v17258_v14  ;;  %v17264_v7 = vld [vmem:[#allocation6_spill] sm:$0xff]  ;;  %v17268_v26 = vld [vmem:[#allocation8_spill] sm:$0xff] }
 0x285   : > { %v1955_v51 = vadd.f32 %v17254_v17, %v1886_v8  ;;  %v2079_v19 = vsel %vm2038_vm7, %v17257_v43, %v17256_v12  ;;  %v3812_v20 = vadd.f32 %v3720_v41, %v13400_v16  ;;  %v3842_v5 = vadd.f32 %v13439_v49, %v3810_v10  ;;  %8788 = vmatmul.mubr.msk.f32.gmra.mxu1 %vm3846_vm5, %v17253_v60  ;;  %v17267_v50 = vld [vmem:[#allocation90_spill] sm:$0xff]  ;;  %v17269_v41 = vld [vmem:[#allocation77_spill] sm:$0xff] }
 0x286   : > { %v3845_v27 = vadd.f32 %v13439_v49, %v3813_v39  ;;  %3908 = vst.msk [vmem:[#allocation3 + $0xe8] sm:$0xff] %vm3846_vm5, %v3843_v33  ;;  %4185 = vmatprep.mubr.f32.mxu0 %v16937_v11  ;;  %4442 = vmatprep.mubr.f32.mxu1 %v16937_v11  ;;  %v2424_v25 = vadd.f32 %v2392_v32, %v2323_v6 }
 0x287   : > { %v2023_v1 = vadd.f32 %v17260_v23, %v1955_v51  ;;  %v2186_v56 = vmul.f32 %v13345_v62, %v2149_v3  ;;  %v2255_v16 = vmul.f32 %v17259_v13, %v17261_v2  ;;  %v3844_v9 = vadd.f32 %v13439_v49, %v3812_v20  ;;  %3907 = vst.msk [vmem:[#allocation3 + $0xe0] sm:$0xff] %vm3846_vm5, %v3842_v5  ;;  %v17274_v23 = vld [vmem:[#allocation27_spill] sm:$0xff] }
 0x288   : > { %3910 = vst.msk [vmem:[#allocation3 + $0xf8] sm:$0xff] %vm3846_vm5, %v3845_v27  ;;  %v2356_v34 = vmul.f32 %v17259_v13, %v2079_v19  ;;  %v2187_v21 = vmul.f32 %v13345_v62, %v17249_v18  ;;  %v2293_v29 = vmul.f32 %v13304_v63, %v13569_v53  ;;  %8757 = vmatmul.mubr.msk.f32.gmra.mxu0 %vm3846_vm5, %v17262_v61  ;;  %v17271_v13 = vld [vmem:[#allocation92_spill] sm:$0xff]  ;;  %v17273_v27 = vld [vmem:[#allocation42_spill] sm:$0xff] }
 0x289   : > { %v13625_v55 = vadd.f32 %v13439_v49, %v2424_v25  ;;  %v2218_v59 = vadd.f32 %v2186_v56, %v2023_v1  ;;  %v2292_v52 = vmul.f32 %v13304_v63, %v2255_v16  ;;  %v2394_v58 = vmul.f32 %v13393_v47, %v17263_v46  ;;  %3909 = vst.msk [vmem:[#allocation3 + $0xf0] sm:$0xff] %vm3846_vm5, %v3844_v9  ;;  %v17275_v1 = vld [vmem:[#allocation9_spill] sm:$0xff] }
 0x28a   : > { %8789 = vmatmul.mubr.msk.f32.gmra.mxu1 %vm3846_vm5, %v17262_v61  ;;  %4191 = vmatprep.mubr.f32.mxu0 %v16937_v11  ;;  %v2393_v18 = vmul.f32 %v13393_v47, %v2356_v34  ;;  %v2219_v32 = vadd.f32 %v2187_v21, %v17264_v7  ;;  %v1888_v36 = vadd.f32 %v17266_v54, %v17265_v15  ;;  %v5905_v34 = vld [vmem:[#allocation2 + $0xe8] sm:$0xff]  ;;  %v17277_v21 = vld [vmem:[#allocation30_spill] sm:$0xff] }
 0x28b   : > { %4448 = vmatprep.mubr.f32.mxu1 %v16937_v11  ;;  %3863 = vst.msk [vmem:[#allocation2 + $0x80] sm:$0xff] %vm3846_vm5, %v13625_v55  ;;  %v2324_v24 = vadd.f32 %v2292_v52, %v2218_v59  ;;  %v2151_v37 = vmul.f32 %v17267_v50, %v17261_v2  ;;  %v2257_v48 = vmul.f32 %v17267_v50, %v2079_v19  ;;  %v13647_v39 = vld [vmem:[#allocation3 + $0xd8] sm:$0xff]  ;;  %v17280_v54 = vld [vmem:[#allocation22_spill] sm:$0xff] }
 0x28c   : > { %v2358_v28 = vmul.f32 %v17267_v50, %v17268_v26  ;;  %v2325_v8 = vadd.f32 %v2293_v29, %v2219_v32  ;;  %v1957_v10 = vadd.f32 %v17269_v41, %v1888_v36  ;;  %v2189_v33 = vmul.f32 %v13345_v62, %v13569_v53  ;;  %8758 = vmatmul.mubr.msk.f32.gmra.mxu0 %vm3846_vm5, %v13625_v55  ;;  %v17270_v53 = vld [vmem:[#allocation50_spill] sm:$0xff]  ;;  %v17278_v52 = vld [vmem:[#allocation57_spill] sm:$0xff] }
 0x28d   : > { %v2295_v6 = vmul.f32 %v13304_v63, %v17263_v46  ;;  %v2425_v17 = vadd.f32 %v2393_v18, %v2324_v24  ;;  %v2188_v51 = vmul.f32 %v13345_v62, %v2151_v37  ;;  %v2294_v0 = vmul.f32 %v13304_v63, %v2257_v48  ;;  %4197 = vmatprep.mubr.f32.mxu0 %v16937_v11  ;;  %v17279_v18 = vld [vmem:[#allocation99_spill] sm:$0xff] }
 0x28e   : > { %v2395_v12 = vmul.f32 %v13393_v47, %v2358_v28  ;;  %8790 = vmatmul.mubr.msk.f32.gmra.mxu1 %vm3846_vm5, %v13625_v55  ;;  %v2426_v43 = vadd.f32 %v2394_v58, %v2325_v8  ;;  %v2025_v14 = vadd.f32 %v17270_v53, %v1957_v10  ;;  %v2221_v3 = vadd.f32 %v2189_v33, %v17271_v13  ;;  %v13669_v5 = vld [vmem:[#allocation3 + $0xe0] sm:$0xff]  ;;  %v13707_v48 = vld [vmem:[#allocation3 + $0xe8] sm:$0xff]  ;;  %v13722_v8 = vpop.permute.xlu0 %5838  ;;  %v6165_v53 = vld [vmem:[#allocation3 + $0xb8] sm:$0xff] }
 0x28f   : > { %4454 = vmatprep.mubr.f32.mxu1 %v16937_v11  ;;  %v13665_v20 = vadd.f32 %v13439_v49, %v2425_v17  ;;  %6014 = vrot.lane.b32.xlu1 %v13647_v39, %s9944_s30  ;;  %v2396_v25 = vmul.f32 %v13393_v47, %v17273_v27  ;;  %v1890_v56 = vadd.f32 %v17275_v1, %v17274_v23  ;;  %v13712_v28 = vld [vmem:[#allocation3 + $0x68] sm:$0xff]  ;;  %v13733_v33 = vld [vmem:[#allocation3 + $0xa0] sm:$0xff]  ;;  %v13745_v17 = vld [vmem:[#allocation3 + $0xf8] sm:$0xff] }
 0x290   : > { %v13676_v2 = vadd.f32 %v13439_v49, %v2426_v43  ;;  %v2220_v16 = vadd.f32 %v2188_v51, %v2025_v14  ;;  %5926 = vrot.lane.b32.xlu0 %v13669_v5, %s9944_s30  ;;  %v2327_v9 = vadd.f32 %v2295_v6, %v2221_v3  ;;  %v2153_v29 = vmul.f32 %v17277_v21, %v2079_v19  ;;  %v13685_v59 = vld [vmem:[#allocation3 + $0xf0] sm:$0xff]  ;;  %v17284_v14 = vld [vmem:[#allocation13_spill] sm:$0xff] }
 0x291   : > { %17272 = vst [vmem:[#allocation78_spill] sm:$0xff] %v13665_v20  ;;  %3864 = vst.msk [vmem:[#allocation2 + $0x88] sm:$0xff] %vm3846_vm5, %v13665_v20  ;;  %8759 = vmatmul.mubr.msk.f32.gmra.mxu0 %vm3846_vm5, %v13665_v20  ;;  %v1959_v46 = vadd.f32 %v17278_v52, %v1890_v56  ;;  %v2259_v58 = vmul.f32 %v17277_v21, %v17268_v26  ;;  %v2360_v7 = vmul.f32 %v17277_v21, %v17279_v18  ;;  %v6665_v13 = vld [vmem:[#allocation2 + $0x58] sm:$0xff]  ;;  %v6246_v3 = vld [vmem:[#allocation3 + $0x50] sm:$0xff]  ;;  %v13808_v21 = vpop.permute.xlu1 %5912 }
 0x292   : > { %17276 = vst [vmem:[#allocation98_spill] sm:$0xff] %v13676_v2  ;;  %8791 = vmatmul.mubr.msk.f32.gmra.mxu1 %vm3846_vm5, %v13665_v20  ;;  %4203 = vmatprep.mubr.f32.mxu0 %v16937_v11  ;;  %3865 = vst.msk [vmem:[#allocation2 + $0x90] sm:$0xff] %vm3846_vm5, %v13676_v2  ;;  %v2326_v19 = vadd.f32 %v2294_v0, %v2220_v16  ;;  %v2428_v32 = vadd.f32 %v2396_v25, %v2327_v9  ;;  %v13747_v51 = vpop.permute.xlu0 %5836  ;;  %v13753_v0 = vld [vmem:[#allocation3 + $0xa8] sm:$0xff]  ;;  %v17285_v25 = vld [vmem:[#allocation40_spill] sm:$0xff] }
 0x293   : > { %v2190_v15 = vmul.f32 %v13345_v62, %v2153_v29  ;;  %4460 = vmatprep.mubr.f32.mxu1 %v16937_v11  ;;  %5920 = vrot.lane.b32.xlu1 %v5905_v34, %s9943_s15  ;;  %v2027_v36 = vadd.f32 %v17280_v54, %v1959_v46  ;;  %v2296_v24 = vmul.f32 %v13304_v63, %v2259_v58  ;;  %v17286_v1 = vld [vmem:[#allocation53_spill] sm:$0xff]  ;;  %v6664_v56 = vld [vmem:[#allocation2 + $0x50] sm:$0xff]  ;;  %v17287_v9 = vld [vmem:[#allocation70_spill] sm:$0xff]  ;;  %v4097_v46 = vpop.f32.mrf.mxu0  ;;  %v4354_v54 = vpop.f32.mrf.mxu1 }
 0x294   : > { %v2427_v50 = vadd.f32 %v2395_v12, %v2326_v19  ;;  %v13703_v37 = vadd.f32 %v13439_v49, %v2428_v32  ;;  %5852 = vrot.lane.b32.xlu0 %v13685_v59, %s9944_s30  ;;  %v2397_v26 = vmul.f32 %v13393_v47, %v2360_v7  ;;  %v5831_v47 = vld [vmem:[#allocation2 + $0xf8] sm:$0xff]  ;;  %v17288_v29 = vld [vmem:[#allocation31_spill] sm:$0xff] }
 0x295   : > { %8760 = vmatmul.mubr.msk.f32.gmra.mxu0 %vm3846_vm5, %v13676_v2  ;;  %v2222_v62 = vadd.f32 %v2190_v15, %v2027_v36  ;;  %v6247_v12 = vld [vmem:[#allocation3 + $0x58] sm:$0xff]  ;;  %v17289_v58 = vld [vmem:[#allocation59_spill] sm:$0xff]  ;;  %v4099_v18 = vpop.f32.mrf.mxu0  ;;  %v13824_v7 = vpop.permute.xlu1 %5998 }
 0x296   : > { %17281 = vst [vmem:[#allocation100_spill] sm:$0xff] %v13703_v37  ;;  %8792 = vmatmul.mubr.msk.f32.gmra.mxu1 %vm3846_vm5, %v13676_v2  ;;  %4209 = vmatprep.mubr.f32.mxu0 %v16937_v11  ;;  %v13718_v63 = vadd.f32 %v13439_v49, %v2427_v50  ;;  %3867 = vst.msk [vmem:[#allocation2 + $0xa0] sm:$0xff] %vm3846_vm5, %v13703_v37  ;;  %v13768_v43 = vpop.permute.xlu0 %5910  ;;  %v13846_v36 = vld [vmem:[#allocation2 + $0x48] sm:$0xff] }
 0x297   : > { %4466 = vmatprep.mubr.f32.mxu1 %v16937_v11  ;;  %v2328_v41 = vadd.f32 %v2296_v24, %v2222_v62  ;;  %5928 = vrot.lane.b32.xlu1 %v13707_v48, %s9944_s30  ;;  %v4103_v32 = vpop.f32.mrf.mxu0  ;;  %v6332_v24 = vld [vmem:[#allocation3 + $0x60] sm:$0xff] }
 0x298   : > { %17282 = vst [vmem:[#allocation7_spill] sm:$0xff] %v13718_v63  ;;  %3866 = vst.msk [vmem:[#allocation2 + $0x98] sm:$0xff] %vm3846_vm5, %v13718_v63  ;;  %6602 = vrot.lane.b32.xlu0 %v13712_v28, %s9944_s30 }
 0x299   : > { %8761 = vmatmul.mubr.msk.f32.gmra.mxu0 %vm3846_vm5, %v13718_v63  ;;  %v2429_v10 = vadd.f32 %v2397_v26, %v2328_v41  ;;  %v13838_v15 = vpop.permute.xlu1 %6082  ;;  %v4105_v62 = vpop.f32.mrf.mxu0  ;;  %v8870_v26 = vmul.f32 -1.442695, %v4099_v18 }
 0x29a   : > { %8793 = vmatmul.mubr.msk.f32.gmra.mxu1 %vm3846_vm5, %v13718_v63  ;;  %4215 = vmatprep.mubr.f32.mxu0 %v16937_v11  ;;  %v13781_v27 = vpop.permute.xlu0 %5996 }
 0x29b   : > { %4472 = vmatprep.mubr.f32.mxu1 %v16937_v11  ;;  %v13740_v6 = vadd.f32 %v13439_v49, %v2429_v10  ;;  %5846 = vrot.lane.b32.xlu1 %v5831_v47, %s9943_s15  ;;  %v5830_v49 = vld [vmem:[#allocation2 + $0xf0] sm:$0xff]  ;;  %v8838_v10 = vmul.f32 -1.442695, %v4097_v46  ;;  %9379 = vpow2.f32 %v8870_v26  ;;  %v6752_v26 = vld [vmem:[#allocation3 + $0x40] sm:$0xff] }
 0x29c   : > { %6670 = vrot.lane.b32.xlu0 %v13733_v33, %s9942_s23 }
 0x29d   : > { %17283 = vst [vmem:[#allocation17_spill] sm:$0xff] %v13740_v6  ;;  %8762 = vmatmul.mubr.msk.f32.gmra.mxu0 %vm3846_vm5, %v13703_v37  ;;  %3868 = vst.msk [vmem:[#allocation2 + $0xa8] sm:$0xff] %vm3846_vm5, %v13740_v6  ;;  %v6248_v34 = vld [vmem:[#allocation2 + $0xa0] sm:$0xff]  ;;  %v13863_v47 = vpop.permute.xlu1 %6168  ;;  %9381 = vpow2.f32 %v8838_v10 }
 0x29e   : > { %8794 = vmatmul.mubr.msk.f32.gmra.mxu1 %vm3846_vm5, %v13703_v37  ;;  %4221 = vmatprep.mubr.f32.mxu0 %v16937_v11  ;;  %v13796_v16 = vpop.permute.xlu0 %6084 }
 0x29f   : > { %4478 = vmatprep.mubr.f32.mxu1 %v16937_v11  ;;  %5854 = vrot.lane.b32.xlu1 %v13745_v17, %s9944_s30  ;;  %v13861_v41 = vld [vmem:[#allocation2 + $0x98] sm:$0xff] }
 0x2a0   : > { %6672 = vrot.lane.b32.xlu0 %v13753_v0, %s9942_s23 }
 0x2a1   : > { %8763 = vmatmul.mubr.msk.f32.gmra.mxu0 %vm3846_vm5, %v13740_v6 }
 0x2a2   : > { %8795 = vmatmul.mubr.msk.f32.gmra.mxu1 %vm3846_vm5, %v13740_v6  ;;  %4227 = vmatprep.mubr.f32.mxu0 %v16937_v11  ;;  %v13812_v52 = vpop.permute.xlu0 %6170 }
 0x2a3   : > { %4484 = vmatprep.mubr.f32.mxu1 %v16937_v11  ;;  %5844 = vrot.lane.b32.xlu1 %v5830_v49, %s9943_s15  ;;  %v13872_v49 = vld [vmem:[#allocation2 + $0x40] sm:$0xff] }
 0x2a4   : > { %6256 = vrot.lane.b32.xlu0 %v6247_v12, %s9942_s23  ;;  %v6249_v23 = vld [vmem:[#allocation2 + $0xa8] sm:$0xff] }
 0x2a5   : > { %8764 = vmatmul.mubr.msk.f32.gmra.mxu0 %vm3846_vm5, %v17284_v14 }
 0x2a6   : > { %8796 = vmatmul.mubr.msk.f32.gmra.mxu1 %vm3846_vm5, %v17284_v14  ;;  %4233 = vmatprep.mubr.f32.mxu0 %v16937_v11  ;;  %v13829_v19 = vpop.permute.xlu0 %6594  ;;  %v13934_v14 = vld [vmem:[#allocation2 + $0x88] sm:$0xff] }
 0x2a7   : > { %4490 = vmatprep.mubr.f32.mxu1 %v16937_v11  ;;  %6186 = vrot.lane.b32.xlu1 %v6165_v53, %s9944_s30 }
 0x2a8   : > { %6680 = vrot.lane.b32.xlu0 %v6665_v13, %s9943_s15 }
 0x2a9   : > { %8765 = vmatmul.mubr.msk.f32.gmra.mxu0 %vm3846_vm5, %v17285_v25 }
 0x2aa   : > { %8797 = vmatmul.mubr.msk.f32.gmra.mxu1 %vm3846_vm5, %v17285_v25  ;;  %4239 = vmatprep.mubr.f32.mxu0 %v16937_v11  ;;  %v13850_v50 = vpop.permute.xlu0 %6522 }
 0x2ab   : > { %4496 = vmatprep.mubr.f32.mxu1 %v16937_v11  ;;  %6254 = vrot.lane.b32.xlu1 %v6246_v3, %s9942_s23 }
 0x2ac   : > { %6264 = vrot.lane.b32.xlu0 %v6249_v23, %s9943_s15 }
 0x2ad   : > { %8766 = vmatmul.mubr.msk.f32.gmra.mxu0 %vm3846_vm5, %v17286_v1 }
 0x2ae   : > { %8798 = vmatmul.mubr.msk.f32.gmra.mxu1 %vm3846_vm5, %v17286_v1  ;;  %4245 = vmatprep.mubr.f32.mxu0 %v16937_v11  ;;  %v9926_v1 = vld [vmem:[#allocation3 + $0x98] sm:$0xff] }
 0x2af   : > { %4502 = vmatprep.mubr.f32.mxu1 %v16937_v11  ;;  %6678 = vrot.lane.b32.xlu1 %v6664_v56, %s9943_s15  ;;  %v8902_v56 = vmul.f32 -1.442695, %v4354_v54 }
 0x2b0   : > { %6688 = vrot.lane.b32.xlu0 %v6247_v12, %s9944_s30  ;;  %v13874_v12 = vpop.permute.xlu0 %6530 }
 0x2b1   : > { %8767 = vmatmul.mubr.msk.f32.gmra.mxu0 %vm3846_vm5, %v17287_v9 }
 0x2b2   : > { %8799 = vmatmul.mubr.msk.f32.gmra.mxu1 %vm3846_vm5, %v17287_v9  ;;  %4251 = vmatprep.mubr.f32.mxu0 %v16937_v11  ;;  %v13919_v9 = vld [vmem:[#allocation2 + $0x38] sm:$0xff] }
 0x2b3   : > { %4508 = vmatprep.mubr.f32.mxu1 %v16937_v11  ;;  %6262 = vrot.lane.b32.xlu1 %v6248_v34, %s9943_s15  ;;  %v13879_v23 = vpop.permute.xlu1 %6592 }
 0x2b4   : > { %6756 = vrot.lane.b32.xlu0 %v17288_v29, %s9942_s23  ;;  %v13887_v29 = vld [vmem:[#allocation2 + $0x90] sm:$0xff] }
 0x2b5   : > { %8768 = vmatmul.mubr.msk.f32.gmra.mxu0 %vm3846_vm5, %v17289_v58 }
 0x2b6   : > { %8800 = vmatmul.mubr.msk.f32.gmra.mxu1 %vm3846_vm5, %v17289_v58  ;;  %4257 = vmatprep.mubr.f32.mxu0 %v16937_v11 }
 0x2b7   : > { %4514 = vmatprep.mubr.f32.mxu1 %v16937_v11  ;;  %6686 = vrot.lane.b32.xlu1 %v6246_v3, %s9944_s30  ;;  %v6753_v3 = vld [vmem:[#allocation3 + $0x48] sm:$0xff] }
 0x2b8   : > { %6758 = vrot.lane.b32.xlu0 %v6165_v53, %s9942_s23  ;;  %v8839_v53 = vmul.f32 -1.442695, %v4103_v32  ;;  %v13895_v32 = vpop.permute.xlu0 %6514 }
 0x2b9   : > { %8769 = vmatmul.mubr.msk.f32.gmra.mxu0 %vm3846_vm5, %v13416_v22 }
 0x2ba   : > { %8801 = vmatmul.mubr.msk.f32.gmra.mxu1 %vm3846_vm5, %v13416_v22  ;;  %4263 = vmatprep.mubr.f32.mxu0 %v16937_v11 }
 0x2bb   : > { %4520 = vmatprep.mubr.f32.mxu1 %v16937_v11  ;;  %6270 = vrot.lane.b32.xlu1 %v13733_v33, %s9944_s30  ;;  %v8871_v33 = vmul.f32 -1.442695, %v4105_v62  ;;  %v13899_v62 = vpop.permute.xlu1 %6600 }
 0x2bc   : > { %6342 = vrot.lane.b32.xlu0 %v13712_v28, %s9942_s23  ;;  %v13857_v28 = vpop.f32.mrf.mxu1 }
 0x2bd   : > { %8770 = vmatmul.mubr.msk.f32.gmra.mxu0 %vm3846_vm5, %v13449_v57  ;;  %17290 = vst [vmem:[#allocation47_spill] sm:$0xff] %v13857_v28  ;;  %9383 = vpow2.f32 %v8871_v33 }
 0x2be   : > { %8802 = vmatmul.mubr.msk.f32.gmra.mxu1 %vm3846_vm5, %v13449_v57  ;;  %4269 = vmatprep.mubr.f32.mxu0 %v16937_v11  ;;  %v4360_v13 = vpop.f32.mrf.mxu1  ;;  %9385 = vpow2.f32 %v8839_v53  ;;  %v9380_v53 = vpop.eup %9379  ;;  %v17296_v57 = vld [vmem:[#allocation35_spill] sm:$0xff] }
 0x2bf   : > { %4526 = vmatprep.mubr.f32.mxu1 %v16937_v11  ;;  %6272 = vrot.lane.b32.xlu1 %v13753_v0, %s9944_s30  ;;  %v4109_v0 = vpop.f32.mrf.mxu0  ;;  %v8903_v46 = vmul.f32 -1.442695, %v4360_v13  ;;  %9387 = vpow2.f32 %v8902_v56  ;;  %v13908_v13 = vpop.permute.xlu0 %6512  ;;  %v5090_v22 = vadd.f32 1.0, %v9380_v53 }
 0x2c0   : > { %6766 = vrot.lane.b32.xlu0 %v13846_v36, %s9943_s15  ;;  %v13889_v18 = vpop.f32.mrf.mxu1 }
 0x2c1   : > { %8771 = vmatmul.mubr.msk.f32.gmra.mxu0 %vm3846_vm5, %v13442_v38  ;;  %v4111_v34 = vpop.f32.mrf.mxu0  ;;  %17291 = vst [vmem:[#allocation16_spill] sm:$0xff] %v13889_v18  ;;  %9389 = vpow2.f32 %v8903_v46  ;;  %v6419_v46 = vld [vmem:[#allocation3 + $0x78] sm:$0xff]  ;;  %v9928_v18 = vld [vmem:[#allocation3 + $0x80] sm:$0xff] }
 0x2c2   : > { %8803 = vmatmul.mubr.msk.f32.gmra.mxu1 %vm3846_vm5, %v13442_v38  ;;  %4275 = vmatprep.mubr.f32.mxu0 %v16937_v11  ;;  %v4366_v10 = vpop.f32.mrf.mxu1 }
 0x2c3   : > { %4532 = vmatprep.mubr.f32.mxu1 %v16937_v11  ;;  %6340 = vrot.lane.b32.xlu1 %v6332_v24, %s9942_s23  ;;  %v4115_v54 = vpop.f32.mrf.mxu0  ;;  %v17292_v24 = vld [vmem:[#allocation44_spill] sm:$0xff] }
 0x2c4   : > { %6350 = vrot.lane.b32.xlu0 %v13861_v41, %s9943_s15  ;;  %v13910_v56 = vpop.f32.mrf.mxu1 }
 0x2c5   : > { %8772 = vmatmul.mubr.msk.f32.gmra.mxu0 %vm3846_vm5, %v13467_v30  ;;  %v4117_v33 = vpop.f32.mrf.mxu0  ;;  %17294 = vst [vmem:[#allocation89_spill] sm:$0xff] %v13910_v56 }
 0x2c6   : > { %8804 = vmatmul.mubr.msk.f32.gmra.mxu1 %vm3846_vm5, %v13467_v30  ;;  %4281 = vmatprep.mubr.f32.mxu0 %v16937_v11  ;;  %v8872_v30 = vmul.f32 -1.442695, %v4111_v34  ;;  %v4372_v58 = vpop.f32.mrf.mxu1  ;;  %v8873_v25 = vmul.f32 -1.442695, %v4117_v33  ;;  %v17300_v33 = vld [vmem:[#allocation93_spill] sm:$0xff] }
 0x2c7   : > { %4538 = vmatprep.mubr.f32.mxu1 %v16937_v11  ;;  %6764 = vrot.lane.b32.xlu1 %v13872_v49, %s9943_s15 }
 0x2c8   : > { %6774 = vrot.lane.b32.xlu0 %v6753_v3, %s9944_s30  ;;  %v8840_v3 = vmul.f32 -1.442695, %v4109_v0  ;;  %v8841_v0 = vmul.f32 -1.442695, %v4115_v54 }
 0x2c9   : > { %8773 = vmatmul.mubr.msk.f32.gmra.mxu0 %vm3846_vm5, %v13452_v45 }
 0x2ca   : > { %8805 = vmatmul.mubr.msk.f32.gmra.mxu1 %vm3846_vm5, %v13452_v45  ;;  %4609 = vmatprep.mubr.f32.mxu0 %v16937_v11  ;;  %v8904_v45 = vmul.f32 -1.442695, %v4366_v10  ;;  %9391 = vpow2.f32 %v8840_v3  ;;  %v17298_v3 = vld [vmem:[#allocation37_spill] sm:$0xff] }
 0x2cb   : > { %6348 = vrot.lane.b32.xlu1 %v13887_v29, %s9943_s15 }
 0x2cc   : > { %6842 = vrot.lane.b32.xlu0 %v13402_v40, %s9942_s23  ;;  %v17293_v40 = vld [vmem:[#allocation43_spill] sm:$0xff]  ;;  %9393 = vpow2.f32 %v8904_v45 }
 0x2cd   : > { %8806 = vmatmul.mubr.msk.f32.vlgmr.msra.gmra.mxu0 %vm3846_vm5, %v17292_v24  ;;  %v9925_v24 = vld [vmem:[#allocation3 + $0x90] sm:$0xff]  ;;  %9395 = vpow2.f32 %v8872_v30 }
 0x2ce   : > { %4615 = vmatprep.mubr.f32.mxu0 %v16937_v11  ;;  %9397 = vrcp.f32 %v5090_v22  ;;  %v8905_v22 = vmul.f32 -1.442695, %v4372_v58  ;;  %v6839_v58 = vld [vmem:[#allocation3 + $0x38] sm:$0xff] }
 0x2cf   : > { %6772 = vrot.lane.b32.xlu1 %v6752_v26, %s9944_s30  ;;  %v13913_v26 = vpop.permute.xlu1 %6520  ;;  %9399 = vpow2.f32 %v8841_v0 }
 0x2d0   : > { %6844 = vrot.lane.b32.xlu0 %v13353_v44, %s9942_s23  ;;  %17295 = vst [vmem:[#allocation33_spill] sm:$0xff] %v13913_v26  ;;  %v9382_v44 = vpop.eup %9381 }
 0x2d1   : > { %8807 = vmatmul.mubr.msk.f32.gmra.mxu0 %vm3846_vm5, %v17293_v40  ;;  %v4121_v40 = vpop.f32.mrf.mxu0  ;;  %v9384_v38 = vpop.eup %9383  ;;  %v4898_v34 = vadd.f32 1.0, %v9382_v44 }
 0x2d2   : > { %4621 = vmatprep.mubr.f32.mxu0 %v16937_v11  ;;  %v5091_v53 = vadd.f32 1.0, %v9384_v38  ;;  %v13931_v44 = vpop.f32.mrf.mxu1 }
 0x2d3   : > { %6356 = vrot.lane.b32.xlu1 %v9925_v24, %s9944_s30  ;;  %v9386_v24 = vpop.eup %9385  ;;  %v13922_v10 = vpop.permute.xlu1 %6528  ;;  %17299 = vst [vmem:[#allocation54_spill] sm:$0xff] %v13931_v44  ;;  %9401 = vrcp.f32 %v4898_v34 }
 0x2d4   : > { %6428 = vrot.lane.b32.xlu0 %v6419_v46, %s9942_s23  ;;  %17297 = vst [vmem:[#allocation61_spill] sm:$0xff] %v13922_v10  ;;  %v9388_v46 = vpop.eup %9387  ;;  %v4123_v54 = vpop.f32.mrf.mxu0  ;;  %v9927_v10 = vld [vmem:[#allocation3 + $0x70] sm:$0xff]  ;;  %9403 = vrcp.f32 %v5091_v53 }
 0x2d5   : > { %8808 = vmatmul.mubr.msk.f32.gmra.mxu0 %vm3846_vm5, %v17296_v57  ;;  %v13926_v57 = vpop.permute.xlu0 %6586  ;;  %v9390_v45 = vpop.eup %9389  ;;  %v5282_v38 = vadd.f32 1.0, %v9388_v46  ;;  %9405 = vpow2.f32 %v8873_v25  ;;  %v13953_v25 = vld [vmem:[#allocation2 + $0x80] sm:$0xff] }
 0x2d6   : > { %4627 = vmatprep.mubr.f32.mxu0 %v16937_v11  ;;  %v4127_v30 = vpop.f32.mrf.mxu0  ;;  %v5283_v34 = vadd.f32 1.0, %v9390_v45  ;;  %v4378_v46 = vpop.f32.mrf.mxu1 }
 0x2d7   : > { %6358 = vrot.lane.b32.xlu1 %v9926_v1, %s9944_s30  ;;  %v4899_v1 = vadd.f32 1.0, %v9386_v24  ;;  %v13940_v0 = vpop.permute.xlu1 %6176  ;;  %v13942_v24 = vld [vmem:[#allocation2 + $0x30] sm:$0xff] }
 0x2d8   : > { %6852 = vrot.lane.b32.xlu0 %v13919_v9, %s9943_s15  ;;  %17301 = vst [vmem:[#allocation74_spill] sm:$0xff] %v13940_v0  ;;  %v4129_v53 = vpop.f32.mrf.mxu0  ;;  %v13955_v45 = vpop.f32.mrf.mxu1  ;;  %v13970_v0 = vld [vmem:[#allocation2 + $0x20] sm:$0xff] }
 0x2d9   : > { %8809 = vmatmul.mubr.msk.f32.gmra.mxu0 %vm3846_vm5, %v17298_v3  ;;  %9407 = vrcp.f32 %v4899_v1  ;;  %v17302_v3 = vld [vmem:[#allocation25_spill] sm:$0xff]  ;;  %v8842_v1 = vmul.f32 -1.442695, %v4121_v40  ;;  %17303 = vst [vmem:[#allocation28_spill] sm:$0xff] %v13955_v45  ;;  %v8875_v44 = vmul.f32 -1.442695, %v4129_v53 }
 0x2da   : > { %4633 = vmatprep.mubr.f32.mxu0 %v16937_v11  ;;  %9409 = vrcp.f32 %v5282_v38  ;;  %v4133_v6 = vpop.f32.mrf.mxu0  ;;  %v6838_v45 = vld [vmem:[#allocation3 + $0x30] sm:$0xff] }
 0x2db   : > { %6426 = vrot.lane.b32.xlu1 %v9927_v10, %s9942_s23  ;;  %v13945_v10 = vpop.permute.xlu0 %6584  ;;  %9411 = vpow2.f32 %v8905_v22  ;;  %v13959_v38 = vpop.permute.xlu1 %6184 }
 0x2dc   : > { %6436 = vrot.lane.b32.xlu0 %v13934_v14, %s9943_s15  ;;  %9413 = vrcp.f32 %v5283_v34  ;;  %17304 = vst [vmem:[#allocation68_spill] sm:$0xff] %v13959_v38  ;;  %v17305_v34 = vld [vmem:[#allocation12_spill] sm:$0xff]  ;;  %v8843_v38 = vmul.f32 -1.442695, %v4127_v30  ;;  %v4135_v26 = vpop.f32.mrf.mxu0 }
 0x2dd   : > { %8810 = vmatmul.mubr.msk.f32.gmra.mxu0 %vm3846_vm5, %v17300_v33  ;;  %v9392_v33 = vpop.eup %9391  ;;  %9415 = vpow2.f32 %v8842_v1  ;;  %v17308_v1 = vld [vmem:[#allocation91_spill] sm:$0xff] }
 0x2de   : > { %4639 = vmatprep.mubr.f32.mxu0 %v16937_v11  ;;  %v9394_v22 = vpop.eup %9393 }
 0x2df   : > { %6850 = vrot.lane.b32.xlu1 %v13942_v24, %s9943_s15  ;;  %v9396_v56 = vpop.eup %9395  ;;  %v13981_v30 = vpop.permute.xlu1 %6100  ;;  %v5284_v2 = vadd.f32 1.0, %v9394_v22 }
 0x2e0   : > { %6860 = vrot.lane.b32.xlu0 %v6839_v58, %s9944_s30  ;;  %v8874_v58 = vmul.f32 -1.442695, %v4123_v54  ;;  %v13967_v40 = vpop.eup %9397  ;;  %v4384_v54 = vpop.f32.mrf.mxu1  ;;  %17309 = vst [vmem:[#allocation41_spill] sm:$0xff] %v13981_v30  ;;  %v5092_v30 = vadd.f32 1.0, %v9396_v56  ;;  %v6423_v56 = vld [vmem:[#allocation3 + $0x88] sm:$0xff] }
 0x2e1   : > { %8811 = vmatmul.mubr.msk.f32.gmra.mxu0 %vm3846_vm5, %v17302_v3  ;;  %v13963_v3 = vpop.permute.xlu0 %6178  ;;  %17306 = vst [vmem:[#allocation49_spill] sm:$0xff] %v13967_v40  ;;  %v9400_v37 = vpop.eup %9399 }
 0x2e2   : > { %4645 = vmatprep.mubr.f32.mxu0 %v16937_v11  ;;  %9417 = vpow2.f32 %v8874_v58  ;;  %v13973_v53 = vpop.eup %9401  ;;  %v4901_v22 = vadd.f32 1.0, %v9400_v37 }
 0x2e3   : > { %6434 = vrot.lane.b32.xlu1 %v13953_v25, %s9943_s15  ;;  %17307 = vst [vmem:[#allocation11_spill] sm:$0xff] %v13973_v53  ;;  %9419 = vpow2.f32 %v8875_v44  ;;  %v13977_v63 = vpop.eup %9403  ;;  %v13988_v44 = vpop.f32.mrf.mxu1 }
 0x2e4   : > { %6928 = vrot.lane.b32.xlu0 %v13375_v4, %s9942_s23  ;;  %v8906_v4 = vmul.f32 -1.442695, %v4378_v46  ;;  %v8907_v46 = vmul.f32 -1.442695, %v4384_v54  ;;  %v9406_v58 = vpop.eup %9405  ;;  %9421 = vpow2.f32 %v8843_v38  ;;  %17311 = vst [vmem:[#allocation58_spill] sm:$0xff] %v13988_v44  ;;  %v4139_v38 = vpop.f32.mrf.mxu0  ;;  %v17312_v44 = vld [vmem:[#allocation66_spill] sm:$0xff] }
 0x2e5   : > { %8812 = vmatmul.mubr.msk.f32.gmra.mxu0 %vm3846_vm5, %v17305_v34  ;;  %v4900_v34 = vadd.f32 1.0, %v9392_v33  ;;  %v13986_v28 = vpop.permute.xlu0 %6092  ;;  %v14005_v37 = vpop.permute.xlu1 %6090 }
 0x2e6   : > { %4651 = vmatprep.mubr.f32.mxu0 %v16937_v11  ;;  %17310 = vst [vmem:[#allocation62_spill] sm:$0xff] %v13986_v28  ;;  %v13990_v33 = vpop.eup %9407  ;;  %9423 = vpow2.f32 %v8906_v4  ;;  %v5093_v4 = vadd.f32 1.0, %v9406_v58  ;;  %17313 = vst [vmem:[#allocation63_spill] sm:$0xff] %v14005_v37  ;;  %v17314_v58 = vld [vmem:[#allocation45_spill] sm:$0xff] }
 0x2e7   : > { %6858 = vrot.lane.b32.xlu1 %v6838_v45, %s9944_s30  ;;  %v5378_v45 = vadd.f32 %v13973_v53, %v13967_v40  ;;  %v13993_v20 = vpop.eup %9409  ;;  %v5379_v54 = vadd.f32 %v13990_v33, %v13977_v63  ;;  %9425 = vrcp.f32 %v4900_v34  ;;  %v8844_v34 = vmul.f32 -1.442695, %v4133_v6 }
 0x2e8   : > { %6936 = vrot.lane.b32.xlu0 %v13970_v0, %s9943_s15  ;;  %v9412_v28 = vpop.eup %9411  ;;  %9427 = vpow2.f32 %v8907_v46 }
 0x2e9   : > { %8813 = vmatmul.mubr.msk.f32.gmra.mxu0 %vm3846_vm5, %v17308_v1  ;;  %v6924_v1 = vld [vmem:[#allocation3 + $0x20] sm:$0xff]  ;;  %v5410_v40 = vadd.f32 %v13993_v20, %v5378_v45  ;;  %9429 = vrcp.f32 %v5284_v2  ;;  %v14002_v53 = vpop.eup %9413  ;;  %v14009_v45 = vpop.permute.xlu0 %6004  ;;  %v5285_v46 = vadd.f32 1.0, %v9412_v28 }
 0x2ea   : > { %4657 = vmatprep.mubr.f32.mxu0 %v16937_v11  ;;  %9431 = vrcp.f32 %v5092_v30  ;;  %v4141_v2 = vpop.f32.mrf.mxu0 }
 0x2eb   : > { %6442 = vrot.lane.b32.xlu1 %v9928_v18, %s9944_s30  ;;  %v8876_v18 = vmul.f32 -1.442695, %v4135_v26  ;;  %v5411_v26 = vadd.f32 %v14002_v53, %v5379_v54  ;;  %9433 = vrcp.f32 %v4901_v22  ;;  %v8877_v28 = vmul.f32 -1.442695, %v4141_v2 }
 0x2ec   : > { %6944 = vrot.lane.b32.xlu0 %v6924_v1, %s9944_s30  ;;  %v4390_v1 = vpop.f32.mrf.mxu1 }
 0x2ed   : > { %8814 = vmatmul.mubr.msk.f32.gmra.mxu0 %vm3846_vm5, %v17312_v44  ;;  %v5442_v44 = vadd.f32 1e-08, %v5410_v40  ;;  %9435 = vpow2.f32 %v8876_v18  ;;  %v8908_v30 = vmul.f32 -1.442695, %v4390_v1  ;;  %v5443_v40 = vadd.f32 1e-08, %v5411_v26 }
 0x2ee   : > { %4663 = vmatprep.mubr.f32.mxu0 %v16937_v11  ;;  %9437 = vrcp.f32 %v5093_v4  ;;  %v14015_v6 = vpop.f32.mrf.mxu1  ;;  %v17316_v18 = vld [vmem:[#allocation94_spill] sm:$0xff]  ;;  %v14025_v4 = vpop.permute.xlu1 %6098  ;;  %v8845_v1 = vmul.f32 -1.442695, %v4139_v38  ;;  %v7010_v26 = vld [vmem:[#allocation3 + $0x10] sm:$0xff] }
 0x2ef   : > { %6444 = vrot.lane.b32.xlu1 %v6423_v56, %s9944_s30  ;;  %17315 = vst [vmem:[#allocation48_spill] sm:$0xff] %v14015_v6  ;;  %v9416_v56 = vpop.eup %9415  ;;  %9439 = vpow2.f32 %v8844_v34  ;;  %17317 = vst [vmem:[#allocation14_spill] sm:$0xff] %v14025_v4  ;;  %v6925_v4 = vld [vmem:[#allocation3 + $0x28] sm:$0xff] }
 0x2f0   : > { %7014 = vrot.lane.b32.xlu0 %v13669_v5, %s9942_s23  ;;  %v14017_v5 = vld [vmem:[#allocation2 + $0x10] sm:$0xff]  ;;  %v9418_v54 = vpop.eup %9417  ;;  %9441 = vrcp.f32 %v5285_v46  ;;  %v4902_v34 = vadd.f32 1.0, %v9416_v56  ;;  %v4396_v2 = vpop.f32.mrf.mxu1 }
 0x2f1   : > { %8815 = vmatmul.mubr.msk.f32.gmra.mxu0 %vm3846_vm5, %v17314_v58  ;;  %v9420_v22 = vpop.eup %9419  ;;  %9443 = vrcp.f32 %v5442_v44  ;;  %v14027_v58 = vld [vmem:[#allocation2 + $0x28] sm:$0xff]  ;;  %v5094_v46 = vadd.f32 1.0, %v9418_v54 }
 0x2f2   : > { %4669 = vmatprep.mubr.f32.mxu0 %v16937_v11  ;;  %9445 = vpow2.f32 %v8908_v30  ;;  %v9422_v6 = vpop.eup %9421  ;;  %v5095_v38 = vadd.f32 1.0, %v9420_v22  ;;  %v8909_v30 = vmul.f32 -1.442695, %v4396_v2 }
 0x2f3   : > { %6930 = vrot.lane.b32.xlu1 %v13647_v39, %s9942_s23  ;;  %v14030_v39 = vpop.permute.xlu0 %6012  ;;  %9447 = vpow2.f32 %v8877_v28  ;;  %v4903_v37 = vadd.f32 1.0, %v9422_v6  ;;  %v14042_v28 = vld [vmem:[#allocation2] sm:$0xff] }
 0x2f4   : > { %7022 = vrot.lane.b32.xlu0 %v14017_v5, %s9943_s15  ;;  %17318 = vst [vmem:[#allocation19_spill] sm:$0xff] %v14030_v39  ;;  %9449 = vrcp.f32 %v5443_v40  ;;  %v14045_v40 = vpop.permute.xlu1 %6006 }
 0x2f5   : > { %8816 = vmatmul.mubr.msk.f32.gmra.mxu0 %vm3846_vm5, %v17316_v18  ;;  %v9424_v18 = vpop.eup %9423  ;;  %9451 = vpow2.f32 %v8845_v1  ;;  %17320 = vst [vmem:[#allocation60_spill] sm:$0xff] %v14045_v40 }
 0x2f6   : > { %4675 = vmatprep.mubr.f32.mxu0 %v16937_v11  ;;  %v14035_v44 = vpop.eup %9425  ;;  %9453 = vrcp.f32 %v4902_v34  ;;  %v5286_v22 = vadd.f32 1.0, %v9424_v18  ;;  %v4145_v34 = vpop.f32.mrf.mxu0 }
 0x2f7   : > { %6938 = vrot.lane.b32.xlu1 %v14027_v58, %s9943_s15  ;;  %v9428_v56 = vpop.eup %9427  ;;  %9455 = vrcp.f32 %v5094_v46  ;;  %v14053_v1 = vpop.permute.xlu0 %5918  ;;  %v8846_v46 = vmul.f32 -1.442695, %v4145_v34  ;;  %v5901_v34 = vld [vmem:[#allocation2 + $0x18] sm:$0xff] }
 0x2f8   : > { %7030 = vrot.lane.b32.xlu0 %v7010_v26, %s9944_s30  ;;  %v14040_v54 = vpop.eup %9429  ;;  %v14047_v26 = vpop.f32.mrf.mxu1  ;;  %17322 = vst [vmem:[#allocation18_spill] sm:$0xff] %v14053_v1  ;;  %9457 = vrcp.f32 %v5095_v38 }
 0x2f9   : > { %8817 = vmatmul.mubr.msk.f32.gmra.mxu0 %vm3846_vm5, %v13513_v35  ;;  %17319 = vst [vmem:[#allocation52_spill] sm:$0xff] %v14040_v54  ;;  %17321 = vst [vmem:[#allocation24_spill] sm:$0xff] %v14047_v26  ;;  %v14049_v35 = vpop.eup %9431  ;;  %9459 = vpow2.f32 %v8909_v30  ;;  %v4147_v26 = vpop.f32.mrf.mxu0 }
 0x2fa   : > { %4681 = vmatprep.mubr.f32.mxu0 %v16937_v11  ;;  %v14055_v6 = vpop.eup %9433  ;;  %9461 = vrcp.f32 %v4903_v37  ;;  %v4402_v38 = vpop.f32.mrf.mxu1  ;;  %v8878_v30 = vmul.f32 -1.442695, %v4147_v26 }
 0x2fb   : > { %6946 = vrot.lane.b32.xlu1 %v6925_v4, %s9944_s30  ;;  %17323 = vst [vmem:[#allocation56_spill] sm:$0xff] %v14055_v6  ;;  %v5287_v4 = vadd.f32 1.0, %v9428_v56  ;;  %v9436_v2 = vpop.eup %9435  ;;  %9463 = vrcp.f32 %v5286_v22  ;;  %v8910_v26 = vmul.f32 -1.442695, %v4402_v38 }
 0x2fc   : > { %7108 = vrot.lane.b32.xlu0 %v14042_v28, %s9943_s15  ;;  %v14060_v18 = vpop.eup %9437  ;;  %9465 = vpow2.f32 %v8846_v46 }
 0x2fd   : > { %8818 = vmatmul.mubr.msk.f32.gmra.mxu0 %vm3846_vm5, %v17242_v31  ;;  %17324 = vst [vmem:[#allocation15_spill] sm:$0xff] %v14060_v18  ;;  %v9440_v40 = vpop.eup %9439  ;;  %v5380_v31 = vadd.f32 %v14049_v35, %v14035_v44  ;;  %9467 = vrcp.f32 %v5287_v4  ;;  %v5381_v46 = vadd.f32 %v14060_v18, %v14055_v6  ;;  %v7011_v6 = vld [vmem:[#allocation3 + $0x18] sm:$0xff] }
 0x2fe   : > { %4687 = vmatprep.mubr.f32.mxu0 %v16937_v11  ;;  %v14068_v56 = vpop.eup %9441  ;;  %9469 = vpow2.f32 %v8878_v30  ;;  %v4904_v1 = vadd.f32 1.0, %v9440_v40  ;;  %v5827_v30 = vld [vmem:[#allocation2 + $0x8] sm:$0xff] }
 0x2ff   : > { %7016 = vrot.lane.b32.xlu1 %v13707_v48, %s9942_s23  ;;  %v5096_v48 = vadd.f32 1.0, %v9436_v2  ;;  %v14074_v22 = vpop.eup %9443  ;;  %v5412_v4 = vadd.f32 %v14040_v54, %v5380_v31 }
 0x300   : > { %7100 = vrot.lane.b32.xlu0 %v13685_v59, %s9942_s23  ;;  %v9446_v39 = vpop.eup %9445 }
 0x301   : > { %8819 = vmatmul.mubr.msk.f32.gmra.mxu0 %vm3846_vm5, %v17247_v42  ;;  %v14072_v37 = vpop.permute.xlu1 %6014  ;;  %v7096_v42 = vld [vmem:[#allocation3] sm:$0xff]  ;;  %9471 = vrcp.f32 %v5096_v48  ;;  %v5288_v31 = vadd.f32 1.0, %v9446_v39  ;;  %v14103_v48 = vsel %vm3846_vm5, %v14042_v28, %v13747_v51  ;;  %v14110_v39 = vsel %vm3846_vm5, %v5901_v34, %v13808_v21 }
 0x302   : > { %17325 = vst [vmem:[#allocation21_spill] sm:$0xff] %v14072_v37  ;;  %4693 = vmatprep.mubr.f32.mxu0 %v16937_v11  ;;  %v14077_v59 = vpop.permute.xlu0 %5926  ;;  %v9448_v37 = vpop.eup %9447  ;;  %9473 = vpow2.f32 %v8910_v26  ;;  %v6535_v51 = vsel %vm3846_vm5, %v13934_v14, %v13895_v32  ;;  %v5444_v28 = vadd.f32 1e-08, %v5412_v4  ;;  %v14130_v21 = vsel %vm3846_vm5, %v13970_v0, %v13781_v27 }
 0x303   : > { %17326 = vst [vmem:[#allocation23_spill] sm:$0xff] %v14077_v59  ;;  %7024 = vrot.lane.b32.xlu1 %v5901_v34, %s9943_s15  ;;  %v14084_v2 = vpop.eup %9449  ;;  %9475 = vrcp.f32 %v4904_v1  ;;  %v14125_v1 = vsel %vm3846_vm5, %v14027_v58, %v13824_v7  ;;  %v14142_v7 = vsel %vm3846_vm5, %v13942_v24, %v13838_v15  ;;  %v14147_v27 = vsel %vm3846_vm5, %v13919_v9, %v13796_v16  ;;  %v14163_v9 = vpop.f32.mrf.mxu1 }
 0x304   : > { %7116 = vrot.lane.b32.xlu0 %v7096_v42, %s9944_s30  ;;  %v9452_v38 = vpop.eup %9451  ;;  %v5413_v42 = vadd.f32 %v14068_v56, %v5381_v46  ;;  %9477 = vrcp.f32 %v5288_v31  ;;  %v6537_v15 = vsel %vm5860_vm11, %v6535_v51, %v13850_v50  ;;  %v6607_v58 = vsel %vm3846_vm5, %v13861_v41, %v13926_v57 }
 0x305   : > { %8820 = vmatmul.mubr.msk.f32.gmra.mxu0 %vm3846_vm5, %v17253_v60  ;;  %v14088_v59 = vpop.permute.xlu1 %5920  ;;  %v14094_v18 = vpop.eup %9453  ;;  %v14098_v60 = vsel %vm3846_vm5, %v5827_v30, %v13722_v8  ;;  %v14115_v8 = vsel %vm3846_vm5, %v14017_v5, %v13768_v43  ;;  %v6606_v43 = vsel %vm3846_vm5, %v13887_v29, %v13945_v10  ;;  %v4905_v32 = vadd.f32 1.0, %v9452_v38 }
 0x306   : > { %17327 = vst [vmem:[#allocation51_spill] sm:$0xff] %v14088_v59  ;;  %4699 = vmatprep.mubr.f32.mxu0 %v16937_v11  ;;  %v14091_v40 = vpop.permute.xlu0 %5852  ;;  %v5097_v59 = vadd.f32 1.0, %v9448_v37  ;;  %v14106_v54 = vpop.eup %9455  ;;  %v5445_v0 = vadd.f32 1e-08, %v5413_v42  ;;  %v14157_v10 = vsel %vm3846_vm5, %v13872_v49, %v13863_v47  ;;  %v5539_v37 = vmul.f32 %v14084_v2, %v13990_v33 }
 0x307   : > { %7032 = vrot.lane.b32.xlu1 %v7011_v6, %s9944_s30  ;;  %v14120_v46 = vpop.eup %9457  ;;  %v5382_v16 = vadd.f32 %v14106_v54, %v14094_v18  ;;  %v6191_v6 = vsel %vm3846_vm5, %v13846_v36, %v13812_v52  ;;  %v14209_v4 = vsel %vm5860_vm11, %v6607_v58, %v13829_v19  ;;  %v17333_v58 = vld [vmem:[#allocation16_spill] sm:$0xff] }
 0x308   : > { %v9460_v5 = vpop.eup %9459  ;;  %9479 = vrcp.f32 %v5097_v59  ;;  %v14199_v33 = vsel %vm5860_vm11, %v6191_v6, %v13963_v3  ;;  %v5881_v51 = vmul.f32 0.0, %v5539_v37 }
 0x309   : > { %8821 = vmatmul.mubr.msk.f32.gmra.mxu0 %vm3846_vm5, %v17262_v61  ;;  %v14137_v14 = vpop.permute.xlu1 %5928  ;;  %v14152_v61 = vpop.eup %9461  ;;  %9481 = vrcp.f32 %v5444_v28  ;;  %v5289_v41 = vadd.f32 1.0, %v9460_v5  ;;  %v7097_v5 = vld [vmem:[#allocation3 + $0x8] sm:$0xff] }
 0x30a   : > { %4705 = vmatprep.mubr.f32.mxu0 %v16937_v11  ;;  %v14150_v29 = vpop.permute.xlu0 %6602  ;;  %v14167_v24 = vpop.eup %9463  ;;  %v5383_v47 = vadd.f32 %v14152_v61, %v14120_v46  ;;  %9483 = vrcp.f32 %v4905_v32 }
 0x30b   : > { %7102 = vrot.lane.b32.xlu1 %v13745_v17, %s9942_s23  ;;  %v6608_v17 = vsel %vm5860_vm11, %v6606_v43, %v13879_v23  ;;  %v9466_v49 = vpop.eup %9465  ;;  %v14188_v23 = vsel %vm3846_vm5, %v13953_v25, %v13908_v13  ;;  %9485 = vrcp.f32 %v5445_v0  ;;  %v5414_v13 = vadd.f32 %v14167_v24, %v5382_v16  ;;  %v4151_v25 = vpop.f32.mrf.mxu0  ;;  %v17332_v0 = vld [vmem:[#allocation11_spill] sm:$0xff] }
 0x30c   : > { %v14183_v57 = vpop.eup %9467  ;;  %v4906_v52 = vadd.f32 1.0, %v9466_v49  ;;  %v4408_v59 = vpop.f32.mrf.mxu1  ;;  %v14205_v26 = vsel %vm5863_vm12, %v6608_v17, %v13899_v62  ;;  %v8847_v42 = vmul.f32 -1.442695, %v4151_v25  ;;  %9487 = vrcp.f32 %v5289_v41  ;;  %v17334_v49 = vld [vmem:[#allocation49_spill] sm:$0xff]  ;;  %v17335_v25 = vld [vmem:[#allocation98_spill] sm:$0xff] }
 0x30d   : > { %8822 = vmatmul.mubr.msk.f32.gmra.mxu0 %vm3846_vm5, %v13625_v55  ;;  %v5847_v50 = vpop.permute.xlu1 %5846  ;;  %v14195_v55 = vsel %vm5863_vm12, %v6537_v15, %v13874_v12  ;;  %v9470_v36 = vpop.eup %9469  ;;  %17329 = vst [vmem:[#allocation32_spill] sm:$0xff] %v14205_v26  ;;  %v5603_v12 = vmul.f32 %v14084_v2, %v13977_v63  ;;  %v5415_v3 = vadd.f32 %v14183_v57, %v5383_v47  ;;  %v8911_v28 = vmul.f32 -1.442695, %v4408_v59 }
 0x30e   : > { %4711 = vmatprep.mubr.f32.mxu0 %v16937_v11  ;;  %v14191_v34 = vpop.permute.xlu0 %6670  ;;  %17328 = vst [vmem:[#allocation97_spill] sm:$0xff] %v14195_v55  ;;  %v5098_v38 = vadd.f32 1.0, %v9470_v36  ;;  %v5862_v31 = vsel %vm5860_vm11, %v14098_v60, %v5847_v50  ;;  %v4153_v43 = vpop.f32.mrf.mxu0  ;;  %v5538_v16 = vmul.f32 %v14074_v22, %v17332_v0  ;;  %9489 = vrcp.f32 %v4906_v52  ;;  %v17337_v0 = vld [vmem:[#allocation47_spill] sm:$0xff] }
 0x30f   : > { %7110 = vrot.lane.b32.xlu1 %v5827_v30, %s9943_s15  ;;  %v17330_v30 = vld [vmem:[#allocation78_spill] sm:$0xff]  ;;  %v14218_v19 = vpop.eup %9471  ;;  %v8879_v60 = vmul.f32 -1.442695, %v4153_v43  ;;  %v5446_v17 = vadd.f32 1e-08, %v5414_v13  ;;  %v5602_v6 = vmul.f32 %v14074_v22, %v17334_v49  ;;  %v14233_v50 = vpop.f32.mrf.mxu1  ;;  %v5667_v41 = vmul.f32 %v14084_v2, %v14002_v53 }
 0x310   : > { %v9474_v15 = vpop.eup %9473  ;;  %9491 = vrcp.f32 %v5098_v38  ;;  %v5666_v52 = vmul.f32 %v14074_v22, %v13993_v20  ;;  %v5447_v36 = vadd.f32 1e-08, %v5415_v3  ;;  %v5885_v13 = vmul.f32 0.0, %v5603_v12 }
 0x311   : > { %8823 = vmatmul.mubr.msk.f32.gmra.mxu0 %vm3846_vm5, %v17330_v30  ;;  %v5855_v62 = vpop.permute.xlu1 %5854  ;;  %v14235_v37 = vpop.eup %9475  ;;  %9493 = vpow2.f32 %v8847_v42  ;;  %v5880_v53 = vmul.f32 0.0, %v5538_v16  ;;  %v5290_v2 = vadd.f32 1.0, %v9474_v15 }
 0x312   : > { %4717 = vmatprep.mubr.f32.mxu0 %v16937_v11  ;;  %v14222_v63 = vsel %vm5863_vm12, %v5862_v31, %v5855_v62  ;;  %v14224_v32 = vpop.permute.xlu0 %6672  ;;  %v5384_v38 = vadd.f32 %v14235_v37, %v14218_v19  ;;  %9495 = vpow2.f32 %v8911_v28  ;;  %v7223_v31 = vld [vmem:[%s16574_s6 + $0x78] sm:$0xff]  ;;  %v14253_v3 = vpop.eup %9477 }
 0x313   : > { %17331 = vst [vmem:[#allocation10_spill] sm:$0xff] %v14222_v63  ;;  %v5879_v47 = vmul.f32 %v14222_v63, %v17333_v58  ;;  %7118 = vrot.lane.b32.xlu1 %v7097_v5, %s9944_s30  ;;  %9497 = vpow2.f32 %v8879_v60  ;;  %v4157_v12 = vpop.f32.mrf.mxu0  ;;  %9231 = vmatprep.subr.mxu1 %v7223_v31  ;;  %v4414_v28 = vpop.f32.mrf.mxu1  ;;  %v5889_v5 = vmul.f32 0.0, %v5667_v41  ;;  %s16499_s30 = scalar_lea.vmem %s16580_s12, %s10027_s29 }
 0x314   : > { %9499 = vrcp.f32 %v5446_v17  ;;  %v8848_v62 = vmul.f32 -1.442695, %v4157_v12  ;;  %9232 = vmatpush3.msra.mxu1 %v7223_v31  ;;  %v8912_v60 = vmul.f32 -1.442695, %v4414_v28  ;;  %v5416_v17 = vadd.f32 %v14253_v3, %v5384_v38 }
 0x315   : > { %8824 = vmatmul.mubr.msk.f32.gmra.mxu0 %vm3846_vm5, %v17335_v25  ;;  %v5883_v59 = vadd.f32 %v5881_v51, %v5879_v47  ;;  %v5845_v30 = vpop.permute.xlu1 %5844  ;;  %v14262_v43 = vpop.eup %9479  ;;  %9501 = vrcp.f32 %v5447_v36  ;;  %v17339_v25 = vld [vmem:[#allocation33_spill] sm:$0xff] }
 0x316   : > { %4723 = vmatprep.mubr.f32.mxu0 %v16937_v11  ;;  %v5861_v20 = vsel %vm5860_vm11, %v14103_v48, %v5845_v30  ;;  %v14251_v22 = vpop.permute.xlu0 %6256  ;;  %v7222_v48 = vld [vmem:[%s16574_s6 + $0x70] sm:$0xff]  ;;  %v4159_v15 = vpop.f32.mrf.mxu0  ;;  %9503 = vpow2.f32 %v8848_v62  ;;  %v14274_v41 = vsel %vm5860_vm11, %v14188_v23, %v17339_v25  ;;  %v17342_v23 = vld [vmem:[#allocation62_spill] sm:$0xff] }
 0x317   : > { %v5887_v42 = vadd.f32 %v5885_v13, %v5883_v59  ;;  %v14257_v51 = vsel %vm5863_vm12, %v5861_v20, %v14091_v40  ;;  %9233 = vmatprep.subr.mxu1 %v7222_v48  ;;  %v9482_v58 = vpop.eup %9481  ;;  %v17338_v40 = vld [vmem:[#allocation7_spill] sm:$0xff]  ;;  %v8880_v49 = vmul.f32 -1.442695, %v4159_v15  ;;  %v5884_v59 = vmul.f32 0.0, %v5602_v6  ;;  %v17341_v20 = vld [vmem:[#allocation74_spill] sm:$0xff]  ;;  %v17350_v25 = vld [vmem:[#allocation56_spill] sm:$0xff] }
 0x318   : > { %17336 = vst [vmem:[#allocation83_spill] sm:$0xff] %v14257_v51  ;;  %v5878_v16 = vmul.f32 %v14257_v51, %v17337_v0  ;;  %9234 = vmatpush3.msra.mxu1 %v7222_v48  ;;  %v14276_v36 = vpop.eup %9483  ;;  %9505 = vrcp.f32 %v5290_v2  ;;  %v14286_v12 = vsel %vm5860_vm11, %v14157_v10, %v17341_v20  ;;  %v14291_v62 = vsel %vm5860_vm11, %v14147_v27, %v17342_v23  ;;  %v7221_v6 = vld [vmem:[%s16574_s6 + $0x68] sm:$0xff]  ;;  %v17343_v27 = vld [vmem:[#allocation100_spill] sm:$0xff] }
 0x319   : > { %8825 = vmatmul.mubr.msk.f32.gmra.mxu0 %vm3846_vm5, %v17338_v40  ;;  %v14268_v47 = vpop.permute.xlu1 %6186  ;;  %v14278_v13 = vadd.f32 %v5889_v5, %v5887_v42  ;;  %v9486_v38 = vpop.eup %9485  ;;  %v5385_v42 = vadd.f32 %v14276_v36, %v14262_v43  ;;  %9507 = vpow2.f32 %v8912_v60  ;;  %v5888_v2 = vmul.f32 0.0, %v5666_v52  ;;  %9235 = vmatprep.subr.mxu1 %v7221_v6  ;;  %v17344_v5 = vld [vmem:[#allocation52_spill] sm:$0xff] }
 0x31a   : > { %4729 = vmatprep.mubr.f32.mxu0 %v16937_v11  ;;  %v5882_v30 = vadd.f32 %v5880_v53, %v5878_v16  ;;  %v14281_v31 = vpop.permute.xlu0 %6680  ;;  %v6020_v53 = vsel %vm5860_vm11, %v14130_v21, %v14009_v45  ;;  %9509 = vpow2.f32 %v8880_v49  ;;  %v5604_v28 = vmul.f32 %v9482_v58, %v14049_v35  ;;  %9236 = vmatpush3.msra.mxu1 %v7221_v6  ;;  %v14308_v15 = vpop.eup %9487  ;;  %v17346_v45 = vld [vmem:[#allocation15_spill] sm:$0xff] }
 0x31b   : > { %17340 = vst [vmem:[#allocation46_spill] sm:$0xff] %v14278_v13  ;;  %v5540_v48 = vmul.f32 %v9482_v58, %v14035_v44  ;;  %v5668_v0 = vmul.f32 %v9482_v58, %v17344_v5  ;;  %v5448_v16 = vadd.f32 1e-08, %v5416_v17  ;;  %v5605_v21 = vmul.f32 %v9486_v38, %v17346_v45  ;;  %v14318_v44 = vpop.eup %9489  ;;  %v17349_v58 = vld [vmem:[#allocation18_spill] sm:$0xff]  ;;  %v17351_v6 = vld [vmem:[#allocation23_spill] sm:$0xff] }
 0x31c   : > { %v5886_v10 = vadd.f32 %v5884_v59, %v5882_v30  ;;  %v5953_v52 = vrot.slane %v14278_v13, 7  ;;  %v5959_v40 = vrot.slane %v14278_v13, 1  ;;  %v5934_v17 = vsel %vm5860_vm11, %v14115_v8, %v17349_v58  ;;  %v17354_v58 = vld [vmem:[#allocation19_spill] sm:$0xff] }
 0x31d   : > { %8826 = vmatmul.mubr.msk.f32.gmra.mxu0 %vm3846_vm5, %v17343_v27  ;;  %v14306_v60 = vpop.permute.xlu1 %6254  ;;  %v5541_v59 = vmul.f32 %v9486_v38, %v17350_v25  ;;  %v5669_v30 = vmul.f32 %v9486_v38, %v14068_v56  ;;  %v5417_v20 = vadd.f32 %v14308_v15, %v5385_v42  ;;  %v14326_v23 = vpop.eup %9491  ;;  %v14339_v56 = vsel %vm5863_vm12, %v6020_v53, %v17354_v58  ;;  %v17357_v42 = vld [vmem:[#allocation89_spill] sm:$0xff]  ;;  %v17360_v53 = vld [vmem:[#allocation54_spill] sm:$0xff] }
 0x31e   : > { %17345 = vst [vmem:[#allocation80_spill] sm:$0xff] %v14306_v60  ;;  %v14313_v35 = vadd.f32 %v5888_v2, %v5886_v10  ;;  %4735 = vmatprep.mubr.f32.mxu0 %v16937_v11  ;;  %v14316_v49 = vpop.permute.xlu0 %6264  ;;  %v14330_v2 = vsel %vm5863_vm12, %v5934_v17, %v17351_v6  ;;  %v17353_v10 = vld [vmem:[#allocation51_spill] sm:$0xff]  ;;  %v9494_v45 = vpop.eup %9493  ;;  %17355 = vst [vmem:[#allocation36_spill] sm:$0xff] %v14339_v56  ;;  %v17358_v25 = vld [vmem:[#allocation17_spill] sm:$0xff]  ;;  %9511 = vrcp.f32 %v5448_v16 }
 0x31f   : > { %17348 = vst [vmem:[#allocation95_spill] sm:$0xff] %v14316_v49  ;;  %17352 = vst [vmem:[#allocation29_spill] sm:$0xff] %v14330_v2  ;;  %v5935_v27 = vsel %vm5860_vm11, %v14110_v39, %v17353_v10  ;;  %v5964_v17 = vmul.f32 %v14330_v2, %v17357_v42  ;;  %v7220_v6 = vld [vmem:[%s16574_s6 + $0x60] sm:$0xff]  ;;  %v9496_v10 = vpop.eup %9495  ;;  %v5971_v2 = vmul.f32 %v14278_v13, %v5605_v21  ;;  %v5449_v26 = vadd.f32 1e-08, %v5417_v20  ;;  %v17362_v60 = vld [vmem:[#allocation13_spill] sm:$0xff] }
 0x320   : > { %17347 = vst [vmem:[#allocation96_spill] sm:$0xff] %v14313_v35  ;;  %v5952_v5 = vrot.slane %v14313_v35, 7  ;;  %v5958_v8 = vrot.slane %v14313_v35, 1  ;;  %v14343_v38 = vsel %vm5863_vm12, %v5935_v27, %v14137_v14  ;;  %9237 = vmatprep.subr.mxu1 %v7220_v6  ;;  %v9498_v16 = vpop.eup %9497  ;;  %v17363_v20 = vld [vmem:[#allocation63_spill] sm:$0xff] }
 0x321   : > { %17356 = vst [vmem:[#allocation71_spill] sm:$0xff] %v14343_v38  ;;  %8827 = vmatmul.mubr.msk.f32.gmra.mxu0 %vm3846_vm5, %v17358_v25  ;;  %v14349_v39 = vpop.permute.xlu1 %6678  ;;  %v5965_v58 = vmul.f32 %v14343_v38, %v17360_v53  ;;  %9238 = vmatpush3.msra.mxu1 %v7220_v6  ;;  %v9500_v55 = vpop.eup %9499  ;;  %v5970_v53 = vmul.f32 %v14313_v35, %v5604_v28  ;;  %v5963_v38 = vsel %vm2038_vm7, %v5959_v40, 0.0  ;;  %v5099_v21 = vadd.f32 1.0, %v9498_v16 }
 0x322   : > { %17359 = vst [vmem:[#allocation73_spill] sm:$0xff] %v14349_v39  ;;  %v5957_v14 = vsel %vm1429_vm6, 0.0, %v5952_v5  ;;  %v5954_v27 = vsel %vm1429_vm6, %v5952_v5, %v5953_v52  ;;  %v5960_v42 = vsel %vm2038_vm7, %v5958_v8, %v5959_v40  ;;  %4741 = vmatprep.mubr.f32.mxu0 %v16937_v11  ;;  %v14360_v25 = vpop.permute.xlu0 %6688  ;;  %v5386_v52 = vadd.f32 %v14326_v23, %v14318_v44  ;;  %v9502_v8 = vpop.eup %9501  ;;  %v17364_v40 = vld [vmem:[#allocation60_spill] sm:$0xff] }
 0x323   : > { %17361 = vst [vmem:[#allocation76_spill] sm:$0xff] %v14360_v25  ;;  %v5966_v63 = vmul.f32 %v5957_v14, %v5540_v48  ;;  %v5967_v51 = vmul.f32 %v5954_v27, %v5541_v59  ;;  %v4907_v5 = vadd.f32 1.0, %v9494_v45  ;;  %v5974_v49 = vmul.f32 %v5960_v42, %v5668_v0  ;;  %v9504_v59 = vpop.eup %9503  ;;  %v17365_v45 = vld [vmem:[#allocation28_spill] sm:$0xff] }
 0x324   : > { %v6106_v28 = vsel %vm5860_vm11, %v14142_v7, %v17363_v20  ;;  %v6021_v6 = vsel %vm5860_vm11, %v14125_v1, %v17364_v40  ;;  %v5975_v14 = vmul.f32 %v5963_v38, %v5669_v30  ;;  %9513 = vrcp.f32 %v5449_v26  ;;  %v17369_v26 = vld [vmem:[#allocation21_spill] sm:$0xff] }
 0x325   : > { %v5968_v39 = vadd.f32 %v5966_v63, %v5964_v17  ;;  %v5969_v25 = vadd.f32 %v5967_v51, %v5965_v58  ;;  %8828 = vmatmul.mubr.msk.f32.gmra.mxu0 %vm3846_vm5, %v17362_v60  ;;  %v14369_v48 = vpop.permute.xlu1 %6262  ;;  %v6050_v63 = vmul.f32 %v14339_v56, %v17365_v45  ;;  %v5291_v51 = vadd.f32 1.0, %v9496_v10  ;;  %v14382_v60 = vpop.eup %9505  ;;  %v17368_v10 = vld [vmem:[#allocation40_spill] sm:$0xff] }
 0x326   : > { %4747 = vmatprep.mubr.f32.mxu0 %v16937_v11  ;;  %v14380_v0 = vpop.permute.xlu0 %6756  ;;  %v9508_v27 = vpop.eup %9507  ;;  %v5606_v7 = vmul.f32 %v9500_v55, %v14106_v54  ;;  %v5542_v42 = vmul.f32 %v9500_v55, %v14094_v18  ;;  %9515 = vrcp.f32 %v4907_v5  ;;  %v4908_v1 = vadd.f32 1.0, %v9504_v59 }
 0x327   : > { %v5972_v17 = vadd.f32 %v5970_v53, %v5968_v39  ;;  %v5973_v58 = vadd.f32 %v5971_v2, %v5969_v25  ;;  %v9510_v16 = vpop.eup %9509  ;;  %v5418_v39 = vadd.f32 %v14382_v60, %v5386_v52  ;;  %9517 = vrcp.f32 %v5099_v21 }
 0x328   : > { %v14397_v54 = vsel %vm5863_vm12, %v6021_v6, %v17369_v26  ;;  %v5670_v18 = vmul.f32 %v9500_v55, %v14167_v24  ;;  %9519 = vrcp.f32 %v5291_v51  ;;  %v5100_v2 = vadd.f32 1.0, %v9510_v16  ;;  %v17371_v6 = vld [vmem:[#allocation53_spill] sm:$0xff] }
 0x329   : > { %v14386_v20 = vadd.f32 %v5974_v49, %v5972_v17  ;;  %v14388_v40 = vadd.f32 %v5975_v14, %v5973_v58  ;;  %8829 = vmatmul.mubr.msk.f32.gmra.mxu0 %vm3846_vm5, %v17368_v10  ;;  %v14393_v30 = vpop.permute.xlu1 %6686  ;;  %17370 = vst [vmem:[#allocation26_spill] sm:$0xff] %v14397_v54  ;;  %v5292_v52 = vadd.f32 1.0, %v9508_v27  ;;  %v5543_v5 = vmul.f32 %v9502_v8, %v14152_v61  ;;  %v17372_v58 = vld [vmem:[#allocation58_spill] sm:$0xff] }
 0x32a   : > { %4753 = vmatprep.mubr.f32.mxu0 %v16937_v11  ;;  %v14401_v49 = vpop.permute.xlu0 %6758  ;;  %v5607_v21 = vmul.f32 %v9502_v8, %v14120_v46  ;;  %9521 = vrcp.f32 %v4908_v1  ;;  %v5450_v45 = vadd.f32 1e-08, %v5418_v39  ;;  %v6051_v61 = vmul.f32 %v14397_v54, %v17372_v58  ;;  %v17382_v58 = vld [vmem:[#allocation61_spill] sm:$0xff] }
 0x32b   : > { %17366 = vst [vmem:[#allocation82_spill] sm:$0xff] %v14386_v20  ;;  %17367 = vst [vmem:[#allocation72_spill] sm:$0xff] %v14388_v40  ;;  %v6038_v38 = vrot.slane %v14386_v20, 7  ;;  %v6039_v25 = vrot.slane %v14388_v40, 7  ;;  %v6045_v53 = vrot.slane %v14388_v40, 1  ;;  %v6044_v59 = vrot.slane %v14386_v20, 1  ;;  %v9512_v17 = vpop.eup %9511 }
 0x32c   : > { %9523 = vrcp.f32 %v5100_v2  ;;  %v5671_v16 = vmul.f32 %v9502_v8, %v14183_v57  ;;  %v6057_v39 = vmul.f32 %v14388_v40, %v5607_v21  ;;  %v17377_v57 = vld [vmem:[#allocation68_spill] sm:$0xff] }
 0x32d   : > { %v6040_v24 = vsel %vm1429_vm6, %v6038_v38, %v6039_v25  ;;  %v6043_v55 = vsel %vm1429_vm6, 0.0, %v6038_v38  ;;  %8830 = vmatmul.mubr.msk.f32.gmra.mxu0 %vm3846_vm5, %v17371_v6  ;;  %v14413_v51 = vpop.permute.xlu1 %6270  ;;  %v6046_v27 = vsel %vm2038_vm7, %v6044_v59, %v6045_v53  ;;  %v6049_v10 = vsel %vm2038_vm7, %v6045_v53, 0.0  ;;  %v17375_v59 = vld [vmem:[#allocation14_spill] sm:$0xff]  ;;  %v17380_v21 = vld [vmem:[#allocation48_spill] sm:$0xff] }
 0x32e   : > { %v6052_v14 = vmul.f32 %v6043_v55, %v5542_v42  ;;  %v6053_v46 = vmul.f32 %v6040_v24, %v5543_v5  ;;  %4759 = vmatprep.mubr.f32.mxu0 %v16937_v11  ;;  %v14419_v1 = vpop.permute.xlu0 %6342  ;;  %9525 = vrcp.f32 %v5292_v52  ;;  %v6056_v38 = vmul.f32 %v14386_v20, %v5606_v7  ;;  %v17373_v42 = vld [vmem:[#allocation41_spill] sm:$0xff]  ;;  %v17381_v55 = vld [vmem:[#allocation24_spill] sm:$0xff] }
 0x32f   : > { %v6060_v25 = vmul.f32 %v6046_v27, %v5670_v18  ;;  %v14428_v5 = vsel %vm5863_vm12, %v14291_v62, %v17373_v42  ;;  %v14432_v24 = vsel %vm5863_vm12, %v6106_v28, %v17375_v59  ;;  %9527 = vrcp.f32 %v5450_v45  ;;  %v7219_v62 = vld [vmem:[%s16574_s6 + $0x58] sm:$0xff]  ;;  %v17387_v42 = vld [vmem:[#allocation59_spill] sm:$0xff] }
 0x330   : > { %v6054_v26 = vadd.f32 %v6052_v14, %v6050_v63  ;;  %v6055_v2 = vadd.f32 %v6053_v46, %v6051_v61  ;;  %17374 = vst [vmem:[#allocation69_spill] sm:$0xff] %v14428_v5  ;;  %17376 = vst [vmem:[#allocation64_spill] sm:$0xff] %v14432_v24  ;;  %v14437_v8 = vsel %vm5863_vm12, %v14286_v12, %v17377_v57  ;;  %v17379_v63 = vld [vmem:[#allocation70_spill] sm:$0xff]  ;;  %9239 = vmatprep.subr.mxu1 %v7219_v62 }
 0x331   : > { %17378 = vst [vmem:[#allocation79_spill] sm:$0xff] %v14437_v8  ;;  %8831 = vmatmul.mubr.msk.f32.gmra.mxu0 %vm3846_vm5, %v17379_v63  ;;  %v14441_v7 = vpop.permute.xlu1 %6272  ;;  %v6061_v53 = vmul.f32 %v6049_v10, %v5671_v16  ;;  %v6136_v12 = vmul.f32 %v14432_v24, %v17380_v21  ;;  %v6137_v6 = vmul.f32 %v14428_v5, %v17381_v55  ;;  %v9514_v14 = vpop.eup %9513  ;;  %v9929_v46 = vld [vmem:[#allocation2 + $0xa0] sm:$0xff] }
 0x332   : > { %v6059_v18 = vadd.f32 %v6057_v39, %v6055_v2  ;;  %v6058_v52 = vadd.f32 %v6056_v38, %v6054_v26  ;;  %4765 = vmatprep.mubr.f32.mxu0 %v16937_v11  ;;  %v14447_v28 = vpop.permute.xlu0 %6766  ;;  %v14455_v45 = vmul.f32 %v14437_v8, %v14163_v9  ;;  %v14460_v61 = vsel %vm5863_vm12, %v14274_v41, %v17382_v58  ;;  %v9930_v41 = vld [vmem:[#allocation2 + $0xa8] sm:$0xff] }
 0x333   : > { %17383 = vst [vmem:[#allocation85_spill] sm:$0xff] %v14460_v61  ;;  %9240 = vmatpush3.msra.mxu1 %v7219_v62  ;;  %v14464_v27 = vsel %vm3846_vm5, %v9929_v46, %v14191_v34  ;;  %v14473_v9 = vsel %vm5863_vm12, %v14209_v4, %v14150_v29  ;;  %v14475_v39 = vpop.eup %9515  ;;  %v6693_v26 = vsel %vm3846_vm5, %v9930_v41, %v14224_v32  ;;  %v9931_v4 = vld [vmem:[#allocation2 + $0x58] sm:$0xff] }
 0x334   : > { %v14466_v16 = vadd.f32 %v6061_v53, %v6059_v18  ;;  %v14468_v10 = vadd.f32 %v6060_v25, %v6058_v52  ;;  %17386 = vst [vmem:[#allocation65_spill] sm:$0xff] %v14473_v9  ;;  %v5544_v2 = vmul.f32 %v9512_v17, %v14235_v37  ;;  %v5608_v34 = vmul.f32 %v9512_v17, %v14218_v19  ;;  %v14484_v25 = vpop.f32.mrf.mxu1  ;;  %v14488_v29 = vpop.eup %9517 }
 0x335   : > { %v5672_v38 = vmul.f32 %v9512_v17, %v14253_v3  ;;  %8832 = vmatmul.mubr.msk.f32.gmra.mxu0 %vm3846_vm5, %v17387_v42  ;;  %v14486_v59 = vpop.permute.xlu1 %6340  ;;  %v14492_v57 = vsel %vm3846_vm5, %v9931_v4, %v14251_v22  ;;  %v14500_v17 = vpop.eup %9519  ;;  %v5609_v63 = vmul.f32 %v9514_v14, %v14262_v43  ;;  %v5387_v22 = vadd.f32 %v14488_v29, %v14475_v39 }
 0x336   : > { %17384 = vst [vmem:[#allocation81_spill] sm:$0xff] %v14466_v16  ;;  %17385 = vst [vmem:[#allocation75_spill] sm:$0xff] %v14468_v10  ;;  %v6124_v32 = vrot.slane %v14468_v10, 7  ;;  %v6130_v19 = vrot.slane %v14468_v10, 1  ;;  %v6131_v37 = vrot.slane %v14466_v16, 1  ;;  %4771 = vmatprep.mubr.f32.mxu0 %v16937_v11  ;;  %v14498_v3 = vpop.permute.xlu0 %6350  ;;  %v6125_v62 = vrot.slane %v14466_v16, 7 }
 0x337   : > { %v14509_v18 = vsel %vm5863_vm12, %v14199_v33, %v14268_v47  ;;  %v5545_v21 = vmul.f32 %v9514_v14, %v14276_v36  ;;  %v5673_v55 = vmul.f32 %v9514_v14, %v14308_v15  ;;  %v14515_v58 = vpop.eup %9521  ;;  %v6142_v46 = vmul.f32 %v14468_v10, %v5608_v34  ;;  %v17389_v47 = vld [vmem:[#allocation67_spill] sm:$0xff]  ;;  %v7218_v36 = vld [vmem:[%s16574_s6 + $0x50] sm:$0xff] }
 0x338   : > { %17388 = vst [vmem:[#allocation34_spill] sm:$0xff] %v14509_v18  ;;  %v6129_v53 = vsel %vm1429_vm6, 0.0, %v6124_v32  ;;  %v6132_v52 = vsel %vm2038_vm7, %v6130_v19, %v6131_v37  ;;  %v6126_v41 = vsel %vm1429_vm6, %v6124_v32, %v6125_v62  ;;  %v6143_v42 = vmul.f32 %v14466_v16, %v5609_v63  ;;  %v4163_v4 = vpop.f32.mrf.mxu0  ;;  %v4420_v33 = vpop.f32.mrf.mxu1  ;;  %9241 = vmatprep.subr.mxu1 %v7218_v36  ;;  %v7215_v16 = vld [vmem:[%s16574_s6 + $0x38] sm:$0xff] }
 0x339   : > { %v6138_v43 = vmul.f32 %v6129_v53, %v5544_v2  ;;  %8833 = vmatmul.mubr.msk.f32.gmra.mxu0 %vm3846_vm5, %v17389_v47  ;;  %v14525_v19 = vpop.eup %9523  ;;  %v6139_v15 = vmul.f32 %v6126_v41, %v5545_v21  ;;  %v5419_v14 = vadd.f32 %v14500_v17, %v5387_v22  ;;  %v8849_v2 = vmul.f32 -1.442695, %v4163_v4  ;;  %v14529_v32 = vpop.permute.xlu1 %6764  ;;  %9242 = vmatpush3.msra.mxu1 %v7218_v36 }
 0x33a   : > { %v8913_v34 = vmul.f32 -1.442695, %v4420_v33  ;;  %4777 = vmatprep.mubr.f32.mxu0 %v16937_v11  ;;  %v14531_v63 = vpop.permute.xlu0 %6774  ;;  %v6146_v53 = vmul.f32 %v6132_v52, %v5672_v38  ;;  %v6135_v47 = vsel %vm2038_vm7, %v6131_v37, 0.0  ;;  %v5388_v8 = vadd.f32 %v14525_v19, %v14515_v58  ;;  %v4165_v5 = vpop.f32.mrf.mxu0  ;;  %v17390_v52 = vld [vmem:[#allocation55_spill] sm:$0xff] }
 0x33b   : > { %v6140_v62 = vadd.f32 %v6138_v43, %v6136_v12  ;;  %v14536_v21 = vpop.f32.mrf.mxu1  ;;  %v14538_v22 = vpop.eup %9525  ;;  %v6141_v41 = vadd.f32 %v6139_v15, %v6137_v6  ;;  %v5451_v4 = vadd.f32 1e-08, %v5419_v14  ;;  %9529 = vpow2.f32 %v8849_v2 }
 0x33c   : > { %v8881_v33 = vmul.f32 -1.442695, %v4165_v5  ;;  %v14542_v24 = vsel %vm5860_vm11, %v6693_v26, %v14281_v31  ;;  %v5420_v38 = vadd.f32 %v14538_v22, %v5388_v8  ;;  %9531 = vpow2.f32 %v8913_v34  ;;  %v4169_v37 = vpop.f32.mrf.mxu0  ;;  %v9528_v43 = vpop.eup %9527  ;;  %v9932_v34 = vld [vmem:[#allocation2 + $0x50] sm:$0xff] }
 0x33d   : > { %v6144_v12 = vadd.f32 %v6142_v46, %v6140_v62  ;;  %8834 = vmatmul.mubr.msk.f32.gmra.mxu0 %vm3846_vm5, %v17390_v52  ;;  %v6145_v36 = vadd.f32 %v6143_v42, %v6141_v41  ;;  %v6147_v54 = vmul.f32 %v6135_v47, %v5673_v55  ;;  %9533 = vrcp.f32 %v5451_v4  ;;  %v4426_v15 = vpop.f32.mrf.mxu1  ;;  %v14548_v5 = vpop.permute.xlu1 %6348  ;;  %v17393_v62 = vld [vmem:[#allocation80_spill] sm:$0xff] }
 0x33e   : > { %v8850_v6 = vmul.f32 -1.442695, %v4169_v37  ;;  %4783 = vmatprep.mubr.f32.mxu0 %v16937_v11  ;;  %v5452_v26 = vadd.f32 1e-08, %v5420_v38  ;;  %9535 = vpow2.f32 %v8881_v33  ;;  %v8914_v8 = vmul.f32 -1.442695, %v4426_v15  ;;  %v4171_v46 = vpop.f32.mrf.mxu0  ;;  %v14566_v33 = vpop.permute.xlu0 %6842 }
 0x33f   : > { %v14550_v31 = vadd.f32 %v6146_v53, %v6144_v12  ;;  %v14552_v14 = vadd.f32 %v6147_v54, %v6145_v36  ;;  %v14556_v2 = vmul.f32 %v14509_v18, %v14233_v50  ;;  %v8882_v55 = vmul.f32 -1.442695, %v4171_v46  ;;  %v14558_v42 = vpop.f32.mrf.mxu1  ;;  %v17394_v54 = vld [vmem:[#allocation86_spill] sm:$0xff]  ;;  %v17397_v18 = vld [vmem:[#allocation20_spill] sm:$0xff] }
 0x340   : > { %9537 = vpow2.f32 %v8850_v6  ;;  %v6276_v47 = vsel %vm3846_vm5, %v9932_v34, %v17393_v62  ;;  %v5546_v53 = vmul.f32 %v9528_v43, %v14318_v44  ;;  %v4175_v4 = vpop.f32.mrf.mxu0  ;;  %v5610_v44 = vmul.f32 %v9528_v43, %v14326_v23  ;;  %v17396_v23 = vld [vmem:[#allocation73_spill] sm:$0xff] }
 0x341   : > { %17391 = vst [vmem:[#allocation84_spill] sm:$0xff] %v14550_v31  ;;  %17392 = vst [vmem:[#allocation87_spill] sm:$0xff] %v14552_v14  ;;  %v16736_v41 = vrot.slane %v14550_v31, 7  ;;  %9539 = vrcp.f32 %v5452_v26  ;;  %8835 = vmatmul.mubr.msk.f32.gmra.mxu0 %vm3846_vm5, %v17394_v54  ;;  %v6216_v50 = vrot.slane %v14550_v31, 1  ;;  %v6217_v12 = vrot.slane %v14552_v14, 1  ;;  %v4432_v37 = vpop.f32.mrf.mxu1  ;;  %v14571_v52 = vpop.permute.xlu1 %6772  ;;  %v17395_v26 = vld [vmem:[#allocation95_spill] sm:$0xff] }
 0x342   : > { %9541 = vpow2.f32 %v8914_v8  ;;  %v8851_v38 = vmul.f32 -1.442695, %v4175_v4  ;;  %4789 = vmatprep.mubr.f32.mxu0 %v16937_v11  ;;  %v8915_v6 = vmul.f32 -1.442695, %v4432_v37  ;;  %v4177_v15 = vpop.f32.mrf.mxu0  ;;  %v6279_v46 = vsel %vm5860_vm11, %v14492_v57, %v17395_v26 }
 0x343   : > { %v6215_v36 = vsel %vm1429_vm6, 0.0, %v16736_v41  ;;  %9543 = vpow2.f32 %v8882_v55  ;;  %v5674_v8 = vmul.f32 %v9528_v43, %v14382_v60  ;;  %v6218_v34 = vsel %vm2038_vm7, %v6216_v50, %v6217_v12  ;;  %v14584_v4 = vpop.f32.mrf.mxu1 }
 0x344   : > { %v6224_v62 = vmul.f32 %v6215_v36, %v5546_v53  ;;  %v6694_v54 = vsel %vm5860_vm11, %v14464_v27, %v17396_v23  ;;  %v6228_v55 = vmul.f32 %v14550_v31, %v5610_v44  ;;  %9545 = vpow2.f32 %v8851_v38  ;;  %v4181_v41 = vpop.f32.mrf.mxu0 }
 0x345   : > { %v8883_v37 = vmul.f32 -1.442695, %v4177_v15  ;;  %8836 = vmatmul.mubr.msk.f32.gmra.mxu0 %vm3846_vm5, %v17397_v18  ;;  %v6232_v57 = vmul.f32 %v6218_v34, %v5674_v8  ;;  %9547 = vpow2.f32 %v8915_v6  ;;  %v8852_v43 = vmul.f32 -1.442695, %v4181_v41  ;;  %v4438_v53 = vpop.f32.mrf.mxu1  ;;  %v14594_v50 = vpop.permute.xlu1 %6356  ;;  %v6746_v18 = vld [vmem:[#allocation2 + $0xb0] sm:$0xff]  ;;  %v17399_v34 = vld [vmem:[#allocation39_spill] sm:$0xff] }
 0x346   : > { %v6226_v60 = vadd.f32 %v6224_v62, %v14455_v45  ;;  %4795 = vmatprep.mubr.f32.mxu0 %v16937_v11  ;;  %v6278_v27 = vsel %vm5860_vm11, %v6276_v47, %v14369_v48  ;;  %v6211_v38 = vrot.slane %v14552_v14, 7  ;;  %v8916_v44 = vmul.f32 -1.442695, %v4438_v53  ;;  %v4183_v36 = vpop.f32.mrf.mxu0  ;;  %v14605_v11 = vpop.permute.xlu0 %6844  ;;  %v6747_v47 = vld [vmem:[#allocation2 + $0xb8] sm:$0xff]  ;;  %v17401_v62 = vld [vmem:[#allocation76_spill] sm:$0xff] }
 0x347   : > { %9549 = vpow2.f32 %v8883_v37  ;;  %v14601_v45 = vsel %vm5863_vm12, %v6278_v27, %v14413_v51  ;;  %v8884_v41 = vmul.f32 -1.442695, %v4183_v36  ;;  %v14603_v6 = vpop.f32.mrf.mxu1  ;;  %v14609_v48 = vsel %vm3846_vm5, %v6746_v18, %v14380_v0 }
 0x348   : > { %v6230_v15 = vadd.f32 %v6228_v55, %v6226_v60  ;;  %17398 = vst [vmem:[#allocation6_spill] sm:$0xff] %v14601_v45  ;;  %9551 = vpow2.f32 %v8852_v43  ;;  %v9530_v26 = vpop.eup %9529  ;;  %v4187_v8 = vpop.f32.mrf.mxu0  ;;  %v14615_v51 = vsel %vm5863_vm12, %v6694_v54, %v14393_v30  ;;  %v14620_v23 = vsel %vm5863_vm12, %v14542_v24, %v17401_v62  ;;  %v6331_v43 = vld [vmem:[#allocation2 + $0x68] sm:$0xff] }
 0x349   : > { %9553 = vpow2.f32 %v8916_v44  ;;  %8837 = vmatmul.mubr.msk.f32.gmra.mxu0 %vm3846_vm5, %v17399_v34  ;;  %17400 = vst [vmem:[#allocation88_spill] sm:$0xff] %v14615_v51  ;;  %17402 = vst [vmem:[#allocation38_spill] sm:$0xff] %v14620_v23  ;;  %v9532_v55 = vpop.eup %9531  ;;  %v6779_v0 = vsel %vm3846_vm5, %v6747_v47, %v14401_v49  ;;  %v4909_v60 = vadd.f32 1.0, %v9530_v26  ;;  %v14628_v27 = vpop.permute.xlu1 %6358  ;;  %v17404_v54 = vrot.slane %v14550_v31, 7  ;;  %v6330_v31 = vld [vmem:[#allocation2 + $0x60] sm:$0xff] }
 0x34a   : > { %v14622_v37 = vadd.f32 %v6232_v57, %v6230_v15  ;;  %9555 = vpow2.f32 %v8884_v41  ;;  %v14626_v53 = vpop.f32.mrf.mxu1  ;;  %v9534_v30 = vpop.eup %9533  ;;  %v6308_v24 = vmul.f32 %v14601_v45, %v14484_v25  ;;  %v5293_v57 = vadd.f32 1.0, %v9532_v55 }
 0x34b   : > { %v6212_v44 = vsel %vm1429_vm6, %v17404_v54, %v6211_v38  ;;  %v6363_v36 = vsel %vm3846_vm5, %v6331_v43, %v14419_v1  ;;  %v14637_v49 = vpop.f32.mrf.mxu0  ;;  %v9536_v15 = vpop.eup %9535  ;;  %v5547_v18 = vmul.f32 %v9534_v30, %v14475_v39  ;;  %v5611_v41 = vmul.f32 %v9534_v30, %v14488_v29 }
 0x34c   : > { %17403 = vst [vmem:[#allocation90_spill] sm:$0xff] %v14622_v37  ;;  %v14643_v26 = vsel %vm5863_vm12, %v6279_v46, %v14441_v7  ;;  %v14647_v38 = vsel %vm5860_vm11, %v6779_v0, %v14447_v28  ;;  %v14649_v25 = vpop.f32.mrf.mxu1  ;;  %v6221_v1 = vsel %vm2038_vm7, %v6217_v12, 0.0  ;;  %v16739_v34 = vrot.slane %v14622_v37, 7  ;;  %v7217_v7 = vld [vmem:[%s16574_s6 + $0x48] sm:$0xff]  ;;  %v14666_v12 = vpop.permute.xlu0 %6428 }
 0x34d   : > { %17405 = vst [vmem:[#allocation8_spill] sm:$0xff] %v14643_v26  ;;  %v9538_v47 = vpop.eup %9537  ;;  %v5101_v39 = vadd.f32 1.0, %v9536_v15  ;;  %v8853_v62 = vmul.f32 -1.442695, %v4187_v8  ;;  %v14655_v29 = vpop.f32.mrf.mxu0  ;;  %v5675_v28 = vmul.f32 %v9534_v30, %v14500_v17  ;;  %v6225_v55 = vmul.f32 %v6212_v44, %v5547_v18  ;;  %9243 = vmatprep.subr.mxu1 %v7217_v7  ;;  %v7216_v44 = vld [vmem:[%s16574_s6 + $0x40] sm:$0xff] }
 0x34e   : > { %v14660_v46 = vpop.eup %9539  ;;  %v6229_v0 = vmul.f32 %v14552_v14, %v5611_v41  ;;  %9557 = vrcp.f32 %v4909_v60  ;;  %v14664_v43 = vpop.f32.mrf.mxu1  ;;  %v6301_v17 = vsel %vm1429_vm6, 0.0, %v16739_v34  ;;  %9244 = vmatpush3.msra.mxu1 %v7217_v7  ;;  %v4910_v41 = vadd.f32 1.0, %v9538_v47 }
 0x34f   : > { %v9542_v8 = vpop.eup %9541  ;;  %v5548_v54 = vmul.f32 %v14660_v46, %v14515_v58  ;;  %v5612_v15 = vmul.f32 %v14660_v46, %v14525_v19  ;;  %9559 = vrcp.f32 %v5293_v57  ;;  %v14675_v30 = vpop.f32.mrf.mxu0  ;;  %v6227_v58 = vadd.f32 %v6225_v55, %v14556_v2  ;;  %9245 = vmatprep.subr.mxu1 %v7216_v44 }
 0x350   : > { %v14677_v60 = vpop.permute.xlu1 %6426  ;;  %v9544_v18 = vpop.eup %9543  ;;  %9561 = vrcp.f32 %v5101_v39  ;;  %v5294_v19 = vadd.f32 1.0, %v9542_v8  ;;  %9246 = vmatpush3.msra.mxu1 %v7216_v44  ;;  %v6233_v47 = vmul.f32 %v6221_v1, %v5675_v28  ;;  %v6362_v55 = vsel %vm3846_vm5, %v6330_v31, %v14486_v59  ;;  %v7214_v1 = vld [vmem:[%s16574_s6 + $0x30] sm:$0xff] }
 0x351   : > { %v14683_v45 = vpop.f32.mrf.mxu1  ;;  %v6310_v34 = vmul.f32 %v6301_v17, %v5548_v54  ;;  %v6314_v57 = vmul.f32 %v14622_v37, %v5612_v15  ;;  %v5102_v14 = vadd.f32 1.0, %v9544_v18  ;;  %9563 = vpow2.f32 %v8853_v62  ;;  %v14686_v7 = vpop.f32.mrf.mxu0  ;;  %9247 = vmatprep.subr.mxu1 %v7215_v16 }
 0x352   : > { %v9546_v2 = vpop.eup %9545  ;;  %v6231_v39 = vadd.f32 %v6229_v0, %v6227_v58  ;;  %9565 = vrcp.f32 %v4910_v41  ;;  %v14697_v17 = vsel %vm5860_vm11, %v6363_v36, %v14498_v3  ;;  %9248 = vmatpush3.msra.mxu1 %v7215_v16  ;;  %v14709_v0 = vpop.permute.xlu0 %6852  ;;  %v6302_v36 = vrot.slane %v14622_v37, 1 }
 0x353   : > { %v14693_v8 = vpop.f32.mrf.mxu1  ;;  %v9548_v54 = vpop.eup %9547  ;;  %v6312_v15 = vadd.f32 %v6310_v34, %v6308_v24  ;;  %9567 = vrcp.f32 %v5294_v19  ;;  %v4911_v62 = vadd.f32 1.0, %v9546_v2  ;;  %v8917_v24 = vmul.f32 -1.442695, %v14626_v53  ;;  %9249 = vmatprep.subr.mxu1 %v7214_v1 }
 0x354   : > { %v14699_v44 = vpop.f32.mrf.mxu0  ;;  %v9550_v28 = vpop.eup %9549  ;;  %v14704_v59 = vadd.f32 %v6233_v47, %v6231_v39  ;;  %9569 = vrcp.f32 %v5102_v14  ;;  %v5295_v31 = vadd.f32 1.0, %v9548_v54  ;;  %9250 = vmatpush3.msra.mxu1 %v7214_v1  ;;  %v7213_v14 = vld [vmem:[%s16574_s6 + $0x28] sm:$0xff]  ;;  %v5676_v54 = vmul.f32 %v14660_v46, %v14538_v22 }
 0x355   : > { %v14707_v34 = vpop.f32.mrf.mxu1  ;;  %v9552_v3 = vpop.eup %9551  ;;  %v6316_v16 = vadd.f32 %v6314_v57, %v6312_v15  ;;  %9571 = vrcp.f32 %v4911_v62  ;;  %v5103_v18 = vadd.f32 1.0, %v9550_v28  ;;  %9251 = vmatprep.subr.mxu1 %v7213_v14  ;;  %v6364_v62 = vsel %vm5860_vm11, %v6362_v55, %v14548_v5  ;;  %v7212_v28 = vld [vmem:[%s16574_s6 + $0x20] sm:$0xff] }
 0x356   : > { %v14712_v58 = vpop.f32.mrf.mxu0  ;;  %v14714_v41 = vpop.permute.xlu1 %6850  ;;  %v6303_v19 = vrot.slane %v14704_v59, 1  ;;  %v6297_v2 = vrot.slane %v14704_v59, 7  ;;  %9573 = vrcp.f32 %v5295_v31  ;;  %v4912_v39 = vadd.f32 1.0, %v9552_v3  ;;  %9252 = vmatpush3.msra.mxu1 %v7213_v14 }
 0x357   : > { %v9554_v53 = vpop.eup %9553  ;;  %v14721_v47 = vpop.f32.mrf.mxu1  ;;  %9575 = vrcp.f32 %v5103_v18  ;;  %v17406_v3 = vrot.slane %v14622_v37, 7  ;;  %v8885_v46 = vmul.f32 -1.442695, %v14637_v49  ;;  %9253 = vmatprep.subr.mxu1 %v7212_v28  ;;  %v8854_v14 = vmul.f32 -1.442695, %v14655_v29 }
 0x358   : > { %v9556_v57 = vpop.eup %9555  ;;  %v5296_v15 = vadd.f32 1.0, %v9554_v53  ;;  %v14727_v1 = vpop.f32.mrf.mxu0  ;;  %v6304_v31 = vsel %vm2038_vm7, %v6302_v36, %v6303_v19  ;;  %9577 = vrcp.f32 %v4912_v39  ;;  %9254 = vmatpush3.msra.mxu1 %v7212_v28  ;;  %v7211_v36 = vld [vmem:[%s16574_s6 + $0x18] sm:$0xff]  ;;  %v8918_v49 = vmul.f32 -1.442695, %v14664_v43  ;;  %v6832_v28 = vld [vmem:[#allocation2 + $0xc0] sm:$0xff] }
 0x359   : > { %v14738_v22 = vsel %vm1429_vm6, %v17406_v3, %v6297_v2  ;;  %v14741_v5 = vpop.f32.mrf.mxu1  ;;  %v6318_v55 = vmul.f32 %v6304_v31, %v5676_v54  ;;  %v5104_v18 = vadd.f32 1.0, %v9556_v57  ;;  %v6780_v2 = vsel %vm5860_vm11, %v14609_v48, %v14529_v32  ;;  %v14759_v29 = vpop.permute.xlu0 %6436  ;;  %9255 = vmatprep.subr.mxu1 %v7211_v36  ;;  %v6833_v31 = vld [vmem:[#allocation2 + $0xc8] sm:$0xff] }
 0x35a   : > { %9579 = vrcp.f32 %v5296_v15  ;;  %v14744_v53 = vpop.f32.mrf.mxu0  ;;  %v14755_v39 = vsel %vm5863_vm12, %v6364_v62, %v14594_v50  ;;  %v8886_v32 = vmul.f32 -1.442695, %v14675_v30  ;;  %v14768_v43 = vpop.permute.xlu1 %6434  ;;  %v14773_v50 = vsel %vm5863_vm12, %v14647_v38, %v14531_v63  ;;  %9256 = vmatpush3.msra.mxu1 %v7211_v36 }
 0x35b   : > { %9581 = vpow2.f32 %v8917_v24  ;;  %17407 = vst [vmem:[#allocation77_spill] sm:$0xff] %v14755_v39  ;;  %v14757_v57 = vpop.f32.mrf.mxu1  ;;  %v14761_v54 = vpop.eup %9557  ;;  %v14763_v15 = vadd.f32 %v6318_v55, %v6316_v16  ;;  %17409 = vst [vmem:[#allocation92_spill] sm:$0xff] %v14773_v50  ;;  %v7210_v24 = vld [vmem:[%s16574_s6 + $0x10] sm:$0xff]  ;;  %v14782_v62 = vmul.f32 %v14643_v26, %v14536_v21  ;;  %v14786_v30 = vsel %vm3846_vm5, %v6832_v28, %v14566_v33 }
 0x35c   : > { %9583 = vrcp.f32 %v5104_v18  ;;  %v14766_v48 = vpop.f32.mrf.mxu0  ;;  %v14778_v16 = vpop.eup %9559  ;;  %v8855_v63 = vmul.f32 -1.442695, %v14686_v7  ;;  %9257 = vmatprep.subr.mxu1 %v7210_v24  ;;  %v6865_v55 = vsel %vm3846_vm5, %v6833_v31, %v14605_v11  ;;  %v14797_v21 = vmul.f32 %v14755_v39, %v14558_v42  ;;  %v7209_v7 = vld [vmem:[%s16574_s6 + $0x8] sm:$0xff]  ;;  %v6417_v42 = vld [vmem:[#allocation2 + $0x78] sm:$0xff] }
 0x35d   : > { %17408 = vst [vmem:[#allocation50_spill] sm:$0xff] %v14763_v15  ;;  %9585 = vpow2.f32 %v8885_v46  ;;  %v14789_v38 = vpop.f32.mrf.mxu1  ;;  %v14791_v3 = vpop.eup %9561  ;;  %v14803_v33 = vsel %vm5863_vm12, %v6780_v2, %v14571_v52  ;;  %9258 = vmatpush3.msra.mxu1 %v7210_v24  ;;  %v8919_v11 = vmul.f32 -1.442695, %v14693_v8  ;;  %v14814_v36 = vsel %vm5863_vm12, %v14697_v17, %v14628_v27  ;;  %v7208_v27 = vld [vmem:[%s16574_s6] sm:$0xff] }
 0x35e   : > { %9587 = vpow2.f32 %v8854_v14  ;;  %v14799_v18 = vpop.f32.mrf.mxu0  ;;  %17410 = vst [vmem:[#allocation42_spill] sm:$0xff] %v14803_v33  ;;  %v9564_v46 = vpop.eup %9563  ;;  %v5389_v14 = vadd.f32 %v14791_v3, %v14761_v54  ;;  %17411 = vst [vmem:[#allocation27_spill] sm:$0xff] %v14814_v36  ;;  %9259 = vmatprep.subr.mxu1 %v7209_v7  ;;  %v6449_v24 = vsel %vm3846_vm5, %v6417_v42, %v14666_v12 }
 0x35f   : > { %9589 = vpow2.f32 %v8918_v49  ;;  %v14816_v52 = vpop.f32.mrf.mxu1  ;;  %v14818_v2 = vpop.eup %9565  ;;  %v4913_v28 = vadd.f32 1.0, %v9564_v46  ;;  %v8887_v49 = vmul.f32 -1.442695, %v14699_v44  ;;  %9260 = vmatpush3.msra.mxu1 %v7209_v7  ;;  %v14838_v12 = vmul.f32 %v14460_v61, %v14683_v45 }
 0x360   : > { %9591 = vpow2.f32 %v8886_v32  ;;  %v14823_v31 = vpop.f32.mrf.mxu0  ;;  %v14828_v8 = vpop.eup %9567  ;;  %v5421_v17 = vadd.f32 %v14778_v16, %v5389_v14  ;;  %v14834_v32 = vsel %vm2038_vm7, %v6303_v19, 0.0  ;;  %9261 = vmatprep.subr.mxu1 %v7208_v27  ;;  %v17413_v14 = vld [vmem:[#allocation97_spill] sm:$0xff]  ;;  %v14852_v19 = vmul.f32 %v14814_v36, %v14584_v4  ;;  %v6416_v36 = vld [vmem:[#allocation2 + $0x70] sm:$0xff] }
 0x361   : > { %17412 = vst [vmem:[#allocation9_spill] sm:$0xff] %v14838_v12  ;;  %9593 = vpow2.f32 %v8855_v63  ;;  %v14840_v44 = vpop.permute.xlu0 %6860  ;;  %v14842_v7 = vpop.f32.mrf.mxu1  ;;  %v14848_v42 = vmul.f32 %v17413_v14, %v14707_v34  ;;  %v8856_v45 = vmul.f32 -1.442695, %v14712_v58  ;;  %9262 = vmatpush3.msra.mxu1 %v7208_v27  ;;  %v8920_v34 = vmul.f32 -1.442695, %v14721_v47 }
 0x362   : > { %v14844_v46 = vpop.eup %9569  ;;  %9595 = vrcp.f32 %v4913_v28  ;;  %v14855_v61 = vpop.f32.mrf.mxu0  ;;  %v5453_v26 = vadd.f32 1e-08, %v5421_v17  ;;  %v14869_v58 = vsel %vm5860_vm11, %v6865_v55, %v14709_v0  ;;  %v8888_v27 = vmul.f32 -1.442695, %v14727_v1 }
 0x363   : > { %17414 = vst [vmem:[#allocation30_spill] sm:$0xff] %v14848_v42  ;;  %v14857_v63 = vpop.permute.xlu1 %6858  ;;  %v14859_v39 = vpop.eup %9571  ;;  %v5390_v28 = vadd.f32 %v14844_v46, %v14818_v2  ;;  %9597 = vpow2.f32 %v8919_v11  ;;  %17415 = vst [vmem:[#allocation57_spill] sm:$0xff] %v14869_v58  ;;  %v17416_v11 = vld [vmem:[#allocation32_spill] sm:$0xff] }
 0x364   : > { %v4480_v14 = vpop.f32.mrf.mxu1  ;;  %v14864_v37 = vpop.eup %9573  ;;  %9599 = vpow2.f32 %v8887_v49  ;;  %v14879_v10 = vmul.f32 %v17416_v11, %v14741_v5  ;;  %v6448_v49 = vsel %vm3846_vm5, %v6416_v36, %v14677_v60  ;;  %v14896_v60 = vmul.f32 -1.442695, %v14757_v57 }
 0x365   : > { %v14872_v17 = vpop.f32.mrf.mxu0  ;;  %v14874_v56 = vpop.eup %9575  ;;  %9601 = vrcp.f32 %v5453_v26  ;;  %v5422_v47 = vadd.f32 %v14828_v8, %v5390_v28  ;;  %v8857_v26 = vmul.f32 -1.442695, %v14744_v53  ;;  %v14900_v36 = vsel %vm5860_vm11, %v6449_v24, %v14759_v29 }
 0x366   : > { %17417 = vst [vmem:[#allocation99_spill] sm:$0xff] %v14879_v10  ;;  %v14883_v4 = vpop.f32.mrf.mxu1  ;;  %v14885_v0 = vpop.eup %9577  ;;  %v5391_v1 = vadd.f32 %v14874_v56, %v14859_v39  ;;  %9603 = vpow2.f32 %v8856_v45  ;;  %v17419_v53 = vrot.slane %v14763_v15, 7  ;;  %v14915_v29 = vmul.f32 %v14473_v9, %v14789_v38 }
 0x367   : > { %v14891_v28 = vpop.f32.mrf.mxu0  ;;  %v14893_v40 = vpop.eup %9579  ;;  %v5454_v5 = vadd.f32 1e-08, %v5422_v47  ;;  %9605 = vpow2.f32 %v8920_v34  ;;  %v14909_v34 = vmul.f32 -1.442695, %v14766_v48  ;;  %v14920_v24 = vsel %vm5860_vm11, %v14786_v30, %v14714_v41 }
 0x368   : > { %17418 = vst [vmem:[#allocation22_spill] sm:$0xff] %v14893_v40  ;;  %v6929_v11 = vpop.permute.xlu0 %6928  ;;  %v4486_v20 = vpop.f32.mrf.mxu1  ;;  %v5423_v45 = vadd.f32 %v14864_v37, %v5391_v1  ;;  %v14906_v55 = vsel %vm1429_vm6, 0.0, %v17419_v53  ;;  %9607 = vpow2.f32 %v8888_v27  ;;  %17421 = vst [vmem:[#allocation44_spill] sm:$0xff] %v14915_v29  ;;  %v14923_v1 = vmul.f32 -1.442695, %v14799_v18 }
 0x369   : > { %v9582_v10 = vpop.eup %9581  ;;  %v4231_v57 = vpop.f32.mrf.mxu0  ;;  %9609 = vrcp.f32 %v5454_v5  ;;  %v14932_v29 = vmul.f32 -1.442695, %v14816_v52  ;;  %v14935_v41 = vmul.f32 -1.442695, %v14823_v31  ;;  %v14939_v30 = vmul.f32 %v14615_v51, %v14842_v7 }
 0x36a   : > { %v6443_v47 = vpop.permute.xlu1 %6442  ;;  %v14911_v13 = vpop.eup %9583  ;;  %v5455_v53 = vadd.f32 1e-08, %v5423_v45  ;;  %v5297_v5 = vadd.f32 1.0, %v9582_v10  ;;  %9611 = vpow2.f32 %v8857_v26  ;;  %v14949_v31 = vmul.f32 -1.442695, %v14855_v61 }
 0x36b   : > { %17420 = vst [vmem:[#allocation31_spill] sm:$0xff] %v14911_v13  ;;  %v14925_v27 = vpop.f32.mrf.mxu1  ;;  %v9586_v48 = vpop.eup %9585  ;;  %v5392_v42 = vadd.f32 %v14911_v13, %v14885_v0  ;;  %17422 = vst [vmem:[#allocation43_spill] sm:$0xff] %v14939_v30  ;;  %v14951_v12 = vmul.f32 -1.442695, %v4480_v14 }
 0x36c   : > { %v14929_v35 = vpop.f32.mrf.mxu0  ;;  %v9588_v38 = vpop.eup %9587  ;;  %v5105_v9 = vadd.f32 1.0, %v9586_v48  ;;  %9613 = vrcp.f32 %v5455_v53  ;;  %v6450_v48 = vsel %vm5860_vm11, %v6448_v49, %v14768_v43  ;;  %v6918_v49 = vld [vmem:[#allocation2 + $0xd0] sm:$0xff] }
 0x36d   : > { %v14941_v18 = vpop.f32.mrf.mxu1  ;;  %v9590_v45 = vpop.eup %9589  ;;  %v5424_v10 = vadd.f32 %v14893_v40, %v5392_v42  ;;  %v4914_v26 = vadd.f32 1.0, %v9588_v38  ;;  %17423 = vst [vmem:[#allocation35_spill] sm:$0xff] %v14951_v12  ;;  %v14954_v51 = vsel %vm5863_vm12, %v6450_v48, %v6443_v47  ;;  %v6950_v14 = vsel %vm3846_vm5, %v6918_v49, %v6929_v11 }
 0x36e   : > { %v14946_v13 = vpop.f32.mrf.mxu0  ;;  %v9592_v52 = vpop.eup %9591  ;;  %9615 = vrcp.f32 %v5105_v9  ;;  %17424 = vst [vmem:[#allocation37_spill] sm:$0xff] %v14954_v51  ;;  %v5298_v30 = vadd.f32 1.0, %v9590_v45  ;;  %v14964_v47 = vmul.f32 -1.442695, %v14872_v17  ;;  %v14973_v45 = vmul.f32 -1.442695, %v14891_v28 }
 0x36f   : > { %v6937_v7 = vpop.permute.xlu0 %6936  ;;  %v14956_v53 = vpop.f32.mrf.mxu1  ;;  %v5456_v38 = vadd.f32 1e-08, %v5424_v10  ;;  %9617 = vrcp.f32 %v5297_v5  ;;  %v5106_v43 = vadd.f32 1.0, %v9592_v52  ;;  %v14970_v5 = vmul.f32 %v14620_v23, %v14883_v4 }
 0x370   : > { %v9594_v42 = vpop.eup %9593  ;;  %v6445_v40 = vpop.permute.xlu1 %6444  ;;  %9619 = vrcp.f32 %v4914_v26  ;;  %v14976_v10 = vsel %vm5860_vm11, %v6950_v14, %v6937_v7  ;;  %v14980_v17 = vmul.f32 -1.442695, %v4486_v20  ;;  %v14984_v52 = vmul.f32 %v14954_v51, %v14603_v6 }
 0x371   : > { %v14958_v58 = vpop.f32.mrf.mxu0  ;;  %v14960_v9 = vpop.eup %9595  ;;  %v4915_v61 = vadd.f32 1.0, %v9594_v42  ;;  %9621 = vrcp.f32 %v5456_v38  ;;  %v14988_v4 = vsel %vm5863_vm12, %v14900_v36, %v6445_v40  ;;  %v14992_v49 = vmul.f32 -1.442695, %v4231_v57 }
 0x372   : > { %v14966_v48 = vpop.f32.mrf.mxu1  ;;  %v9598_v12 = vpop.eup %9597  ;;  %9623 = vrcp.f32 %v5106_v43  ;;  %17425 = vst [vmem:[#allocation93_spill] sm:$0xff] %v14988_v4  ;;  %v15007_v57 = vmul.f32 %v14988_v4, %v14649_v25  ;;  %v15020_v25 = vmul.f32 -1.442695, %v14941_v18  ;;  %v15035_v18 = vsel %vm5863_vm12, %v14920_v24, %v14857_v63 }
 0x373   : > { %v14978_v26 = vpop.f32.mrf.mxu0  ;;  %v9600_v11 = vpop.eup %9599  ;;  %9625 = vrcp.f32 %v5298_v30  ;;  %v5299_v7 = vadd.f32 1.0, %v9598_v12  ;;  %v15003_v12 = vmul.f32 %v14803_v33, %v14925_v27  ;;  %17427 = vst [vmem:[#allocation12_spill] sm:$0xff] %v15035_v18  ;;  %v15049_v63 = vmul.f32 %v14773_v50, %v14956_v53 }
 0x374   : > { %v14990_v42 = vpop.f32.mrf.mxu1  ;;  %v9602_v28 = vpop.eup %9601  ;;  %v5107_v38 = vadd.f32 1.0, %v9600_v11  ;;  %9627 = vrcp.f32 %v4915_v61 }
 0x375   : > { %v14994_v14 = vpop.f32.mrf.mxu0  ;;  %v9604_v20 = vpop.eup %9603  ;;  %v5549_v43 = vmul.f32 %v9602_v28, %v14761_v54  ;;  %v5613_v6 = vmul.f32 %v9602_v28, %v14791_v3  ;;  %v5677_v23 = vmul.f32 %v9602_v28, %v14778_v16  ;;  %17426 = vst [vmem:[#allocation25_spill] sm:$0xff] %v15003_v12  ;;  %17429 = vst [vmem:[#allocation66_spill] sm:$0xff] %v15049_v63 }
 0x376   : > { %v14999_v40 = vpop.f32.mrf.mxu1  ;;  %v9606_v36 = vpop.eup %9605  ;;  %9629 = vrcp.f32 %v5107_v38  ;;  %v4916_v51 = vadd.f32 1.0, %v9604_v20  ;;  %v15017_v20 = vmul.f32 -1.442695, %v14929_v35  ;;  %v15030_v35 = vmul.f32 -1.442695, %v14946_v13 }
 0x377   : > { %v15009_v30 = vpop.f32.mrf.mxu0  ;;  %v9608_v54 = vpop.eup %9607  ;;  %v6311_v3 = vmul.f32 %v14738_v22, %v5549_v43  ;;  %v6315_v16 = vmul.f32 %v14704_v59, %v5613_v6  ;;  %v6319_v61 = vmul.f32 %v14834_v32, %v5677_v23  ;;  %v5300_v11 = vadd.f32 1.0, %v9606_v36 }
 0x378   : > { %v15014_v28 = vpop.f32.mrf.mxu1  ;;  %v9610_v38 = vpop.eup %9609  ;;  %9631 = vrcp.f32 %v5299_v7  ;;  %v5108_v27 = vadd.f32 1.0, %v9608_v54 }
 0x379   : > { %v15022_v33 = vpop.f32.mrf.mxu0  ;;  %v9612_v4 = vpop.eup %9611  ;;  %v6313_v22 = vadd.f32 %v6311_v3, %v14782_v62  ;;  %v5550_v43 = vmul.f32 %v9610_v38, %v14818_v2  ;;  %v5614_v23 = vmul.f32 %v9610_v38, %v14844_v46  ;;  %9633 = vrcp.f32 %v4916_v51 }
 0x37a   : > { %v15027_v32 = vpop.f32.mrf.mxu1  ;;  %9635 = vrcp.f32 %v5300_v11  ;;  %v4917_v7 = vadd.f32 1.0, %v9612_v4  ;;  %v9614_v62 = vpop.eup %9613  ;;  %v5678_v53 = vmul.f32 %v9610_v38, %v14828_v8 }
 0x37b   : > { %v15037_v6 = vpop.f32.mrf.mxu0  ;;  %v6317_v36 = vadd.f32 %v6315_v16, %v6313_v22  ;;  %v6396_v2 = vmul.f32 %v14906_v55, %v5550_v43  ;;  %v6400_v51 = vmul.f32 %v14763_v15, %v5614_v23  ;;  %9637 = vrcp.f32 %v5108_v27  ;;  %v6931_v46 = vpop.permute.xlu1 %6930 }
 0x37c   : > { %v15041_v54 = vpop.f32.mrf.mxu1  ;;  %v15043_v4 = vpop.eup %9615  ;;  %v5551_v13 = vmul.f32 %v9614_v62, %v14859_v39  ;;  %v5615_v3 = vmul.f32 %v9614_v62, %v14874_v56  ;;  %9639 = vrcp.f32 %v4917_v7  ;;  %v6919_v39 = vld [vmem:[#allocation2 + $0xd8] sm:$0xff]  ;;  %v15068_v43 = vmul.f32 -1.442695, %v14958_v58 }
 0x37d   : > { %17428 = vst [vmem:[#allocation91_spill] sm:$0xff] %v15043_v4  ;;  %v15051_v24 = vpop.f32.mrf.mxu0  ;;  %v15053_v55 = vpop.eup %9617  ;;  %v15055_v16 = vadd.f32 %v6319_v61, %v6317_v36  ;;  %v5393_v11 = vadd.f32 %v15043_v4, %v14960_v9  ;;  %v6398_v27 = vadd.f32 %v6396_v2, %v14797_v21  ;;  %9641 = vpow2.f32 %v14896_v60 }
 0x37e   : > { %17430 = vst [vmem:[#allocation45_spill] sm:$0xff] %v15053_v55  ;;  %v15061_v56 = vpop.f32.mrf.mxu1  ;;  %v15063_v22 = vpop.eup %9619  ;;  %9643 = vpow2.f32 %v14909_v34  ;;  %v6951_v61 = vsel %vm3846_vm5, %v6919_v39, %v6931_v46  ;;  %v5679_v58 = vmul.f32 %v9614_v62, %v14864_v37  ;;  %v17433_v39 = vrot.slane %v14763_v15, 1 }
 0x37f   : > { %17431 = vst [vmem:[#allocation94_spill] sm:$0xff] %v15055_v16  ;;  %v15071_v23 = vpop.f32.mrf.mxu0  ;;  %v15073_v7 = vpop.eup %9621  ;;  %v5425_v21 = vadd.f32 %v15053_v55, %v5393_v11  ;;  %v6389_v60 = vrot.slane %v15055_v16, 1  ;;  %v6402_v36 = vadd.f32 %v6400_v51, %v6398_v27  ;;  %v6383_v2 = vrot.slane %v15055_v16, 7 }
 0x380   : > { %v15078_v50 = vpop.f32.mrf.mxu1  ;;  %v15080_v8 = vpop.eup %9623  ;;  %v6401_v34 = vmul.f32 %v15055_v16, %v5615_v3  ;;  %9645 = vpow2.f32 %v14923_v1  ;;  %v5552_v38 = vmul.f32 %v15073_v7, %v14885_v0  ;;  %v17434_v37 = vrot.slane %v14763_v15, 7 }
 0x381   : > { %17432 = vst [vmem:[#allocation78_spill] sm:$0xff] %v15078_v50  ;;  %v15087_v46 = vpop.f32.mrf.mxu0  ;;  %v15089_v11 = vpop.eup %9625  ;;  %v5457_v51 = vadd.f32 1e-08, %v5425_v21  ;;  %v5394_v27 = vadd.f32 %v15080_v8, %v15063_v22  ;;  %v6390_v50 = vsel %vm2038_vm7, %v17433_v39, %v6389_v60  ;;  %v6393_v63 = vsel %vm2038_vm7, %v6389_v60, 0.0 }
 0x382   : > { %v6384_v62 = vsel %vm1429_vm6, %v17434_v37, %v6383_v2  ;;  %v15099_v1 = vpop.f32.mrf.mxu1  ;;  %v15101_v3 = vpop.eup %9627  ;;  %v6404_v0 = vmul.f32 %v6390_v50, %v5678_v53  ;;  %9647 = vpow2.f32 %v14932_v29  ;;  %v6405_v12 = vmul.f32 %v6393_v63, %v5679_v58 }
 0x383   : > { %v6397_v55 = vmul.f32 %v6384_v62, %v5551_v13  ;;  %v15105_v21 = vpop.f32.mrf.mxu0  ;;  %v15107_v4 = vpop.eup %9629  ;;  %9649 = vrcp.f32 %v5457_v51  ;;  %v5426_v39 = vadd.f32 %v15089_v11, %v5394_v27  ;;  %v15111_v2 = vmul.f32 -1.442695, %v14966_v48  ;;  %v17438_v62 = vld [vmem:[#allocation35_spill] sm:$0xff] }
 0x384   : > { %v6945_v16 = vpop.permute.xlu0 %6944  ;;  %v15113_v37 = vpop.f32.mrf.mxu1  ;;  %v15115_v50 = vadd.f32 %v6404_v0, %v6402_v36  ;;  %v5395_v13 = vadd.f32 %v15107_v4, %v15101_v3  ;;  %9651 = vpow2.f32 %v14935_v41  ;;  %v15127_v48 = vmul.f32 -1.442695, %v14978_v26  ;;  %v17436_v36 = vld [vmem:[#allocation57_spill] sm:$0xff] }
 0x385   : > { %17435 = vst [vmem:[#allocation11_spill] sm:$0xff] %v15113_v37  ;;  %v6399_v29 = vadd.f32 %v6397_v55, %v14852_v19  ;;  %v6939_v53 = vpop.permute.xlu1 %6938  ;;  %v15121_v60 = vpop.f32.mrf.mxu0  ;;  %v5458_v63 = vadd.f32 1e-08, %v5426_v39  ;;  %9653 = vpow2.f32 %v14949_v31  ;;  %v15132_v58 = vsel %vm5863_vm12, %v17436_v36, %v14840_v44 }
 0x386   : > { %v15123_v51 = vpop.eup %9631  ;;  %17437 = vst [vmem:[#allocation16_spill] sm:$0xff] %v15132_v58  ;;  %v15134_v27 = vpop.f32.mrf.mxu1  ;;  %9655 = vpow2.f32 %v17438_v62  ;;  %v6468_v0 = vrot.slane %v15115_v50, 7  ;;  %v15147_v44 = vmul.f32 %v15035_v18, %v14990_v42  ;;  %v6953_v39 = vsel %vm5860_vm11, %v6951_v61, %v6939_v53 }
 0x387   : > { %v15136_v19 = vpop.eup %9633  ;;  %v5427_v41 = vadd.f32 %v15123_v51, %v5395_v13  ;;  %v6403_v55 = vadd.f32 %v6401_v34, %v6399_v29  ;;  %v15141_v31 = vpop.f32.mrf.mxu0  ;;  %9657 = vrcp.f32 %v5458_v63  ;;  %v15152_v36 = vsel %vm5863_vm12, %v14976_v10, %v6945_v16 }
 0x388   : > { %v15143_v26 = vpop.eup %9635  ;;  %17439 = vst [vmem:[#allocation49_spill] sm:$0xff] %v15147_v44  ;;  %17440 = vst [vmem:[#allocation98_spill] sm:$0xff] %v15152_v36  ;;  %v15154_v34 = vpop.f32.mrf.mxu1  ;;  %9659 = vpow2.f32 %v14964_v47  ;;  %v6473_v63 = vsel %vm1429_vm6, 0.0, %v6468_v0  ;;  %v15170_v16 = vmul.f32 -1.442695, %v14994_v14 }
 0x389   : > { %17441 = vst [vmem:[#allocation47_spill] sm:$0xff] %v15154_v34  ;;  %v15156_v13 = vpop.eup %9637  ;;  %v5459_v29 = vadd.f32 1e-08, %v5427_v41  ;;  %v15158_v62 = vadd.f32 %v6405_v12, %v6403_v55  ;;  %v15162_v37 = vpop.f32.mrf.mxu0  ;;  %9661 = vpow2.f32 %v14973_v45  ;;  %v6482_v10 = vmul.f32 %v6473_v63, %v5552_v38 }
 0x38a   : > { %v15164_v42 = vpop.eup %9639  ;;  %v5396_v61 = vadd.f32 %v15156_v13, %v15136_v19  ;;  %v15174_v47 = vmul.f32 -1.442695, %v14999_v40  ;;  %v15177_v41 = vmul.f32 -1.442695, %v15009_v30  ;;  %v4534_v14 = vpop.f32.mrf.mxu1  ;;  %v15188_v30 = vmul.f32 %v15132_v58, %v15014_v28 }
 0x38b   : > { %v9642_v53 = vpop.eup %9641  ;;  %9663 = vrcp.f32 %v5459_v29  ;;  %v6469_v12 = vrot.slane %v15158_v62, 7  ;;  %v4279_v55 = vpop.f32.mrf.mxu0  ;;  %v15182_v45 = vadd.f32 %v6482_v10, %v14984_v52  ;;  %v15201_v28 = vmul.f32 %v15152_v36, %v15041_v54 }
 0x38c   : > { %v9644_v34 = vpop.eup %9643  ;;  %v5428_v18 = vadd.f32 %v15143_v26, %v5396_v61  ;;  %v5301_v44 = vadd.f32 1.0, %v9642_v53  ;;  %9665 = vpow2.f32 %v14980_v17  ;;  %17442 = vst [vmem:[#allocation7_spill] sm:$0xff] %v15188_v30  ;;  %v15191_v61 = vmul.f32 -1.442695, %v15022_v33  ;;  %v6947_v52 = vpop.permute.xlu1 %6946 }
 0x38d   : > { %v5109_v38 = vadd.f32 1.0, %v9644_v34  ;;  %9667 = vpow2.f32 %v14992_v49  ;;  %v6470_v40 = vsel %vm1429_vm6, %v6468_v0, %v6469_v12  ;;  %v4283_v29 = vpop.f32.mrf.mxu0  ;;  %v9646_v63 = vpop.eup %9645  ;;  %v15194_v17 = vmul.f32 -1.442695, %v15027_v32  ;;  %17443 = vst [vmem:[#allocation33_spill] sm:$0xff] %v15201_v28 }
 0x38e   : > { %v5460_v15 = vadd.f32 1e-08, %v5428_v18  ;;  %9669 = vrcp.f32 %v5301_v44  ;;  %v4918_v34 = vadd.f32 1.0, %v9646_v63  ;;  %v15197_v49 = vmul.f32 -1.442695, %v15037_v6  ;;  %v15212_v44 = vpop.f32.mrf.mxu1 }
 0x38f   : > { %9671 = vrcp.f32 %v5109_v38  ;;  %v4285_v0 = vpop.f32.mrf.mxu0  ;;  %v9648_v10 = vpop.eup %9647  ;;  %v15204_v18 = vmul.f32 -1.442695, %v15051_v24  ;;  %v15207_v33 = vmul.f32 -1.442695, %v15061_v56  ;;  %v15210_v32 = vmul.f32 -1.442695, %v15071_v23 }
 0x390   : > { %9673 = vrcp.f32 %v5460_v15  ;;  %17444 = vst [vmem:[#allocation74_spill] sm:$0xff] %v15212_v44  ;;  %v15214_v6 = vpop.eup %9649  ;;  %v5302_v53 = vadd.f32 1.0, %v9648_v10  ;;  %v15217_v54 = vsel %vm5863_vm12, %v6953_v39, %v6947_v52  ;;  %v15220_v15 = vmul.f32 -1.442695, %v15087_v46 }
 0x391   : > { %9675 = vrcp.f32 %v4918_v34  ;;  %17445 = vst [vmem:[#allocation62_spill] sm:$0xff] %v15217_v54  ;;  %v4611_v24 = vpop.f32.mrf.mxu0  ;;  %v9652_v12 = vpop.eup %9651  ;;  %v5553_v56 = vmul.f32 %v15214_v6, %v14960_v9  ;;  %v15226_v23 = vmul.f32 -1.442695, %v15099_v1  ;;  %v15229_v38 = vmul.f32 -1.442695, %v15105_v21 }
 0x392   : > { %9677 = vpow2.f32 %v15017_v20  ;;  %v9654_v63 = vpop.eup %9653  ;;  %v5110_v39 = vadd.f32 1.0, %v9652_v12  ;;  %v15232_v52 = vmul.f32 -1.442695, %v15121_v60  ;;  %v15235_v46 = vmul.f32 -1.442695, %v15134_v27  ;;  %v4540_v21 = vpop.f32.mrf.mxu1 }
 0x393   : > { %9679 = vrcp.f32 %v5302_v53  ;;  %v4613_v34 = vpop.f32.mrf.mxu0  ;;  %v9656_v20 = vpop.eup %9655  ;;  %v4919_v10 = vadd.f32 1.0, %v9654_v63  ;;  %v6483_v9 = vmul.f32 %v6470_v40, %v5553_v56  ;;  %v15239_v1 = vmul.f32 -1.442695, %v15141_v31 }
 0x394   : > { %9681 = vpow2.f32 %v15020_v25  ;;  %v9658_v44 = vpop.eup %9657  ;;  %v15242_v53 = vmul.f32 -1.442695, %v15162_v37  ;;  %v15244_v60 = vmul.f32 -1.442695, %v4534_v14  ;;  %v15246_v12 = vmul.f32 -1.442695, %v4279_v55 }
 0x395   : > { %9683 = vrcp.f32 %v5110_v39  ;;  %v15248_v27 = vpop.f32.mrf.mxu0  ;;  %v9660_v36 = vpop.eup %9659  ;;  %v5554_v63 = vmul.f32 %v9658_v44, %v15063_v22  ;;  %v5618_v25 = vmul.f32 %v9658_v44, %v15080_v8  ;;  %v5303_v40 = vadd.f32 1.0, %v9656_v20 }
 0x396   : > { %17446 = vst [vmem:[#allocation100_spill] sm:$0xff] %v15244_v60  ;;  %17447 = vst [vmem:[#allocation52_spill] sm:$0xff] %v15246_v12  ;;  %v15252_v31 = vmul.f32 -1.442695, %v4283_v29  ;;  %v9662_v56 = vpop.eup %9661  ;;  %v5682_v39 = vmul.f32 %v9658_v44, %v15089_v11  ;;  %v5111_v58 = vadd.f32 1.0, %v9660_v36  ;;  %v15256_v37 = vadd.f32 %v6483_v9, %v15007_v57  ;;  %v17451_v44 = vld [vmem:[#allocation9_spill] sm:$0xff] }
 0x397   : > { %v15258_v14 = vmul.f32 -1.442695, %v4540_v21  ;;  %v4619_v55 = vpop.f32.mrf.mxu0  ;;  %v6554_v28 = vmul.f32 0.0, %v5554_v63  ;;  %9685 = vrcp.f32 %v4919_v10  ;;  %v4920_v30 = vadd.f32 1.0, %v9662_v56 }
 0x398   : > { %17448 = vst [vmem:[#allocation15_spill] sm:$0xff] %v15252_v31  ;;  %v9664_v54 = vpop.eup %9663  ;;  %v15260_v22 = vmul.f32 -1.442695, %v4285_v0  ;;  %9687 = vrcp.f32 %v5111_v58  ;;  %v6558_v21 = vmul.f32 0.0, %v5618_v25  ;;  %v6562_v0 = vmul.f32 0.0, %v5682_v39  ;;  %v17452_v58 = vld [vmem:[#allocation96_spill] sm:$0xff] }
 0x399   : > { %17449 = vst [vmem:[#allocation18_spill] sm:$0xff] %v15258_v14  ;;  %v9666_v8 = vpop.eup %9665  ;;  %v5555_v29 = vmul.f32 %v9664_v54, %v15101_v3  ;;  %v5619_v20 = vmul.f32 %v9664_v54, %v15107_v4  ;;  %v5683_v11 = vmul.f32 %v9664_v54, %v15123_v51  ;;  %v15265_v36 = vpop.f32.mrf.mxu0  ;;  %v6556_v9 = vadd.f32 %v6554_v28, %v17451_v44  ;;  %v17453_v31 = vld [vmem:[#allocation83_spill] sm:$0xff]  ;;  %v17454_v28 = vld [vmem:[#allocation30_spill] sm:$0xff] }
 0x39a   : > { %17450 = vst [vmem:[#allocation56_spill] sm:$0xff] %v15260_v22  ;;  %v9668_v57 = vpop.eup %9667  ;;  %9689 = vrcp.f32 %v5303_v40  ;;  %v5304_v63 = vadd.f32 1.0, %v9666_v8  ;;  %v5892_v54 = vmul.f32 %v17452_v58, %v4611_v24  ;;  %v5894_v12 = vmul.f32 %v17453_v31, %v4613_v34 }
 0x39b   : > { %v15268_v10 = vpop.eup %9669  ;;  %v6555_v56 = vmul.f32 0.0, %v5555_v29  ;;  %9691 = vrcp.f32 %v4920_v30  ;;  %v5112_v22 = vadd.f32 1.0, %v9668_v57  ;;  %v4625_v3 = vpop.f32.mrf.mxu0  ;;  %v6560_v4 = vadd.f32 %v6558_v21, %v6556_v9 }
 0x39c   : > { %v15270_v14 = vpop.eup %9671  ;;  %v6559_v51 = vmul.f32 0.0, %v5619_v20  ;;  %v6563_v40 = vmul.f32 0.0, %v5683_v11  ;;  %v5896_v11 = vadd.f32 %v5894_v12, %v5892_v54 }
 0x39d   : > { %v9674_v60 = vpop.eup %9673  ;;  %v6557_v25 = vadd.f32 %v6555_v56, %v17454_v28  ;;  %v5397_v8 = vadd.f32 %v15270_v14, %v15164_v42  ;;  %9693 = vrcp.f32 %v5112_v22  ;;  %v4629_v39 = vpop.f32.mrf.mxu0  ;;  %v15279_v29 = vadd.f32 %v6562_v0, %v6560_v4  ;;  %v17455_v4 = vld [vmem:[#allocation46_spill] sm:$0xff] }
 0x39e   : > { %v15277_v30 = vpop.eup %9675  ;;  %v5556_v57 = vmul.f32 %v9674_v60, %v15136_v19  ;;  %v5620_v20 = vmul.f32 %v9674_v60, %v15156_v13  ;;  %9695 = vrcp.f32 %v5304_v63  ;;  %v5684_v21 = vmul.f32 %v9674_v60, %v15143_v26  ;;  %9263 = vmatprep.mubr.f32.mxu1 %v5896_v11  ;;  %v17456_v60 = vld [vmem:[#allocation10_spill] sm:$0xff]  ;;  %v17457_v11 = vld [vmem:[#allocation99_spill] sm:$0xff] }
 0x39f   : > { %v9678_v24 = vpop.eup %9677  ;;  %v6561_v34 = vadd.f32 %v6559_v51, %v6557_v25  ;;  %v5429_v31 = vadd.f32 %v15268_v10, %v5397_v8  ;;  %9697 = vpow2.f32 %v15030_v35  ;;  %v4631_v44 = vpop.f32.mrf.mxu0  ;;  %v6632_v22 = vrot.slane %v15279_v29, 1 }
 0x3a0   : > { %v15285_v9 = vpop.eup %9679  ;;  %v6626_v0 = vrot.slane %v15279_v29, 7  ;;  %v4921_v19 = vadd.f32 1.0, %v9678_v24  ;;  %9699 = vpow2.f32 %v15068_v43  ;;  %v5893_v35 = vmul.f32 %v17455_v4, %v15248_v27 }
 0x3a1   : > { %v9682_v56 = vpop.eup %9681  ;;  %v15290_v13 = vadd.f32 %v6563_v40, %v6561_v34  ;;  %v5461_v63 = vadd.f32 1e-08, %v5429_v31  ;;  %v4635_v12 = vpop.f32.mrf.mxu0  ;;  %v5895_v54 = vmul.f32 %v17456_v60, %v4619_v55  ;;  %v6644_v40 = vmul.f32 %v15279_v29, %v5620_v20  ;;  %v17458_v20 = vld [vmem:[#allocation82_spill] sm:$0xff] }
 0x3a2   : > { %v15295_v51 = vpop.eup %9683  ;;  %v6631_v58 = vsel %vm1429_vm6, 0.0, %v6626_v0  ;;  %9701 = vrcp.f32 %v4921_v19  ;;  %v5305_v26 = vadd.f32 1.0, %v9682_v56  ;;  %v5978_v19 = vmul.f32 %v17458_v20, %v15265_v36  ;;  %v17460_v36 = vld [vmem:[#allocation72_spill] sm:$0xff]  ;;  %v17462_v20 = vld [vmem:[#allocation75_spill] sm:$0xff] }
 0x3a3   : > { %v6633_v28 = vrot.slane %v15290_v13, 1  ;;  %v6640_v25 = vmul.f32 %v6631_v58, %v5556_v57  ;;  %9703 = vrcp.f32 %v5461_v63  ;;  %v4637_v43 = vpop.f32.mrf.mxu0  ;;  %v6627_v8 = vrot.slane %v15290_v13, 7 }
 0x3a4   : > { %v5398_v27 = vadd.f32 %v15295_v51, %v15277_v30  ;;  %9705 = vrcp.f32 %v5305_v26  ;;  %v5897_v24 = vadd.f32 %v5895_v54, %v5893_v35  ;;  %v15304_v34 = vpop.eup %9685  ;;  %v17459_v35 = vld [vmem:[#allocation29_spill] sm:$0xff] }
 0x3a5   : > { %v6634_v31 = vsel %vm2038_vm7, %v6632_v22, %v6633_v28  ;;  %v15308_v55 = vsel %vm2038_vm7, %v6633_v28, 0.0  ;;  %v6642_v57 = vadd.f32 %v6640_v25, %v17457_v11  ;;  %v4641_v56 = vpop.f32.mrf.mxu0  ;;  %v15313_v63 = vpop.eup %9687  ;;  %9707 = vpow2.f32 %v15111_v2 }
 0x3a6   : > { %v6648_v4 = vmul.f32 %v6634_v31, %v5684_v21  ;;  %v5430_v58 = vadd.f32 %v15285_v9, %v5398_v27  ;;  %v5980_v26 = vmul.f32 %v17459_v35, %v4625_v3  ;;  %9264 = vmatmul.mubr.f32.vlgmr.msra.gmra.mxu1 %v5897_v24  ;;  %v5399_v54 = vadd.f32 %v15313_v63, %v15304_v34  ;;  %v17461_v27 = vld [vmem:[#allocation71_spill] sm:$0xff] }
 0x3a7   : > { %v15318_v22 = vpop.eup %9689  ;;  %v6646_v60 = vadd.f32 %v6644_v40, %v6642_v57  ;;  %9709 = vpow2.f32 %v15127_v48  ;;  %v5979_v28 = vmul.f32 %v17460_v36, %v4629_v39  ;;  %v4643_v25 = vpop.f32.mrf.mxu0  ;;  %v5981_v3 = vmul.f32 %v17461_v27, %v4631_v44 }
 0x3a8   : > { %v15324_v11 = vpop.eup %9691  ;;  %v5462_v21 = vadd.f32 1e-08, %v5430_v58  ;;  %9711 = vpow2.f32 %v15170_v16  ;;  %v5982_v2 = vadd.f32 %v5980_v26, %v5978_v19  ;;  %v6628_v40 = vsel %vm1429_vm6, %v6626_v0, %v6627_v8  ;;  %v17463_v16 = vld [vmem:[#allocation36_spill] sm:$0xff]  ;;  %v17464_v8 = vld [vmem:[#allocation81_spill] sm:$0xff] }
 0x3a9   : > { %v15328_v24 = vadd.f32 %v6648_v4, %v6646_v60  ;;  %v5431_v31 = vadd.f32 %v15318_v22, %v5399_v54  ;;  %9713 = vpow2.f32 %v15174_v47  ;;  %v4647_v48 = vpop.f32.mrf.mxu0  ;;  %v5983_v39 = vadd.f32 %v5981_v3, %v5979_v28 }
 0x3aa   : > { %v15333_v57 = vpop.eup %9693  ;;  %9715 = vrcp.f32 %v5462_v21  ;;  %9266 = vmatprep.mubr.f32.mxu1 %v5982_v2  ;;  %v6064_v58 = vmul.f32 %v17462_v20, %v4635_v12  ;;  %v6066_v19 = vmul.f32 %v17463_v16, %v4637_v43  ;;  %v6065_v47 = vmul.f32 %v17464_v8, %v4641_v56  ;;  %v17465_v12 = vld [vmem:[#allocation26_spill] sm:$0xff]  ;;  %v17466_v2 = vld [vmem:[#allocation84_spill] sm:$0xff] }
 0x3ab   : > { %v15337_v35 = vpop.eup %9695  ;;  %v6712_v44 = vrot.slane %v15328_v24, 7  ;;  %v5463_v4 = vadd.f32 1e-08, %v5431_v31  ;;  %v5400_v0 = vadd.f32 %v15333_v57, %v15324_v11  ;;  %v4649_v26 = vpop.f32.mrf.mxu0  ;;  %v6718_v54 = vrot.slane %v15328_v24, 1  ;;  %9267 = vmatmul.mubr.f32.gmra.mxu1 %v5983_v39  ;;  %v17467_v39 = vld [vmem:[#allocation64_spill] sm:$0xff] }
 0x3ac   : > { %v9698_v60 = vpop.eup %9697  ;;  %9717 = vpow2.f32 %v15177_v41  ;;  %v6068_v36 = vadd.f32 %v6066_v19, %v6064_v58  ;;  %v6067_v43 = vmul.f32 %v17465_v12, %v4643_v25  ;;  %v6150_v27 = vmul.f32 %v17466_v2, %v4647_v48  ;;  %v17468_v48 = vld [vmem:[#allocation31_spill] sm:$0xff] }
 0x3ad   : > { %9719 = vrcp.f32 %v5463_v4  ;;  %v5432_v28 = vadd.f32 %v15337_v35, %v5400_v0  ;;  %v5113_v21 = vadd.f32 1.0, %v9698_v60  ;;  %v4653_v3 = vpop.f32.mrf.mxu0  ;;  %v9700_v31 = vpop.eup %9699  ;;  %v15351_v56 = vsel %vm1429_vm6, 0.0, %v6712_v44  ;;  %v17469_v60 = vld [vmem:[#allocation87_spill] sm:$0xff] }
 0x3ae   : > { %9721 = vpow2.f32 %v15191_v61  ;;  %v6069_v41 = vadd.f32 %v6067_v43, %v6065_v47  ;;  %9269 = vmatprep.mubr.f32.mxu1 %v6068_v36  ;;  %v6152_v20 = vmul.f32 %v17467_v39, %v4649_v26  ;;  %v4922_v16 = vadd.f32 1.0, %v9700_v31  ;;  %v17470_v47 = vld [vmem:[#allocation69_spill] sm:$0xff] }
 0x3af   : > { %v15355_v25 = vpop.eup %9701  ;;  %v5464_v58 = vadd.f32 1e-08, %v5432_v28  ;;  %9723 = vrcp.f32 %v5113_v21  ;;  %v4655_v19 = vpop.f32.mrf.mxu0  ;;  %v5616_v4 = vmul.f32 %v15073_v7, %v17468_v48  ;;  %v6151_v61 = vmul.f32 %v17469_v60, %v4653_v3  ;;  %v17471_v21 = vld [vmem:[#allocation22_spill] sm:$0xff] }
 0x3b0   : > { %v9704_v0 = vpop.eup %9703  ;;  %9725 = vpow2.f32 %v15194_v17  ;;  %v6154_v8 = vadd.f32 %v6152_v20, %v6150_v27  ;;  %9270 = vmatmul.mubr.f32.gmra.mxu1 %v6069_v41  ;;  %v6153_v36 = vmul.f32 %v17470_v47, %v4655_v19  ;;  %v15368_v2 = vmul.f32 %v15073_v7, %v17471_v21  ;;  %v17472_v3 = vld [vmem:[#allocation90_spill] sm:$0xff]  ;;  %v17473_v7 = vld [vmem:[#allocation79_spill] sm:$0xff] }
 0x3b1   : > { %v15362_v12 = vpop.eup %9705  ;;  %v5557_v26 = vmul.f32 %v9704_v0, %v15164_v42  ;;  %v5621_v43 = vmul.f32 %v9704_v0, %v15270_v14  ;;  %9727 = vrcp.f32 %v5464_v58  ;;  %v4659_v28 = vpop.f32.mrf.mxu0  ;;  %v5685_v17 = vmul.f32 %v9704_v0, %v15268_v10  ;;  %v17474_v0 = vld [vmem:[#allocation44_spill] sm:$0xff] }
 0x3b2   : > { %9729 = vrcp.f32 %v4922_v16  ;;  %v6155_v27 = vadd.f32 %v6153_v36, %v6151_v61  ;;  %9272 = vmatprep.mubr.f32.mxu1 %v6154_v8  ;;  %v6236_v31 = vmul.f32 %v17472_v3, %v4659_v28  ;;  %v9708_v41 = vpop.eup %9707  ;;  %v6474_v14 = vrot.slane %v15115_v50, 1 }
 0x3b3   : > { %v6641_v39 = vmul.f32 %v6628_v40, %v5557_v26  ;;  %v6645_v20 = vmul.f32 %v15290_v13, %v5621_v43  ;;  %9731 = vpow2.f32 %v15197_v49  ;;  %v4661_v42 = vpop.f32.mrf.mxu0  ;;  %v5306_v19 = vadd.f32 1.0, %v9708_v41 }
 0x3b4   : > { %v9710_v58 = vpop.eup %9709  ;;  %9733 = vpow2.f32 %v15204_v18  ;;  %v6238_v10 = vmul.f32 %v17473_v7, %v4661_v42  ;;  %9273 = vmatmul.mubr.f32.gmra.mxu1 %v6155_v27  ;;  %v6475_v16 = vrot.slane %v15158_v62, 1  ;;  %v6486_v49 = vmul.f32 %v15115_v50, %v5616_v4 }
 0x3b5   : > { %v9712_v48 = vpop.eup %9711  ;;  %v6643_v8 = vadd.f32 %v6641_v39, %v17474_v0  ;;  %v5114_v40 = vadd.f32 1.0, %v9710_v58  ;;  %9735 = vpow2.f32 %v15207_v33  ;;  %v4665_v60 = vpop.f32.mrf.mxu0  ;;  %v6649_v47 = vmul.f32 %v15308_v55, %v5685_v17 }
 0x3b6   : > { %v9714_v61 = vpop.eup %9713  ;;  %9737 = vrcp.f32 %v5306_v19  ;;  %v4923_v36 = vadd.f32 1.0, %v9712_v48  ;;  %v6240_v18 = vadd.f32 %v6238_v10, %v6236_v31  ;;  %v15385_v27 = vsel %vm2038_vm7, %v6474_v14, %v6475_v16  ;;  %v17476_v48 = vld [vmem:[#allocation43_spill] sm:$0xff] }
 0x3b7   : > { %v9716_v26 = vpop.eup %9715  ;;  %v6647_v43 = vadd.f32 %v6645_v20, %v6643_v8  ;;  %9739 = vrcp.f32 %v5114_v40  ;;  %v5307_v28 = vadd.f32 1.0, %v9714_v61  ;;  %v4667_v21 = vpop.f32.mrf.mxu0  ;;  %v6237_v55 = vmul.f32 %v14704_v59, %v4665_v60 }
 0x3b8   : > { %v5558_v33 = vmul.f32 %v9716_v26, %v15277_v30  ;;  %v5622_v4 = vmul.f32 %v9716_v26, %v15295_v51  ;;  %9741 = vrcp.f32 %v4923_v36  ;;  %9275 = vmatprep.mubr.f32.mxu1 %v6240_v18  ;;  %v5686_v31 = vmul.f32 %v9716_v26, %v15285_v9  ;;  %v17475_v51 = vld [vmem:[#allocation34_spill] sm:$0xff] }
 0x3b9   : > { %v9718_v17 = vpop.eup %9717  ;;  %v15390_v3 = vadd.f32 %v6649_v47, %v6647_v43  ;;  %9743 = vrcp.f32 %v5307_v28  ;;  %v4671_v41 = vpop.f32.mrf.mxu0  ;;  %v15394_v39 = vadd.f32 %v6486_v49, %v15182_v45  ;;  %v6239_v14 = vmul.f32 %v17475_v51, %v4667_v21 }
 0x3ba   : > { %v9720_v20 = vpop.eup %9719  ;;  %v6726_v42 = vmul.f32 %v15351_v56, %v5558_v33  ;;  %v5115_v30 = vadd.f32 1.0, %v9718_v17  ;;  %9745 = vpow2.f32 %v15210_v32  ;;  %v6730_v19 = vmul.f32 %v15328_v24, %v5622_v4 }
 0x3bb   : > { %v9722_v59 = vpop.eup %9721  ;;  %v6719_v58 = vrot.slane %v15390_v3, 1  ;;  %v5559_v9 = vmul.f32 %v9720_v20, %v15304_v34  ;;  %v5623_v7 = vmul.f32 %v9720_v20, %v15313_v63  ;;  %v4673_v10 = vpop.f32.mrf.mxu0  ;;  %v6713_v56 = vrot.slane %v15390_v3, 7 }
 0x3bc   : > { %v15403_v45 = vpop.eup %9723  ;;  %v6728_v0 = vadd.f32 %v6726_v42, %v17476_v48  ;;  %9747 = vrcp.f32 %v5115_v30  ;;  %v4924_v32 = vadd.f32 1.0, %v9722_v59  ;;  %v5687_v34 = vmul.f32 %v9720_v20, %v15318_v22 }
 0x3bd   : > { %v9726_v8 = vpop.eup %9725  ;;  %v6723_v40 = vsel %vm2038_vm7, %v6719_v58, 0.0  ;;  %v6720_v60 = vsel %vm2038_vm7, %v6718_v54, %v6719_v58  ;;  %v5401_v63 = vadd.f32 %v15403_v45, %v15355_v25  ;;  %v4677_v49 = vpop.f32.mrf.mxu0  ;;  %v6714_v18 = vsel %vm1429_vm6, %v6712_v44, %v6713_v56 }
 0x3be   : > { %v9728_v61 = vpop.eup %9727  ;;  %v6732_v47 = vadd.f32 %v6730_v19, %v6728_v0  ;;  %v6734_v36 = vmul.f32 %v6720_v60, %v5686_v31  ;;  %v6731_v26 = vmul.f32 %v15390_v3, %v5623_v7  ;;  %v6727_v28 = vmul.f32 %v6714_v18, %v5559_v9 }
 0x3bf   : > { %v15418_v43 = vpop.eup %9729  ;;  %v6735_v21 = vmul.f32 %v6723_v40, %v5687_v34  ;;  %v5560_v54 = vmul.f32 %v9728_v61, %v15324_v11  ;;  %v5624_v22 = vmul.f32 %v9728_v61, %v15333_v57  ;;  %v4679_v33 = vpop.f32.mrf.mxu0  ;;  %v5433_v31 = vadd.f32 %v15362_v12, %v5401_v63 }
 0x3c0   : > { %v9732_v4 = vpop.eup %9731  ;;  %v15422_v17 = vadd.f32 %v6734_v36, %v6732_v47  ;;  %9749 = vrcp.f32 %v4924_v32  ;;  %v5308_v20 = vadd.f32 1.0, %v9726_v8  ;;  %v6729_v44 = vadd.f32 %v6727_v28, %v14970_v5  ;;  %v17478_v8 = vld [vmem:[#allocation6_spill] sm:$0xff] }
 0x3c1   : > { %v9734_v42 = vpop.eup %9733  ;;  %v5116_v30 = vadd.f32 1.0, %v9732_v4  ;;  %9751 = vpow2.f32 %v15220_v15  ;;  %v6241_v51 = vadd.f32 %v6239_v14, %v6237_v55  ;;  %v4683_v59 = vpop.f32.mrf.mxu0  ;;  %v5465_v9 = vadd.f32 1e-08, %v5433_v31  ;;  %v17477_v55 = vld [vmem:[#allocation50_spill] sm:$0xff]  ;;  %v17480_v4 = vld [vmem:[#allocation8_spill] sm:$0xff] }
 0x3c2   : > { %v9736_v58 = vpop.eup %9735  ;;  %v6798_v11 = vrot.slane %v15422_v17, 7  ;;  %v6804_v57 = vrot.slane %v15422_v17, 1  ;;  %v6816_v19 = vmul.f32 %v15422_v17, %v5624_v22  ;;  %v6733_v48 = vadd.f32 %v6731_v26, %v6729_v44  ;;  %v17479_v28 = vld [vmem:[#allocation94_spill] sm:$0xff] }
 0x3c3   : > { %v15430_v7 = vpop.eup %9737  ;;  %9753 = vrcp.f32 %v5308_v20  ;;  %v4925_v0 = vadd.f32 1.0, %v9734_v42  ;;  %v5309_v56 = vadd.f32 1.0, %v9736_v58  ;;  %9276 = vmatmul.mubr.f32.gmra.mxu1 %v6241_v51  ;;  %v4685_v5 = vpop.f32.mrf.mxu0  ;;  %v6322_v14 = vmul.f32 %v17477_v55, %v4671_v41  ;;  %v17481_v20 = vld [vmem:[#allocation25_spill] sm:$0xff] }
 0x3c4   : > { %v15432_v32 = vpop.eup %9739  ;;  %v6803_v15 = vsel %vm1429_vm6, 0.0, %v6798_v11  ;;  %9755 = vrcp.f32 %v5465_v9  ;;  %v6324_v40 = vmul.f32 %v17478_v8, %v4673_v10  ;;  %v15439_v34 = vadd.f32 %v6735_v21, %v6733_v48 }
 0x3c5   : > { %v15437_v60 = vpop.eup %9741  ;;  %v6812_v63 = vmul.f32 %v6803_v15, %v5560_v54  ;;  %v5402_v47 = vadd.f32 %v15432_v32, %v15418_v43  ;;  %9757 = vrcp.f32 %v5116_v30  ;;  %v4689_v36 = vpop.f32.mrf.mxu0  ;;  %v6323_v22 = vmul.f32 %v17479_v28, %v4677_v49 }
 0x3c6   : > { %v15443_v18 = vpop.eup %9743  ;;  %9759 = vrcp.f32 %v4925_v0  ;;  %v6326_v26 = vadd.f32 %v6324_v40, %v6322_v14  ;;  %v6325_v41 = vmul.f32 %v17480_v4, %v4679_v33  ;;  %v6805_v10 = vrot.slane %v15439_v34, 1  ;;  %v17484_v4 = vld [vmem:[#allocation37_spill] sm:$0xff] }
 0x3c7   : > { %v9746_v31 = vpop.eup %9745  ;;  %v6814_v21 = vadd.f32 %v6812_v63, %v17481_v20  ;;  %v6799_v54 = vrot.slane %v15439_v34, 7  ;;  %v5434_v42 = vadd.f32 %v15430_v7, %v5402_v47  ;;  %v4691_v44 = vpop.f32.mrf.mxu0  ;;  %v5688_v30 = vmul.f32 %v9728_v61, %v15337_v35  ;;  %v17482_v35 = vld [vmem:[#allocation77_spill] sm:$0xff] }
 0x3c8   : > { %9761 = vrcp.f32 %v5309_v56  ;;  %v5117_v51 = vadd.f32 1.0, %v9746_v31  ;;  %v6327_v58 = vadd.f32 %v6325_v41, %v6323_v22  ;;  %9278 = vmatprep.mubr.f32.mxu1 %v6326_v26  ;;  %v6806_v49 = vsel %vm2038_vm7, %v6804_v57, %v6805_v10  ;;  %v17483_v57 = vld [vmem:[#allocation27_spill] sm:$0xff] }
 0x3c9   : > { %v15452_v9 = vpop.eup %9747  ;;  %v6818_v33 = vadd.f32 %v6816_v19, %v6814_v21  ;;  %v6800_v48 = vsel %vm1429_vm6, %v6798_v11, %v6799_v54  ;;  %v6408_v0 = vmul.f32 %v15115_v50, %v4683_v59  ;;  %v4695_v15 = vpop.f32.mrf.mxu0  ;;  %v6820_v55 = vmul.f32 %v6806_v49, %v5688_v30  ;;  %v17486_v54 = vld [vmem:[#allocation45_spill] sm:$0xff] }
 0x3ca   : > { %v5466_v14 = vadd.f32 1e-08, %v5434_v42  ;;  %v5403_v8 = vadd.f32 %v15452_v9, %v15437_v60  ;;  %9763 = vrcp.f32 %v5117_v51  ;;  %9279 = vmatmul.mubr.f32.gmra.mxu1 %v6327_v58  ;;  %v6410_v61 = vmul.f32 %v17482_v35, %v4685_v5 }
 0x3cb   : > { %9765 = vpow2.f32 %v15226_v23  ;;  %v6409_v56 = vmul.f32 %v15158_v62, %v4689_v36  ;;  %v6411_v19 = vmul.f32 %v17483_v57, %v4691_v44  ;;  %v4697_v40 = vpop.f32.mrf.mxu0  ;;  %v15463_v11 = vadd.f32 %v6820_v55, %v6818_v33 }
 0x3cc   : > { %9767 = vrcp.f32 %v5466_v14  ;;  %v5435_v50 = vadd.f32 %v15443_v18, %v5403_v8  ;;  %v6490_v59 = vmul.f32 %v15385_v27, %v15368_v2  ;;  %v6809_v47 = vsel %vm2038_vm7, %v6805_v10, 0.0  ;;  %v17485_v27 = vld [vmem:[#allocation91_spill] sm:$0xff]  ;;  %v17487_v8 = vld [vmem:[#allocation100_spill] sm:$0xff] }
 0x3cd   : > { %v15468_v63 = vpop.eup %9749  ;;  %9769 = vpow2.f32 %v15229_v38  ;;  %v6412_v23 = vadd.f32 %v6410_v61, %v6408_v0  ;;  %v6413_v5 = vadd.f32 %v6411_v19, %v6409_v56  ;;  %v15472_v36 = vpop.f32.mrf.mxu0  ;;  %v6884_v28 = vrot.slane %v15463_v11, 7  ;;  %v17489_v56 = vld [vmem:[#allocation52_spill] sm:$0xff]  ;;  %v17490_v19 = vld [vmem:[#allocation66_spill] sm:$0xff] }
 0x3ce   : > { %v9752_v26 = vpop.eup %9751  ;;  %v5467_v22 = vadd.f32 1e-08, %v5435_v50  ;;  %9771 = vpow2.f32 %v15232_v52  ;;  %v6496_v41 = vmul.f32 %v17484_v4, %v4697_v40  ;;  %v6492_v2 = vadd.f32 %v6490_v59, %v15394_v39  ;;  %v17491_v40 = vld [vmem:[#allocation15_spill] sm:$0xff]  ;;  %v17492_v50 = vld [vmem:[#allocation85_spill] sm:$0xff] }
 0x3cf   : > { %v4926_v31 = vadd.f32 1.0, %v9752_v26  ;;  %9773 = vpow2.f32 %v15235_v46  ;;  %9281 = vmatprep.mubr.f32.mxu1 %v6412_v23  ;;  %v5617_v38 = vmul.f32 %v15214_v6, %v17485_v27  ;;  %v4703_v10 = vpop.f32.mrf.mxu0  ;;  %v15486_v21 = vsel %vm1429_vm6, 0.0, %v6884_v28  ;;  %v17493_v26 = vld [vmem:[#allocation18_spill] sm:$0xff]  ;;  %v17494_v27 = vld [vmem:[#allocation56_spill] sm:$0xff] }
 0x3d0   : > { %v15481_v20 = vpop.eup %9753  ;;  %v6890_v52 = vrot.slane %v15463_v11, 1  ;;  %9775 = vrcp.f32 %v5467_v22  ;;  %9282 = vmatmul.mubr.f32.gmra.mxu1 %v6413_v5  ;;  %v5681_v46 = vmul.f32 %v15214_v6, %v17486_v54  ;;  %v6494_v39 = vmul.f32 %v6492_v2, %v4695_v15 }
 0x3d1   : > { %v9756_v42 = vpop.eup %9755  ;;  %9777 = vrcp.f32 %v4926_v31  ;;  %v6479_v44 = vsel %vm2038_vm7, %v6475_v16, 0.0  ;;  %v6487_v30 = vmul.f32 %v15158_v62, %v5617_v38  ;;  %v4707_v51 = vpop.f32.mrf.mxu0 }
 0x3d2   : > { %v15495_v58 = vpop.eup %9757  ;;  %v5561_v49 = vmul.f32 %v9756_v42, %v15355_v25  ;;  %v5625_v33 = vmul.f32 %v9756_v42, %v15403_v45  ;;  %v5689_v0 = vmul.f32 %v9756_v42, %v15362_v12  ;;  %9779 = vpow2.f32 %v15239_v1  ;;  %v17488_v45 = vld [vmem:[#allocation93_spill] sm:$0xff] }
 0x3d3   : > { %v15501_v6 = vpop.eup %9759  ;;  %v5404_v15 = vadd.f32 %v15495_v58, %v15468_v63  ;;  %9781 = vpow2.f32 %v15242_v53  ;;  %v6498_v16 = vadd.f32 %v6496_v41, %v6494_v39  ;;  %v6489_v62 = vadd.f32 %v6487_v30, %v15256_v37  ;;  %v4709_v55 = vpop.f32.mrf.mxu0 }
 0x3d4   : > { %v6813_v14 = vmul.f32 %v6800_v48, %v5561_v49  ;;  %v6817_v25 = vmul.f32 %v15439_v34, %v5625_v33  ;;  %9783 = vpow2.f32 %v17487_v8  ;;  %v6497_v12 = vmul.f32 %v17488_v45, %v4703_v10 }
 0x3d5   : > { %v15510_v35 = vpop.eup %9761  ;;  %v6821_v1 = vmul.f32 %v6809_v47, %v5689_v0  ;;  %v5436_v61 = vadd.f32 %v15481_v20, %v5404_v15  ;;  %9785 = vpow2.f32 %v17489_v56  ;;  %v6491_v57 = vmul.f32 %v6479_v44, %v5681_v46  ;;  %9284 = vmatprep.mubr.f32.mxu1 %v6498_v16  ;;  %v4713_v53 = vpop.f32.mrf.mxu0  ;;  %v17495_v46 = vld [vmem:[#allocation97_spill] sm:$0xff] }
 0x3d6   : > { %v6815_v37 = vadd.f32 %v6813_v14, %v17490_v19  ;;  %9787 = vpow2.f32 %v17491_v40  ;;  %v6566_v48 = vmul.f32 %v15279_v29, %v4707_v51  ;;  %v6568_v59 = vmul.f32 %v17492_v50, %v4709_v55  ;;  %v17496_v56 = vld [vmem:[#allocation49_spill] sm:$0xff] }
 0x3d7   : > { %v15518_v23 = vpop.eup %9763  ;;  %v5468_v5 = vadd.f32 1e-08, %v5436_v61  ;;  %9789 = vpow2.f32 %v17493_v26  ;;  %v6493_v47 = vadd.f32 %v6491_v57, %v6489_v62  ;;  %v15522_v22 = vmul.f32 %v15290_v13, %v4713_v53  ;;  %v4715_v4 = vpop.f32.mrf.mxu0 }
 0x3d8   : > { %v9766_v41 = vpop.eup %9765  ;;  %v6819_v31 = vadd.f32 %v6817_v25, %v6815_v37  ;;  %v5405_v2 = vadd.f32 %v15518_v23, %v15501_v6  ;;  %9791 = vpow2.f32 %v17494_v27  ;;  %v6570_v29 = vadd.f32 %v6568_v59, %v6566_v48  ;;  %v17497_v27 = vld [vmem:[#allocation7_spill] sm:$0xff] }
 0x3d9   : > { %v9768_v38 = vpop.eup %9767  ;;  %9793 = vrcp.f32 %v5468_v5  ;;  %v5310_v10 = vadd.f32 1.0, %v9766_v41  ;;  %v6495_v54 = vmul.f32 %v6493_v47, %v15472_v36  ;;  %v6569_v42 = vmul.f32 %v17495_v46, %v4715_v4  ;;  %v4719_v39 = vpop.f32.mrf.mxu0 }
 0x3da   : > { %v9770_v44 = vpop.eup %9769  ;;  %v15529_v13 = vadd.f32 %v6821_v1, %v6819_v31  ;;  %v5562_v30 = vmul.f32 %v9768_v38, %v15418_v43  ;;  %v5626_v51 = vmul.f32 %v9768_v38, %v15432_v32  ;;  %v5690_v49 = vmul.f32 %v9768_v38, %v15430_v7 }
 0x3db   : > { %v9772_v33 = vpop.eup %9771  ;;  %v5437_v0 = vadd.f32 %v15510_v35, %v5405_v2  ;;  %9795 = vrcp.f32 %v5310_v10  ;;  %v5118_v15 = vadd.f32 1.0, %v9770_v44  ;;  %v6499_v16 = vadd.f32 %v6497_v12, %v6495_v54  ;;  %v4721_v62 = vpop.f32.mrf.mxu0 }
 0x3dc   : > { %v9774_v36 = vpop.eup %9773  ;;  %v6891_v55 = vrot.slane %v15529_v13, 1  ;;  %v6898_v14 = vmul.f32 %v15486_v21, %v5562_v30  ;;  %v6902_v25 = vmul.f32 %v15463_v11, %v5626_v51  ;;  %v6885_v43 = vrot.slane %v15529_v13, 7 }
 0x3dd   : > { %v9776_v8 = vpop.eup %9775  ;;  %v5469_v32 = vadd.f32 1e-08, %v5437_v0  ;;  %9797 = vrcp.f32 %v5118_v15  ;;  %v4927_v7 = vadd.f32 1.0, %v9772_v33  ;;  %v5311_v45 = vadd.f32 1.0, %v9774_v36  ;;  %9285 = vmatmul.mubr.f32.gmra.mxu1 %v6499_v16  ;;  %v15539_v1 = vpop.f32.mrf.mxu0  ;;  %v17498_v36 = vld [vmem:[#allocation32_spill] sm:$0xff] }
 0x3de   : > { %v15541_v61 = vpop.eup %9777  ;;  %v6892_v12 = vsel %vm2038_vm7, %v6890_v52, %v6891_v55  ;;  %v6900_v21 = vadd.f32 %v6898_v14, %v17496_v56  ;;  %v5563_v57 = vmul.f32 %v9776_v8, %v15437_v60  ;;  %v5627_v53 = vmul.f32 %v9776_v8, %v15452_v9  ;;  %9287 = vmatprep.mubr.f32.mxu1 %v6570_v29  ;;  %v15573_v56 = vpop.permute.xlu0 %7014 }
 0x3df   : > { %v9780_v19 = vpop.eup %9779  ;;  %v6906_v37 = vmul.f32 %v6892_v12, %v5690_v49  ;;  %v5691_v40 = vmul.f32 %v9776_v8, %v15443_v18  ;;  %v6886_v48 = vsel %vm1429_vm6, %v6884_v28, %v6885_v43  ;;  %v6895_v50 = vsel %vm2038_vm7, %v6891_v55, 0.0  ;;  %v4727_v59 = vpop.f32.mrf.mxu0 }
 0x3e0   : > { %v9782_v5 = vpop.eup %9781  ;;  %v6904_v52 = vadd.f32 %v6902_v25, %v6900_v21  ;;  %v6899_v26 = vmul.f32 %v6886_v48, %v5563_v57  ;;  %v6903_v47 = vmul.f32 %v15529_v13, %v5627_v53  ;;  %9799 = vrcp.f32 %v5469_v32 }
 0x3e1   : > { %v9784_v60 = vpop.eup %9783  ;;  %v6907_v9 = vmul.f32 %v6895_v50, %v5691_v40  ;;  %9801 = vrcp.f32 %v4927_v7  ;;  %v5119_v4 = vadd.f32 1.0, %v9780_v19  ;;  %v4928_v41 = vadd.f32 1.0, %v9782_v5  ;;  %v4731_v31 = vpop.f32.mrf.mxu0  ;;  %v17499_v40 = vld [vmem:[#allocation65_spill] sm:$0xff] }
 0x3e2   : > { %v9786_v18 = vpop.eup %9785  ;;  %v15555_v2 = vadd.f32 %v6906_v37, %v6904_v52  ;;  %v6901_v28 = vadd.f32 %v6899_v26, %v17497_v27  ;;  %9803 = vrcp.f32 %v5311_v45  ;;  %v5312_v29 = vadd.f32 1.0, %v9784_v60  ;;  %v17500_v50 = vld [vmem:[#allocation33_spill] sm:$0xff]  ;;  %v17501_v60 = vld [vmem:[#allocation88_spill] sm:$0xff] }
 0x3e3   : > { %v9788_v38 = vpop.eup %9787  ;;  %9805 = vrcp.f32 %v5119_v4  ;;  %v5120_v10 = vadd.f32 1.0, %v9786_v18  ;;  %v6571_v54 = vadd.f32 %v6569_v42, %v15522_v22  ;;  %v6652_v46 = vmul.f32 %v15328_v24, %v4719_v39  ;;  %v4733_v44 = vpop.f32.mrf.mxu0 }
 0x3e4   : > { %v9790_v30 = vpop.eup %9789  ;;  %v6905_v51 = vadd.f32 %v6903_v47, %v6901_v28  ;;  %v6970_v49 = vrot.slane %v15555_v2, 7  ;;  %v6976_v33 = vrot.slane %v15555_v2, 1  ;;  %9807 = vrcp.f32 %v4928_v41  ;;  %v17502_v41 = vld [vmem:[#allocation38_spill] sm:$0xff] }
 0x3e5   : > { %v9792_v0 = vpop.eup %9791  ;;  %9809 = vrcp.f32 %v5312_v29  ;;  %v4929_v15 = vadd.f32 1.0, %v9788_v38  ;;  %v5313_v16 = vadd.f32 1.0, %v9790_v30  ;;  %v6654_v55 = vmul.f32 %v17498_v36, %v4721_v62  ;;  %9288 = vmatmul.mubr.f32.gmra.mxu1 %v6571_v54  ;;  %v4737_v14 = vpop.f32.mrf.mxu0 }
 0x3e6   : > { %v9794_v25 = vpop.eup %9793  ;;  %v15563_v22 = vadd.f32 %v6907_v9, %v6905_v51  ;;  %v6975_v24 = vsel %vm1429_vm6, 0.0, %v6970_v49  ;;  %9811 = vrcp.f32 %v5120_v10  ;;  %v5121_v42 = vadd.f32 1.0, %v9792_v0  ;;  %v17503_v10 = vld [vmem:[#allocation42_spill] sm:$0xff] }
 0x3e7   : > { %v5564_v39 = vmul.f32 %v9794_v25, %v15468_v63  ;;  %v5628_v43 = vmul.f32 %v9794_v25, %v15495_v58  ;;  %v5692_v8 = vmul.f32 %v9794_v25, %v15481_v20  ;;  %9813 = vrcp.f32 %v4929_v15  ;;  %v4739_v32 = vpop.f32.mrf.mxu0 }
 0x3e8   : > { %v15569_v7 = vpop.eup %9795  ;;  %v6977_v62 = vrot.slane %v15563_v22, 1  ;;  %v6971_v45 = vrot.slane %v15563_v22, 7  ;;  %9815 = vrcp.f32 %v5313_v16  ;;  %v6656_v12 = vadd.f32 %v6654_v55, %v6652_v46  ;;  %v17504_v55 = vld [vmem:[#allocation78_spill] sm:$0xff] }
 0x3e9   : > { %v6984_v21 = vmul.f32 %v6975_v24, %v5564_v39  ;;  %v6988_v57 = vmul.f32 %v15555_v2, %v5628_v43  ;;  %9817 = vrcp.f32 %v5121_v42  ;;  %v6653_v63 = vmul.f32 %v15390_v3, %v15539_v1  ;;  %v4743_v20 = vpop.f32.mrf.mxu0 }
 0x3ea   : > { %v15578_v58 = vpop.eup %9797  ;;  %v6978_v53 = vsel %vm2038_vm7, %v6976_v33, %v6977_v62  ;;  %v6972_v19 = vsel %vm1429_vm6, %v6970_v49, %v6971_v45  ;;  %v6981_v37 = vsel %vm2038_vm7, %v6977_v62, 0.0  ;;  %v6655_v48 = vmul.f32 %v17499_v40, %v4727_v59  ;;  %9290 = vmatprep.mubr.f32.mxu1 %v6656_v12  ;;  %v15591_v59 = vpop.permute.xlu1 %7016  ;;  %v17506_v62 = vld [vmem:[#allocation92_spill] sm:$0xff] }
 0x3eb   : > { %v6986_v5 = vadd.f32 %v6984_v21, %v17500_v50  ;;  %v6992_v52 = vmul.f32 %v6978_v53, %v5692_v8  ;;  %v5406_v26 = vadd.f32 %v15578_v58, %v15541_v61  ;;  %v6738_v3 = vmul.f32 %v15422_v17, %v4731_v31  ;;  %v4745_v1 = vpop.f32.mrf.mxu0  ;;  %v15603_v49 = vpop.permute.xlu0 %7022 }
 0x3ec   : > { %v6657_v47 = vadd.f32 %v6655_v48, %v6653_v63  ;;  %v6740_v9 = vmul.f32 %v17501_v60, %v4733_v44  ;;  %v6739_v4 = vmul.f32 %v15439_v34, %v4737_v14  ;;  %v6741_v18 = vmul.f32 %v17502_v41, %v4739_v32 }
 0x3ed   : > { %v9800_v27 = vpop.eup %9799  ;;  %v6990_v28 = vadd.f32 %v6988_v57, %v6986_v5  ;;  %v5438_v29 = vadd.f32 %v15569_v7, %v5406_v26  ;;  %v6824_v38 = vmul.f32 %v15463_v11, %v4743_v20  ;;  %v6826_v54 = vmul.f32 %v17503_v10, %v4745_v1  ;;  %v4749_v46 = vpop.f32.mrf.mxu0 }
 0x3ee   : > { %v15596_v17 = vpop.eup %9801  ;;  %v5565_v31 = vmul.f32 %v9800_v27, %v15501_v6  ;;  %v5629_v44 = vmul.f32 %v9800_v27, %v15518_v23  ;;  %v5693_v34 = vmul.f32 %v9800_v27, %v15510_v35  ;;  %v6742_v30 = vadd.f32 %v6740_v9, %v6738_v3  ;;  %9291 = vmatmul.mubr.f32.gmra.mxu1 %v6657_v47  ;;  %v17505_v6 = vld [vmem:[#allocation62_spill] sm:$0xff]  ;;  %v15622_v21 = vpop.permute.xlu1 %7024 }
 0x3ef   : > { %v15601_v51 = vpop.eup %9803  ;;  %v15605_v33 = vadd.f32 %v6992_v52, %v6990_v28  ;;  %v5470_v11 = vadd.f32 1e-08, %v5438_v29  ;;  %v6743_v0 = vadd.f32 %v6741_v18, %v6739_v4  ;;  %v6828_v15 = vadd.f32 %v6826_v54, %v6824_v38  ;;  %v4751_v16 = vpop.f32.mrf.mxu0  ;;  %v17508_v29 = vld [vmem:[#allocation16_spill] sm:$0xff] }
 0x3f0   : > { %v15607_v36 = vpop.eup %9805  ;;  %v6983_v14 = vmul.f32 %v17505_v6, %v17504_v55  ;;  %v6985_v23 = vmul.f32 %v6972_v19, %v5565_v31  ;;  %v6989_v35 = vmul.f32 %v15563_v22, %v5629_v44  ;;  %v6993_v25 = vmul.f32 %v6981_v37, %v5693_v34  ;;  %9293 = vmatprep.mubr.f32.mxu1 %v6742_v30  ;;  %v7031_v5 = vpop.permute.xlu0 %7030  ;;  %v17509_v55 = vld [vmem:[#allocation98_spill] sm:$0xff] }
 0x3f1   : > { %v15612_v24 = vpop.eup %9807  ;;  %9819 = vrcp.f32 %v5470_v11  ;;  %v5407_v42 = vadd.f32 %v15607_v36, %v15596_v17  ;;  %v4755_v39 = vpop.f32.mrf.mxu0  ;;  %v6825_v32 = vmul.f32 %v15529_v13, %v4749_v46  ;;  %v6827_v45 = vmul.f32 %v17506_v62, %v4751_v16  ;;  %v17507_v13 = vld [vmem:[#allocation12_spill] sm:$0xff] }
 0x3f2   : > { %v15616_v43 = vpop.eup %9809  ;;  %v6987_v8 = vadd.f32 %v6985_v23, %v6983_v14  ;;  %9294 = vmatmul.mubr.f32.gmra.mxu1 %v6743_v0  ;;  %v6910_v63 = vmul.f32 %v15555_v2, %v4755_v39  ;;  %v7056_v60 = vrot.slane %v15605_v33, 7  ;;  %v7062_v9 = vrot.slane %v15605_v33, 1  ;;  %v7033_v10 = vpop.permute.xlu1 %7032  ;;  %v7004_v23 = vld [vmem:[#allocation2 + $0xe0] sm:$0xff] }
 0x3f3   : > { %v15620_v12 = vpop.eup %9811  ;;  %v5439_v57 = vadd.f32 %v15601_v51, %v5407_v42  ;;  %9296 = vmatprep.mubr.f32.mxu1 %v6828_v15  ;;  %v4757_v20 = vpop.f32.mrf.mxu0  ;;  %v6829_v40 = vadd.f32 %v6827_v45, %v6825_v32  ;;  %v7005_v32 = vld [vmem:[#allocation2 + $0xe8] sm:$0xff] }
 0x3f4   : > { %v15626_v53 = vpop.eup %9813  ;;  %v6991_v19 = vadd.f32 %v6989_v35, %v6987_v8  ;;  %v5408_v37 = vadd.f32 %v15620_v12, %v15612_v24  ;;  %v6912_v48 = vmul.f32 %v17507_v13, %v4757_v20  ;;  %v7109_v30 = vpop.permute.xlu0 %7108  ;;  %v7061_v42 = vsel %vm1429_vm6, 0.0, %v7056_v60  ;;  %v17510_v13 = vld [vmem:[#allocation11_spill] sm:$0xff] }
 0x3f5   : > { %v15631_v50 = vpop.eup %9815  ;;  %v5471_v52 = vadd.f32 1e-08, %v5439_v57  ;;  %v4761_v26 = vpop.f32.mrf.mxu0 }
 0x3f6   : > { %v15633_v3 = vpop.eup %9817  ;;  %v15635_v1 = vadd.f32 %v6993_v25, %v6991_v19  ;;  %v5440_v2 = vadd.f32 %v15616_v43, %v5408_v37  ;;  %v6914_v47 = vadd.f32 %v6912_v48, %v6910_v63  ;;  %9297 = vmatmul.mubr.f32.gmra.mxu1 %v6829_v40  ;;  %v6911_v46 = vmul.f32 %v15563_v22, %v4761_v26  ;;  %v7103_v63 = vpop.permute.xlu1 %7102 }
 0x3f7   : > { %9821 = vrcp.f32 %v5471_v52  ;;  %v5409_v4 = vadd.f32 %v15633_v3, %v15626_v53  ;;  %v4763_v41 = vpop.f32.mrf.mxu0  ;;  %v7036_v22 = vsel %vm3846_vm5, %v7004_v23, %v15573_v56  ;;  %v7037_v19 = vsel %vm3846_vm5, %v7005_v32, %v15591_v59  ;;  %v17512_v32 = vld [vmem:[#allocation74_spill] sm:$0xff] }
 0x3f8   : > { %v7063_v18 = vrot.slane %v15635_v1, 1  ;;  %v7057_v27 = vrot.slane %v15635_v1, 7  ;;  %v5472_v28 = vadd.f32 1e-08, %v5440_v2  ;;  %v6913_v38 = vmul.f32 %v17508_v29, %v4763_v41  ;;  %9299 = vmatprep.mubr.f32.mxu1 %v6914_v47 }
 0x3f9   : > { %v5441_v54 = vadd.f32 %v15631_v50, %v5409_v4  ;;  %v4767_v31 = vpop.f32.mrf.mxu0  ;;  %v7038_v8 = vsel %vm5860_vm11, %v7036_v22, %v15603_v49  ;;  %v7101_v49 = vpop.permute.xlu0 %7100  ;;  %v7039_v26 = vsel %vm5860_vm11, %v7037_v19, %v15622_v21 }
 0x3fa   : > { %v7064_v44 = vsel %vm2038_vm7, %v7062_v9, %v7063_v18  ;;  %v7058_v34 = vsel %vm1429_vm6, %v7056_v60, %v7057_v27  ;;  %9823 = vrcp.f32 %v5472_v28  ;;  %v6915_v0 = vadd.f32 %v6913_v38, %v6911_v46  ;;  %v7090_v9 = vld [vmem:[#allocation2 + $0xf0] sm:$0xff]  ;;  %v7111_v28 = vpop.permute.xlu1 %7110  ;;  %v17511_v38 = vld [vmem:[#allocation47_spill] sm:$0xff] }
 0x3fb   : > { %v5473_v11 = vadd.f32 1e-08, %v5441_v54  ;;  %v4769_v15 = vpop.f32.mrf.mxu0  ;;  %v6996_v16 = vmul.f32 %v15605_v33, %v4767_v31  ;;  %v7040_v56 = vsel %vm5863_vm12, %v7038_v8, %v7031_v5  ;;  %v7041_v5 = vsel %vm5863_vm12, %v7039_v26, %v7033_v10 }
 0x3fc   : > { %v6998_v14 = vmul.f32 %v17509_v55, %v4769_v15  ;;  %9300 = vmatmul.mubr.f32.gmra.mxu1 %v6915_v0  ;;  %v7068_v48 = vmul.f32 %v7040_v56, %v17510_v13  ;;  %v7122_v21 = vsel %vm3846_vm5, %v7090_v9, %v7101_v49  ;;  %v7069_v54 = vmul.f32 %v7041_v5, %v17511_v38 }
 0x3fd   : > { %9825 = vrcp.f32 %v5473_v11  ;;  %v4773_v35 = vpop.f32.mrf.mxu0 }
 0x3fe   : > { %v9820_v25 = vpop.eup %9819  ;;  %v7000_v39 = vadd.f32 %v6998_v14, %v6996_v16  ;;  %v6997_v37 = vmul.f32 %v15635_v1, %v4773_v35  ;;  %v7124_v16 = vsel %vm5860_vm11, %v7122_v21, %v7109_v30  ;;  %v7119_v8 = vpop.permute.xlu1 %7118 }
 0x3ff   : > { %v5566_v62 = vmul.f32 %v9820_v25, %v15541_v61  ;;  %v5630_v45 = vmul.f32 %v9820_v25, %v15578_v58  ;;  %v5694_v57 = vmul.f32 %v9820_v25, %v15569_v7  ;;  %v4775_v20 = vpop.f32.mrf.mxu0 }
 0x400   : > { %v6999_v40 = vmul.f32 %v17505_v6, %v4775_v20  ;;  %9302 = vmatprep.mubr.f32.mxu1 %v7000_v39  ;;  %v7067_v6 = vsel %vm2038_vm7, %v7063_v18, 0.0 }
 0x401   : > { %v7070_v61 = vmul.f32 %v7061_v42, %v5566_v62  ;;  %v7074_v58 = vmul.f32 %v15605_v33, %v5630_v45  ;;  %v7078_v52 = vmul.f32 %v7064_v44, %v5694_v57  ;;  %v4779_v7 = vpop.f32.mrf.mxu0  ;;  %v7117_v44 = vpop.permute.xlu0 %7116 }
 0x402   : > { %v7001_v2 = vadd.f32 %v6999_v40, %v6997_v37  ;;  %v7126_v25 = vsel %vm5863_vm12, %v7124_v16, %v7117_v44 }
 0x403   : > { %v7072_v59 = vadd.f32 %v7070_v61, %v7068_v48  ;;  %v4781_v47 = vpop.f32.mrf.mxu0 }
 0x404   : > { %v9822_v60 = vpop.eup %9821  ;;  %9303 = vmatmul.mubr.f32.gmra.mxu1 %v7001_v2  ;;  %v7084_v10 = vmul.f32 %v7040_v56, %v4781_v47 }
 0x405   : > { %v7076_v4 = vadd.f32 %v7074_v58, %v7072_v59  ;;  %v5567_v41 = vmul.f32 %v9822_v60, %v15596_v17  ;;  %v5631_v33 = vmul.f32 %v9822_v60, %v15607_v36  ;;  %v5695_v27 = vmul.f32 %v9822_v60, %v15601_v51  ;;  %v4785_v29 = vpop.f32.mrf.mxu0 }
 0x407   : > { %v9824_v46 = vpop.eup %9823  ;;  %v7080_v31 = vadd.f32 %v7078_v52, %v7076_v4  ;;  %v7071_v18 = vmul.f32 %v7058_v34, %v5567_v41  ;;  %v7075_v11 = vmul.f32 %v15635_v1, %v5631_v33  ;;  %v7079_v0 = vmul.f32 %v7067_v6, %v5695_v27  ;;  %v4787_v15 = vpop.f32.mrf.mxu0  ;;  %v7091_v1 = vld [vmem:[#allocation2 + $0xf8] sm:$0xff] }
 0x408   : > { %v5568_v17 = vmul.f32 %v9824_v46, %v15612_v24  ;;  %v5632_v36 = vmul.f32 %v9824_v46, %v15620_v12  ;;  %v7154_v12 = vmul.f32 %v7126_v25, %v17512_v32  ;;  %v7123_v30 = vsel %vm3846_vm5, %v7091_v1, %v7103_v63 }
 0x409   : > { %v7073_v51 = vadd.f32 %v7071_v18, %v7069_v54  ;;  %v7142_v55 = vrot.slane %v7080_v31, 7  ;;  %v7082_v14 = vmul.f32 %v7080_v31, %v4779_v7  ;;  %v4791_v23 = vpop.f32.mrf.mxu0  ;;  %v7125_v20 = vsel %vm5860_vm11, %v7123_v30, %v7111_v28 }
 0x40a   : > { %v9826_v35 = vpop.eup %9825  ;;  %v7160_v22 = vmul.f32 %v7080_v31, %v5632_v36  ;;  %v7085_v19 = vmul.f32 %v7041_v5, %v4787_v15  ;;  %v7127_v40 = vsel %vm5863_vm12, %v7125_v20, %v7119_v8  ;;  %v7148_v49 = vrot.slane %v7080_v31, 1 }
 0x40b   : > { %v7077_v42 = vadd.f32 %v7075_v11, %v7073_v51  ;;  %v7147_v34 = vsel %vm1429_vm6, 0.0, %v7142_v55  ;;  %v5569_v39 = vmul.f32 %v9826_v35, %v15626_v53  ;;  %v7086_v24 = vadd.f32 %v7084_v10, %v7082_v14  ;;  %v4793_v56 = vpop.f32.mrf.mxu0 }
 0x40c   : > { %v7156_v62 = vmul.f32 %v7147_v34, %v5568_v17  ;;  %v5633_v45 = vmul.f32 %v9826_v35, %v15633_v3  ;;  %v5696_v58 = vmul.f32 %v9824_v46, %v15616_v43  ;;  %v5697_v63 = vmul.f32 %v9826_v35, %v15631_v50  ;;  %v4542_v3 = vpop.f32.mrf.mxu1 }
 0x40d   : > { %v7081_v57 = vadd.f32 %v7079_v0, %v7077_v42  ;;  %9305 = vmatprep.mubr.f32.mxu1 %v7086_v24  ;;  %v4797_v59 = vpop.f32.mrf.mxu0  ;;  %v7155_v60 = vmul.f32 %v7127_v40, %v4542_v3  ;;  %v7170_v43 = vmul.f32 %v7126_v25, %v4793_v56 }
 0x40e   : > { %v7158_v37 = vadd.f32 %v7156_v62, %v7154_v12 }
 0x40f   : > { %v7143_v53 = vrot.slane %v7081_v57, 7  ;;  %v7083_v13 = vmul.f32 %v7081_v57, %v4785_v29  ;;  %v7149_v48 = vrot.slane %v7081_v57, 1  ;;  %v7161_v61 = vmul.f32 %v7081_v57, %v5633_v45  ;;  %v4799_v33 = vpop.f32.mrf.mxu0 }
 0x410   : > { %v7162_v52 = vadd.f32 %v7160_v22, %v7158_v37  ;;  %v7171_v21 = vmul.f32 %v7127_v40, %v4799_v33 }
 0x411   : > { %v7144_v7 = vsel %vm1429_vm6, %v7142_v55, %v7143_v53  ;;  %v7087_v26 = vadd.f32 %v7085_v19, %v7083_v13  ;;  %v7150_v2 = vsel %vm2038_vm7, %v7148_v49, %v7149_v48  ;;  %v7153_v5 = vsel %vm2038_vm7, %v7149_v48, 0.0 }
 0x412   : > { %v7157_v47 = vmul.f32 %v7144_v7, %v5569_v39  ;;  %v7164_v6 = vmul.f32 %v7150_v2, %v5696_v58  ;;  %v7165_v9 = vmul.f32 %v7153_v5, %v5697_v63 }
 0x413   : > { %9306 = vmatmul.mubr.f32.gmra.mxu1 %v7087_v26 }
 0x414   : > { %v7159_v4 = vadd.f32 %v7157_v47, %v7155_v60  ;;  %v7166_v41 = vadd.f32 %v7164_v6, %v7162_v52 }
 0x416   : > { %v7168_v27 = vmul.f32 %v7166_v41, %v4791_v23  ;;  %v7163_v50 = vadd.f32 %v7161_v61, %v7159_v4 }
 0x418   : > { %v7172_v28 = vadd.f32 %v7170_v43, %v7168_v27  ;;  %v7167_v29 = vadd.f32 %v7165_v9, %v7163_v50 }
 0x41a   : > { %v7169_v38 = vmul.f32 %v7167_v29, %v4797_v59  ;;  %9308 = vmatprep.mubr.f32.mxu1 %v7172_v28 }
 0x41c   : > { %v7173_v54 = vadd.f32 %v7171_v21, %v7169_v38 }
 0x41e   : > { %9309 = vmatmul.mubr.f32.gmra.mxu1 %v7173_v54 }
 0x466   : > { %v15692_v10 = vpop.f32.mrf.mxu1 }
 0x467   : > { %v7452_v46 = vsel %vm3846_vm5, %v15692_v10, 0.0 }
 0x468   : > { %7453 = vadd.xlane.f32.xlu1 %v7452_v46  ;;  %v15696_v31 = vpop.f32.mrf.mxu1 }
 0x469   : > { %v7449_v44 = vsel %vm3846_vm5, %v15696_v31, 0.0 }
 0x46a   : > { %7450 = vadd.xlane.f32.xlu0 %v7449_v44 }
 0x46b   : > { %v15700_v18 = vpop.f32.mrf.mxu1 }
 0x46c   : > { %v7458_v36 = vsel %vm3846_vm5, %v15700_v18, 0.0 }
 0x46d   : > { %v15702_v11 = vpop.f32.mrf.mxu1 }
 0x46e   : > { %v7455_v0 = vsel %vm3846_vm5, %v15702_v11, 0.0 }
 0x46f   : > { %7456 = vadd.xlane.f32.xlu0 %v7455_v0 }
 0x470   : > { %v15706_v15 = vpop.f32.mrf.mxu1 }
 0x471   : > { %v7464_v14 = vsel %vm3846_vm5, %v15706_v15, 0.0 }
 0x472   : > { %v15708_v17 = vpop.f32.mrf.mxu1 }
 0x473   : > { %v7461_v51 = vsel %vm3846_vm5, %v15708_v17, 0.0  ;;  %7459 = vadd.xlane.f32.xlu0 %v7458_v36 }
 0x474   : > { %7462 = vadd.xlane.f32.xlu1 %v7461_v51  ;;  %v15714_v16 = vpop.f32.mrf.mxu1 }
 0x475   : > { %v7470_v35 = vsel %vm3846_vm5, %v15714_v16, 0.0 }
 0x476   : > { %v15716_v55 = vpop.f32.mrf.mxu1 }
 0x477   : > { %v7467_v23 = vsel %vm3846_vm5, %v15716_v55, 0.0  ;;  %7465 = vadd.xlane.f32.xlu0 %v7464_v14 }
 0x478   : > { %7468 = vadd.xlane.f32.xlu1 %v7467_v23 }
 0x47b   : > { %7471 = vadd.xlane.f32.xlu0 %v7470_v35 }
 0x483   : > { %v15724_v25 = vpop.f32.mrf.mxu1 }
 0x484   : > { %v7476_v22 = vsel %vm3846_vm5, %v15724_v25, 0.0 }
 0x485   : > { %7477 = vadd.xlane.f32.xlu0 %v7476_v22  ;;  %v15728_v42 = vpop.f32.mrf.mxu1 }
 0x486   : > { %v7473_v34 = vsel %vm3846_vm5, %v15728_v42, 0.0 }
 0x487   : > { %7474 = vadd.xlane.f32.xlu1 %v7473_v34 }
 0x48a   : > { %v15732_v1 = vpop.f32.mrf.mxu1 }
 0x48b   : > { %v7482_v39 = vsel %vm3846_vm5, %v15732_v1, 0.0 }
 0x48c   : > { %7483 = vadd.xlane.f32.xlu0 %v7482_v39  ;;  %v15736_v8 = vpop.f32.mrf.mxu1 }
 0x48d   : > { %v7479_v24 = vsel %vm3846_vm5, %v15736_v8, 0.0 }
 0x48e   : > { %7480 = vadd.xlane.f32.xlu1 %v7479_v24 }
 0x490   : > { %v15740_v32 = vpop.f32.mrf.mxu1 }
 0x491   : > { %v7488_v12 = vsel %vm3846_vm5, %v15740_v32, 0.0 }
 0x492   : > { %7489 = vadd.xlane.f32.xlu0 %v7488_v12  ;;  %v15744_v62 = vpop.f32.mrf.mxu1 }
 0x493   : > { %v7485_v30 = vsel %vm3846_vm5, %v15744_v62, 0.0 }
 0x494   : > { %7486 = vadd.xlane.f32.xlu1 %v7485_v30 }
 0x49d   : > { %v15748_v45 = vpop.f32.mrf.mxu1 }
 0x49e   : > { %v7494_v57 = vsel %vm3846_vm5, %v15748_v45, 0.0 }
 0x49f   : > { %7495 = vadd.xlane.f32.xlu0 %v7494_v57  ;;  %v15752_v20 = vpop.f32.mrf.mxu1 }
 0x4a0   : > { %v7491_v19 = vsel %vm3846_vm5, %v15752_v20, 0.0 }
 0x4a1   : > { %7492 = vadd.xlane.f32.xlu1 %v7491_v19 }
 0x4a5   : > { %v15756_v56 = vpop.f32.mrf.mxu1 }
 0x4a6   : > { %v7500_v37 = vsel %vm3846_vm5, %v15756_v56, 0.0 }
 0x4a7   : > { %7501 = vadd.xlane.f32.xlu0 %v7500_v37  ;;  %v15760_v40 = vpop.f32.mrf.mxu1 }
 0x4a8   : > { %v7497_v49 = vsel %vm3846_vm5, %v15760_v40, 0.0 }
 0x4a9   : > { %7498 = vadd.xlane.f32.xlu1 %v7497_v49 }
 0x4ae   : > { %v15764_v53 = vpop.f32.mrf.mxu1 }
 0x4af   : > { %v7506_v13 = vsel %vm3846_vm5, %v15764_v53, 0.0 }
 0x4b0   : > { %7507 = vadd.xlane.f32.xlu0 %v7506_v13  ;;  %v15768_v48 = vpop.f32.mrf.mxu1 }
 0x4b1   : > { %v7503_v61 = vsel %vm3846_vm5, %v15768_v48, 0.0 }
 0x4b2   : > { %7504 = vadd.xlane.f32.xlu1 %v7503_v61  ;;  %v15772_v58 = vpop.f32.mrf.mxu1 }
 0x4b3   : > { %v7512_v52 = vsel %vm3846_vm5, %v15772_v58, 0.0 }
 0x4b4   : > { %7513 = vadd.xlane.f32.xlu0 %v7512_v52  ;;  %v15776_v63 = vpop.f32.mrf.mxu1 }
 0x4b5   : > { %v7509_v3 = vsel %vm3846_vm5, %v15776_v63, 0.0 }
 0x4b6   : > { %7510 = vadd.xlane.f32.xlu1 %v7509_v3  ;;  %v15780_v7 = vpop.f32.mrf.mxu1 }
 0x4b7   : > { %v7518_v26 = vsel %vm3846_vm5, %v15780_v7, 0.0 }
 0x4b8   : > { %7519 = vadd.xlane.f32.xlu0 %v7518_v26  ;;  %v15784_v2 = vpop.f32.mrf.mxu1 }
 0x4b9   : > { %v7515_v59 = vsel %vm3846_vm5, %v15784_v2, 0.0 }
 0x4ba   : > { %7516 = vadd.xlane.f32.xlu1 %v7515_v59 }
 0x4bc   : > { %v15788_v5 = vpop.f32.mrf.mxu1 }
 0x4bd   : > { %v7524_v47 = vsel %vm3846_vm5, %v15788_v5, 0.0 }
 0x4be   : > { %7525 = vadd.xlane.f32.xlu0 %v7524_v47  ;;  %v15792_v60 = vpop.f32.mrf.mxu1 }
 0x4bf   : > { %v7521_v6 = vsel %vm3846_vm5, %v15792_v60, 0.0 }
 0x4c0   : > { %7522 = vadd.xlane.f32.xlu1 %v7521_v6 }
 0x4c4   : > { %v15796_v9 = vpop.f32.mrf.mxu1 }
 0x4c5   : > { %v7530_v4 = vsel %vm3846_vm5, %v15796_v9, 0.0 }
 0x4c6   : > { %7531 = vadd.xlane.f32.xlu0 %v7530_v4  ;;  %v15800_v41 = vpop.f32.mrf.mxu1 }
 0x4c7   : > { %v7527_v43 = vsel %vm3846_vm5, %v15800_v41, 0.0 }
 0x4c8   : > { %7528 = vadd.xlane.f32.xlu1 %v7527_v43 }
 0x4d3   : > { %v15804_v33 = vpop.f32.mrf.mxu1 }
 0x4d4   : > { %v7536_v27 = vsel %vm3846_vm5, %v15804_v33, 0.0 }
 0x4d5   : > { %7537 = vadd.xlane.f32.xlu0 %v7536_v27  ;;  %v15808_v50 = vpop.f32.mrf.mxu1 }
 0x4d6   : > { %v7533_v28 = vsel %vm3846_vm5, %v15808_v50, 0.0 }
 0x4d7   : > { %7534 = vadd.xlane.f32.xlu1 %v7533_v28 }
 0x4de   : > { %v15812_v29 = vpop.f32.mrf.mxu1 }
 0x4df   : > { %v7542_v21 = vsel %vm3846_vm5, %v15812_v29, 0.0 }
 0x4e0   : > { %7543 = vadd.xlane.f32.xlu0 %v7542_v21  ;;  %v15816_v38 = vpop.f32.mrf.mxu1 }
 0x4e1   : > { %v7539_v54 = vsel %vm3846_vm5, %v15816_v38, 0.0 }
 0x4e2   : > { %7540 = vadd.xlane.f32.xlu1 %v7539_v54 }
 0x4f1   : > { %v7454_v46 = vpop.xlane.xlu1 %7453 }
 0x4f2   : > { %v7547_v44 = vmul.f32 0.03125, %v7454_v46 }
 0x4f3   : > { %v7451_v0 = vpop.xlane.xlu0 %7450 }
 0x4f4   : > { %v15821_v36 = vsub.f32 %v15692_v10, %v7547_v44  ;;  %v7546_v51 = vmul.f32 0.03125, %v7451_v0 }
 0x4f6   : > { %v15824_v14 = vsub.f32 %v15696_v31, %v7546_v51  ;;  %v7611_v23 = vmul.f32 %v15821_v36, %v15821_v36 }
 0x4f8   : > { %v7645_v35 = vsel %vm3846_vm5, %v7611_v23, 0.0  ;;  %v7610_v22 = vmul.f32 %v15824_v14, %v15824_v14  ;;  %v7457_v34 = vpop.xlane.xlu0 %7456 }
 0x4f9   : > { %7646 = vadd.xlane.f32.xlu0 %v7645_v35  ;;  %v7548_v39 = vmul.f32 0.03125, %v7457_v34 }
 0x4fa   : > { %v7642_v24 = vsel %vm3846_vm5, %v7610_v22, 0.0 }
 0x4fb   : > { %7643 = vadd.xlane.f32.xlu1 %v7642_v24  ;;  %v15833_v10 = vsub.f32 %v15702_v11, %v7548_v39 }
 0x4fc   : > { %v7460_v12 = vpop.xlane.xlu0 %7459 }
 0x4fd   : > { %v7463_v31 = vpop.xlane.xlu1 %7462  ;;  %v7549_v30 = vmul.f32 0.03125, %v7460_v12  ;;  %v7612_v57 = vmul.f32 %v15833_v10, %v15833_v10 }
 0x4fe   : > { %v7550_v19 = vmul.f32 0.03125, %v7463_v31 }
 0x4ff   : > { %v15838_v37 = vsub.f32 %v15700_v18, %v7549_v30  ;;  %v7648_v49 = vsel %vm3846_vm5, %v7612_v57, 0.0 }
 0x500   : > { %v15842_v13 = vsub.f32 %v15708_v17, %v7550_v19  ;;  %v7466_v61 = vpop.xlane.xlu0 %7465  ;;  %7649 = vadd.xlane.f32.xlu1 %v7648_v49 }
 0x501   : > { %v7469_v52 = vpop.xlane.xlu1 %7468  ;;  %v7551_v11 = vmul.f32 0.03125, %v7466_v61  ;;  %v7613_v3 = vmul.f32 %v15838_v37, %v15838_v37 }
 0x502   : > { %v7614_v26 = vmul.f32 %v15842_v13, %v15842_v13  ;;  %v7552_v59 = vmul.f32 0.03125, %v7469_v52 }
 0x503   : > { %v15849_v47 = vsub.f32 %v15706_v15, %v7551_v11  ;;  %v7651_v18 = vsel %vm3846_vm5, %v7613_v3, 0.0 }
 0x504   : > { %v7654_v6 = vsel %vm3846_vm5, %v7614_v26, 0.0  ;;  %v15854_v17 = vsub.f32 %v15716_v55, %v7552_v59  ;;  %7652 = vadd.xlane.f32.xlu0 %v7651_v18  ;;  %v7472_v4 = vpop.xlane.xlu0 %7471 }
 0x505   : > { %7655 = vadd.xlane.f32.xlu1 %v7654_v6  ;;  %v7553_v43 = vmul.f32 0.03125, %v7472_v4  ;;  %v7615_v27 = vmul.f32 %v15849_v47, %v15849_v47 }
 0x506   : > { %v7616_v28 = vmul.f32 %v15854_v17, %v15854_v17 }
 0x507   : > { %v15861_v15 = vsub.f32 %v15714_v16, %v7553_v43  ;;  %v7657_v21 = vsel %vm3846_vm5, %v7615_v27, 0.0 }
 0x508   : > { %v7660_v54 = vsel %vm3846_vm5, %v7616_v28, 0.0  ;;  %7658 = vadd.xlane.f32.xlu0 %v7657_v21 }
 0x509   : > { %7661 = vadd.xlane.f32.xlu1 %v7660_v54  ;;  %v7617_v55 = vmul.f32 %v15861_v15, %v15861_v15 }
 0x50b   : > { %v7663_v46 = vsel %vm3846_vm5, %v7617_v55, 0.0 }
 0x50c   : > { %7664 = vadd.xlane.f32.xlu0 %v7663_v46 }
 0x50e   : > { %v7478_v44 = vpop.xlane.xlu0 %7477 }
 0x50f   : > { %v7555_v0 = vmul.f32 0.03125, %v7478_v44 }
 0x510   : > { %v7475_v51 = vpop.xlane.xlu1 %7474 }
 0x511   : > { %v15869_v23 = vsub.f32 %v15724_v25, %v7555_v0  ;;  %v7554_v16 = vmul.f32 0.03125, %v7475_v51 }
 0x513   : > { %v15872_v35 = vsub.f32 %v15728_v42, %v7554_v16  ;;  %v7619_v22 = vmul.f32 %v15869_v23, %v15869_v23 }
 0x515   : > { %v7484_v34 = vpop.xlane.xlu0 %7483  ;;  %v7669_v39 = vsel %vm3846_vm5, %v7619_v22, 0.0  ;;  %v7618_v24 = vmul.f32 %v15872_v35, %v15872_v35 }
 0x516   : > { %v7557_v12 = vmul.f32 0.03125, %v7484_v34  ;;  %7670 = vadd.xlane.f32.xlu0 %v7669_v39 }
 0x517   : > { %v7666_v31 = vsel %vm3846_vm5, %v7618_v24, 0.0  ;;  %v7481_v30 = vpop.xlane.xlu1 %7480 }
 0x518   : > { %v15881_v25 = vsub.f32 %v15732_v1, %v7557_v12  ;;  %7667 = vadd.xlane.f32.xlu1 %v7666_v31  ;;  %v7556_v42 = vmul.f32 0.03125, %v7481_v30 }
 0x51a   : > { %v15884_v57 = vsub.f32 %v15736_v8, %v7556_v42  ;;  %v7621_v19 = vmul.f32 %v15881_v25, %v15881_v25 }
 0x51b   : > { %v7490_v49 = vpop.xlane.xlu0 %7489 }
 0x51c   : > { %v7559_v61 = vmul.f32 0.03125, %v7490_v49  ;;  %v7675_v52 = vsel %vm3846_vm5, %v7621_v19, 0.0  ;;  %v7620_v11 = vmul.f32 %v15884_v57, %v15884_v57 }
 0x51d   : > { %7676 = vadd.xlane.f32.xlu0 %v7675_v52  ;;  %v7487_v3 = vpop.xlane.xlu1 %7486 }
 0x51e   : > { %v15892_v1 = vsub.f32 %v15740_v32, %v7559_v61  ;;  %v7672_v26 = vsel %vm3846_vm5, %v7620_v11, 0.0  ;;  %v7558_v59 = vmul.f32 0.03125, %v7487_v3 }
 0x51f   : > { %7673 = vadd.xlane.f32.xlu1 %v7672_v26 }
 0x520   : > { %v15896_v8 = vsub.f32 %v15744_v62, %v7558_v59  ;;  %v7623_v18 = vmul.f32 %v15892_v1, %v15892_v1 }
 0x522   : > { %v7681_v6 = vsel %vm3846_vm5, %v7623_v18, 0.0  ;;  %v7622_v4 = vmul.f32 %v15896_v8, %v15896_v8 }
 0x523   : > { %7682 = vadd.xlane.f32.xlu0 %v7681_v6 }
 0x524   : > { %v7678_v43 = vsel %vm3846_vm5, %v7622_v4, 0.0 }
 0x525   : > { %7679 = vadd.xlane.f32.xlu1 %v7678_v43 }
 0x528   : > { %v7496_v32 = vpop.xlane.xlu0 %7495 }
 0x529   : > { %v7561_v27 = vmul.f32 0.03125, %v7496_v32 }
 0x52a   : > { %v7493_v28 = vpop.xlane.xlu1 %7492 }
 0x52b   : > { %v15905_v21 = vsub.f32 %v15748_v45, %v7561_v27  ;;  %v7560_v62 = vmul.f32 0.03125, %v7493_v28 }
 0x52d   : > { %v15908_v54 = vsub.f32 %v15752_v20, %v7560_v62  ;;  %v7625_v55 = vmul.f32 %v15905_v21, %v15905_v21 }
 0x52f   : > { %v7687_v46 = vsel %vm3846_vm5, %v7625_v55, 0.0  ;;  %v7624_v44 = vmul.f32 %v15908_v54, %v15908_v54 }
 0x530   : > { %v7502_v0 = vpop.xlane.xlu0 %7501  ;;  %7688 = vadd.xlane.f32.xlu0 %v7687_v46 }
 0x531   : > { %v7563_v51 = vmul.f32 0.03125, %v7502_v0  ;;  %v7684_v16 = vsel %vm3846_vm5, %v7624_v44, 0.0 }
 0x532   : > { %7685 = vadd.xlane.f32.xlu1 %v7684_v16  ;;  %v7499_v45 = vpop.xlane.xlu1 %7498 }
 0x533   : > { %v15917_v22 = vsub.f32 %v15756_v56, %v7563_v51  ;;  %v7562_v20 = vmul.f32 0.03125, %v7499_v45 }
 0x535   : > { %v15920_v34 = vsub.f32 %v15760_v40, %v7562_v20  ;;  %v7627_v39 = vmul.f32 %v15917_v22, %v15917_v22 }
 0x537   : > { %v7693_v24 = vsel %vm3846_vm5, %v7627_v39, 0.0  ;;  %v7626_v12 = vmul.f32 %v15920_v34, %v15920_v34 }
 0x538   : > { %7694 = vadd.xlane.f32.xlu0 %v7693_v24 }
 0x539   : > { %v7508_v31 = vpop.xlane.xlu0 %7507  ;;  %v7690_v30 = vsel %vm3846_vm5, %v7626_v12, 0.0 }
 0x53a   : > { %v7565_v42 = vmul.f32 0.03125, %v7508_v31  ;;  %7691 = vadd.xlane.f32.xlu1 %v7690_v30 }
 0x53b   : > { %v7505_v56 = vpop.xlane.xlu1 %7504 }
 0x53c   : > { %v15929_v19 = vsub.f32 %v15764_v53, %v7565_v42  ;;  %v7564_v40 = vmul.f32 0.03125, %v7505_v56 }
 0x53d   : > { %v7514_v49 = vpop.xlane.xlu0 %7513 }
 0x53e   : > { %v15932_v61 = vsub.f32 %v15768_v48, %v7564_v40  ;;  %v7567_v52 = vmul.f32 0.03125, %v7514_v49  ;;  %v7629_v11 = vmul.f32 %v15929_v19, %v15929_v19 }
 0x53f   : > { %v7511_v3 = vpop.xlane.xlu1 %7510 }
 0x540   : > { %v15937_v26 = vsub.f32 %v15772_v58, %v7567_v52  ;;  %v7699_v59 = vsel %vm3846_vm5, %v7629_v11, 0.0  ;;  %v7628_v18 = vmul.f32 %v15932_v61, %v15932_v61  ;;  %v7566_v53 = vmul.f32 0.03125, %v7511_v3 }
 0x541   : > { %7700 = vadd.xlane.f32.xlu0 %v7699_v59  ;;  %v7520_v6 = vpop.xlane.xlu0 %7519 }
 0x542   : > { %v7696_v4 = vsel %vm3846_vm5, %v7628_v18, 0.0  ;;  %v15944_v48 = vsub.f32 %v15776_v63, %v7566_v53  ;;  %v7569_v43 = vmul.f32 0.03125, %v7520_v6  ;;  %v7631_v32 = vmul.f32 %v15937_v26, %v15937_v26 }
 0x543   : > { %7697 = vadd.xlane.f32.xlu1 %v7696_v4  ;;  %v7517_v58 = vpop.xlane.xlu1 %7516 }
 0x544   : > { %v15949_v27 = vsub.f32 %v15780_v7, %v7569_v43  ;;  %v7705_v28 = vsel %vm3846_vm5, %v7631_v32, 0.0  ;;  %v7630_v62 = vmul.f32 %v15944_v48, %v15944_v48  ;;  %v7568_v55 = vmul.f32 0.03125, %v7517_v58 }
 0x545   : > { %7706 = vadd.xlane.f32.xlu0 %v7705_v28 }
 0x546   : > { %v7702_v46 = vsel %vm3846_vm5, %v7630_v62, 0.0  ;;  %v15956_v63 = vsub.f32 %v15784_v2, %v7568_v55  ;;  %v7633_v44 = vmul.f32 %v15949_v27, %v15949_v27 }
 0x547   : > { %7703 = vadd.xlane.f32.xlu1 %v7702_v46  ;;  %v7526_v0 = vpop.xlane.xlu0 %7525 }
 0x548   : > { %v7711_v7 = vsel %vm3846_vm5, %v7633_v44, 0.0  ;;  %v7632_v51 = vmul.f32 %v15956_v63, %v15956_v63  ;;  %v7571_v16 = vmul.f32 0.03125, %v7526_v0 }
 0x549   : > { %7712 = vadd.xlane.f32.xlu0 %v7711_v7  ;;  %v7523_v20 = vpop.xlane.xlu1 %7522 }
 0x54a   : > { %v7708_v45 = vsel %vm3846_vm5, %v7632_v51, 0.0  ;;  %v15965_v39 = vsub.f32 %v15788_v5, %v7571_v16  ;;  %v7570_v2 = vmul.f32 0.03125, %v7523_v20 }
 0x54b   : > { %7709 = vadd.xlane.f32.xlu1 %v7708_v45 }
 0x54c   : > { %v15968_v24 = vsub.f32 %v15792_v60, %v7570_v2  ;;  %v7635_v12 = vmul.f32 %v15965_v39, %v15965_v39 }
 0x54e   : > { %v7717_v30 = vsel %vm3846_vm5, %v7635_v12, 0.0  ;;  %v7634_v42 = vmul.f32 %v15968_v24, %v15968_v24 }
 0x54f   : > { %v7532_v31 = vpop.xlane.xlu0 %7531  ;;  %7718 = vadd.xlane.f32.xlu0 %v7717_v30 }
 0x550   : > { %v7573_v56 = vmul.f32 0.03125, %v7532_v31  ;;  %v7714_v40 = vsel %vm3846_vm5, %v7634_v42, 0.0 }
 0x551   : > { %v7529_v5 = vpop.xlane.xlu1 %7528  ;;  %7715 = vadd.xlane.f32.xlu1 %v7714_v40 }
 0x552   : > { %v15977_v49 = vsub.f32 %v15796_v9, %v7573_v56  ;;  %v7572_v60 = vmul.f32 0.03125, %v7529_v5 }
 0x554   : > { %v15980_v52 = vsub.f32 %v15800_v41, %v7572_v60  ;;  %v7637_v11 = vmul.f32 %v15977_v49, %v15977_v49 }
 0x556   : > { %v7723_v3 = vsel %vm3846_vm5, %v7637_v11, 0.0  ;;  %v7636_v59 = vmul.f32 %v15980_v52, %v15980_v52 }
 0x557   : > { %7724 = vadd.xlane.f32.xlu0 %v7723_v3 }
 0x558   : > { %v7720_v18 = vsel %vm3846_vm5, %v7636_v59, 0.0 }
 0x559   : > { %7721 = vadd.xlane.f32.xlu1 %v7720_v18 }
 0x55e   : > { %v7538_v53 = vpop.xlane.xlu0 %7537 }
 0x55f   : > { %v7575_v9 = vmul.f32 0.03125, %v7538_v53 }
 0x560   : > { %v7535_v6 = vpop.xlane.xlu1 %7534 }
 0x561   : > { %v15989_v4 = vsub.f32 %v15804_v33, %v7575_v9  ;;  %v7574_v41 = vmul.f32 0.03125, %v7535_v6 }
 0x563   : > { %v15992_v43 = vsub.f32 %v15808_v50, %v7574_v41  ;;  %v7639_v32 = vmul.f32 %v15989_v4, %v15989_v4 }
 0x565   : > { %v7729_v58 = vsel %vm3846_vm5, %v7639_v32, 0.0  ;;  %v7638_v28 = vmul.f32 %v15992_v43, %v15992_v43 }
 0x566   : > { %7730 = vadd.xlane.f32.xlu0 %v7729_v58 }
 0x567   : > { %v7726_v62 = vsel %vm3846_vm5, %v7638_v28, 0.0 }
 0x568   : > { %7727 = vadd.xlane.f32.xlu1 %v7726_v62 }
 0x569   : > { %v7544_v55 = vpop.xlane.xlu0 %7543 }
 0x56a   : > { %v7577_v46 = vmul.f32 0.03125, %v7544_v55 }
 0x56b   : > { %v7541_v33 = vpop.xlane.xlu1 %7540 }
 0x56c   : > { %v16001_v44 = vsub.f32 %v15812_v29, %v7577_v46  ;;  %v7576_v50 = vmul.f32 0.03125, %v7541_v33 }
 0x56e   : > { %v16004_v0 = vsub.f32 %v15816_v38, %v7576_v50  ;;  %v7641_v7 = vmul.f32 %v16001_v44, %v16001_v44 }
 0x570   : > { %v7735_v51 = vsel %vm3846_vm5, %v7641_v7, 0.0  ;;  %v7640_v16 = vmul.f32 %v16004_v0, %v16004_v0 }
 0x571   : > { %7736 = vadd.xlane.f32.xlu0 %v7735_v51 }
 0x572   : > { %v7732_v45 = vsel %vm3846_vm5, %v7640_v16, 0.0 }
 0x573   : > { %7733 = vadd.xlane.f32.xlu1 %v7732_v45 }
 0x582   : > { %v7647_v2 = vpop.xlane.xlu0 %7646 }
 0x583   : > { %v7739_v31 = vmul.f32 0.03125, %v7647_v2 }
 0x584   : > { %v7644_v20 = vpop.xlane.xlu1 %7643 }
 0x585   : > { %v7738_v29 = vmul.f32 0.03125, %v7644_v20  ;;  %v7771_v5 = vadd.f32 1e-05, %v7739_v31  ;;  %v16016_v31 = vld [vmem:[%s16575_s7] ss:$0 sm:$0xff] }
 0x587   : > { %v7770_v42 = vadd.f32 1e-05, %v7738_v29 }
 0x589   : > { %v7650_v12 = vpop.xlane.xlu1 %7649  ;;  %9827 = vrsqrt.f32 %v7770_v42 }
 0x58a   : > { %v7740_v38 = vmul.f32 0.03125, %v7650_v12  ;;  %9829 = vrsqrt.f32 %v7771_v5 }
 0x58c   : > { %v7772_v60 = vadd.f32 1e-05, %v7740_v38 }
 0x58d   : > { %v7653_v30 = vpop.xlane.xlu0 %7652 }
 0x58e   : > { %v7656_v56 = vpop.xlane.xlu1 %7655  ;;  %v7741_v40 = vmul.f32 0.03125, %v7653_v30  ;;  %9831 = vrsqrt.f32 %v7772_v60 }
 0x58f   : > { %v7742_v11 = vmul.f32 0.03125, %v7656_v56 }
 0x590   : > { %v7773_v3 = vadd.f32 1e-05, %v7741_v40 }
 0x591   : > { %v7659_v59 = vpop.xlane.xlu0 %7658  ;;  %v7774_v53 = vadd.f32 1e-05, %v7742_v11 }
 0x592   : > { %v7662_v18 = vpop.xlane.xlu1 %7661  ;;  %v7743_v9 = vmul.f32 0.03125, %v7659_v59  ;;  %9833 = vrsqrt.f32 %v7773_v3  ;;  %v16025_v59 = vld [vmem:[%s16576_s8] ss:$0 sm:$0xff] }
 0x593   : > { %v7744_v6 = vmul.f32 0.03125, %v7662_v18  ;;  %9835 = vrsqrt.f32 %v7774_v53 }
 0x594   : > { %v7775_v32 = vadd.f32 1e-05, %v7743_v9 }
 0x595   : > { %v7665_v41 = vpop.xlane.xlu0 %7664  ;;  %v7776_v28 = vadd.f32 1e-05, %v7744_v6 }
 0x596   : > { %v7745_v62 = vmul.f32 0.03125, %v7665_v41  ;;  %9837 = vrsqrt.f32 %v7775_v32  ;;  %v9828_v46 = vpop.eup %9827 }
 0x597   : > { %9839 = vrsqrt.f32 %v7776_v28  ;;  %v9830_v51 = vpop.eup %9829  ;;  %v7834_v20 = vmul.f32 %v9828_v46, %v15824_v14 }
 0x598   : > { %v7777_v50 = vadd.f32 1e-05, %v7745_v62  ;;  %v7835_v30 = vmul.f32 %v9830_v51, %v15821_v36 }
 0x599   : > { %v7873_v40 = vmul.f32 %v16016_v31, %v7834_v20 }
 0x59a   : > { %9841 = vrsqrt.f32 %v7777_v50  ;;  %v7874_v36 = vmul.f32 %v16016_v31, %v7835_v30  ;;  %v8203_v50 = vld [vmem:[%s16579_s11 + $0x10] sm:$0xff] }
 0x59b   : > { %v9832_v45 = vpop.eup %9831  ;;  %v16031_v9 = vadd.f32 %v16025_v59, %v7873_v40 }
 0x59c   : > { %v7836_v38 = vmul.f32 %v9832_v45, %v15833_v10  ;;  %v16035_v28 = vadd.f32 %v16025_v59, %v7874_v36 }
 0x59e   : > { %v7875_v10 = vmul.f32 %v16016_v31, %v7836_v38  ;;  %v7945_v30 = vmul.f32 %v16035_v28, %v16035_v28 }
 0x59f   : > { %v7671_v33 = vpop.xlane.xlu0 %7670  ;;  %v9834_v12 = vpop.eup %9833 }
 0x5a0   : > { %v7747_v2 = vmul.f32 0.03125, %v7671_v33  ;;  %v9836_v56 = vpop.eup %9835  ;;  %v7837_v60 = vmul.f32 %v9834_v12, %v15838_v37  ;;  %v16038_v62 = vadd.f32 %v16025_v59, %v7875_v10  ;;  %v8204_v33 = vld [vmem:[%s16579_s11 + $0x18] sm:$0xff]  ;;  %v7977_v10 = vsel %vm3846_vm5, %v7945_v30, 0.0 }
 0x5a1   : > { %v7668_v58 = vpop.xlane.xlu1 %7667  ;;  %v7838_v18 = vmul.f32 %v9836_v56, %v15842_v13  ;;  %9311 = vmatprep.subr.mxu1 %v8204_v33 }
 0x5a2   : > { %v7746_v55 = vmul.f32 0.03125, %v7668_v58  ;;  %v7779_v5 = vadd.f32 1e-05, %v7747_v2  ;;  %v7876_v37 = vmul.f32 %v16016_v31, %v7837_v60  ;;  %9312 = vmatpush3.msra.mxu1 %v8204_v33  ;;  %v7946_v38 = vmul.f32 %v16038_v62, %v16038_v62 }
 0x5a3   : > { %v9838_v6 = vpop.eup %9837  ;;  %v7877_v13 = vmul.f32 %v16016_v31, %v7838_v18  ;;  %9313 = vmatprep.subr.mxu1 %v8203_v50 }
 0x5a4   : > { %v7778_v16 = vadd.f32 1e-05, %v7746_v55  ;;  %v9840_v32 = vpop.eup %9839  ;;  %v7839_v45 = vmul.f32 %v9838_v6, %v15849_v47  ;;  %9314 = vmatpush3.msra.mxu1 %v8203_v50  ;;  %v7979_v18 = vsel %vm3846_vm5, %v7946_v38, 0.0 }
 0x5a5   : > { %v7840_v20 = vmul.f32 %v9840_v32, %v15854_v17 }
 0x5a6   : > { %9843 = vrsqrt.f32 %v7778_v16  ;;  %v7677_v42 = vpop.xlane.xlu0 %7676  ;;  %v16050_v16 = vadd.f32 %v16025_v59, %v7876_v37 }
 0x5a7   : > { %v7749_v3 = vmul.f32 0.03125, %v7677_v42  ;;  %9845 = vrsqrt.f32 %v7779_v5  ;;  %v9842_v12 = vpop.eup %9841  ;;  %v16062_v42 = vadd.f32 %v16025_v59, %v7877_v13  ;;  %v7879_v60 = vmul.f32 %v16016_v31, %v7840_v20 }
 0x5a8   : > { %v7674_v7 = vpop.xlane.xlu1 %7673  ;;  %v7947_v5 = vmul.f32 %v16050_v16, %v16050_v16 }
 0x5a9   : > { %v7748_v29 = vmul.f32 0.03125, %v7674_v7  ;;  %v7781_v58 = vadd.f32 1e-05, %v7749_v3  ;;  %v7944_v7 = vmul.f32 %v16031_v9, %v16031_v9  ;;  %v7841_v3 = vmul.f32 %v9842_v12, %v15861_v15 }
 0x5aa   : > { %v7981_v13 = vsel %vm3846_vm5, %v7947_v5, 0.0  ;;  %v16080_v15 = vadd.f32 %v16025_v59, %v7879_v60 }
 0x5ab   : > { %v7780_v11 = vadd.f32 1e-05, %v7748_v29  ;;  %v8202_v29 = vld [vmem:[%s16579_s11 + $0x8] sm:$0xff]  ;;  %v7976_v56 = vsel %vm3846_vm5, %v7944_v7, 0.0  ;;  %v7880_v7 = vmul.f32 %v16016_v31, %v7841_v3 }
 0x5ac   : > { %v7683_v41 = vpop.xlane.xlu0 %7682  ;;  %9315 = vmatprep.subr.mxu1 %v8202_v29  ;;  %v7950_v38 = vmul.f32 %v16080_v15, %v16080_v15 }
 0x5ad   : > { %9847 = vrsqrt.f32 %v7780_v11  ;;  %v7751_v51 = vmul.f32 0.03125, %v7683_v41  ;;  %9316 = vmatpush3.msra.mxu1 %v8202_v29  ;;  %v7978_v41 = vadd.f32 %v7977_v10, %v7976_v56  ;;  %v16092_v56 = vadd.f32 %v16025_v59, %v7880_v7 }
 0x5ae   : > { %v7680_v14 = vpop.xlane.xlu1 %7679  ;;  %9849 = vrsqrt.f32 %v7781_v58 }
 0x5af   : > { %v7750_v53 = vmul.f32 0.03125, %v7680_v14  ;;  %v7783_v40 = vadd.f32 1e-05, %v7751_v51  ;;  %v7878_v14 = vmul.f32 %v16016_v31, %v7839_v45  ;;  %v7980_v50 = vadd.f32 %v7979_v18, %v7978_v41 }
 0x5b1   : > { %v7782_v55 = vadd.f32 1e-05, %v7750_v53  ;;  %v7948_v53 = vmul.f32 %v16062_v42, %v16062_v42 }
 0x5b3   : > { %9851 = vrsqrt.f32 %v7782_v55  ;;  %v9844_v17 = vpop.eup %9843  ;;  %v16077_v55 = vadd.f32 %v16025_v59, %v7878_v14  ;;  %v7983_v51 = vsel %vm3846_vm5, %v7948_v53, 0.0  ;;  %v7951_v53 = vmul.f32 %v16092_v56, %v16092_v56 }
 0x5b4   : > { %v7842_v6 = vmul.f32 %v9844_v17, %v15872_v35  ;;  %9853 = vrsqrt.f32 %v7783_v40  ;;  %v9846_v58 = vpop.eup %9845 }
 0x5b5   : > { %v7843_v29 = vmul.f32 %v9846_v58, %v15869_v23  ;;  %v7949_v30 = vmul.f32 %v16077_v55, %v16077_v55 }
 0x5b6   : > { %v7881_v45 = vmul.f32 %v16016_v31, %v7842_v6 }
 0x5b7   : > { %v7882_v60 = vmul.f32 %v16016_v31, %v7843_v29 }
 0x5b8   : > { %v16095_v5 = vadd.f32 %v16025_v59, %v7881_v45 }
 0x5b9   : > { %v7689_v47 = vpop.xlane.xlu0 %7688 }
 0x5ba   : > { %v7753_v36 = vmul.f32 0.03125, %v7689_v47  ;;  %v9848_v33 = vpop.eup %9847  ;;  %v7952_v41 = vmul.f32 %v16095_v5, %v16095_v5 }
 0x5bb   : > { %v7686_v46 = vpop.xlane.xlu1 %7685  ;;  %v7844_v47 = vmul.f32 %v9848_v33, %v15884_v57  ;;  %v9850_v40 = vpop.eup %9849  ;;  %v7987_v57 = vsel %vm3846_vm5, %v7950_v38, 0.0  ;;  %v16108_v33 = vadd.f32 %v16025_v59, %v7882_v60 }
 0x5bc   : > { %v7752_v2 = vmul.f32 0.03125, %v7686_v46  ;;  %v7785_v35 = vadd.f32 1e-05, %v7753_v36  ;;  %v7985_v36 = vsel %vm3846_vm5, %v7949_v30, 0.0 }
 0x5bd   : > { %v7883_v10 = vmul.f32 %v16016_v31, %v7844_v47  ;;  %v7953_v38 = vmul.f32 %v16108_v33, %v16108_v33 }
 0x5be   : > { %v7784_v11 = vadd.f32 1e-05, %v7752_v2  ;;  %v7982_v2 = vadd.f32 %v7981_v13, %v7980_v50 }
 0x5c0   : > { %9855 = vrsqrt.f32 %v7784_v11  ;;  %v7984_v17 = vadd.f32 %v7983_v51, %v7982_v2  ;;  %v9852_v14 = vpop.eup %9851  ;;  %v7989_v2 = vsel %vm3846_vm5, %v7951_v53, 0.0 }
 0x5c1   : > { %v7695_v46 = vpop.xlane.xlu0 %7694  ;;  %9857 = vrsqrt.f32 %v7785_v35  ;;  %v7846_v58 = vmul.f32 %v9852_v14, %v15896_v8  ;;  %v9854_v7 = vpop.eup %9853  ;;  %v16111_v35 = vadd.f32 %v16025_v59, %v7883_v10  ;;  %v7991_v8 = vsel %vm3846_vm5, %v7952_v41, 0.0 }
 0x5c2   : > { %v7755_v12 = vmul.f32 0.03125, %v7695_v46  ;;  %v7986_v6 = vadd.f32 %v7985_v36, %v7984_v17  ;;  %v7847_v14 = vmul.f32 %v9854_v7, %v15892_v1 }
 0x5c3   : > { %v7692_v37 = vpop.xlane.xlu1 %7691 }
 0x5c4   : > { %v7754_v32 = vmul.f32 0.03125, %v7692_v37  ;;  %v7787_v11 = vadd.f32 1e-05, %v7755_v12  ;;  %v7988_v46 = vadd.f32 %v7987_v57, %v7986_v6  ;;  %v7885_v12 = vmul.f32 %v16016_v31, %v7846_v58 }
 0x5c5   : > { %v7993_v6 = vsel %vm3846_vm5, %v7953_v38, 0.0 }
 0x5c6   : > { %v7786_v20 = vadd.f32 1e-05, %v7754_v32  ;;  %v7845_v32 = vmul.f32 %v9850_v40, %v15881_v25  ;;  %v7990_v47 = vadd.f32 %v7989_v2, %v7988_v46  ;;  %v16127_v10 = vadd.f32 %v16025_v59, %v7885_v12 }
 0x5c8   : > { %9859 = vrsqrt.f32 %v7786_v20  ;;  %v7884_v29 = vmul.f32 %v16016_v31, %v7845_v32  ;;  %v7956_v7 = vmul.f32 %v16127_v10, %v16127_v10 }
 0x5c9   : > { %9861 = vrsqrt.f32 %v7787_v11 }
 0x5ca   : > { %v7701_v23 = vpop.xlane.xlu0 %7700  ;;  %v16124_v57 = vadd.f32 %v16025_v59, %v7884_v29 }
 0x5cb   : > { %v7757_v37 = vmul.f32 0.03125, %v7701_v23  ;;  %v7954_v23 = vmul.f32 %v16111_v35, %v16111_v35 }
 0x5cc   : > { %v7698_v3 = vpop.xlane.xlu1 %7697 }
 0x5cd   : > { %v7756_v18 = vmul.f32 0.03125, %v7698_v3  ;;  %v9856_v20 = vpop.eup %9855  ;;  %v7789_v25 = vadd.f32 1e-05, %v7757_v37  ;;  %v7992_v3 = vadd.f32 %v7991_v8, %v7990_v47  ;;  %v7995_v1 = vsel %vm3846_vm5, %v7954_v23, 0.0 }
 0x5ce   : > { %v7707_v51 = vpop.xlane.xlu0 %7706  ;;  %v7848_v60 = vmul.f32 %v9856_v20, %v15908_v54  ;;  %v9858_v36 = vpop.eup %9857  ;;  %v7886_v54 = vmul.f32 %v16016_v31, %v7847_v14 }
 0x5cf   : > { %v7788_v13 = vadd.f32 1e-05, %v7756_v18  ;;  %v7759_v17 = vmul.f32 0.03125, %v7707_v51  ;;  %v7994_v58 = vadd.f32 %v7993_v6, %v7992_v3 }
 0x5d0   : > { %v7704_v50 = vpop.xlane.xlu1 %7703  ;;  %v7887_v41 = vmul.f32 %v16016_v31, %v7848_v60  ;;  %v16140_v8 = vadd.f32 %v16025_v59, %v7886_v54 }
 0x5d1   : > { %9863 = vrsqrt.f32 %v7788_v13  ;;  %v7758_v45 = vmul.f32 0.03125, %v7704_v50  ;;  %v7791_v37 = vadd.f32 1e-05, %v7759_v17  ;;  %v7849_v13 = vmul.f32 %v9858_v36, %v15905_v21 }
 0x5d2   : > { %9865 = vrsqrt.f32 %v7789_v25  ;;  %v7713_v18 = vpop.xlane.xlu0 %7712  ;;  %v7955_v50 = vmul.f32 %v16124_v57, %v16124_v57  ;;  %v7996_v20 = vadd.f32 %v7995_v1, %v7994_v58  ;;  %v16143_v29 = vadd.f32 %v16025_v59, %v7887_v41 }
 0x5d3   : > { %v7790_v30 = vadd.f32 1e-05, %v7758_v45  ;;  %v7761_v46 = vmul.f32 0.03125, %v7713_v18  ;;  %v7957_v60 = vmul.f32 %v16140_v8, %v16140_v8 }
 0x5d4   : > { %v7710_v40 = vpop.xlane.xlu1 %7709  ;;  %v7997_v47 = vsel %vm3846_vm5, %v7955_v50, 0.0 }
 0x5d5   : > { %v7760_v11 = vmul.f32 0.03125, %v7710_v40  ;;  %9867 = vrsqrt.f32 %v7790_v30  ;;  %v9860_v53 = vpop.eup %9859  ;;  %v7888_v30 = vmul.f32 %v16016_v31, %v7849_v13  ;;  %v7793_v38 = vadd.f32 1e-05, %v7761_v46 }
 0x5d6   : > { %v7850_v51 = vmul.f32 %v9860_v53, %v15920_v34  ;;  %9869 = vrsqrt.f32 %v7791_v37  ;;  %v9862_v25 = vpop.eup %9861  ;;  %v7999_v34 = vsel %vm3846_vm5, %v7956_v7, 0.0  ;;  %v7998_v23 = vadd.f32 %v7997_v47, %v7996_v20 }
 0x5d7   : > { %v7792_v32 = vadd.f32 1e-05, %v7760_v11  ;;  %v7958_v11 = vmul.f32 %v16143_v29, %v16143_v29  ;;  %v7851_v3 = vmul.f32 %v9862_v25, %v15917_v22  ;;  %v16156_v53 = vadd.f32 %v16025_v59, %v7888_v30 }
 0x5d8   : > { %v7719_v21 = vpop.xlane.xlu0 %7718  ;;  %v7889_v17 = vmul.f32 %v16016_v31, %v7850_v51  ;;  %v8000_v18 = vadd.f32 %v7999_v34, %v7998_v23  ;;  %v8001_v13 = vsel %vm3846_vm5, %v7957_v60, 0.0 }
 0x5d9   : > { %9871 = vrsqrt.f32 %v7792_v32  ;;  %v7763_v14 = vmul.f32 0.03125, %v7719_v21  ;;  %v8003_v22 = vsel %vm3846_vm5, %v7958_v11, 0.0  ;;  %v7959_v50 = vmul.f32 %v16156_v53, %v16156_v53 }
 0x5da   : > { %v7716_v45 = vpop.xlane.xlu1 %7715  ;;  %9873 = vrsqrt.f32 %v7793_v38  ;;  %v16159_v1 = vadd.f32 %v16025_v59, %v7889_v17  ;;  %v8002_v7 = vadd.f32 %v8001_v13, %v8000_v18 }
 0x5db   : > { %v7762_v2 = vmul.f32 0.03125, %v7716_v45  ;;  %v7795_v41 = vadd.f32 1e-05, %v7763_v14  ;;  %v8005_v34 = vsel %vm3846_vm5, %v7959_v50, 0.0 }
 0x5dc   : > { %v7960_v45 = vmul.f32 %v16159_v1, %v16159_v1  ;;  %v8004_v21 = vadd.f32 %v8003_v22, %v8002_v7 }
 0x5dd   : > { %v7794_v40 = vadd.f32 1e-05, %v7762_v2 }
 0x5de   : > { %v9864_v12 = vpop.eup %9863  ;;  %v8007_v17 = vsel %vm3846_vm5, %v7960_v45, 0.0  ;;  %v8006_v23 = vadd.f32 %v8005_v34, %v8004_v21 }
 0x5df   : > { %v7852_v36 = vmul.f32 %v9864_v12, %v15932_v61  ;;  %v9866_v37 = vpop.eup %9865  ;;  %9875 = vrsqrt.f32 %v7794_v40  ;;  %v7890_v61 = vmul.f32 %v16016_v31, %v7851_v3 }
 0x5e0   : > { %v7725_v32 = vpop.xlane.xlu0 %7724  ;;  %v7853_v20 = vmul.f32 %v9866_v37, %v15929_v19  ;;  %9877 = vrsqrt.f32 %v7795_v41 }
 0x5e1   : > { %v7891_v46 = vmul.f32 %v16016_v31, %v7852_v36  ;;  %v7765_v25 = vmul.f32 0.03125, %v7725_v32  ;;  %v16172_v30 = vadd.f32 %v16025_v59, %v7890_v61  ;;  %v8008_v36 = vadd.f32 %v8007_v17, %v8006_v23 }
 0x5e2   : > { %v7722_v6 = vpop.xlane.xlu1 %7721  ;;  %v9868_v54 = vpop.eup %9867  ;;  %v7892_v19 = vmul.f32 %v16016_v31, %v7853_v20 }
 0x5e3   : > { %v7764_v58 = vmul.f32 0.03125, %v7722_v6  ;;  %v7854_v2 = vmul.f32 %v9868_v54, %v15944_v48  ;;  %v9870_v12 = vpop.eup %9869  ;;  %v16175_v38 = vadd.f32 %v16025_v59, %v7891_v46  ;;  %v7797_v40 = vadd.f32 1e-05, %v7765_v25 }
 0x5e4   : > { %v7855_v14 = vmul.f32 %v9870_v12, %v15937_v26  ;;  %v7961_v60 = vmul.f32 %v16172_v30, %v16172_v30  ;;  %v16188_v6 = vadd.f32 %v16025_v59, %v7892_v19 }
 0x5e5   : > { %v7796_v51 = vadd.f32 1e-05, %v7764_v58  ;;  %v7893_v48 = vmul.f32 %v16016_v31, %v7854_v2  ;;  %v7962_v11 = vmul.f32 %v16175_v38, %v16175_v38 }
 0x5e6   : > { %v9872_v47 = vpop.eup %9871  ;;  %v7894_v26 = vmul.f32 %v16016_v31, %v7855_v14  ;;  %v8009_v58 = vsel %vm3846_vm5, %v7961_v60, 0.0  ;;  %v7963_v7 = vmul.f32 %v16188_v6, %v16188_v6 }
 0x5e7   : > { %9879 = vrsqrt.f32 %v7796_v51  ;;  %v7856_v3 = vmul.f32 %v9872_v47, %v15956_v63  ;;  %v9874_v18 = vpop.eup %9873  ;;  %v16191_v37 = vadd.f32 %v16025_v59, %v7893_v48  ;;  %v8011_v13 = vsel %vm3846_vm5, %v7962_v11, 0.0 }
 0x5e8   : > { %9881 = vrsqrt.f32 %v7797_v40  ;;  %v8010_v61 = vadd.f32 %v8009_v58, %v8008_v36  ;;  %v7857_v46 = vmul.f32 %v9874_v18, %v15949_v27  ;;  %v16204_v25 = vadd.f32 %v16025_v59, %v7894_v26 }
 0x5e9   : > { %v7895_v63 = vmul.f32 %v16016_v31, %v7856_v3  ;;  %v7964_v51 = vmul.f32 %v16191_v37, %v16191_v37  ;;  %v8013_v17 = vsel %vm3846_vm5, %v7963_v7, 0.0 }
 0x5ea   : > { %v8012_v2 = vadd.f32 %v8011_v13, %v8010_v61  ;;  %v7896_v34 = vmul.f32 %v16016_v31, %v7857_v46  ;;  %v7965_v48 = vmul.f32 %v16204_v25, %v16204_v25 }
 0x5eb   : > { %v16207_v12 = vadd.f32 %v16025_v59, %v7895_v63  ;;  %v8015_v19 = vsel %vm3846_vm5, %v7964_v51, 0.0 }
 0x5ec   : > { %v9876_v41 = vpop.eup %9875  ;;  %v8014_v40 = vadd.f32 %v8013_v17, %v8012_v2  ;;  %v16220_v3 = vadd.f32 %v16025_v59, %v7896_v34  ;;  %v8017_v26 = vsel %vm3846_vm5, %v7965_v48, 0.0 }
 0x5ed   : > { %v7858_v45 = vmul.f32 %v9876_v41, %v15968_v24  ;;  %v9878_v21 = vpop.eup %9877  ;;  %v7966_v14 = vmul.f32 %v16207_v12, %v16207_v12 }
 0x5ee   : > { %v7859_v23 = vmul.f32 %v9878_v21, %v15965_v39  ;;  %v8016_v11 = vadd.f32 %v8015_v19, %v8014_v40 }
 0x5ef   : > { %v7731_v54 = vpop.xlane.xlu0 %7730  ;;  %v7897_v24 = vmul.f32 %v16016_v31, %v7858_v45  ;;  %v8019_v58 = vsel %vm3846_vm5, %v7966_v14, 0.0 }
 0x5f0   : > { %v7767_v32 = vmul.f32 0.03125, %v7731_v54  ;;  %v8018_v61 = vadd.f32 %v8017_v26, %v8016_v11 }
 0x5f1   : > { %v7728_v22 = vpop.xlane.xlu1 %7727  ;;  %v16223_v18 = vadd.f32 %v16025_v59, %v7897_v24 }
 0x5f2   : > { %v7799_v50 = vadd.f32 1e-05, %v7767_v32  ;;  %v7766_v20 = vmul.f32 0.03125, %v7728_v22  ;;  %v7898_v32 = vmul.f32 %v16016_v31, %v7859_v23  ;;  %v7967_v22 = vmul.f32 %v16220_v3, %v16220_v3 }
 0x5f3   : > { %v7968_v46 = vmul.f32 %v16223_v18, %v16223_v18  ;;  %v8020_v51 = vadd.f32 %v8019_v58, %v8018_v61 }
 0x5f4   : > { %9883 = vrsqrt.f32 %v7799_v50  ;;  %v7798_v27 = vadd.f32 1e-05, %v7766_v20  ;;  %v9880_v47 = vpop.eup %9879  ;;  %v16235_v45 = vadd.f32 %v16025_v59, %v7898_v32  ;;  %v8021_v21 = vsel %vm3846_vm5, %v7967_v22, 0.0 }
 0x5f5   : > { %v7860_v60 = vmul.f32 %v9880_v47, %v15980_v52  ;;  %v9882_v41 = vpop.eup %9881  ;;  %v8022_v17 = vadd.f32 %v8021_v21, %v8020_v51 }
 0x5f6   : > { %9885 = vrsqrt.f32 %v7798_v27  ;;  %v7861_v50 = vmul.f32 %v9882_v41, %v15977_v49  ;;  %v8023_v27 = vsel %vm3846_vm5, %v7968_v46, 0.0  ;;  %v7969_v49 = vmul.f32 %v16235_v45, %v16235_v45 }
 0x5f7   : > { %v7899_v13 = vmul.f32 %v16016_v31, %v7860_v60  ;;  %v8024_v40 = vadd.f32 %v8023_v27, %v8022_v17 }
 0x5f8   : > { %v7900_v47 = vmul.f32 %v16016_v31, %v7861_v50  ;;  %v8025_v60 = vsel %vm3846_vm5, %v7969_v49, 0.0 }
 0x5f9   : > { %v16238_v20 = vadd.f32 %v16025_v59, %v7899_v13  ;;  %v8026_v41 = vadd.f32 %v8025_v60, %v8024_v40 }
 0x5fa   : > { %v7737_v36 = vpop.xlane.xlu0 %7736  ;;  %v16250_v23 = vadd.f32 %v16025_v59, %v7900_v47 }
 0x5fb   : > { %v7769_v54 = vmul.f32 0.03125, %v7737_v36  ;;  %v7970_v19 = vmul.f32 %v16238_v20, %v16238_v20 }
 0x5fc   : > { %v7734_v39 = vpop.xlane.xlu1 %7733 }
 0x5fd   : > { %v7801_v52 = vadd.f32 1e-05, %v7769_v54  ;;  %v7768_v63 = vmul.f32 0.03125, %v7734_v39  ;;  %v8027_v11 = vsel %vm3846_vm5, %v7970_v19, 0.0 }
 0x5fe   : > { %v8028_v32 = vadd.f32 %v8027_v11, %v8026_v41 }
 0x5ff   : > { %9887 = vrsqrt.f32 %v7801_v52  ;;  %v7800_v7 = vadd.f32 1e-05, %v7768_v63 }
 0x601   : > { %9889 = vrsqrt.f32 %v7800_v7  ;;  %v9884_v2 = vpop.eup %9883 }
 0x602   : > { %v7863_v24 = vmul.f32 %v9884_v2, %v15989_v4  ;;  %v7971_v4 = vmul.f32 %v16250_v23, %v16250_v23 }
 0x603   : > { %v9886_v34 = vpop.eup %9885 }
 0x604   : > { %v7862_v48 = vmul.f32 %v9886_v34, %v15992_v43  ;;  %v7902_v36 = vmul.f32 %v16016_v31, %v7863_v24  ;;  %v8029_v52 = vsel %vm3846_vm5, %v7971_v4, 0.0 }
 0x605   : > { %v8030_v46 = vadd.f32 %v8029_v52, %v8028_v32 }
 0x606   : > { %v7901_v14 = vmul.f32 %v16016_v31, %v7862_v48  ;;  %v16264_v39 = vadd.f32 %v16025_v59, %v7902_v36 }
 0x608   : > { %v16257_v54 = vadd.f32 %v16025_v59, %v7901_v14  ;;  %v7973_v50 = vmul.f32 %v16264_v39, %v16264_v39 }
 0x60a   : > { %v7972_v43 = vmul.f32 %v16257_v54, %v16257_v54  ;;  %v8033_v21 = vsel %vm3846_vm5, %v7973_v50, 0.0 }
 0x60c   : > { %v9888_v26 = vpop.eup %9887  ;;  %v8031_v63 = vsel %vm3846_vm5, %v7972_v43, 0.0 }
 0x60d   : > { %v7865_v58 = vmul.f32 %v9888_v26, %v16001_v44  ;;  %v8032_v2 = vadd.f32 %v8031_v63, %v8030_v46  ;;  %v8201_v26 = vld [vmem:[%s16579_s11] sm:$0xff] }
 0x60e   : > { %v9890_v13 = vpop.eup %9889  ;;  %9317 = vmatprep.subr.mxu1 %v8201_v26 }
 0x60f   : > { %v7904_v22 = vmul.f32 %v16016_v31, %v7865_v58  ;;  %v7864_v61 = vmul.f32 %v9890_v13, %v16004_v0  ;;  %v8034_v47 = vadd.f32 %v8033_v21, %v8032_v2  ;;  %9318 = vmatpush3.msra.mxu1 %v8201_v26  ;;  %v16309_v2 = vld [vmem:[%s16578_s10] ss:$0 sm:$0xff] }
 0x611   : > { %v16274_v7 = vadd.f32 %v16025_v59, %v7904_v22  ;;  %v7903_v51 = vmul.f32 %v16016_v31, %v7864_v61  ;;  %v16296_v22 = vld [vmem:[%s16577_s9] ss:$0 sm:$0xff] }
 0x613   : > { %v16278_v44 = vadd.f32 %v16025_v59, %v7903_v51  ;;  %v7975_v27 = vmul.f32 %v16274_v7, %v16274_v7 }
 0x615   : > { %v7974_v0 = vmul.f32 %v16278_v44, %v16278_v44  ;;  %v8037_v49 = vsel %vm3846_vm5, %v7975_v27, 0.0 }
 0x617   : > { %v8035_v34 = vsel %vm3846_vm5, %v7974_v0, 0.0 }
 0x618   : > { %v8036_v17 = vadd.f32 %v8035_v34, %v8034_v47 }
 0x61a   : > { %v8038_v19 = vadd.f32 %v8037_v49, %v8036_v17 }
 0x61c   : > { %v8039_v31 = vrot.slane %v8038_v19, 4 }
 0x61e   : > { %v8040_v24 = vadd.f32 %v8039_v31, %v8038_v19 }
 0x620   : > { %v8041_v48 = vrot.slane %v8040_v24, 2 }
 0x622   : > { %v8042_v59 = vadd.f32 %v8041_v48, %v8040_v24 }
 0x624   : > { %v8043_v40 = vrot.slane %v8042_v59, 1 }
 0x626   : > { %v8044_v14 = vadd.f32 %v8043_v40, %v8042_v59 }
 0x628   : > { %9891 = vrsqrt.f32 %v8044_v14  ;;  %vm8047_vm6 = vcmp.eq.f32.partialorder %v8044_v14, inf  ;;  %v8050_v36 = vand.u32 2147483648, %v8044_v14  ;;  %vm8049_vm7 = vcmp.eq.f32.partialorder %v8044_v14, 0.0 }
 0x635   : > { %v9892_v60 = vpop.eup %9891 }
 0x636   : > { %v8046_v11 = vmul.f32 %v9892_v60, %v8044_v14 }
 0x638   : > { %v8048_v41 = vsel %vm8047_vm6, %v8044_v14, %v8046_v11 }
 0x639   : > { %v8051_v4 = vsel %vm8049_vm7, %v8050_v36, %v8048_v41 }
 0x63a   : > { %v8052_v43 = vsel %vm3846_vm5, %v8051_v4, 0.0 }
 0x63b   : > { %8053 = vadd.xlane.f32.xlu1 %v8052_v43 }
 0x6c4   : > { %v8054_v32 = vpop.xlane.xlu1 %8053 }
 0x6c5   : > { %v8055_v58 = vmul.f32 0.03125, %v8054_v32 }
 0x6c7   : > { %v8056_v13 = vadd.f32 1e-06, %v8055_v58 }
 0x6c9   : > { %9893 = vrcp.f32 %v8056_v13 }
 0x6d6   : > { %v9894_v52 = vpop.eup %9893 }
 0x6d7   : > { %v16291_v63 = vmul.f32 %v9894_v52, %v8051_v4 }
 0x6d9   : > { %v8061_v61 = vmul.f32 %v16291_v63, %v16035_v28  ;;  %v8060_v46 = vmul.f32 %v16291_v63, %v16031_v9  ;;  %v8062_v50 = vmul.f32 %v16291_v63, %v16038_v62  ;;  %v8063_v51 = vmul.f32 %v16291_v63, %v16050_v16 }
 0x6da   : > { %v8064_v21 = vmul.f32 %v16291_v63, %v16062_v42  ;;  %v8065_v17 = vmul.f32 %v16291_v63, %v16077_v55  ;;  %v8066_v49 = vmul.f32 %v16291_v63, %v16080_v15  ;;  %v8067_v11 = vmul.f32 %v16291_v63, %v16092_v56 }
 0x6db   : > { %v8099_v27 = vmul.f32 %v16296_v22, %v8061_v61  ;;  %v8098_v0 = vmul.f32 %v16296_v22, %v8060_v46  ;;  %v8100_v47 = vmul.f32 %v16296_v22, %v8062_v50  ;;  %v8101_v34 = vmul.f32 %v16296_v22, %v8063_v51 }
 0x6dc   : > { %v8102_v48 = vmul.f32 %v16296_v22, %v8064_v21  ;;  %v8103_v60 = vmul.f32 %v16296_v22, %v8065_v17  ;;  %v8104_v4 = vmul.f32 %v16296_v22, %v8066_v49  ;;  %v8105_v26 = vmul.f32 %v16296_v22, %v8067_v11 }
 0x6dd   : > { %v8137_v19 = vadd.f32 %v16309_v2, %v8098_v0  ;;  %v8138_v31 = vadd.f32 %v16309_v2, %v8099_v27  ;;  %v8139_v24 = vadd.f32 %v16309_v2, %v8100_v47  ;;  %v8140_v14 = vadd.f32 %v16309_v2, %v8101_v34 }
 0x6de   : > { %v8141_v41 = vadd.f32 %v16309_v2, %v8102_v48  ;;  %v8142_v43 = vadd.f32 %v16309_v2, %v8103_v60  ;;  %v8143_v58 = vadd.f32 %v16309_v2, %v8104_v4  ;;  %v8070_v52 = vmul.f32 %v16291_v63, %v16111_v35 }
 0x6df   : > { %v8169_v59 = vadd.f32 %v8137_v19, %v16031_v9  ;;  %v8170_v40 = vadd.f32 %v8138_v31, %v16035_v28  ;;  %v8171_v36 = vadd.f32 %v8139_v24, %v16038_v62  ;;  %v8068_v9 = vmul.f32 %v16291_v63, %v16095_v5 }
 0x6e0   : > { %v8172_v28 = vadd.f32 %v8140_v14, %v16050_v16  ;;  %v8069_v62 = vmul.f32 %v16291_v63, %v16108_v33  ;;  %v8173_v32 = vadd.f32 %v8141_v41, %v16062_v42  ;;  %v8174_v16 = vadd.f32 %v8142_v43, %v16077_v55 }
 0x6e1   : > { %9319 = vmatprep.mubr.msk.f32.mxu1 %vm3846_vm5, %v8169_v59  ;;  %v8106_v13 = vmul.f32 %v16296_v22, %v8068_v9  ;;  %v8144_v61 = vadd.f32 %v16309_v2, %v8105_v26  ;;  %v8071_v42 = vmul.f32 %v16291_v63, %v16124_v57  ;;  %v8175_v50 = vadd.f32 %v8143_v58, %v16080_v15 }
 0x6e2   : > { %9320 = vmatmul.mubr.msk.f32.vlgmr.msra.gmra.mxu1 %vm3846_vm5, %v8170_v40  ;;  %v8107_v46 = vmul.f32 %v16296_v22, %v8069_v62  ;;  %v8108_v21 = vmul.f32 %v16296_v22, %v8070_v52  ;;  %v8072_v27 = vmul.f32 %v16291_v63, %v16127_v10  ;;  %v8073_v15 = vmul.f32 %v16291_v63, %v16140_v8 }
 0x6e3   : > { %9322 = vmatprep.mubr.msk.f32.mxu1 %vm3846_vm5, %v8171_v36  ;;  %v8145_v51 = vadd.f32 %v16309_v2, %v8106_v13  ;;  %v8176_v55 = vadd.f32 %v8144_v61, %v16092_v56  ;;  %v8109_v47 = vmul.f32 %v16296_v22, %v8071_v42  ;;  %v8074_v19 = vmul.f32 %v16291_v63, %v16143_v29 }
 0x6e4   : > { %v8146_v0 = vadd.f32 %v16309_v2, %v8107_v46  ;;  %v8147_v17 = vadd.f32 %v16309_v2, %v8108_v21  ;;  %v8110_v49 = vmul.f32 %v16296_v22, %v8072_v27  ;;  %v8111_v24 = vmul.f32 %v16296_v22, %v8073_v15 }
 0x6e5   : > { %v8177_v34 = vadd.f32 %v8145_v51, %v16095_v5  ;;  %v8148_v31 = vadd.f32 %v16309_v2, %v8109_v47  ;;  %v8075_v5 = vmul.f32 %v16291_v63, %v16156_v53  ;;  %v8112_v40 = vmul.f32 %v16296_v22, %v8074_v19 }
 0x6e6   : > { %9323 = vmatmul.mubr.msk.f32.gmra.mxu1 %vm3846_vm5, %v8172_v28  ;;  %v8178_v56 = vadd.f32 %v8146_v0, %v16108_v33  ;;  %v8179_v48 = vadd.f32 %v8147_v17, %v16111_v35  ;;  %v8149_v59 = vadd.f32 %v16309_v2, %v8110_v49  ;;  %v8076_v14 = vmul.f32 %v16291_v63, %v16159_v1 }
 0x6e7   : > { %9325 = vmatprep.mubr.msk.f32.mxu1 %vm3846_vm5, %v8173_v32  ;;  %v8180_v33 = vadd.f32 %v8148_v31, %v16124_v57  ;;  %v8150_v60 = vadd.f32 %v16309_v2, %v8111_v24  ;;  %v8113_v11 = vmul.f32 %v16296_v22, %v8075_v5  ;;  %v8077_v35 = vmul.f32 %v16291_v63, %v16172_v30 }
 0x6e8   : > { %v8181_v36 = vadd.f32 %v8149_v59, %v16127_v10  ;;  %v8151_v41 = vadd.f32 %v16309_v2, %v8112_v40  ;;  %v8114_v4 = vmul.f32 %v16296_v22, %v8076_v14  ;;  %v8078_v9 = vmul.f32 %v16291_v63, %v16175_v38 }
 0x6e9   : > { %v8182_v57 = vadd.f32 %v8150_v60, %v16140_v8  ;;  %v8152_v28 = vadd.f32 %v16309_v2, %v8113_v11  ;;  %v8115_v43 = vmul.f32 %v16296_v22, %v8077_v35  ;;  %v8079_v10 = vmul.f32 %v16291_v63, %v16188_v6 }
 0x6ea   : > { %9326 = vmatmul.mubr.msk.f32.gmra.mxu1 %vm3846_vm5, %v8174_v16  ;;  %v8183_v26 = vadd.f32 %v8151_v41, %v16143_v29  ;;  %v8153_v62 = vadd.f32 %v16309_v2, %v8114_v4  ;;  %v8116_v32 = vmul.f32 %v16296_v22, %v8078_v9  ;;  %v8080_v58 = vmul.f32 %v16291_v63, %v16191_v37 }
 0x6eb   : > { %9328 = vmatprep.mubr.msk.f32.mxu1 %vm3846_vm5, %v8175_v50  ;;  %v8184_v8 = vadd.f32 %v8152_v28, %v16156_v53  ;;  %v8154_v13 = vadd.f32 %v16309_v2, %v8115_v43  ;;  %v8117_v52 = vmul.f32 %v16296_v22, %v8079_v10  ;;  %v8081_v29 = vmul.f32 %v16291_v63, %v16204_v25 }
 0x6ec   : > { %v8185_v16 = vadd.f32 %v8153_v62, %v16159_v1  ;;  %v8155_v61 = vadd.f32 %v16309_v2, %v8116_v32  ;;  %v8118_v46 = vmul.f32 %v16296_v22, %v8080_v58  ;;  %v8082_v42 = vmul.f32 %v16291_v63, %v16207_v12 }
 0x6ed   : > { %v8186_v53 = vadd.f32 %v8154_v13, %v16172_v30  ;;  %v8156_v50 = vadd.f32 %v16309_v2, %v8117_v52  ;;  %v8119_v51 = vmul.f32 %v16296_v22, %v8081_v29  ;;  %v8083_v1 = vmul.f32 %v16291_v63, %v16220_v3 }
 0x6ee   : > { %9329 = vmatmul.mubr.msk.f32.gmra.mxu1 %vm3846_vm5, %v8176_v55  ;;  %v8187_v21 = vadd.f32 %v8155_v61, %v16175_v38  ;;  %v8157_v27 = vadd.f32 %v16309_v2, %v8118_v46  ;;  %v8120_v55 = vmul.f32 %v16296_v22, %v8082_v42  ;;  %v8084_v0 = vmul.f32 %v16291_v63, %v16223_v18 }
 0x6ef   : > { %9331 = vmatprep.mubr.msk.f32.mxu1 %vm3846_vm5, %v8177_v34  ;;  %v8188_v30 = vadd.f32 %v8156_v50, %v16188_v6  ;;  %v8158_v47 = vadd.f32 %v16309_v2, %v8119_v51  ;;  %v8121_v15 = vmul.f32 %v16296_v22, %v8083_v1  ;;  %v8085_v38 = vmul.f32 %v16291_v63, %v16235_v45 }
 0x6f0   : > { %v8189_v34 = vadd.f32 %v8157_v27, %v16191_v37  ;;  %v8159_v17 = vadd.f32 %v16309_v2, %v8120_v55  ;;  %v8122_v49 = vmul.f32 %v16296_v22, %v8084_v0  ;;  %v8086_v19 = vmul.f32 %v16291_v63, %v16238_v20 }
 0x6f1   : > { %v8190_v6 = vadd.f32 %v8158_v47, %v16204_v25  ;;  %v8123_v31 = vmul.f32 %v16296_v22, %v8085_v38  ;;  %v8087_v37 = vmul.f32 %v16291_v63, %v16250_v23  ;;  %v8088_v59 = vmul.f32 %v16291_v63, %v16257_v54 }
 0x6f2   : > { %9332 = vmatmul.mubr.msk.f32.gmra.mxu1 %vm3846_vm5, %v8178_v56  ;;  %v8160_v56 = vadd.f32 %v16309_v2, %v8121_v15  ;;  %v8191_v24 = vadd.f32 %v8159_v17, %v16207_v12  ;;  %v8161_v5 = vadd.f32 %v16309_v2, %v8122_v49  ;;  %v8089_v12 = vmul.f32 %v16291_v63, %v16264_v39 }
 0x6f3   : > { %9334 = vmatprep.mubr.msk.f32.mxu1 %vm3846_vm5, %v8179_v48  ;;  %v8124_v48 = vmul.f32 %v16296_v22, %v8086_v19  ;;  %v8162_v40 = vadd.f32 %v16309_v2, %v8123_v31  ;;  %v8125_v14 = vmul.f32 %v16296_v22, %v8087_v37  ;;  %v8126_v11 = vmul.f32 %v16296_v22, %v8088_v59 }
 0x6f4   : > { %v8192_v25 = vadd.f32 %v8160_v56, %v16220_v3  ;;  %v8090_v35 = vmul.f32 %v16291_v63, %v16278_v44  ;;  %v8127_v41 = vmul.f32 %v16296_v22, %v8089_v12 }
 0x6f5   : > { %v8163_v60 = vadd.f32 %v16309_v2, %v8124_v48  ;;  %v8194_v3 = vadd.f32 %v8162_v40, %v16235_v45  ;;  %v8165_v9 = vadd.f32 %v16309_v2, %v8126_v11 }
 0x6f6   : > { %9335 = vmatmul.mubr.msk.f32.gmra.mxu1 %vm3846_vm5, %v8180_v33  ;;  %v8193_v33 = vadd.f32 %v8161_v5, %v16223_v18  ;;  %v8091_v18 = vmul.f32 %v16291_v63, %v16274_v7  ;;  %v8166_v28 = vadd.f32 %v16309_v2, %v8127_v41 }
 0x6f7   : > { %9337 = vmatprep.mubr.msk.f32.mxu1 %vm3846_vm5, %v8181_v36  ;;  %v8164_v36 = vadd.f32 %v16309_v2, %v8125_v14  ;;  %v8195_v4 = vadd.f32 %v8163_v60, %v16238_v20  ;;  %v8197_v10 = vadd.f32 %v8165_v9, %v16257_v54 }
 0x6f8   : > { %v8129_v43 = vmul.f32 %v16296_v22, %v8091_v18  ;;  %v8198_v20 = vadd.f32 %v8166_v28, %v16264_v39 }
 0x6f9   : > { %v8196_v45 = vadd.f32 %v8164_v36, %v16250_v23 }
 0x6fa   : > { %9338 = vmatmul.mubr.msk.f32.gmra.mxu1 %vm3846_vm5, %v8182_v57  ;;  %v8128_v57 = vmul.f32 %v16296_v22, %v8090_v35 }
 0x6fb   : > { %9340 = vmatprep.mubr.msk.f32.mxu1 %vm3846_vm5, %v8183_v26  ;;  %v8168_v26 = vadd.f32 %v16309_v2, %v8129_v43 }
 0x6fc   : > { %v8167_v63 = vadd.f32 %v16309_v2, %v8128_v57 }
 0x6fd   : > { %v8200_v23 = vadd.f32 %v8168_v26, %v16274_v7 }
 0x6fe   : > { %9341 = vmatmul.mubr.msk.f32.gmra.mxu1 %vm3846_vm5, %v8184_v8  ;;  %v8199_v62 = vadd.f32 %v8167_v63, %v16278_v44 }
 0x6ff   : > { %9343 = vmatprep.mubr.msk.f32.mxu1 %vm3846_vm5, %v8185_v16 }
 0x702   : > { %9344 = vmatmul.mubr.msk.f32.gmra.mxu1 %vm3846_vm5, %v8186_v53 }
 0x703   : > { %9346 = vmatprep.mubr.msk.f32.mxu1 %vm3846_vm5, %v8187_v21 }
 0x706   : > { %9347 = vmatmul.mubr.msk.f32.gmra.mxu1 %vm3846_vm5, %v8188_v30 }
 0x707   : > { %9349 = vmatprep.mubr.msk.f32.mxu1 %vm3846_vm5, %v8189_v34 }
 0x70a   : > { %9350 = vmatmul.mubr.msk.f32.gmra.mxu1 %vm3846_vm5, %v8190_v6 }
 0x70b   : > { %9352 = vmatprep.mubr.msk.f32.mxu1 %vm3846_vm5, %v8191_v24 }
 0x70e   : > { %9353 = vmatmul.mubr.msk.f32.gmra.mxu1 %vm3846_vm5, %v8192_v25 }
 0x70f   : > { %9355 = vmatprep.mubr.msk.f32.mxu1 %vm3846_vm5, %v8193_v33 }
 0x712   : > { %9356 = vmatmul.mubr.msk.f32.gmra.mxu1 %vm3846_vm5, %v8194_v3 }
 0x713   : > { %9358 = vmatprep.mubr.msk.f32.mxu1 %vm3846_vm5, %v8195_v4 }
 0x716   : > { %9359 = vmatmul.mubr.msk.f32.gmra.mxu1 %vm3846_vm5, %v8196_v45 }
 0x717   : > { %9361 = vmatprep.mubr.msk.f32.mxu1 %vm3846_vm5, %v8197_v10 }
 0x71a   : > { %9362 = vmatmul.mubr.msk.f32.gmra.mxu1 %vm3846_vm5, %v8198_v20 }
 0x71b   : > { %9364 = vmatprep.mubr.msk.f32.mxu1 %vm3846_vm5, %v8199_v62 }
 0x71e   : > { %9365 = vmatmul.mubr.msk.f32.gmra.mxu1 %vm3846_vm5, %v8200_v23 }
 0x7a2   : > { %v9321_v54 = vpop.f32.mrf.mxu1 }
 0x7a3   : > { %8527 = vst.msk [vmem:[%s16499_s30 + $0x8] sm:$0xff] %vm1077_vm0, %v9321_v54 }
 0x7a4   : > { %v8367_v39 = vpop.f32.mrf.mxu1 }
 0x7a5   : > { %8526 = vst.msk [vmem:[%s16499_s30] sm:$0xff] %vm1077_vm0, %v8367_v39 }
 0x7a6   : > { %v9324_v7 = vpop.f32.mrf.mxu1 }
 0x7a7   : > { %8529 = vst.msk [vmem:[%s16499_s30 + $0x18] sm:$0xff] %vm1077_vm0, %v9324_v7 }
 0x7a8   : > { %v8377_v44 = vpop.f32.mrf.mxu1 }
 0x7a9   : > { %8528 = vst.msk [vmem:[%s16499_s30 + $0x10] sm:$0xff] %vm1077_vm0, %v8377_v44 }
 0x7aa   : > { %v9327_v22 = vpop.f32.mrf.mxu1 }
 0x7ab   : > { %8531 = vst.msk [vmem:[%s16499_s30 + $0x28] sm:$0xff] %vm1077_vm0, %v9327_v22 }
 0x7ac   : > { %v8387_v2 = vpop.f32.mrf.mxu1 }
 0x7ad   : > { %8530 = vst.msk [vmem:[%s16499_s30 + $0x20] sm:$0xff] %vm1077_vm0, %v8387_v2 }
 0x7ae   : > { %v9330_v32 = vpop.f32.mrf.mxu1 }
 0x7af   : > { %8533 = vst.msk [vmem:[%s16499_s30 + $0x38] sm:$0xff] %vm1077_vm0, %v9330_v32 }
 0x7b0   : > { %v8397_v58 = vpop.f32.mrf.mxu1 }
 0x7b1   : > { %8532 = vst.msk [vmem:[%s16499_s30 + $0x30] sm:$0xff] %vm1077_vm0, %v8397_v58 }
 0x7b2   : > { %v9333_v8 = vpop.f32.mrf.mxu1 }
 0x7b3   : > { %8535 = vst.msk [vmem:[%s16499_s30 + $0x48] sm:$0xff] %vm1077_vm0, %v9333_v8 }
 0x7b4   : > { %v8407_v13 = vpop.f32.mrf.mxu1 }
 0x7b5   : > { %8534 = vst.msk [vmem:[%s16499_s30 + $0x40] sm:$0xff] %vm1077_vm0, %v8407_v13 }
 0x7b6   : > { %v9336_v52 = vpop.f32.mrf.mxu1 }
 0x7b7   : > { %8537 = vst.msk [vmem:[%s16499_s30 + $0x58] sm:$0xff] %vm1077_vm0, %v9336_v52 }
 0x7b8   : > { %v8417_v29 = vpop.f32.mrf.mxu1 }
 0x7b9   : > { %8536 = vst.msk [vmem:[%s16499_s30 + $0x50] sm:$0xff] %vm1077_vm0, %v8417_v29 }
 0x7ba   : > { %v9339_v16 = vpop.f32.mrf.mxu1 }
 0x7bb   : > { %8539 = vst.msk [vmem:[%s16499_s30 + $0x68] sm:$0xff] %vm1077_vm0, %v9339_v16 }
 0x7bc   : > { %v8427_v61 = vpop.f32.mrf.mxu1 }
 0x7bd   : > { %8538 = vst.msk [vmem:[%s16499_s30 + $0x60] sm:$0xff] %vm1077_vm0, %v8427_v61 }
 0x7be   : > { %v9342_v46 = vpop.f32.mrf.mxu1 }
 0x7bf   : > { %8541 = vst.msk [vmem:[%s16499_s30 + $0x78] sm:$0xff] %vm1077_vm0, %v9342_v46 }
 0x7c0   : > { %v8437_v42 = vpop.f32.mrf.mxu1 }
 0x7c1   : > { %8540 = vst.msk [vmem:[%s16499_s30 + $0x70] sm:$0xff] %vm1077_vm0, %v8437_v42 }
 0x7c2   : > { %v9345_v53 = vpop.f32.mrf.mxu1 }
 0x7c3   : > { %8543 = vst.msk [vmem:[%s16499_s30 + $0x88] sm:$0xff] %vm1077_vm0, %v9345_v53 }
 0x7c4   : > { %v8447_v50 = vpop.f32.mrf.mxu1 }
 0x7c5   : > { %8542 = vst.msk [vmem:[%s16499_s30 + $0x80] sm:$0xff] %vm1077_vm0, %v8447_v50 }
 0x7c6   : > { %v9348_v51 = vpop.f32.mrf.mxu1 }
 0x7c7   : > { %8545 = vst.msk [vmem:[%s16499_s30 + $0x98] sm:$0xff] %vm1077_vm0, %v9348_v51 }
 0x7c8   : > { %v8457_v1 = vpop.f32.mrf.mxu1 }
 0x7c9   : > { %8544 = vst.msk [vmem:[%s16499_s30 + $0x90] sm:$0xff] %vm1077_vm0, %v8457_v1 }
 0x7ca   : > { %v9351_v21 = vpop.f32.mrf.mxu1 }
 0x7cb   : > { %8547 = vst.msk [vmem:[%s16499_s30 + $0xa8] sm:$0xff] %vm1077_vm0, %v9351_v21 }
 0x7cc   : > { %v8467_v27 = vpop.f32.mrf.mxu1 }
 0x7cd   : > { %8546 = vst.msk [vmem:[%s16499_s30 + $0xa0] sm:$0xff] %vm1077_vm0, %v8467_v27 }
 0x7ce   : > { %v9354_v55 = vpop.f32.mrf.mxu1 }
 0x7cf   : > { %8549 = vst.msk [vmem:[%s16499_s30 + $0xb8] sm:$0xff] %vm1077_vm0, %v9354_v55 }
 0x7d0   : > { %v8477_v0 = vpop.f32.mrf.mxu1 }
 0x7d1   : > { %8548 = vst.msk [vmem:[%s16499_s30 + $0xb0] sm:$0xff] %vm1077_vm0, %v8477_v0 }
 0x7d2   : > { %v9357_v30 = vpop.f32.mrf.mxu1 }
 0x7d3   : > { %8551 = vst.msk [vmem:[%s16499_s30 + $0xc8] sm:$0xff] %vm1077_vm0, %v9357_v30 }
 0x7d4   : > { %v8487_v47 = vpop.f32.mrf.mxu1 }
 0x7d5   : > { %8550 = vst.msk [vmem:[%s16499_s30 + $0xc0] sm:$0xff] %vm1077_vm0, %v8487_v47 }
 0x7d6   : > { %v9360_v15 = vpop.f32.mrf.mxu1 }
 0x7d7   : > { %8553 = vst.msk [vmem:[%s16499_s30 + $0xd8] sm:$0xff] %vm1077_vm0, %v9360_v15 }
 0x7d8   : > { %v8497_v38 = vpop.f32.mrf.mxu1 }
 0x7d9   : > { %8552 = vst.msk [vmem:[%s16499_s30 + $0xd0] sm:$0xff] %vm1077_vm0, %v8497_v38 }
 0x7da   : > { %v9363_v34 = vpop.f32.mrf.mxu1 }
 0x7db   : > { %8555 = vst.msk [vmem:[%s16499_s30 + $0xe8] sm:$0xff] %vm1077_vm0, %v9363_v34 }
 0x7dc   : > { %v8507_v17 = vpop.f32.mrf.mxu1 }
 0x7dd   : > { %8554 = vst.msk [vmem:[%s16499_s30 + $0xe0] sm:$0xff] %vm1077_vm0, %v8507_v17 }
 0x7de   : > { %v9366_v49 = vpop.f32.mrf.mxu1 }
 0x7df   : > { %8557 = vst.msk [vmem:[%s16499_s30 + $0xf8] sm:$0xff] %vm1077_vm0, %v9366_v49 }
 0x7e0   : > { %v8517_v19 = vpop.f32.mrf.mxu1 }
 0x7e1   : > { %8556 = vst.msk [vmem:[%s16499_s30 + $0xf0] sm:$0xff] %vm1077_vm0, %v8517_v19 }
 0x7e2 PF: > { %s22_s21 = sadd.s32 1, %s9939_s21  }
 0x7e3   : > { %p19_p4 = scmp.ge.s32.totalorder %s22_s21, 4  }
 0x7e5   :  { %21 = sbr.rel (!%p19_p4) target bundleno = 1 (0x1), region = 101 }

</bundles_post_ra>
